<compile_context>
chip_gen: v5e
topology: v5e:2x2
jax: 0.10.0
libtpu: 0.0.40
codegen_flags: <defaults>
</compile_context>

<pallas_src>
import jax
import jax.numpy as jnp
from jax.experimental import pallas as pl
from jax.experimental.pallas import tpu as pltpu

EPS = 1e-5


def conv_block_kernel(x_ref, w1_ref, g1_ref, b1_ref, w2_ref, g2_ref, b2_ref,
                      out_ref, xpad_ref, hpad_ref):
    # x_ref   : (N, H, W, Cin)        unpadded NHWC input
    # w1_ref  : (9*Cin, CP)           im2col conv1 weights (output channels padded to CP)
    # w2_ref  : (9*CP, CP)            im2col conv2 weights
    # g*/b*   : (1, CP)               BN gamma / beta (zero-padded)
    # out_ref : (N, H, W, CP)         lane-dense output (CP is a multiple of 128)
    # xpad_ref: (N, H+2, W+2, Cin)    scratch: spatially padded input
    # hpad_ref: (N, H+2, W+2, CP)     scratch: spatially padded intermediate
    N, H, W, Cin = x_ref.shape
    CP = w1_ref.shape[-1]
    M = N * H * W
    inv_m = 1.0 / M

    # ---- stage input into a zero-haloed padded scratch (SAME padding, pad=1) ----
    zrow = jnp.zeros((N, 1, W + 2, Cin), jnp.float32)
    zcol = jnp.zeros((N, H, 1, Cin), jnp.float32)
    xpad_ref[:, 0:1, :, :] = zrow
    xpad_ref[:, H + 1:H + 2, :, :] = zrow
    xpad_ref[:, 1:H + 1, 0:1, :] = zcol
    xpad_ref[:, 1:H + 1, W + 1:W + 2, :] = zcol
    xpad_ref[:, 1:H + 1, 1:W + 1, :] = x_ref[...]

    # ---- conv1: single im2col matmul, K = 9*Cin (accumulation stays on the MXU) ----
    taps1 = [xpad_ref[:, dy:dy + H, dx:dx + W, :]
             for dy in range(3) for dx in range(3)]
    col1 = jnp.concatenate(taps1, axis=-1).reshape(M, 9 * Cin)
    acc1 = jnp.dot(col1, w1_ref[...], preferred_element_type=jnp.float32)
    # conv bias omitted: training-mode BN removes the batch mean next, so it cancels.

    # ---- BN1 (single-pass batch stats) + ReLU, folded into one scale/shift pass ----
    s1 = jnp.sum(acc1, axis=0, keepdims=True)
    ss1 = jnp.sum(acc1 * acc1, axis=0, keepdims=True)
    mean1 = s1 * inv_m
    var1 = jnp.maximum(ss1 * inv_m - mean1 * mean1, 0.0)
    scale1 = jax.lax.rsqrt(var1 + EPS) * g1_ref[...]
    shift1 = b1_ref[...] - mean1 * scale1
    h = jnp.maximum(acc1 * scale1 + shift1, 0.0)          # (M, CP), padded chans stay 0

    # ---- stage intermediate: zero only the 1-pixel halo (no full memset) ----
    zrow2 = jnp.zeros((N, 1, W + 2, CP), jnp.float32)
    zcol2 = jnp.zeros((N, H, 1, CP), jnp.float32)
    hpad_ref[:, 0:1, :, :] = zrow2
    hpad_ref[:, H + 1:H + 2, :, :] = zrow2
    hpad_ref[:, 1:H + 1, 0:1, :] = zcol2
    hpad_ref[:, 1:H + 1, W + 1:W + 2, :] = zcol2
    hpad_ref[:, 1:H + 1, 1:W + 1, :] = h.reshape(N, H, W, CP)

    # ---- conv2: single im2col matmul, K = 9*CP (lane-aligned 128-wide taps) ----
    taps2 = [hpad_ref[:, dy:dy + H, dx:dx + W, :]
             for dy in range(3) for dx in range(3)]
    col2 = jnp.concatenate(taps2, axis=-1).reshape(M, 9 * CP)
    acc2 = jnp.dot(col2, w2_ref[...], preferred_element_type=jnp.float32)

    # ---- BN2 + ReLU ----
    s2 = jnp.sum(acc2, axis=0, keepdims=True)
    ss2 = jnp.sum(acc2 * acc2, axis=0, keepdims=True)
    mean2 = s2 * inv_m
    var2 = jnp.maximum(ss2 * inv_m - mean2 * mean2, 0.0)
    scale2 = jax.lax.rsqrt(var2 + EPS) * g2_ref[...]
    shift2 = b2_ref[...] - mean2 * scale2
    y = jnp.maximum(acc2 * scale2 + shift2, 0.0)

    # lane-dense store: minor dim CP is a multiple of 128
    out_ref[...] = y.reshape(N, H, W, CP).astype(out_ref.dtype)


def _vmem_limit_bytes():
    """Scoped VMEM request with headroom (don't ask for 100% of v7x's 64 MiB)."""
    try:
        cap = int(getattr(pltpu.get_tpu_info(), "vmem_capacity_bytes", 128 << 20))
    except Exception:
        cap = 128 << 20
    return max(32 << 20, min(100 << 20, (cap * 3) // 4))


def conv_block(x_nchw, params):
    """ConvBlock forward. x_nchw: (N, Cin, H, W) float32 -> (N, Cout, H, W)."""
    w1, b1, g1, be1, w2, b2, g2, be2 = params
    del b1, b2  # conv biases cancel under training-mode BN; kept only for the reference
    N, Cin, H, W = x_nchw.shape
    Cout = w1.shape[0]
    CP = ((Cout + 127) // 128) * 128   # pad output channels to a lane-dense width

    # NCHW -> NHWC (channels on the lane axis).  Spatial padding happens in-kernel.
    x = jnp.transpose(x_nchw, (0, 2, 3, 1)).astype(jnp.float32)

    # PyTorch OIHW -> im2col weights (kh*kw*Cin, CP); zero-pad the extra channels.
    w1k = jnp.transpose(w1, (2, 3, 1, 0)).astype(jnp.float32)            # (3,3,Cin,Cout)
    w1k = jnp.pad(w1k, ((0, 0), (0, 0), (0, 0), (0, CP - Cout))).reshape(9 * Cin, CP)
    w2k = jnp.transpose(w2, (2, 3, 1, 0)).astype(jnp.float32)            # (3,3,Cout,Cout)
    w2k = jnp.pad(w2k, ((0, 0), (0, 0), (0, CP - Cout), (0, CP - Cout))).reshape(9 * CP, CP)

    def pad_vec(v):
        return jnp.pad(v.astype(jnp.float32), (0, CP - Cout)).reshape(1, CP)

    g1k, be1k = pad_vec(g1), pad_vec(be1)
    g2k, be2k = pad_vec(g2), pad_vec(be2)

    vmem = pl.BlockSpec(memory_space=pltpu.MemorySpace.VMEM)
    out = pl.pallas_call(
        conv_block_kernel,
        out_shape=jax.ShapeDtypeStruct((N, H, W, CP), jnp.float32),
        in_specs=[vmem] * 7,
        out_specs=vmem,
        scratch_shapes=[pltpu.VMEM((N, H + 2, W + 2, Cin), jnp.float32),
                        pltpu.VMEM((N, H + 2, W + 2, CP), jnp.float32)],
        compiler_params=pltpu.CompilerParams(vmem_limit_bytes=_vmem_limit_bytes()),
    )(x, w1k, g1k, be1k, w2k, g2k, be2k)

    # drop channel padding, NHWC -> NCHW
    return jnp.transpose(out[..., :Cout], (0, 3, 1, 2))


def init_params(key, in_ch, out_ch):
    """Deterministic parameter init mirroring nn.Conv2d / nn.BatchNorm2d shapes."""
    k1, k2, k3, k4 = jax.random.split(key, 4)
    bound1 = 1.0 / (in_ch * 9) ** 0.5
    bound2 = 1.0 / (out_ch * 9) ** 0.5
    w1 = jax.random.uniform(k1, (out_ch, in_ch, 3, 3), jnp.float32, -bound1, bound1)
    b1 = jax.random.uniform(k2, (out_ch,), jnp.float32, -bound1, bound1)
    w2 = jax.random.uniform(k3, (out_ch, out_ch, 3, 3), jnp.float32, -bound2, bound2)
    b2 = jax.random.uniform(k4, (out_ch,), jnp.float32, -bound2, bound2)
    # BatchNorm2d default init: weight (gamma) = 1, bias (beta) = 0
    g1 = jnp.ones((out_ch,), jnp.float32)
    be1 = jnp.zeros((out_ch,), jnp.float32)
    g2 = jnp.ones((out_ch,), jnp.float32)
    be2 = jnp.zeros((out_ch,), jnp.float32)
    return (w1, b1, g1, be1, w2, b2, g2, be2)


def ref_forward(x, params):
    """Pure-JAX reference (NCHW, includes conv biases) for verification."""
    w1, b1, g1, be1, w2, b2, g2, be2 = params

    def conv(x, w, b):
        y = jax.lax.conv_general_dilated(
            x, w, window_strides=(1, 1), padding="SAME",
            dimension_numbers=("NCHW", "OIHW", "NCHW"))
        return y + b[None, :, None, None]

    def bn_relu(x, g, be):
        m = jnp.mean(x, axis=(0, 2, 3), keepdims=True)
        v = jnp.mean((x - m) ** 2, axis=(0, 2, 3), keepdims=True)
        y = (x - m) * jax.lax.rsqrt(v + EPS) * g[None, :, None, None] + be[None, :, None, None]
        return jnp.maximum(y, 0.0)

    h = bn_relu(conv(x, w1, b1), g1, be1)
    return bn_relu(conv(h, w2, b2), g2, be2)


if __name__ == "__main__":
    key = jax.random.PRNGKey(0)
    kx, kp = jax.random.split(key)

    N, in_ch, out_ch, H, W = 2, 4, 8, 16, 16
    x = jax.random.normal(kx, (N, in_ch, H, W), jnp.float32)
    params = init_params(kp, in_ch, out_ch)

    fwd = jax.jit(conv_block)
    out = jax.block_until_ready(fwd(x, params))

    ref = ref_forward(x, params)
    assert out.shape == (N, out_ch, H, W)
    # slightly looser tolerance: single-pass E[x^2]-mean^2 variance + bias folding
    assert jnp.allclose(out, ref, atol=2e-4, rtol=2e-4), (
        f"max abs err = {jnp.max(jnp.abs(out - ref))}")

    print("KERNEL_OK")
</pallas_src>

<mosaic_0001>
module attributes {stable_mosaic.version = 11 : i64} {
  func.func @conv_block_kernel(%arg0: memref<2x16x16x4xf32, #tpu.memory_space<vmem>>, %arg1: memref<36x128xf32, #tpu.memory_space<vmem>>, %arg2: memref<1x128xf32, #tpu.memory_space<vmem>>, %arg3: memref<1x128xf32, #tpu.memory_space<vmem>>, %arg4: memref<1152x128xf32, #tpu.memory_space<vmem>>, %arg5: memref<1x128xf32, #tpu.memory_space<vmem>>, %arg6: memref<1x128xf32, #tpu.memory_space<vmem>>, %arg7: memref<2x16x16x128xf32, #tpu.memory_space<vmem>>, %arg8: memref<2x18x18x4xf32, #tpu.memory_space<vmem>>, %arg9: memref<2x18x18x128xf32, #tpu.memory_space<vmem>>) attributes {dimension_semantics = [], scalar_prefetch = 0 : i64, scratch_operands = 2 : i64, tpu.core_type = #tpu.core_type<tc>} {
    %cst = arith.constant 0.000000e+00 : f32
    %0 = vector.broadcast %cst : f32 to vector<2x1x18x4xf32>
    %cst_0 = arith.constant 0.000000e+00 : f32
    %1 = vector.broadcast %cst_0 : f32 to vector<2x16x1x4xf32>
    %c0 = arith.constant 0 : index
    %c0_1 = arith.constant 0 : index
    %c0_2 = arith.constant 0 : index
    %c0_3 = arith.constant 0 : index
    %2 = vector.load %arg8[%c0, %c0_1, %c0_2, %c0_3] : memref<2x18x18x4xf32, #tpu.memory_space<vmem>>, vector<2x1x18x4xf32>
    tpu.vector_store %arg8[%c0, %c0_1, %c0_2, %c0_3], %0 {strides = array<i32>} : memref<2x18x18x4xf32, #tpu.memory_space<vmem>>, vector<2x1x18x4xf32>,
    %c0_4 = arith.constant 0 : index
    %c17 = arith.constant 17 : index
    %c0_5 = arith.constant 0 : index
    %c0_6 = arith.constant 0 : index
    %3 = vector.load %arg8[%c0_4, %c17, %c0_5, %c0_6] : memref<2x18x18x4xf32, #tpu.memory_space<vmem>>, vector<2x1x18x4xf32>
    tpu.vector_store %arg8[%c0_4, %c17, %c0_5, %c0_6], %0 {strides = array<i32>} : memref<2x18x18x4xf32, #tpu.memory_space<vmem>>, vector<2x1x18x4xf32>,
    %c0_7 = arith.constant 0 : index
    %c1 = arith.constant 1 : index
    %c0_8 = arith.constant 0 : index
    %c0_9 = arith.constant 0 : index
    %4 = vector.load %arg8[%c0_7, %c1, %c0_8, %c0_9] : memref<2x18x18x4xf32, #tpu.memory_space<vmem>>, vector<2x16x1x4xf32>
    tpu.vector_store %arg8[%c0_7, %c1, %c0_8, %c0_9], %1 {strides = array<i32>} : memref<2x18x18x4xf32, #tpu.memory_space<vmem>>, vector<2x16x1x4xf32>,
    %c0_10 = arith.constant 0 : index
    %c1_11 = arith.constant 1 : index
    %c17_12 = arith.constant 17 : index
    %c0_13 = arith.constant 0 : index
    %5 = vector.load %arg8[%c0_10, %c1_11, %c17_12, %c0_13] : memref<2x18x18x4xf32, #tpu.memory_space<vmem>>, vector<2x16x1x4xf32>
    tpu.vector_store %arg8[%c0_10, %c1_11, %c17_12, %c0_13], %1 {strides = array<i32>} : memref<2x18x18x4xf32, #tpu.memory_space<vmem>>, vector<2x16x1x4xf32>,
    %c0_14 = arith.constant 0 : index
    %c0_15 = arith.constant 0 : index
    %c0_16 = arith.constant 0 : index
    %c0_17 = arith.constant 0 : index
    %6 = vector.load %arg0[%c0_14, %c0_15, %c0_16, %c0_17] : memref<2x16x16x4xf32, #tpu.memory_space<vmem>>, vector<2x16x16x4xf32>
    %c0_18 = arith.constant 0 : index
    %c1_19 = arith.constant 1 : index
    %c1_20 = arith.constant 1 : index
    %c0_21 = arith.constant 0 : index
    %7 = vector.load %arg8[%c0_18, %c1_19, %c1_20, %c0_21] : memref<2x18x18x4xf32, #tpu.memory_space<vmem>>, vector<2x16x16x4xf32>
    tpu.vector_store %arg8[%c0_18, %c1_19, %c1_20, %c0_21], %6 {strides = array<i32>} : memref<2x18x18x4xf32, #tpu.memory_space<vmem>>, vector<2x16x16x4xf32>,
    %c0_22 = arith.constant 0 : index
    %c0_23 = arith.constant 0 : index
    %c0_24 = arith.constant 0 : index
    %c0_25 = arith.constant 0 : index
    %8 = vector.load %arg8[%c0_22, %c0_23, %c0_24, %c0_25] : memref<2x18x18x4xf32, #tpu.memory_space<vmem>>, vector<2x16x16x4xf32>
    %c0_26 = arith.constant 0 : index
    %c0_27 = arith.constant 0 : index
    %c1_28 = arith.constant 1 : index
    %c0_29 = arith.constant 0 : index
    %9 = vector.load %arg8[%c0_26, %c0_27, %c1_28, %c0_29] : memref<2x18x18x4xf32, #tpu.memory_space<vmem>>, vector<2x16x16x4xf32>
    %c0_30 = arith.constant 0 : index
    %c0_31 = arith.constant 0 : index
    %c2 = arith.constant 2 : index
    %c0_32 = arith.constant 0 : index
    %10 = vector.load %arg8[%c0_30, %c0_31, %c2, %c0_32] : memref<2x18x18x4xf32, #tpu.memory_space<vmem>>, vector<2x16x16x4xf32>
    %c0_33 = arith.constant 0 : index
    %c1_34 = arith.constant 1 : index
    %c0_35 = arith.constant 0 : index
    %c0_36 = arith.constant 0 : index
    %11 = vector.load %arg8[%c0_33, %c1_34, %c0_35, %c0_36] : memref<2x18x18x4xf32, #tpu.memory_space<vmem>>, vector<2x16x16x4xf32>
    %c0_37 = arith.constant 0 : index
    %c1_38 = arith.constant 1 : index
    %c1_39 = arith.constant 1 : index
    %c0_40 = arith.constant 0 : index
    %12 = vector.load %arg8[%c0_37, %c1_38, %c1_39, %c0_40] : memref<2x18x18x4xf32, #tpu.memory_space<vmem>>, vector<2x16x16x4xf32>
    %c0_41 = arith.constant 0 : index
    %c1_42 = arith.constant 1 : index
    %c2_43 = arith.constant 2 : index
    %c0_44 = arith.constant 0 : index
    %13 = vector.load %arg8[%c0_41, %c1_42, %c2_43, %c0_44] : memref<2x18x18x4xf32, #tpu.memory_space<vmem>>, vector<2x16x16x4xf32>
    %c0_45 = arith.constant 0 : index
    %c2_46 = arith.constant 2 : index
    %c0_47 = arith.constant 0 : index
    %c0_48 = arith.constant 0 : index
    %14 = vector.load %arg8[%c0_45, %c2_46, %c0_47, %c0_48] : memref<2x18x18x4xf32, #tpu.memory_space<vmem>>, vector<2x16x16x4xf32>
    %c0_49 = arith.constant 0 : index
    %c2_50 = arith.constant 2 : index
    %c1_51 = arith.constant 1 : index
    %c0_52 = arith.constant 0 : index
    %15 = vector.load %arg8[%c0_49, %c2_50, %c1_51, %c0_52] : memref<2x18x18x4xf32, #tpu.memory_space<vmem>>, vector<2x16x16x4xf32>
    %c0_53 = arith.constant 0 : index
    %c2_54 = arith.constant 2 : index
    %c2_55 = arith.constant 2 : index
    %c0_56 = arith.constant 0 : index
    %16 = vector.load %arg8[%c0_53, %c2_54, %c2_55, %c0_56] : memref<2x18x18x4xf32, #tpu.memory_space<vmem>>, vector<2x16x16x4xf32>
    %17 = tpu.concatenate %8, %9, %10, %11, %12, %13, %14, %15, %16 in 3 : vector<2x16x16x4xf32>, vector<2x16x16x4xf32>, vector<2x16x16x4xf32>, vector<2x16x16x4xf32>, vector<2x16x16x4xf32>, vector<2x16x16x4xf32>, vector<2x16x16x4xf32>, vector<2x16x16x4xf32>, vector<2x16x16x4xf32> -> vector<2x16x16x36xf32>
    %18 = vector.shape_cast %17 : vector<2x16x16x36xf32> to vector<512x36xf32>
    %c0_57 = arith.constant 0 : index
    %c0_58 = arith.constant 0 : index
    %19 = vector.load %arg1[%c0_57, %c0_58] : memref<36x128xf32, #tpu.memory_space<vmem>>, vector<36x128xf32>
    %cst_59 = arith.constant dense<0.000000e+00> : vector<512x128xf32>
    %20 = tpu.matmul %18, %19, %cst_59 {dimension_numbers = #tpu.dot_dimension_numbers<[1], [0], [0], [1], [0, 0, 1, 1], [], []>} : vector<512x36xf32>, vector<36x128xf32>, vector<512x128xf32> -> vector<512x128xf32>
    %cst_60 = arith.constant dense<0.000000e+00> : vector<128xf32>
    %21 = vector.multi_reduction <add>, %20, %cst_60 [0] : vector<512x128xf32> to vector<128xf32>
    %22 = vector.shape_cast %21 : vector<128xf32> to vector<1x128xf32>
    %23 = arith.mulf %20, %20 : vector<512x128xf32>
    %cst_61 = arith.constant dense<0.000000e+00> : vector<128xf32>
    %24 = vector.multi_reduction <add>, %23, %cst_61 [0] : vector<512x128xf32> to vector<128xf32>
    %25 = vector.shape_cast %24 : vector<128xf32> to vector<1x128xf32>
    %cst_62 = arith.constant 0.001953125 : f32
    %26 = vector.broadcast %cst_62 : f32 to vector<1x128xf32>
    %27 = arith.mulf %22, %26 : vector<1x128xf32>
    %cst_63 = arith.constant 0.001953125 : f32
    %28 = vector.broadcast %cst_63 : f32 to vector<1x128xf32>
    %29 = arith.mulf %25, %28 : vector<1x128xf32>
    %30 = arith.mulf %27, %27 : vector<1x128xf32>
    %31 = arith.subf %29, %30 : vector<1x128xf32>
    %cst_64 = arith.constant 0.000000e+00 : f32
    %32 = vector.broadcast %cst_64 : f32 to vector<1x128xf32>
    %33 = arith.maximumf %31, %32 : vector<1x128xf32>
    %cst_65 = arith.constant 9.99999974E-6 : f32
    %34 = vector.broadcast %cst_65 : f32 to vector<1x128xf32>
    %35 = arith.addf %33, %34 : vector<1x128xf32>
    %36 = math.rsqrt %35 : vector<1x128xf32>
    %c0_66 = arith.constant 0 : index
    %c0_67 = arith.constant 0 : index
    %37 = vector.load %arg2[%c0_66, %c0_67] : memref<1x128xf32, #tpu.memory_space<vmem>>, vector<1x128xf32>
    %38 = arith.mulf %36, %37 : vector<1x128xf32>
    %c0_68 = arith.constant 0 : index
    %c0_69 = arith.constant 0 : index
    %39 = vector.load %arg3[%c0_68, %c0_69] : memref<1x128xf32, #tpu.memory_space<vmem>>, vector<1x128xf32>
    %40 = arith.mulf %27, %38 : vector<1x128xf32>
    %41 = arith.subf %39, %40 : vector<1x128xf32>
    %42 = vector.broadcast %38 : vector<1x128xf32> to vector<512x128xf32>
    %43 = arith.mulf %20, %42 : vector<512x128xf32>
    %44 = vector.broadcast %41 : vector<1x128xf32> to vector<512x128xf32>
    %45 = arith.addf %43, %44 : vector<512x128xf32>
    %cst_70 = arith.constant 0.000000e+00 : f32
    %46 = vector.broadcast %cst_70 : f32 to vector<512x128xf32>
    %47 = arith.maximumf %45, %46 : vector<512x128xf32>
    %cst_71 = arith.constant 0.000000e+00 : f32
    %48 = vector.broadcast %cst_71 : f32 to vector<2x1x18x128xf32>
    %cst_72 = arith.constant 0.000000e+00 : f32
    %49 = vector.broadcast %cst_72 : f32 to vector<2x16x1x128xf32>
    %c0_73 = arith.constant 0 : index
    %c0_74 = arith.constant 0 : index
    %c0_75 = arith.constant 0 : index
    %c0_76 = arith.constant 0 : index
    %50 = vector.load %arg9[%c0_73, %c0_74, %c0_75, %c0_76] : memref<2x18x18x128xf32, #tpu.memory_space<vmem>>, vector<2x1x18x128xf32>
    tpu.vector_store %arg9[%c0_73, %c0_74, %c0_75, %c0_76], %48 {strides = array<i32>} : memref<2x18x18x128xf32, #tpu.memory_space<vmem>>, vector<2x1x18x128xf32>,
    %c0_77 = arith.constant 0 : index
    %c17_78 = arith.constant 17 : index
    %c0_79 = arith.constant 0 : index
    %c0_80 = arith.constant 0 : index
    %51 = vector.load %arg9[%c0_77, %c17_78, %c0_79, %c0_80] : memref<2x18x18x128xf32, #tpu.memory_space<vmem>>, vector<2x1x18x128xf32>
    tpu.vector_store %arg9[%c0_77, %c17_78, %c0_79, %c0_80], %48 {strides = array<i32>} : memref<2x18x18x128xf32, #tpu.memory_space<vmem>>, vector<2x1x18x128xf32>,
    %c0_81 = arith.constant 0 : index
    %c1_82 = arith.constant 1 : index
    %c0_83 = arith.constant 0 : index
    %c0_84 = arith.constant 0 : index
    %52 = vector.load %arg9[%c0_81, %c1_82, %c0_83, %c0_84] : memref<2x18x18x128xf32, #tpu.memory_space<vmem>>, vector<2x16x1x128xf32>
    tpu.vector_store %arg9[%c0_81, %c1_82, %c0_83, %c0_84], %49 {strides = array<i32>} : memref<2x18x18x128xf32, #tpu.memory_space<vmem>>, vector<2x16x1x128xf32>,
    %c0_85 = arith.constant 0 : index
    %c1_86 = arith.constant 1 : index
    %c17_87 = arith.constant 17 : index
    %c0_88 = arith.constant 0 : index
    %53 = vector.load %arg9[%c0_85, %c1_86, %c17_87, %c0_88] : memref<2x18x18x128xf32, #tpu.memory_space<vmem>>, vector<2x16x1x128xf32>
    tpu.vector_store %arg9[%c0_85, %c1_86, %c17_87, %c0_88], %49 {strides = array<i32>} : memref<2x18x18x128xf32, #tpu.memory_space<vmem>>, vector<2x16x1x128xf32>,
    %54 = vector.shape_cast %47 : vector<512x128xf32> to vector<2x16x16x128xf32>
    %c0_89 = arith.constant 0 : index
    %c1_90 = arith.constant 1 : index
    %c1_91 = arith.constant 1 : index
    %c0_92 = arith.constant 0 : index
    %55 = vector.load %arg9[%c0_89, %c1_90, %c1_91, %c0_92] : memref<2x18x18x128xf32, #tpu.memory_space<vmem>>, vector<2x16x16x128xf32>
    tpu.vector_store %arg9[%c0_89, %c1_90, %c1_91, %c0_92], %54 {strides = array<i32>} : memref<2x18x18x128xf32, #tpu.memory_space<vmem>>, vector<2x16x16x128xf32>,
    %c0_93 = arith.constant 0 : index
    %c0_94 = arith.constant 0 : index
    %c0_95 = arith.constant 0 : index
    %c0_96 = arith.constant 0 : index
    %56 = vector.load %arg9[%c0_93, %c0_94, %c0_95, %c0_96] : memref<2x18x18x128xf32, #tpu.memory_space<vmem>>, vector<2x16x16x128xf32>
    %c0_97 = arith.constant 0 : index
    %c0_98 = arith.constant 0 : index
    %c1_99 = arith.constant 1 : index
    %c0_100 = arith.constant 0 : index
    %57 = vector.load %arg9[%c0_97, %c0_98, %c1_99, %c0_100] : memref<2x18x18x128xf32, #tpu.memory_space<vmem>>, vector<2x16x16x128xf32>
    %c0_101 = arith.constant 0 : index
    %c0_102 = arith.constant 0 : index
    %c2_103 = arith.constant 2 : index
    %c0_104 = arith.constant 0 : index
    %58 = vector.load %arg9[%c0_101, %c0_102, %c2_103, %c0_104] : memref<2x18x18x128xf32, #tpu.memory_space<vmem>>, vector<2x16x16x128xf32>
    %c0_105 = arith.constant 0 : index
    %c1_106 = arith.constant 1 : index
    %c0_107 = arith.constant 0 : index
    %c0_108 = arith.constant 0 : index
    %59 = vector.load %arg9[%c0_105, %c1_106, %c0_107, %c0_108] : memref<2x18x18x128xf32, #tpu.memory_space<vmem>>, vector<2x16x16x128xf32>
    %c0_109 = arith.constant 0 : index
    %c1_110 = arith.constant 1 : index
    %c1_111 = arith.constant 1 : index
    %c0_112 = arith.constant 0 : index
    %60 = vector.load %arg9[%c0_109, %c1_110, %c1_111, %c0_112] : memref<2x18x18x128xf32, #tpu.memory_space<vmem>>, vector<2x16x16x128xf32>
    %c0_113 = arith.constant 0 : index
    %c1_114 = arith.constant 1 : index
    %c2_115 = arith.constant 2 : index
    %c0_116 = arith.constant 0 : index
    %61 = vector.load %arg9[%c0_113, %c1_114, %c2_115, %c0_116] : memref<2x18x18x128xf32, #tpu.memory_space<vmem>>, vector<2x16x16x128xf32>
    %c0_117 = arith.constant 0 : index
    %c2_118 = arith.constant 2 : index
    %c0_119 = arith.constant 0 : index
    %c0_120 = arith.constant 0 : index
    %62 = vector.load %arg9[%c0_117, %c2_118, %c0_119, %c0_120] : memref<2x18x18x128xf32, #tpu.memory_space<vmem>>, vector<2x16x16x128xf32>
    %c0_121 = arith.constant 0 : index
    %c2_122 = arith.constant 2 : index
    %c1_123 = arith.constant 1 : index
    %c0_124 = arith.constant 0 : index
    %63 = vector.load %arg9[%c0_121, %c2_122, %c1_123, %c0_124] : memref<2x18x18x128xf32, #tpu.memory_space<vmem>>, vector<2x16x16x128xf32>
    %c0_125 = arith.constant 0 : index
    %c2_126 = arith.constant 2 : index
    %c2_127 = arith.constant 2 : index
    %c0_128 = arith.constant 0 : index
    %64 = vector.load %arg9[%c0_125, %c2_126, %c2_127, %c0_128] : memref<2x18x18x128xf32, #tpu.memory_space<vmem>>, vector<2x16x16x128xf32>
    %65 = tpu.concatenate %56, %57, %58, %59, %60, %61, %62, %63, %64 in 3 : vector<2x16x16x128xf32>, vector<2x16x16x128xf32>, vector<2x16x16x128xf32>, vector<2x16x16x128xf32>, vector<2x16x16x128xf32>, vector<2x16x16x128xf32>, vector<2x16x16x128xf32>, vector<2x16x16x128xf32>, vector<2x16x16x128xf32> -> vector<2x16x16x1152xf32>
    %66 = vector.shape_cast %65 : vector<2x16x16x1152xf32> to vector<512x1152xf32>
    %c0_129 = arith.constant 0 : index
    %c0_130 = arith.constant 0 : index
    %67 = vector.load %arg4[%c0_129, %c0_130] : memref<1152x128xf32, #tpu.memory_space<vmem>>, vector<1152x128xf32>
    %cst_131 = arith.constant dense<0.000000e+00> : vector<512x128xf32>
    %68 = tpu.matmul %66, %67, %cst_131 {dimension_numbers = #tpu.dot_dimension_numbers<[1], [0], [0], [1], [0, 0, 1, 1], [], []>} : vector<512x1152xf32>, vector<1152x128xf32>, vector<512x128xf32> -> vector<512x128xf32>
    %cst_132 = arith.constant dense<0.000000e+00> : vector<128xf32>
    %69 = vector.multi_reduction <add>, %68, %cst_132 [0] : vector<512x128xf32> to vector<128xf32>
    %70 = vector.shape_cast %69 : vector<128xf32> to vector<1x128xf32>
    %71 = arith.mulf %68, %68 : vector<512x128xf32>
    %cst_133 = arith.constant dense<0.000000e+00> : vector<128xf32>
    %72 = vector.multi_reduction <add>, %71, %cst_133 [0] : vector<512x128xf32> to vector<128xf32>
    %73 = vector.shape_cast %72 : vector<128xf32> to vector<1x128xf32>
    %cst_134 = arith.constant 0.001953125 : f32
    %74 = vector.broadcast %cst_134 : f32 to vector<1x128xf32>
    %75 = arith.mulf %70, %74 : vector<1x128xf32>
    %cst_135 = arith.constant 0.001953125 : f32
    %76 = vector.broadcast %cst_135 : f32 to vector<1x128xf32>
    %77 = arith.mulf %73, %76 : vector<1x128xf32>
    %78 = arith.mulf %75, %75 : vector<1x128xf32>
    %79 = arith.subf %77, %78 : vector<1x128xf32>
    %cst_136 = arith.constant 0.000000e+00 : f32
    %80 = vector.broadcast %cst_136 : f32 to vector<1x128xf32>
    %81 = arith.maximumf %79, %80 : vector<1x128xf32>
    %cst_137 = arith.constant 9.99999974E-6 : f32
    %82 = vector.broadcast %cst_137 : f32 to vector<1x128xf32>
    %83 = arith.addf %81, %82 : vector<1x128xf32>
    %84 = math.rsqrt %83 : vector<1x128xf32>
    %c0_138 = arith.constant 0 : index
    %c0_139 = arith.constant 0 : index
    %85 = vector.load %arg5[%c0_138, %c0_139] : memref<1x128xf32, #tpu.memory_space<vmem>>, vector<1x128xf32>
    %86 = arith.mulf %84, %85 : vector<1x128xf32>
    %c0_140 = arith.constant 0 : index
    %c0_141 = arith.constant 0 : index
    %87 = vector.load %arg6[%c0_140, %c0_141] : memref<1x128xf32, #tpu.memory_space<vmem>>, vector<1x128xf32>
    %88 = arith.mulf %75, %86 : vector<1x128xf32>
    %89 = arith.subf %87, %88 : vector<1x128xf32>
    %90 = vector.broadcast %86 : vector<1x128xf32> to vector<512x128xf32>
    %91 = arith.mulf %68, %90 : vector<512x128xf32>
    %92 = vector.broadcast %89 : vector<1x128xf32> to vector<512x128xf32>
    %93 = arith.addf %91, %92 : vector<512x128xf32>
    %cst_142 = arith.constant 0.000000e+00 : f32
    %94 = vector.broadcast %cst_142 : f32 to vector<512x128xf32>
    %95 = arith.maximumf %93, %94 : vector<512x128xf32>
    %96 = vector.shape_cast %95 : vector<512x128xf32> to vector<2x16x16x128xf32>
    %c0_143 = arith.constant 0 : index
    %c0_144 = arith.constant 0 : index
    %c0_145 = arith.constant 0 : index
    %c0_146 = arith.constant 0 : index
    %97 = vector.load %arg7[%c0_143, %c0_144, %c0_145, %c0_146] : memref<2x16x16x128xf32, #tpu.memory_space<vmem>>, vector<2x16x16x128xf32>
    tpu.vector_store %arg7[%c0_143, %c0_144, %c0_145, %c0_146], %96 {strides = array<i32>} : memref<2x16x16x128xf32, #tpu.memory_space<vmem>>, vector<2x16x16x128xf32>,
    return
  }
}

</mosaic_0001>

<bundles_post_ra>
// kernel: conv_block.1
= control target key start
LH: loop header
LB: loop body
LE: loop exit
PB: predicated region body
PF: predicated region fallthrough
CT: control target
= control target key end

     0   :  { %vm26_vm0 = vcmask 31744   ;;  %v7557_v0 = vmov 0.0   ;;  %s7558_s24 = smov 4   ;;  %s7559_s25 = smov 8   ;;  %vm42_vm1 = vcmask 24576   ;;  %vm29_vm2 = vcmask 25600   ;;  %s13497_s0 = inlined_call_operand.vmem [shape: f32[2,16,16,4], index: 0, kind: input, shape index: {}]   ;;  %s13498_s1 = inlined_call_operand.vmem [shape: f32[36,128], index: 1, kind: input, shape index: {}]   ;;  %s13499_s2 = inlined_call_operand.vmem [shape: f32[1,128], index: 2, kind: input, shape index: {}]   ;;  %s13500_s3 = inlined_call_operand.vmem [shape: f32[1,128], index: 3, kind: input, shape index: {}]   ;;  %s13501_s4 = inlined_call_operand.vmem [shape: f32[1152,128], index: 4, kind: input, shape index: {}]   ;;  %s13502_s5 = inlined_call_operand.vmem [shape: f32[1,128], index: 5, kind: input, shape index: {}]   ;;  %s13503_s6 = inlined_call_operand.vmem [shape: f32[1,128], index: 6, kind: input, shape index: {}]   ;;  %s13504_s7 = inlined_call_operand.vmem [shape: f32[2,16,16,128], index: 7, kind: output, shape index: {}]  }
   0x1   :  { %27 = vst.msk [vmem:[#allocation2] sm:$0xff] %vm26_vm0, %v7557_v0  ;;  %v107_v3 = vld [vmem:[%s13497_s0] sm:$0xff]  ;;  %s7560_s28 = smov 12   ;;  %s7561_s29 = smov 16   ;;  %v109_v6 = vld [vmem:[%s13497_s0 + $0x10] sm:$0xff]  ;;  %v110_v7 = vld [vmem:[%s13497_s0 + $0x18] sm:$0xff] }
   0x2   :  { %28 = vst.msk [vmem:[#allocation2 + $0x8] sm:$0xff] %vm26_vm0, %v7557_v0  ;;  %v108_v8 = vld [vmem:[%s13497_s0 + $0x8] sm:$0xff]  ;;  %v111_v10 = vld [vmem:[%s13497_s0 + $0x20] sm:$0xff]  ;;  %s7562_s15 = smov 28   ;;  %s7563_s16 = smov 32   ;;  %v113_v25 = vld [vmem:[%s13497_s0 + $0x30] sm:$0xff] }
   0x3   :  { %31 = vst.msk [vmem:[#allocation2 + $0x1b0] sm:$0xff] %vm26_vm0, %v7557_v0  ;;  %s7564_s17 = smov 20   ;;  %s7565_s18 = smov 24   ;;  %v112_v19 = vld [vmem:[%s13497_s0 + $0x28] sm:$0xff]  ;;  %v114_v26 = vld [vmem:[%s13497_s0 + $0x38] sm:$0xff]  ;;  %vm3577_vm3 = vcmask 1043456  }
   0x4   :  { %32 = vst.msk [vmem:[#allocation2 + $0x1b8] sm:$0xff] %vm26_vm0, %v7557_v0  ;;  %v3383_v31 = vld [vmem:[%s13498_s1 + $0x20] sm:$0xf]  ;;  %v3382_v32 = vld [vmem:[%s13498_s1 + $0x18] sm:$0xff]  ;;  %v3381_v33 = vld [vmem:[%s13498_s1 + $0x10] sm:$0xff]  ;;  %vm2924_vm4 = vcmask 64512  }
   0x5   :  { %35 = vst.msk [vmem:[#allocation2 + $0x198] sm:$0xff] %vm26_vm0, %v7557_v0  ;;  %7440 = vmatpush.msk.msra.mxu0 %vm3577_vm3, %v3383_v31  ;;  %7505 = vmatpush.msk.msra.mxu3 %vm3577_vm3, %v3383_v31  ;;  %v3380_v35 = vld [vmem:[%s13498_s1 + $0x8] sm:$0xff]  ;;  %v3379_v36 = vld [vmem:[%s13498_s1] sm:$0xff]  ;;  %vm2989_vm5 = vcmask 97280   ;;  %vm3054_vm6 = vcmask 130048   ;;  %vm3119_vm7 = vcmask 162816  }
   0x6   :  { %36 = vst.msk [vmem:[#allocation2 + $0x1a0] sm:$0xff] %vm26_vm0, %v7557_v0  ;;  %v115_v38 = vld [vmem:[%s13497_s0 + $0x40] sm:$0xff]  ;;  %v116_v39 = vld [vmem:[%s13497_s0 + $0x48] sm:$0xff]  ;;  %vm3184_vm8 = vcmask 195584   ;;  %vm3249_vm9 = vcmask 228352   ;;  %vm3314_vm10 = vcmask 261120  }
   0x7   :  { %38 = vst.msk [vmem:[#allocation2 + $0x348] sm:$0xff] %vm26_vm0, %v7557_v0  ;;  %3593 = vmatpush.msra.mxu0 %v3382_v32  ;;  %7506 = vmatpush.msra.mxu3 %v3382_v32  ;;  %vm3384_vm11 = vcmask 293888  }
   0x8   :  { %39 = vst.msk [vmem:[#allocation2 + $0x350] sm:$0xff] %vm26_vm0, %v7557_v0  ;;  %v235_v44 = vld [vmem:[#allocation2] sm:$0xff] }
   0x9   :  { %v299_v1 = vld [vmem:[#allocation2 + $0x1] sm:$0xff]  ;;  %4209 = vst [vmem:[#allocation3] sm:$0xff] %v7557_v0  ;;  %3594 = vmatpush.msra.mxu0 %v3381_v33  ;;  %7507 = vmatpush.msra.mxu3 %v3381_v33 }
   0xa   :  { %876 = vrot.lane.b32.xlu0 %v299_v1, %s7558_s24  ;;  %4210 = vst [vmem:[#allocation3 + $0x8] sm:$0xff] %v7557_v0  ;;  %v363_v2 = vld [vmem:[#allocation2 + $0x2] sm:$0xff] }
   0xb   :  { %4211 = vst [vmem:[#allocation3 + $0x10] sm:$0x3] %v7557_v0  ;;  %3595 = vmatpush.msra.mxu0 %v3380_v35  ;;  %7508 = vmatpush.msra.mxu3 %v3380_v35  ;;  %v236_v62 = vld [vmem:[#allocation2 + $0x8] sm:$0xff] }
   0xc   :  { %4212 = vst [vmem:[#allocation3 + $0x1b0] sm:$0xff] %v7557_v0 }
   0xd   :  { %4213 = vst [vmem:[#allocation3 + $0x1b8] sm:$0xff] %v7557_v0  ;;  %3596 = vmatpush.msra.mxu0 %v3379_v36  ;;  %7509 = vmatpush.msra.mxu3 %v3379_v36 }
   0xe   :  { %4214 = vst [vmem:[#allocation3 + $0x1c0] sm:$0x3] %v7557_v0 }
   0xf   :  { %4216 = vst [vmem:[#allocation3 + $0x198] sm:$0xff] %v7557_v0 }
  0x10   :  { %4217 = vst [vmem:[#allocation3 + $0x1a0] sm:$0xff] %v7557_v0 }
  0x11   :  { %4218 = vst [vmem:[#allocation3 + $0x1a8] sm:$0x3] %v7557_v0 }
  0x12   :  { %4219 = vst [vmem:[#allocation3 + $0x348] sm:$0xff] %v7557_v0  ;;  %1132 = vrot.lane.b32.xlu0 %v363_v2, %s7559_s25 }
  0x13   :  { %4220 = vst [vmem:[#allocation3 + $0x350] sm:$0xff] %v7557_v0 }
  0x14   :  { %4221 = vst [vmem:[#allocation3 + $0x358] sm:$0x3] %v7557_v0 }
  0x15   :  { %4223 = vst [vmem:[#allocation3 + $0x18] sm:$0x1] %v7557_v0 }
  0x16   :  { %4224 = vst [vmem:[#allocation3 + $0x30] sm:$0x1] %v7557_v0 }
  0x17   :  { %4225 = vst [vmem:[#allocation3 + $0x48] sm:$0x1] %v7557_v0 }
  0x18   :  { %4226 = vst [vmem:[#allocation3 + $0x60] sm:$0x1] %v7557_v0 }
  0x19   :  { %4227 = vst [vmem:[#allocation3 + $0x78] sm:$0x1] %v7557_v0 }
  0x1a   :  { %4228 = vst [vmem:[#allocation3 + $0x90] sm:$0x1] %v7557_v0 }
  0x1b   :  { %4229 = vst [vmem:[#allocation3 + $0xa8] sm:$0x1] %v7557_v0 }
  0x1c   :  { %4230 = vst [vmem:[#allocation3 + $0xc0] sm:$0x1] %v7557_v0 }
  0x1d   :  { %4231 = vst [vmem:[#allocation3 + $0xd8] sm:$0x1] %v7557_v0 }
  0x1e   :  { %4232 = vst [vmem:[#allocation3 + $0xf0] sm:$0x1] %v7557_v0 }
  0x1f   :  { %4233 = vst [vmem:[#allocation3 + $0x108] sm:$0x1] %v7557_v0 }
  0x20   :  { %4234 = vst [vmem:[#allocation3 + $0x120] sm:$0x1] %v7557_v0 }
  0x21   :  { %4235 = vst [vmem:[#allocation3 + $0x138] sm:$0x1] %v7557_v0 }
  0x22   :  { %4236 = vst [vmem:[#allocation3 + $0x150] sm:$0x1] %v7557_v0 }
  0x23   :  { %4237 = vst [vmem:[#allocation3 + $0x168] sm:$0x1] %v7557_v0 }
  0x24   :  { %4238 = vst [vmem:[#allocation3 + $0x180] sm:$0x1] %v7557_v0 }
  0x25   :  { %4239 = vst [vmem:[#allocation3 + $0x1c8] sm:$0x1] %v7557_v0 }
  0x26   :  { %4240 = vst [vmem:[#allocation3 + $0x1e0] sm:$0x1] %v7557_v0 }
  0x27   :  { %4241 = vst [vmem:[#allocation3 + $0x1f8] sm:$0x1] %v7557_v0 }
  0x28   :  { %4242 = vst [vmem:[#allocation3 + $0x210] sm:$0x1] %v7557_v0 }
  0x29   :  { %4243 = vst [vmem:[#allocation3 + $0x228] sm:$0x1] %v7557_v0 }
  0x2a   :  { %4244 = vst [vmem:[#allocation3 + $0x240] sm:$0x1] %v7557_v0 }
  0x2b   :  { %4245 = vst [vmem:[#allocation3 + $0x258] sm:$0x1] %v7557_v0 }
  0x2c   :  { %4246 = vst [vmem:[#allocation3 + $0x270] sm:$0x1] %v7557_v0 }
  0x2d   :  { %4247 = vst [vmem:[#allocation3 + $0x288] sm:$0x1] %v7557_v0 }
  0x2e   :  { %4248 = vst [vmem:[#allocation3 + $0x2a0] sm:$0x1] %v7557_v0 }
  0x2f   :  { %4249 = vst [vmem:[#allocation3 + $0x2b8] sm:$0x1] %v7557_v0 }
  0x30   :  { %4250 = vst [vmem:[#allocation3 + $0x2d0] sm:$0x1] %v7557_v0 }
  0x31   :  { %4251 = vst [vmem:[#allocation3 + $0x2e8] sm:$0x1] %v7557_v0 }
  0x32   :  { %4252 = vst [vmem:[#allocation3 + $0x300] sm:$0x1] %v7557_v0 }
  0x33   :  { %4253 = vst [vmem:[#allocation3 + $0x318] sm:$0x1] %v7557_v0 }
  0x34   :  { %4254 = vst [vmem:[#allocation3 + $0x330] sm:$0x1] %v7557_v0 }
  0x35   :  { %4255 = vst [vmem:[#allocation3 + $0x29] sm:$0x1] %v7557_v0 }
  0x36   :  { %4256 = vst [vmem:[#allocation3 + $0x41] sm:$0x1] %v7557_v0 }
  0x37   :  { %4257 = vst [vmem:[#allocation3 + $0x59] sm:$0x1] %v7557_v0 }
  0x38   :  { %4258 = vst [vmem:[#allocation3 + $0x71] sm:$0x1] %v7557_v0 }
  0x39   :  { %4259 = vst [vmem:[#allocation3 + $0x89] sm:$0x1] %v7557_v0 }
  0x3a   :  { %4260 = vst [vmem:[#allocation3 + $0xa1] sm:$0x1] %v7557_v0 }
  0x3b   :  { %4261 = vst [vmem:[#allocation3 + $0xb9] sm:$0x1] %v7557_v0 }
  0x3c   :  { %4262 = vst [vmem:[#allocation3 + $0xd1] sm:$0x1] %v7557_v0 }
  0x3d   :  { %4263 = vst [vmem:[#allocation3 + $0xe9] sm:$0x1] %v7557_v0 }
  0x3e   :  { %4264 = vst [vmem:[#allocation3 + $0x101] sm:$0x1] %v7557_v0 }
  0x3f   :  { %4265 = vst [vmem:[#allocation3 + $0x119] sm:$0x1] %v7557_v0 }
  0x40   :  { %4266 = vst [vmem:[#allocation3 + $0x131] sm:$0x1] %v7557_v0 }
  0x41   :  { %4267 = vst [vmem:[#allocation3 + $0x149] sm:$0x1] %v7557_v0 }
  0x42   :  { %4268 = vst [vmem:[#allocation3 + $0x161] sm:$0x1] %v7557_v0 }
  0x43   :  { %4269 = vst [vmem:[#allocation3 + $0x179] sm:$0x1] %v7557_v0 }
  0x44   :  { %4270 = vst [vmem:[#allocation3 + $0x191] sm:$0x1] %v7557_v0 }
  0x45   :  { %4271 = vst [vmem:[#allocation3 + $0x1d9] sm:$0x1] %v7557_v0 }
  0x46   :  { %4272 = vst [vmem:[#allocation3 + $0x1f1] sm:$0x1] %v7557_v0 }
  0x47   :  { %4273 = vst [vmem:[#allocation3 + $0x209] sm:$0x1] %v7557_v0 }
  0x48   :  { %4274 = vst [vmem:[#allocation3 + $0x221] sm:$0x1] %v7557_v0 }
  0x49   :  { %4275 = vst [vmem:[#allocation3 + $0x239] sm:$0x1] %v7557_v0 }
  0x4a   :  { %4276 = vst [vmem:[#allocation3 + $0x251] sm:$0x1] %v7557_v0 }
  0x4b   :  { %4277 = vst [vmem:[#allocation3 + $0x269] sm:$0x1] %v7557_v0 }
  0x4c   :  { %4278 = vst [vmem:[#allocation3 + $0x281] sm:$0x1] %v7557_v0 }
  0x4d   :  { %4279 = vst [vmem:[#allocation3 + $0x299] sm:$0x1] %v7557_v0 }
  0x4e   :  { %4280 = vst [vmem:[#allocation3 + $0x2b1] sm:$0x1] %v7557_v0 }
  0x4f   :  { %4281 = vst [vmem:[#allocation3 + $0x2c9] sm:$0x1] %v7557_v0 }
  0x50   :  { %4282 = vst [vmem:[#allocation3 + $0x2e1] sm:$0x1] %v7557_v0 }
  0x51   :  { %4283 = vst [vmem:[#allocation3 + $0x2f9] sm:$0x1] %v7557_v0 }
  0x52   :  { %4284 = vst [vmem:[#allocation3 + $0x311] sm:$0x1] %v7557_v0 }
  0x53   :  { %4285 = vst [vmem:[#allocation3 + $0x329] sm:$0x1] %v7557_v0 }
  0x54   :  { %4286 = vst [vmem:[#allocation3 + $0x341] sm:$0x1] %v7557_v0 }
  0x55   :  { %43 = vst.msk [vmem:[#allocation2 + $0x18] sm:$0x1] %vm42_vm1, %v7557_v0 }
  0x56   :  { %171 = vst.msk [vmem:[#allocation2 + $0x19] sm:$0xff] %vm26_vm0, %v107_v3 }
  0x57   :  { %44 = vst.msk [vmem:[#allocation2 + $0x30] sm:$0x1] %vm42_vm1, %v7557_v0 }
  0x58   :  { %45 = vst.msk [vmem:[#allocation2 + $0x48] sm:$0x1] %vm42_vm1, %v7557_v0 }
  0x59   :  { %46 = vst.msk [vmem:[#allocation2 + $0x60] sm:$0x1] %vm42_vm1, %v7557_v0 }
  0x5a   :  { %47 = vst.msk [vmem:[#allocation2 + $0x78] sm:$0x1] %vm42_vm1, %v7557_v0 }
  0x5b   :  { %48 = vst.msk [vmem:[#allocation2 + $0x90] sm:$0x1] %vm42_vm1, %v7557_v0 }
  0x5c   :  { %49 = vst.msk [vmem:[#allocation2 + $0xa8] sm:$0x1] %vm42_vm1, %v7557_v0 }
  0x5d   :  { %v7718_v4 = vld [vmem:[#allocation2 + $0x18] sm:$0xff]  ;;  %50 = vst.msk [vmem:[#allocation2 + $0xc0] sm:$0x1] %vm42_vm1, %v7557_v0 }
  0x5e   :  { %1388 = vrot.lane.b32.xlu1 %v7718_v4, %s7560_s28  ;;  %51 = vst.msk [vmem:[#allocation2 + $0xd8] sm:$0x1] %vm42_vm1, %v7557_v0  ;;  %v7736_v5 = vld [vmem:[#allocation2 + $0x19] sm:$0xff] }
  0x5f   :  { %52 = vst.msk [vmem:[#allocation2 + $0xf0] sm:$0x1] %vm42_vm1, %v7557_v0 }
  0x60   :  { %53 = vst.msk [vmem:[#allocation2 + $0x108] sm:$0x1] %vm42_vm1, %v7557_v0 }
  0x61   :  { %54 = vst.msk [vmem:[#allocation2 + $0x120] sm:$0x1] %vm42_vm1, %v7557_v0 }
  0x62   :  { %55 = vst.msk [vmem:[#allocation2 + $0x138] sm:$0x1] %vm42_vm1, %v7557_v0 }
  0x63   :  { %56 = vst.msk [vmem:[#allocation2 + $0x150] sm:$0x1] %vm42_vm1, %v7557_v0 }
  0x64   :  { %57 = vst.msk [vmem:[#allocation2 + $0x168] sm:$0x1] %vm42_vm1, %v7557_v0 }
  0x65   :  { %58 = vst.msk [vmem:[#allocation2 + $0x180] sm:$0x1] %vm42_vm1, %v7557_v0 }
  0x66   :  { %59 = vst.msk [vmem:[#allocation2 + $0x1c8] sm:$0x1] %vm42_vm1, %v7557_v0  ;;  %1644 = vrot.lane.b32.xlu1 %v7736_v5, %s7561_s29 }
  0x67   :  { %60 = vst.msk [vmem:[#allocation2 + $0x1e0] sm:$0x1] %vm42_vm1, %v7557_v0 }
  0x68   :  { %61 = vst.msk [vmem:[#allocation2 + $0x1f8] sm:$0x1] %vm42_vm1, %v7557_v0 }
  0x69   :  { %62 = vst.msk [vmem:[#allocation2 + $0x210] sm:$0x1] %vm42_vm1, %v7557_v0 }
  0x6a   :  { %63 = vst.msk [vmem:[#allocation2 + $0x228] sm:$0x1] %vm42_vm1, %v7557_v0 }
  0x6b   :  { %64 = vst.msk [vmem:[#allocation2 + $0x240] sm:$0x1] %vm42_vm1, %v7557_v0 }
  0x6c   :  { %65 = vst.msk [vmem:[#allocation2 + $0x258] sm:$0x1] %vm42_vm1, %v7557_v0 }
  0x6d   :  { %66 = vst.msk [vmem:[#allocation2 + $0x270] sm:$0x1] %vm42_vm1, %v7557_v0 }
  0x6e   :  { %67 = vst.msk [vmem:[#allocation2 + $0x288] sm:$0x1] %vm42_vm1, %v7557_v0 }
  0x6f   :  { %68 = vst.msk [vmem:[#allocation2 + $0x2a0] sm:$0x1] %vm42_vm1, %v7557_v0 }
  0x70   :  { %69 = vst.msk [vmem:[#allocation2 + $0x2b8] sm:$0x1] %vm42_vm1, %v7557_v0 }
  0x71   :  { %70 = vst.msk [vmem:[#allocation2 + $0x2d0] sm:$0x1] %vm42_vm1, %v7557_v0 }
  0x72   :  { %71 = vst.msk [vmem:[#allocation2 + $0x2e8] sm:$0x1] %vm42_vm1, %v7557_v0 }
  0x73   :  { %72 = vst.msk [vmem:[#allocation2 + $0x300] sm:$0x1] %vm42_vm1, %v7557_v0 }
  0x74   :  { %73 = vst.msk [vmem:[#allocation2 + $0x318] sm:$0x1] %vm42_vm1, %v7557_v0 }
  0x75   :  { %74 = vst.msk [vmem:[#allocation2 + $0x330] sm:$0x1] %vm42_vm1, %v7557_v0 }
  0x76   :  { %75 = vst.msk [vmem:[#allocation2 + $0x29] sm:$0x1] %vm42_vm1, %v7557_v0 }
  0x77   :  { %76 = vst.msk [vmem:[#allocation2 + $0x41] sm:$0x1] %vm42_vm1, %v7557_v0 }
  0x78   :  { %77 = vst.msk [vmem:[#allocation2 + $0x59] sm:$0x1] %vm42_vm1, %v7557_v0 }
  0x79   :  { %78 = vst.msk [vmem:[#allocation2 + $0x71] sm:$0x1] %vm42_vm1, %v7557_v0 }
  0x7a   :  { %79 = vst.msk [vmem:[#allocation2 + $0x89] sm:$0x1] %vm42_vm1, %v7557_v0 }
  0x7b   :  { %80 = vst.msk [vmem:[#allocation2 + $0xa1] sm:$0x1] %vm42_vm1, %v7557_v0 }
  0x7c   :  { %81 = vst.msk [vmem:[#allocation2 + $0xb9] sm:$0x1] %vm42_vm1, %v7557_v0  ;;  %v877_v40 = vpop.permute.xlu0 %876 }
  0x7d   :  { %82 = vst.msk [vmem:[#allocation2 + $0xd1] sm:$0x1] %vm42_vm1, %v7557_v0  ;;  %v2860_v47 = vsel %vm26_vm0, %v235_v44, %v877_v40 }
  0x7e   :  { %83 = vst.msk [vmem:[#allocation2 + $0xe9] sm:$0x1] %vm42_vm1, %v7557_v0 }
  0x7f   :  { %84 = vst.msk [vmem:[#allocation2 + $0x101] sm:$0x1] %vm42_vm1, %v7557_v0 }
  0x80   :  { %85 = vst.msk [vmem:[#allocation2 + $0x119] sm:$0x1] %vm42_vm1, %v7557_v0 }
  0x81   :  { %86 = vst.msk [vmem:[#allocation2 + $0x131] sm:$0x1] %vm42_vm1, %v7557_v0 }
  0x82   :  { %87 = vst.msk [vmem:[#allocation2 + $0x149] sm:$0x1] %vm42_vm1, %v7557_v0 }
  0x83   :  { %88 = vst.msk [vmem:[#allocation2 + $0x161] sm:$0x1] %vm42_vm1, %v7557_v0 }
  0x84   :  { %89 = vst.msk [vmem:[#allocation2 + $0x179] sm:$0x1] %vm42_vm1, %v7557_v0  ;;  %v1133_v45 = vpop.permute.xlu0 %1132 }
  0x85   :  { %90 = vst.msk [vmem:[#allocation2 + $0x191] sm:$0x1] %vm42_vm1, %v7557_v0  ;;  %v2925_v50 = vsel %vm2924_vm4, %v2860_v47, %v1133_v45 }
  0x86   :  { %91 = vst.msk [vmem:[#allocation2 + $0x1d9] sm:$0x1] %vm42_vm1, %v7557_v0 }
  0x87   :  { %92 = vst.msk [vmem:[#allocation2 + $0x1f1] sm:$0x1] %vm42_vm1, %v7557_v0 }
  0x88   :  { %93 = vst.msk [vmem:[#allocation2 + $0x209] sm:$0x1] %vm42_vm1, %v7557_v0 }
  0x89   :  { %94 = vst.msk [vmem:[#allocation2 + $0x221] sm:$0x1] %vm42_vm1, %v7557_v0 }
  0x8a   :  { %95 = vst.msk [vmem:[#allocation2 + $0x239] sm:$0x1] %vm42_vm1, %v7557_v0 }
  0x8b   :  { %96 = vst.msk [vmem:[#allocation2 + $0x251] sm:$0x1] %vm42_vm1, %v7557_v0 }
  0x8c   :  { %97 = vst.msk [vmem:[#allocation2 + $0x269] sm:$0x1] %vm42_vm1, %v7557_v0 }
  0x8d   :  { %98 = vst.msk [vmem:[#allocation2 + $0x281] sm:$0x1] %vm42_vm1, %v7557_v0 }
  0x8e   :  { %99 = vst.msk [vmem:[#allocation2 + $0x299] sm:$0x1] %vm42_vm1, %v7557_v0 }
  0x8f   :  { %100 = vst.msk [vmem:[#allocation2 + $0x2b1] sm:$0x1] %vm42_vm1, %v7557_v0 }
  0x90   :  { %101 = vst.msk [vmem:[#allocation2 + $0x2c9] sm:$0x1] %vm42_vm1, %v7557_v0 }
  0x91   :  { %102 = vst.msk [vmem:[#allocation2 + $0x2e1] sm:$0x1] %vm42_vm1, %v7557_v0 }
  0x92   :  { %103 = vst.msk [vmem:[#allocation2 + $0x2f9] sm:$0x1] %vm42_vm1, %v7557_v0 }
  0x93   :  { %104 = vst.msk [vmem:[#allocation2 + $0x311] sm:$0x1] %vm42_vm1, %v7557_v0 }
  0x94   :  { %105 = vst.msk [vmem:[#allocation2 + $0x329] sm:$0x1] %vm42_vm1, %v7557_v0 }
  0x95   :  { %106 = vst.msk [vmem:[#allocation2 + $0x341] sm:$0x1] %vm42_vm1, %v7557_v0 }
  0x96   :  { %173 = vst.msk [vmem:[#allocation2 + $0x31] sm:$0xff] %vm26_vm0, %v109_v6 }
  0x97   :  { %174 = vst.msk [vmem:[#allocation2 + $0x39] sm:$0xff] %vm26_vm0, %v110_v7 }
  0x98   :  { %172 = vst.msk [vmem:[#allocation2 + $0x21] sm:$0xff] %vm26_vm0, %v108_v8  ;;  %v117_v8 = vld [vmem:[%s13497_s0 + $0x50] sm:$0xff] }
  0x99   :  { %30 = vst.msk [vmem:[#allocation2 + $0x10] sm:$0x3] %vm29_vm2, %v7557_v0 }
  0x9a   :  { %33 = vst.msk [vmem:[#allocation2 + $0x1c0] sm:$0x3] %vm29_vm2, %v7557_v0 }
  0x9b   :  { %37 = vst.msk [vmem:[#allocation2 + $0x1a8] sm:$0x3] %vm29_vm2, %v7557_v0 }
  0x9c   :  { %40 = vst.msk [vmem:[#allocation2 + $0x358] sm:$0x3] %vm29_vm2, %v7557_v0 }
  0x9d   :  { %v7856_v9 = vld [vmem:[#allocation2 + $0x31] sm:$0xff]  ;;  %175 = vst.msk [vmem:[#allocation2 + $0x49] sm:$0xff] %vm26_vm0, %v111_v10 }
  0x9e   :  { %2412 = vrot.lane.b32.xlu0 %v7856_v9, %s7562_s15  ;;  %v748_v11 = vld [vmem:[#allocation2 + $0x32] sm:$0xff]  ;;  %176 = vst.msk [vmem:[#allocation2 + $0x51] sm:$0xff] %vm26_vm0, %v112_v19  ;;  %v7885_v20 = vld [vmem:[#allocation2 + $0x3a] sm:$0xff] }
  0x9f   :  { %2668 = vrot.lane.b32.xlu1 %v748_v11, %s7563_s16  ;;  %v555_v12 = vld [vmem:[#allocation2 + $0x1a] sm:$0xff]  ;;  %v7868_v15 = vld [vmem:[#allocation2 + $0x30] sm:$0xff]  ;;  %v556_v16 = vld [vmem:[#allocation2 + $0x22] sm:$0xff]  ;;  %177 = vst.msk [vmem:[#allocation2 + $0x61] sm:$0xff] %vm26_vm0, %v113_v25 }
  0xa0   :  { %1900 = vrot.lane.b32.xlu2 %v555_v12, %s7564_s17  ;;  %v364_v13 = vld [vmem:[#allocation2 + $0xa] sm:$0xff]  ;;  %v7866_v14 = vld [vmem:[#allocation2 + $0x20] sm:$0xff]  ;;  %v7875_v17 = vld [vmem:[#allocation2 + $0x38] sm:$0xff]  ;;  %178 = vst.msk [vmem:[#allocation2 + $0x69] sm:$0xff] %vm26_vm0, %v114_v26 }
  0xa1   :  { %v300_v18 = vld [vmem:[#allocation2 + $0x9] sm:$0xff]  ;;  %v492_v21 = vld [vmem:[#allocation2 + $0x21] sm:$0xff]  ;;  %v685_v22 = vld [vmem:[#allocation2 + $0x39] sm:$0xff]  ;;  %179 = vst.msk [vmem:[#allocation2 + $0x79] sm:$0xff] %vm26_vm0, %v115_v38 }
  0xa2   :  { %180 = vst.msk [vmem:[#allocation2 + $0x81] sm:$0xff] %vm26_vm0, %v116_v39 }
  0xa3   :  { %181 = vst.msk [vmem:[#allocation2 + $0x91] sm:$0xff] %vm26_vm0, %v117_v8 }
  0xa4   :  { %v7897_v23 = vld [vmem:[#allocation2 + $0x48] sm:$0xff] }
  0xa5   :  { %v7899_v24 = vld [vmem:[#allocation2 + $0x49] sm:$0xff]  ;;  %v7924_v28 = vld [vmem:[#allocation2 + $0x51] sm:$0xff] }
  0xa6   :  { %1134 = vrot.lane.b32.xlu0 %v364_v13, %s7559_s25  ;;  %v7917_v27 = vld [vmem:[#allocation2 + $0x4a] sm:$0xff]  ;;  %v7926_v29 = vld [vmem:[#allocation2 + $0x52] sm:$0xff]  ;;  %v7950_v34 = vld [vmem:[#allocation2 + $0x60] sm:$0xff] }
  0xa7   :  { %1390 = vrot.lane.b32.xlu1 %v7866_v14, %s7560_s28  ;;  %v7934_v30 = vld [vmem:[#allocation2 + $0x50] sm:$0xff]  ;;  %v7964_v37 = vld [vmem:[#allocation2 + $0x62] sm:$0xff] }
  0xa8   :  { %2156 = vrot.lane.b32.xlu2 %v7868_v15, %s7565_s18  ;;  %v7979_v42 = vld [vmem:[#allocation2 + $0x61] sm:$0xff]  ;;  %v7990_v49 = vld [vmem:[#allocation2 + $0x69] sm:$0xff]  ;;  %v8022_v6 = vld [vmem:[#allocation2 + $0x79] sm:$0xff] }
  0xa9   :  { %v7988_v48 = vld [vmem:[#allocation2 + $0x68] sm:$0xff]  ;;  %v8024_v7 = vld [vmem:[#allocation2 + $0x7a] sm:$0xff] }
  0xaa   :  { %v8012_v63 = vld [vmem:[#allocation2 + $0x6a] sm:$0xff]  ;;  %v8040_v19 = vld [vmem:[#allocation2 + $0x78] sm:$0xff]  ;;  %v8051_v26 = vld [vmem:[#allocation2 + $0x80] sm:$0xff] }
  0xab   :  { %v8067_v36 = vld [vmem:[#allocation2 + $0x82] sm:$0xff] }
  0xae   :  { %1902 = vrot.lane.b32.xlu0 %v556_v16, %s7564_s17 }
  0xaf   :  { %2158 = vrot.lane.b32.xlu1 %v7875_v17, %s7565_s18 }
  0xb0   :  { %878 = vrot.lane.b32.xlu2 %v300_v18, %s7558_s24 }
  0xb6   :  { %2670 = vrot.lane.b32.xlu0 %v7885_v20, %s7563_s16 }
  0xb7   :  { %880 = vrot.lane.b32.xlu1 %v7736_v5, %s7558_s24 }
  0xb8   :  { %1646 = vrot.lane.b32.xlu2 %v492_v21, %s7561_s29 }
  0xbe   :  { %1392 = vrot.lane.b32.xlu0 %v7868_v15, %s7560_s28 }
  0xbf   :  { %1648 = vrot.lane.b32.xlu1 %v7856_v9, %s7561_s29 }
  0xc0   :  { %2414 = vrot.lane.b32.xlu2 %v685_v22, %s7562_s15 }
  0xc6   :  { %2160 = vrot.lane.b32.xlu0 %v7897_v23, %s7565_s18 }
  0xc7   :  { %2416 = vrot.lane.b32.xlu1 %v7899_v24, %s7562_s15 }
  0xc8   :  { %1136 = vrot.lane.b32.xlu2 %v555_v12, %s7559_s25 }
  0xce   :  { %882 = vrot.lane.b32.xlu0 %v492_v21, %s7558_s24 }
  0xcf   :  { %1138 = vrot.lane.b32.xlu1 %v556_v16, %s7559_s25 }
  0xd0   :  { %1904 = vrot.lane.b32.xlu2 %v748_v11, %s7564_s17  ;;  %v1389_v43 = vpop.permute.xlu1 %1388 }
  0xd1   :  { %v2990_v51 = vsel %vm2989_vm5, %v2925_v50, %v1389_v43 }
  0xd6   :  { %1650 = vrot.lane.b32.xlu0 %v685_v22, %s7561_s29 }
  0xd7   :  { %1906 = vrot.lane.b32.xlu1 %v7885_v20, %s7564_s17 }
  0xd8   :  { %2672 = vrot.lane.b32.xlu2 %v7917_v27, %s7563_s16  ;;  %v1645_v52 = vpop.permute.xlu1 %1644 }
  0xd9   :  { %v3055_v53 = vsel %vm3054_vm6, %v2990_v51, %v1645_v52  ;;  %v8091_v52 = vld [vmem:[#allocation2 + $0x90] sm:$0xff] }
  0xde   :  { %2418 = vrot.lane.b32.xlu0 %v7924_v28, %s7562_s15 }
  0xdf   :  { %2674 = vrot.lane.b32.xlu1 %v7926_v29, %s7563_s16 }
  0xe0   :  { %1394 = vrot.lane.b32.xlu2 %v7875_v17, %s7560_s28 }
  0xe6   :  { %1140 = vrot.lane.b32.xlu0 %v748_v11, %s7559_s25 }
  0xe7   :  { %1396 = vrot.lane.b32.xlu1 %v7897_v23, %s7560_s28 }
  0xe8   :  { %2162 = vrot.lane.b32.xlu2 %v7934_v30, %s7565_s18 }
  0xee   :  { %1908 = vrot.lane.b32.xlu0 %v7917_v27, %s7564_s17 }
  0xef   :  { %2164 = vrot.lane.b32.xlu1 %v7950_v34, %s7565_s18 }
  0xf0   :  { %884 = vrot.lane.b32.xlu2 %v7856_v9, %s7558_s24 }
  0xf6   :  { %2676 = vrot.lane.b32.xlu0 %v7964_v37, %s7563_s16 }
  0xf7   :  { %886 = vrot.lane.b32.xlu1 %v685_v22, %s7558_s24 }
  0xf8   :  { %1652 = vrot.lane.b32.xlu2 %v7899_v24, %s7561_s29 }
  0xfa   :  { %v1901_v41 = vpop.permute.xlu2 %1900 }
  0xfb   :  { %v3120_v55 = vsel %vm3119_vm7, %v3055_v53, %v1901_v41  ;;  %v8093_v53 = vld [vmem:[#allocation2 + $0x91] sm:$0xff] }
  0xfe   :  { %1398 = vrot.lane.b32.xlu0 %v7934_v30, %s7560_s28 }
  0xff   :  { %1654 = vrot.lane.b32.xlu1 %v7924_v28, %s7561_s29 }
 0x100   :  { %2420 = vrot.lane.b32.xlu2 %v7979_v42, %s7562_s15 }
 0x102   :  { %v2157_v46 = vpop.permute.xlu2 %2156 }
 0x103   :  { %v3185_v57 = vsel %vm3184_vm8, %v3120_v55, %v2157_v46  ;;  %v8081_v46 = vld [vmem:[#allocation2 + $0x81] sm:$0xff] }
 0x104   :  { %v119_v55 = vld [vmem:[%s13497_s0 + $0x60] sm:$0xff] }
 0x105   :  { %183 = vst.msk [vmem:[#allocation2 + $0xa9] sm:$0xff] %vm26_vm0, %v119_v55 }
 0x106   :  { %2166 = vrot.lane.b32.xlu0 %v7988_v48, %s7565_s18 }
 0x107   :  { %2422 = vrot.lane.b32.xlu1 %v7990_v49, %s7562_s15 }
 0x108   :  { %1142 = vrot.lane.b32.xlu2 %v7885_v20, %s7559_s25 }
 0x10a   :  { %v879_v54 = vpop.permute.xlu2 %878 }
 0x10b   :  { %v2861_v0 = vsel %vm26_vm0, %v236_v62, %v879_v54  ;;  %v140_v62 = vld [vmem:[%s13497_s0 + $0x108] sm:$0xff] }
 0x10c   :  { %204 = vst.msk [vmem:[#allocation2 + $0x1d1] sm:$0xff] %vm26_vm0, %v140_v62 }
 0x10e   :  { %888 = vrot.lane.b32.xlu0 %v7899_v24, %s7558_s24 }
 0x10f   :  { %1144 = vrot.lane.b32.xlu1 %v7917_v27, %s7559_s25 }
 0x110   :  { %v2413_v56 = vpop.permute.xlu0 %2412  ;;  %1910 = vrot.lane.b32.xlu2 %v7926_v29, %s7564_s17 }
 0x111   :  { %v3250_v58 = vsel %vm3249_vm9, %v3185_v57, %v2413_v56  ;;  %v2669_v59 = vpop.permute.xlu1 %2668 }
 0x112   :  { %v1647_v60 = vpop.permute.xlu2 %1646  ;;  %v3315_v61 = vsel %vm3314_vm10, %v3250_v58, %v2669_v59 }
 0x113   :  { %7441 = vmatmul.msk.f32.vlgmr.msra.gmra.mxu0 %vm3384_vm11, %v3315_v61  ;;  %v139_v61 = vld [vmem:[%s13497_s0 + $0x100] sm:$0xff] }
 0x114   :  { %203 = vst.msk [vmem:[#allocation2 + $0x1c9] sm:$0xff] %vm26_vm0, %v139_v61 }
 0x116   :  { %1656 = vrot.lane.b32.xlu0 %v7979_v42, %s7561_s29 }
 0x117   :  { %1912 = vrot.lane.b32.xlu1 %v7964_v37, %s7564_s17 }
 0x118   :  { %v1135_v1 = vpop.permute.xlu0 %1134  ;;  %2678 = vrot.lane.b32.xlu2 %v8012_v63, %s7563_s16 }
 0x119   :  { %v1391_v2 = vpop.permute.xlu1 %1390  ;;  %v2926_v5 = vsel %vm2924_vm4, %v2861_v0, %v1135_v1 }
 0x11a   :  { %v2415_v3 = vpop.permute.xlu2 %2414  ;;  %v2991_v9 = vsel %vm2989_vm5, %v2926_v5, %v1391_v2 }
 0x11b   :  { %v3056_v11 = vsel %vm3054_vm6, %v2991_v9, %v1647_v60 }
 0x11e   :  { %2424 = vrot.lane.b32.xlu0 %v8022_v6, %s7562_s15 }
 0x11f   :  { %2680 = vrot.lane.b32.xlu1 %v8024_v7, %s7563_s16 }
 0x120   :  { %v1903_v10 = vpop.permute.xlu0 %1902  ;;  %1400 = vrot.lane.b32.xlu2 %v7950_v34, %s7560_s28 }
 0x121   :  { %v2159_v12 = vpop.permute.xlu1 %2158  ;;  %v3121_v13 = vsel %vm3119_vm7, %v3056_v11, %v1903_v10 }
 0x122   :  { %v1137_v16 = vpop.permute.xlu2 %1136  ;;  %v3186_v18 = vsel %vm3184_vm8, %v3121_v13, %v2159_v12 }
 0x123   :  { %v3251_v21 = vsel %vm3249_vm9, %v3186_v18, %v2415_v3 }
 0x126   :  { %1146 = vrot.lane.b32.xlu0 %v7926_v29, %s7559_s25  ;;  %v118_v29 = vld [vmem:[%s13497_s0 + $0x58] sm:$0xff] }
 0x127   :  { %1402 = vrot.lane.b32.xlu1 %v7988_v48, %s7560_s28  ;;  %182 = vst.msk [vmem:[#allocation2 + $0x99] sm:$0xff] %vm26_vm0, %v118_v29 }
 0x128   :  { %v2671_v20 = vpop.permute.xlu0 %2670  ;;  %2168 = vrot.lane.b32.xlu2 %v8040_v19, %s7565_s18 }
 0x129   :  { %v881_v22 = vpop.permute.xlu1 %880  ;;  %v3316_v24 = vsel %vm3314_vm10, %v3251_v21, %v2671_v20 }
 0x12a   :  { %7442 = vmatmul.msk.f32.gmra.mxu0 %vm3384_vm11, %v3316_v24  ;;  %v1905_v25 = vpop.permute.xlu2 %1904  ;;  %v2862_v27 = vsel %vm26_vm0, %v7718_v4, %v881_v22 }
 0x12b   :  { %v2927_v32 = vsel %vm2924_vm4, %v2862_v27, %v1137_v16 }
 0x12e   :  { %1914 = vrot.lane.b32.xlu0 %v8012_v63, %s7564_s17  ;;  %v8127_v5 = vld [vmem:[#allocation2 + $0x92] sm:$0xff]  ;;  %v8144_v16 = vld [vmem:[#allocation2 + $0x9a] sm:$0xff] }
 0x12f   :  { %2170 = vrot.lane.b32.xlu1 %v8051_v26, %s7565_s18  ;;  %v8142_v13 = vld [vmem:[#allocation2 + $0x99] sm:$0xff] }
 0x130   :  { %v1393_v31 = vpop.permute.xlu0 %1392  ;;  %890 = vrot.lane.b32.xlu2 %v7924_v28, %s7558_s24  ;;  %v8160_v29 = vld [vmem:[#allocation2 + $0x98] sm:$0xff] }
 0x131   :  { %v1649_v33 = vpop.permute.xlu1 %1648  ;;  %v2992_v4 = vsel %vm2989_vm5, %v2927_v32, %v1393_v31  ;;  %v143_v31 = vld [vmem:[%s13497_s0 + $0x120] sm:$0xff] }
 0x132   :  { %v2673_v35 = vpop.permute.xlu2 %2672  ;;  %v3057_v38 = vsel %vm3054_vm6, %v2992_v4, %v1649_v33  ;;  %207 = vst.msk [vmem:[#allocation2 + $0x1f9] sm:$0xff] %vm26_vm0, %v143_v31 }
 0x133   :  { %v3122_v28 = vsel %vm3119_vm7, %v3057_v38, %v1905_v25 }
 0x136   :  { %2682 = vrot.lane.b32.xlu0 %v8067_v36, %s7563_s16 }
 0x137   :  { %892 = vrot.lane.b32.xlu1 %v7979_v42, %s7558_s24 }
 0x138   :  { %v2161_v39 = vpop.permute.xlu0 %2160  ;;  %1658 = vrot.lane.b32.xlu2 %v7990_v49, %s7561_s29 }
 0x139   :  { %v3187_v40 = vsel %vm3184_vm8, %v3122_v28, %v2161_v39  ;;  %v2417_v41 = vpop.permute.xlu1 %2416  ;;  %v142_v28 = vld [vmem:[%s13497_s0 + $0x118] sm:$0xff] }
 0x13a   :  { %v3252_v43 = vsel %vm3249_vm9, %v3187_v40, %v2417_v41  ;;  %v1395_v44 = vpop.permute.xlu2 %1394  ;;  %206 = vst.msk [vmem:[#allocation2 + $0x1e9] sm:$0xff] %vm26_vm0, %v142_v28 }
 0x13b   :  { %v3317_v45 = vsel %vm3314_vm10, %v3252_v43, %v2673_v35 }
 0x13c   :  { %7443 = vmatmul.msk.f32.gmra.mxu0 %vm3384_vm11, %v3317_v45  ;;  %v8191_v45 = vld [vmem:[#allocation2 + $0xa9] sm:$0xff] }
 0x13e   :  { %1404 = vrot.lane.b32.xlu0 %v8040_v19, %s7560_s28 }
 0x13f   :  { %1660 = vrot.lane.b32.xlu1 %v8022_v6, %s7561_s29 }
 0x140   :  { %v883_v42 = vpop.permute.xlu0 %882  ;;  %2426 = vrot.lane.b32.xlu2 %v8081_v46, %s7562_s15 }
 0x141   :  { %v1139_v47 = vpop.permute.xlu1 %1138  ;;  %v2863_v51 = vsel %vm26_vm0, %v7866_v14, %v883_v42  ;;  %v397_v42 = vld [vmem:[#allocation2 + $0x1ca] sm:$0xff] }
 0x142   :  { %v2163_v50 = vpop.permute.xlu2 %2162  ;;  %v2928_v54 = vsel %vm2924_vm4, %v2863_v51, %v1139_v47 }
 0x143   :  { %v2993_v14 = vsel %vm2989_vm5, %v2928_v54, %v1395_v44 }
 0x146   :  { %2172 = vrot.lane.b32.xlu0 %v8091_v52, %s7565_s18 }
 0x147   :  { %2428 = vrot.lane.b32.xlu1 %v8093_v53, %s7562_s15 }
 0x148   :  { %v1651_v56 = vpop.permute.xlu0 %1650  ;;  %1148 = vrot.lane.b32.xlu2 %v7964_v37, %s7559_s25 }
 0x149   :  { %v1907_v57 = vpop.permute.xlu1 %1906  ;;  %v3058_v58 = vsel %vm3054_vm6, %v2993_v14, %v1651_v56 }
 0x14a   :  { %v885_v59 = vpop.permute.xlu2 %884  ;;  %v3123_v60 = vsel %vm3119_vm7, %v3058_v58, %v1907_v57  ;;  %v333_v58 = vld [vmem:[#allocation2 + $0x1c9] sm:$0xff] }
 0x14b   :  { %v3188_v0 = vsel %vm3184_vm8, %v3123_v60, %v2163_v50  ;;  %v2864_v8 = vsel %vm26_vm0, %v7868_v15, %v885_v59  ;;  %v120_v15 = vld [vmem:[%s13497_s0 + $0x68] sm:$0xff] }
 0x14c   :  { %184 = vst.msk [vmem:[#allocation2 + $0xb1] sm:$0xff] %vm26_vm0, %v120_v15  ;;  %v144_v59 = vld [vmem:[%s13497_s0 + $0x128] sm:$0xff] }
 0x14d   :  { %208 = vst.msk [vmem:[#allocation2 + $0x201] sm:$0xff] %vm26_vm0, %v144_v59 }
 0x14e   :  { %894 = vrot.lane.b32.xlu0 %v7990_v49, %s7558_s24 }
 0x14f   :  { %1150 = vrot.lane.b32.xlu1 %v8012_v63, %s7559_s25  ;;  %v141_v63 = vld [vmem:[%s13497_s0 + $0x110] sm:$0xff] }
 0x150   :  { %v2419_v37 = vpop.permute.xlu0 %2418  ;;  %1916 = vrot.lane.b32.xlu2 %v8024_v7, %s7564_s17  ;;  %205 = vst.msk [vmem:[#allocation2 + $0x1e1] sm:$0xff] %vm26_vm0, %v141_v63 }
 0x151   :  { %v3253_v49 = vsel %vm3249_vm9, %v3188_v0, %v2419_v37  ;;  %v2675_v1 = vpop.permute.xlu1 %2674 }
 0x152   :  { %v1653_v2 = vpop.permute.xlu2 %1652  ;;  %v3318_v3 = vsel %vm3314_vm10, %v3253_v49, %v2675_v1 }
 0x153   :  { %7444 = vmatmul.msk.f32.gmra.mxu0 %vm3384_vm11, %v3318_v3 }
 0x156   :  { %1662 = vrot.lane.b32.xlu0 %v8081_v46, %s7561_s29 }
 0x157   :  { %1918 = vrot.lane.b32.xlu1 %v8067_v36, %s7564_s17  ;;  %v8204_v57 = vld [vmem:[#allocation2 + $0x1e0] sm:$0xff] }
 0x158   :  { %v1141_v9 = vpop.permute.xlu0 %1140  ;;  %2684 = vrot.lane.b32.xlu2 %v8127_v5, %s7563_s16  ;;  %v8217_v0 = vld [vmem:[#allocation2 + $0x1e1] sm:$0xff] }
 0x159   :  { %v1397_v10 = vpop.permute.xlu1 %1396  ;;  %v2929_v12 = vsel %vm2924_vm4, %v2864_v8, %v1141_v9  ;;  %v8230_v8 = vld [vmem:[#allocation2 + $0x1f8] sm:$0xff] }
 0x15a   :  { %v2421_v11 = vpop.permute.xlu2 %2420  ;;  %v2994_v18 = vsel %vm2989_vm5, %v2929_v12, %v1397_v10 }
 0x15b   :  { %v3059_v21 = vsel %vm3054_vm6, %v2994_v18, %v1653_v2 }
 0x15e   :  { %2430 = vrot.lane.b32.xlu0 %v8142_v13, %s7562_s15 }
 0x15f   :  { %2686 = vrot.lane.b32.xlu1 %v8144_v16, %s7563_s16 }
 0x160   :  { %v1909_v20 = vpop.permute.xlu0 %1908  ;;  %1406 = vrot.lane.b32.xlu2 %v8051_v26, %s7560_s28 }
 0x161   :  { %v2165_v22 = vpop.permute.xlu1 %2164  ;;  %v3124_v24 = vsel %vm3119_vm7, %v3059_v21, %v1909_v20  ;;  %v8243_v21 = vld [vmem:[#allocation2 + $0x1f9] sm:$0xff] }
 0x162   :  { %v1143_v25 = vpop.permute.xlu2 %1142  ;;  %v3189_v27 = vsel %vm3184_vm8, %v3124_v24, %v2165_v22  ;;  %v8245_v22 = vld [vmem:[#allocation2 + $0xb0] sm:$0xff]  ;;  %v8247_v24 = vld [vmem:[#allocation2 + $0x1e2] sm:$0xff] }
 0x163   :  { %v3254_v33 = vsel %vm3249_vm9, %v3189_v27, %v2421_v11 }
 0x166   :  { %1152 = vrot.lane.b32.xlu0 %v8024_v7, %s7559_s25  ;;  %v8175_v7 = vld [vmem:[#allocation2 + $0xa8] sm:$0xff] }
 0x167   :  { %1408 = vrot.lane.b32.xlu1 %v8091_v52, %s7560_s28 }
 0x168   :  { %v2677_v32 = vpop.permute.xlu0 %2676  ;;  %2174 = vrot.lane.b32.xlu2 %v8160_v29, %s7565_s18 }
 0x169   :  { %v887_v4 = vpop.permute.xlu1 %886  ;;  %v3319_v35 = vsel %vm3314_vm10, %v3254_v33, %v2677_v32  ;;  %v334_v33 = vld [vmem:[#allocation2 + $0x1d1] sm:$0xff] }
 0x16a   :  { %v1911_v38 = vpop.permute.xlu2 %1910  ;;  %7445 = vmatmul.msk.f32.gmra.mxu0 %vm3384_vm11, %v3319_v35  ;;  %v2865_v39 = vsel %vm26_vm0, %v7875_v17, %v887_v4  ;;  %v8258_v4 = vld [vmem:[#allocation2 + $0xb1] sm:$0xff] }
 0x16b   :  { %v2930_v41 = vsel %vm2924_vm4, %v2865_v39, %v1143_v25 }
 0x16e   :  { %1920 = vrot.lane.b32.xlu0 %v8127_v5, %s7564_s17 }
 0x16f   :  { %2176 = vrot.lane.b32.xlu1 %v8175_v7, %s7565_s18 }
 0x170   :  { %v1399_v40 = vpop.permute.xlu0 %1398  ;;  %896 = vrot.lane.b32.xlu2 %v8022_v6, %s7558_s24 }
 0x171   :  { %v1655_v43 = vpop.permute.xlu1 %1654  ;;  %v2995_v17 = vsel %vm2989_vm5, %v2930_v41, %v1399_v40  ;;  %v8268_v41 = vld [vmem:[#allocation2 + $0xb2] sm:$0xff] }
 0x172   :  { %v2679_v44 = vpop.permute.xlu2 %2678  ;;  %v3060_v47 = vsel %vm3054_vm6, %v2995_v17, %v1655_v43  ;;  %v8271_v17 = vld [vmem:[#allocation2 + $0x1fa] sm:$0xff] }
 0x173   :  { %v3125_v6 = vsel %vm3119_vm7, %v3060_v47, %v1911_v38 }
 0x176   :  { %2432 = vrot.lane.b32.xlu0 %v8191_v45, %s7562_s15 }
 0x177   :  { %1200 = vrot.lane.b32.xlu1 %v397_v42, %s7559_s25  ;;  %v122_v42 = vld [vmem:[%s13497_s0 + $0x78] sm:$0xff] }
 0x178   :  { %v2167_v50 = vpop.permute.xlu0 %2166  ;;  %1664 = vrot.lane.b32.xlu2 %v8093_v53, %s7561_s29  ;;  %186 = vst.msk [vmem:[#allocation2 + $0xc9] sm:$0xff] %vm26_vm0, %v122_v42 }
 0x179   :  { %v3190_v51 = vsel %vm3184_vm8, %v3125_v6, %v2167_v50  ;;  %v2423_v54 = vpop.permute.xlu1 %2422 }
 0x17a   :  { %v3255_v55 = vsel %vm3249_vm9, %v3190_v51, %v2423_v54  ;;  %v1401_v56 = vpop.permute.xlu2 %1400 }
 0x17b   :  { %v3320_v14 = vsel %vm3314_vm10, %v3255_v55, %v2679_v44  ;;  %v121_v44 = vld [vmem:[%s13497_s0 + $0x70] sm:$0xff] }
 0x17c   :  { %7446 = vmatmul.msk.f32.gmra.mxu0 %vm3384_vm11, %v3320_v14  ;;  %185 = vst.msk [vmem:[#allocation2 + $0xc1] sm:$0xff] %vm26_vm0, %v121_v44  ;;  %v8290_v55 = vld [vmem:[#allocation2 + $0x1e9] sm:$0xff] }
 0x17e   :  { %898 = vrot.lane.b32.xlu0 %v8081_v46, %s7558_s24  ;;  %v8219_v46 = vld [vmem:[#allocation2 + $0xaa] sm:$0xff] }
 0x17f   :  { %1456 = vrot.lane.b32.xlu1 %v8204_v57, %s7560_s28 }
 0x180   :  { %v889_v60 = vpop.permute.xlu0 %888  ;;  %944 = vrot.lane.b32.xlu2 %v333_v58, %s7558_s24 }
 0x181   :  { %v1145_v61 = vpop.permute.xlu1 %1144  ;;  %v2866_v37 = vsel %vm26_vm0, %v7897_v23, %v889_v60 }
 0x182   :  { %v2169_v62 = vpop.permute.xlu2 %2168  ;;  %v2931_v49 = vsel %vm2924_vm4, %v2866_v37, %v1145_v61 }
 0x183   :  { %v2996_v2 = vsel %vm2989_vm5, %v2931_v49, %v1401_v56  ;;  %v398_v56 = vld [vmem:[#allocation2 + $0x1d2] sm:$0xff] }
 0x186   :  { %1712 = vrot.lane.b32.xlu0 %v8217_v0, %s7561_s29 }
 0x187   :  { %1410 = vrot.lane.b32.xlu1 %v8160_v29, %s7560_s28 }
 0x188   :  { %v1657_v1 = vpop.permute.xlu0 %1656  ;;  %2688 = vrot.lane.b32.xlu2 %v8219_v46, %s7563_s16 }
 0x189   :  { %v1913_v3 = vpop.permute.xlu1 %1912  ;;  %v3061_v23 = vsel %vm3054_vm6, %v2996_v2, %v1657_v1 }
 0x18a   :  { %v891_v63 = vpop.permute.xlu2 %890  ;;  %v3126_v9 = vsel %vm3119_vm7, %v3061_v23, %v1913_v3 }
 0x18b   :  { %v3191_v11 = vsel %vm3184_vm8, %v3126_v9, %v2169_v62  ;;  %v8301_v62 = vld [vmem:[#allocation2 + $0x1ea] sm:$0xff]  ;;  %v8317_v9 = vld [vmem:[#allocation2 + $0x201] sm:$0xff] }
 0x18e   :  { %1666 = vrot.lane.b32.xlu0 %v8142_v13, %s7561_s29 }
 0x18f   :  { %2224 = vrot.lane.b32.xlu1 %v8230_v8, %s7565_s18 }
 0x190   :  { %v2425_v10 = vpop.permute.xlu0 %2424  ;;  %1154 = vrot.lane.b32.xlu2 %v8067_v36, %s7559_s25  ;;  %v2867_v36 = vsel %vm26_vm0, %v7934_v30, %v891_v63 }
 0x191   :  { %v3256_v12 = vsel %vm3249_vm9, %v3191_v11, %v2425_v10  ;;  %v2681_v18 = vpop.permute.xlu1 %2680  ;;  %v145_v10 = vld [vmem:[%s13497_s0 + $0x130] sm:$0xff] }
 0x192   :  { %v1659_v15 = vpop.permute.xlu2 %1658  ;;  %v3321_v20 = vsel %vm3314_vm10, %v3256_v12, %v2681_v18  ;;  %209 = vst.msk [vmem:[#allocation2 + $0x211] sm:$0xff] %vm26_vm0, %v145_v10 }
 0x193   :  { %7447 = vmatmul.msk.f32.gmra.mxu0 %vm3384_vm11, %v3321_v20  ;;  %v8331_v20 = vld [vmem:[#allocation2 + $0x202] sm:$0xff] }
 0x196   :  { %2480 = vrot.lane.b32.xlu0 %v8243_v21, %s7562_s15 }
 0x197   :  { %2178 = vrot.lane.b32.xlu1 %v8245_v22, %s7565_s18 }
 0x198   :  { %v1147_v25 = vpop.permute.xlu0 %1146  ;;  %1968 = vrot.lane.b32.xlu2 %v8247_v24, %s7564_s17 }
 0x199   :  { %v1403_v27 = vpop.permute.xlu1 %1402  ;;  %v2932_v32 = vsel %vm2924_vm4, %v2867_v36, %v1147_v25  ;;  %v8333_v36 = vld [vmem:[#allocation2 + $0x200] sm:$0xff] }
 0x19a   :  { %v2427_v31 = vpop.permute.xlu2 %2426  ;;  %v2997_v35 = vsel %vm2989_vm5, %v2932_v32, %v1403_v27  ;;  %v146_v27 = vld [vmem:[%s13497_s0 + $0x138] sm:$0xff] }
 0x19b   :  { %v3062_v30 = vsel %vm3054_vm6, %v2997_v35, %v1659_v15  ;;  %210 = vst.msk [vmem:[#allocation2 + $0x219] sm:$0xff] %vm26_vm0, %v146_v27  ;;  %v269_v27 = vld [vmem:[#allocation2 + $0x1c8] sm:$0xff] }
 0x19e   :  { %946 = vrot.lane.b32.xlu0 %v334_v33, %s7558_s24 }
 0x19f   :  { %2434 = vrot.lane.b32.xlu1 %v8258_v4, %s7562_s15 }
 0x1a0   :  { %v1915_v38 = vpop.permute.xlu0 %1914  ;;  %1922 = vrot.lane.b32.xlu2 %v8144_v16, %s7564_s17 }
 0x1a1   :  { %v2171_v39 = vpop.permute.xlu1 %2170  ;;  %v3127_v28 = vsel %vm3119_vm7, %v3062_v30, %v1915_v38  ;;  %v8348_v38 = vld [vmem:[#allocation2 + $0xc2] sm:$0xff] }
 0x1a2   :  { %v1149_v40 = vpop.permute.xlu2 %1148  ;;  %v3192_v43 = vsel %vm3184_vm8, %v3127_v28, %v2171_v39  ;;  %v8351_v39 = vld [vmem:[#allocation2 + $0xc0] sm:$0xff] }
 0x1a3   :  { %v3257_v50 = vsel %vm3249_vm9, %v3192_v43, %v2427_v31 }
 0x1a6   :  { %2690 = vrot.lane.b32.xlu0 %v8268_v41, %s7563_s16 }
 0x1a7   :  { %900 = vrot.lane.b32.xlu1 %v8093_v53, %s7558_s24 }
 0x1a8   :  { %v2683_v47 = vpop.permute.xlu0 %2682  ;;  %2736 = vrot.lane.b32.xlu2 %v8271_v17, %s7563_s16 }
 0x1a9   :  { %v893_v6 = vpop.permute.xlu1 %892  ;;  %v3322_v51 = vsel %vm3314_vm10, %v3257_v50, %v2683_v47  ;;  %v8363_v47 = vld [vmem:[#allocation2 + $0xc1] sm:$0xff] }
 0x1aa   :  { %v1917_v54 = vpop.permute.xlu2 %1916  ;;  %7448 = vmatmul.msk.f32.gmra.mxu0 %vm3384_vm11, %v3322_v51  ;;  %v2868_v53 = vsel %vm26_vm0, %v7950_v34, %v893_v6  ;;  %v8304_v34 = vld [vmem:[#allocation2 + $0x1e8] sm:$0xff] }
 0x1ab   :  { %v2933_v58 = vsel %vm2924_vm4, %v2868_v53, %v1149_v40 }
 0x1ae   :  { %1156 = vrot.lane.b32.xlu0 %v8127_v5, %s7559_s25 }
 0x1af   :  { %1714 = vrot.lane.b32.xlu1 %v8290_v55, %s7561_s29 }
 0x1b0   :  { %v1405_v14 = vpop.permute.xlu0 %1404  ;;  %1202 = vrot.lane.b32.xlu2 %v398_v56, %s7559_s25 }
 0x1b1   :  { %v1661_v59 = vpop.permute.xlu1 %1660  ;;  %v2998_v60 = vsel %vm2989_vm5, %v2933_v58, %v1405_v14  ;;  %v8381_v58 = vld [vmem:[#allocation2 + $0x210] sm:$0xff] }
 0x1b2   :  { %v2685_v61 = vpop.permute.xlu2 %2684  ;;  %v3063_v37 = vsel %vm3054_vm6, %v2998_v60, %v1661_v59 }
 0x1b3   :  { %v3128_v49 = vsel %vm3119_vm7, %v3063_v37, %v1917_v54 }
 0x1b6   :  { %1970 = vrot.lane.b32.xlu0 %v8301_v62, %s7564_s17 }
 0x1b7   :  { %1668 = vrot.lane.b32.xlu1 %v8191_v45, %s7561_s29 }
 0x1b8   :  { %v2173_v5 = vpop.permute.xlu0 %2172  ;;  %1458 = vrot.lane.b32.xlu2 %v8304_v34, %s7560_s28 }
 0x1b9   :  { %v3193_v1 = vsel %vm3184_vm8, %v3128_v49, %v2173_v5  ;;  %v2429_v2 = vpop.permute.xlu1 %2428 }
 0x1ba   :  { %v3258_v3 = vsel %vm3249_vm9, %v3193_v1, %v2429_v2  ;;  %v1407_v23 = vpop.permute.xlu2 %1406  ;;  %v8395_v1 = vld [vmem:[#allocation2 + $0xc8] sm:$0xff]  ;;  %v8397_v2 = vld [vmem:[#allocation2 + $0x212] sm:$0xff] }
 0x1bb   :  { %v3323_v63 = vsel %vm3314_vm10, %v3258_v3, %v2685_v61  ;;  %v123_v3 = vld [vmem:[%s13497_s0 + $0x80] sm:$0xff] }
 0x1bc   :  { %7449 = vmatmul.msk.f32.gmra.mxu0 %vm3384_vm11, %v3323_v63  ;;  %187 = vst.msk [vmem:[#allocation2 + $0xd9] sm:$0xff] %vm26_vm0, %v123_v3 }
 0x1be   :  { %1924 = vrot.lane.b32.xlu0 %v8219_v46, %s7564_s17 }
 0x1bf   :  { %2482 = vrot.lane.b32.xlu1 %v8317_v9, %s7562_s15 }
 0x1c0   :  { %v895_v11 = vpop.permute.xlu0 %894  ;;  %1412 = vrot.lane.b32.xlu2 %v8175_v7, %s7560_s28 }
 0x1c1   :  { %v1151_v12 = vpop.permute.xlu1 %1150  ;;  %v2869_v15 = vsel %vm26_vm0, %v7988_v48, %v895_v11  ;;  %v8409_v11 = vld [vmem:[#allocation2 + $0xc9] sm:$0xff] }
 0x1c2   :  { %v2175_v18 = vpop.permute.xlu2 %2174  ;;  %v2934_v25 = vsel %vm2924_vm4, %v2869_v15, %v1151_v12  ;;  %v8411_v12 = vld [vmem:[#allocation2 + $0x211] sm:$0xff] }
 0x1c3   :  { %v2999_v48 = vsel %vm2989_vm5, %v2934_v25, %v1407_v23  ;;  %v8478_v3 = vld [vmem:[#allocation2 + $0xd9] sm:$0xff] }
 0x1c6   :  { %2738 = vrot.lane.b32.xlu0 %v8331_v20, %s7563_s16 }
 0x1c7   :  { %948 = vrot.lane.b32.xlu1 %v8217_v0, %s7558_s24 }
 0x1c8   :  { %v1663_v31 = vpop.permute.xlu0 %1662  ;;  %2226 = vrot.lane.b32.xlu2 %v8333_v36, %s7565_s18 }
 0x1c9   :  { %v1919_v32 = vpop.permute.xlu1 %1918  ;;  %v3064_v33 = vsel %vm3054_vm6, %v2999_v48, %v1663_v31  ;;  %v124_v31 = vld [vmem:[%s13497_s0 + $0x88] sm:$0xff] }
 0x1ca   :  { %v897_v35 = vpop.permute.xlu2 %896  ;;  %v3129_v30 = vsel %vm3119_vm7, %v3064_v33, %v1919_v32  ;;  %188 = vst.msk [vmem:[#allocation2 + $0xe1] sm:$0xff] %vm26_vm0, %v124_v31 }
 0x1cb   :  { %v3194_v28 = vsel %vm3184_vm8, %v3129_v30, %v2175_v18  ;;  %v2870_v51 = vsel %vm26_vm0, %v8040_v19, %v897_v35 }
 0x1ce   :  { %1204 = vrot.lane.b32.xlu0 %v8247_v24, %s7559_s25 }
 0x1cf   :  { %2692 = vrot.lane.b32.xlu1 %v8348_v38, %s7563_s16 }
 0x1d0   :  { %v2431_v0 = vpop.permute.xlu0 %2430  ;;  %2180 = vrot.lane.b32.xlu2 %v8351_v39, %s7565_s18 }
 0x1d1   :  { %v3259_v40 = vsel %vm3249_vm9, %v3194_v28, %v2431_v0  ;;  %v2687_v43 = vpop.permute.xlu1 %2686 }
 0x1d2   :  { %v1665_v44 = vpop.permute.xlu2 %1664  ;;  %v3324_v42 = vsel %vm3314_vm10, %v3259_v40, %v2687_v43 }
 0x1d3   :  { %7450 = vmatmul.msk.f32.gmra.mxu0 %vm3384_vm11, %v3324_v42 }
 0x1d6   :  { %1460 = vrot.lane.b32.xlu0 %v8230_v8, %s7560_s28 }
 0x1d7   :  { %1158 = vrot.lane.b32.xlu1 %v8144_v16, %s7559_s25 }
 0x1d8   :  { %v1153_v24 = vpop.permute.xlu0 %1152  ;;  %2436 = vrot.lane.b32.xlu2 %v8363_v47, %s7562_s15 }
 0x1d9   :  { %v1409_v50 = vpop.permute.xlu1 %1408  ;;  %v2935_v54 = vsel %vm2924_vm4, %v2870_v51, %v1153_v24 }
 0x1da   :  { %v945_v6 = vpop.permute.xlu2 %944  ;;  %v3000_v16 = vsel %vm2989_vm5, %v2935_v54, %v1409_v50  ;;  %v8446_v50 = vld [vmem:[#allocation2 + $0x218] sm:$0xff] }
 0x1db   :  { %v3065_v19 = vsel %vm3054_vm6, %v3000_v16, %v1665_v44  ;;  %v2894_v48 = vsel %vm26_vm0, %v269_v27, %v945_v6  ;;  %v270_v27 = vld [vmem:[#allocation2 + $0x1d0] sm:$0xff] }
 0x1de   :  { %1414 = vrot.lane.b32.xlu0 %v8245_v22, %s7560_s28 }
 0x1df   :  { %1972 = vrot.lane.b32.xlu1 %v8271_v17, %s7564_s17 }
 0x1e0   :  { %v1921_v56 = vpop.permute.xlu0 %1920  ;;  %902 = vrot.lane.b32.xlu2 %v8142_v13, %s7558_s24 }
 0x1e1   :  { %v2177_v53 = vpop.permute.xlu1 %2176  ;;  %v3130_v59 = vsel %vm3119_vm7, %v3065_v19, %v1921_v56  ;;  %v8459_v19 = vld [vmem:[#allocation2 + $0x219] sm:$0xff] }
 0x1e2   :  { %v2689_v14 = vpop.permute.xlu2 %2688  ;;  %v3195_v60 = vsel %vm3184_vm8, %v3130_v59, %v2177_v53 }
 0x1e6   :  { %2228 = vrot.lane.b32.xlu0 %v8381_v58, %s7565_s18 }
 0x1e7   :  { %1926 = vrot.lane.b32.xlu1 %v8268_v41, %s7564_s17 }
 0x1e8   :  { %v2433_v61 = vpop.permute.xlu0 %2432  ;;  %1716 = vrot.lane.b32.xlu2 %v8243_v21, %s7561_s29 }
 0x1e9   :  { %v3260_v13 = vsel %vm3249_vm9, %v3195_v60, %v2433_v61  ;;  %v1201_v37 = vpop.permute.xlu1 %1200 }
 0x1ea   :  { %v1155_v5 = vpop.permute.xlu2 %1154  ;;  %v3325_v49 = vsel %vm3314_vm10, %v3260_v13, %v2689_v14  ;;  %v2959_v33 = vsel %vm2924_vm4, %v2894_v48, %v1201_v37 }
 0x1eb   :  { %7451 = vmatmul.msk.f32.gmra.mxu0 %vm3384_vm11, %v3325_v49 }
 0x1ee   :  { %2182 = vrot.lane.b32.xlu0 %v8395_v1, %s7565_s18 }
 0x1ef   :  { %2740 = vrot.lane.b32.xlu1 %v8397_v2, %s7563_s16 }
 0x1f0   :  { %v899_v23 = vpop.permute.xlu0 %898  ;;  %1670 = vrot.lane.b32.xlu2 %v8258_v4, %s7561_s29 }
 0x1f1   :  { %v1457_v63 = vpop.permute.xlu1 %1456  ;;  %v2871_v6 = vsel %vm26_vm0, %v8051_v26, %v899_v23  ;;  %v8461_v26 = vld [vmem:[#allocation2 + $0xd8] sm:$0xff]  ;;  %v148_v23 = vld [vmem:[%s13497_s0 + $0x148] sm:$0xff] }
 0x1f2   :  { %v1969_v10 = vpop.permute.xlu2 %1968  ;;  %v3024_v30 = vsel %vm2989_vm5, %v2959_v33, %v1457_v63  ;;  %v2936_v54 = vsel %vm2924_vm4, %v2871_v6, %v1155_v5  ;;  %212 = vst.msk [vmem:[#allocation2 + $0x231] sm:$0xff] %vm26_vm0, %v148_v23  ;;  %v8553_v23 = vld [vmem:[#allocation2 + $0xe2] sm:$0xff] }
 0x1f6   :  { %2438 = vrot.lane.b32.xlu0 %v8409_v11, %s7562_s15 }
 0x1f7   :  { %1206 = vrot.lane.b32.xlu1 %v8301_v62, %s7559_s25 }
 0x1f8   :  { %v1713_v18 = vpop.permute.xlu0 %1712  ;;  %2484 = vrot.lane.b32.xlu2 %v8411_v12, %s7562_s15 }
 0x1f9   :  { %v1411_v15 = vpop.permute.xlu1 %1410  ;;  %v3089_v0 = vsel %vm3054_vm6, %v3024_v30, %v1713_v18 }
 0x1fa   :  { %v1923_v25 = vpop.permute.xlu2 %1922  ;;  %v3154_v28 = vsel %vm3119_vm7, %v3089_v0, %v1969_v10  ;;  %v3001_v16 = vsel %vm2989_vm5, %v2936_v54, %v1411_v15  ;;  %v8490_v15 = vld [vmem:[#allocation2 + $0xda] sm:$0xff] }
 0x1fe   :  { %904 = vrot.lane.b32.xlu0 %v8191_v45, %s7558_s24  ;;  %v8433_v45 = vld [vmem:[#allocation2 + $0xca] sm:$0xff] }
 0x1ff   :  { %1462 = vrot.lane.b32.xlu1 %v8333_v36, %s7560_s28 }
 0x200   :  { %v1667_v62 = vpop.permute.xlu0 %1666  ;;  %950 = vrot.lane.b32.xlu2 %v8290_v55, %s7558_s24 }
 0x201   :  { %v2225_v32 = vpop.permute.xlu1 %2224  ;;  %v3066_v14 = vsel %vm3054_vm6, %v3001_v16, %v1667_v62 }
 0x202   :  { %v2737_v35 = vpop.permute.xlu2 %2736  ;;  %v3219_v55 = vsel %vm3184_vm8, %v3154_v28, %v2225_v32  ;;  %v3131_v59 = vsel %vm3119_vm7, %v3066_v14, %v1923_v25  ;;  %v8492_v25 = vld [vmem:[#allocation2 + $0x21a] sm:$0xff] }
 0x206   :  { %1718 = vrot.lane.b32.xlu0 %v8317_v9, %s7561_s29 }
 0x207   :  { %1416 = vrot.lane.b32.xlu1 %v8351_v39, %s7560_s28 }
 0x208   :  { %v2481_v40 = vpop.permute.xlu0 %2480  ;;  %2694 = vrot.lane.b32.xlu2 %v8433_v45, %s7563_s16 }
 0x209   :  { %v3284_v43 = vsel %vm3249_vm9, %v3219_v55, %v2481_v40  ;;  %v2179_v44 = vpop.permute.xlu1 %2178 }
 0x20a   :  { %v1203_v42 = vpop.permute.xlu2 %1202  ;;  %v3349_v24 = vsel %vm3314_vm10, %v3284_v43, %v2737_v35  ;;  %v3196_v60 = vsel %vm3184_vm8, %v3131_v59, %v2179_v44 }
 0x20b   :  { %7475 = vmatmul.msk.f32.vlgmr.msra.gmra.mxu3 %vm3384_vm11, %v3349_v24 }
 0x20e   :  { %1672 = vrot.lane.b32.xlu0 %v8363_v47, %s7561_s29 }
 0x20f   :  { %2230 = vrot.lane.b32.xlu1 %v8446_v50, %s7565_s18 }
 0x210   :  { %v947_v51 = vpop.permute.xlu0 %946  ;;  %1160 = vrot.lane.b32.xlu2 %v8219_v46, %s7559_s25  ;;  %v147_v46 = vld [vmem:[%s13497_s0 + $0x140] sm:$0xff] }
 0x211   :  { %v2435_v56 = vpop.permute.xlu1 %2434  ;;  %211 = vst.msk [vmem:[#allocation2 + $0x229] sm:$0xff] %vm26_vm0, %v147_v46  ;;  %v2895_v62 = vsel %vm26_vm0, %v270_v27, %v947_v51 }
 0x212   :  { %v1459_v53 = vpop.permute.xlu2 %1458  ;;  %v3261_v61 = vsel %vm3249_vm9, %v3196_v60, %v2435_v56  ;;  %v2960_v32 = vsel %vm2924_vm4, %v2895_v62, %v1203_v42 }
 0x213   :  { %v3025_v35 = vsel %vm2989_vm5, %v2960_v32, %v1459_v53 }
 0x216   :  { %2486 = vrot.lane.b32.xlu0 %v8459_v19, %s7562_s15 }
 0x217   :  { %2184 = vrot.lane.b32.xlu1 %v8461_v26, %s7565_s18 }
 0x218   :  { %v2691_v13 = vpop.permute.xlu0 %2690  ;;  %1974 = vrot.lane.b32.xlu2 %v8331_v20, %s7564_s17  ;;  %v8527_v54 = vld [vmem:[#allocation2 + $0x229] sm:$0xff] }
 0x219   :  { %v901_v37 = vpop.permute.xlu1 %900  ;;  %v3326_v5 = vsel %vm3314_vm10, %v3261_v61, %v2691_v13  ;;  %v8539_v60 = vld [vmem:[#allocation2 + $0x22a] sm:$0xff] }
 0x21a   :  { %v1413_v49 = vpop.permute.xlu2 %1412  ;;  %7452 = vmatmul.msk.f32.gmra.mxu0 %vm3384_vm11, %v3326_v5  ;;  %v8541_v61 = vld [vmem:[#allocation2 + $0x228] sm:$0xff]  ;;  %v125_v13 = vld [vmem:[%s13497_s0 + $0x90] sm:$0xff] }
 0x21b   :  { %189 = vst.msk [vmem:[#allocation2 + $0xf1] sm:$0xff] %vm26_vm0, %v125_v13 }
 0x21e   :  { %952 = vrot.lane.b32.xlu0 %v8243_v21, %s7558_s24 }
 0x21f   :  { %2440 = vrot.lane.b32.xlu1 %v8478_v3, %s7562_s15 }
 0x220   :  { %v1157_v63 = vpop.permute.xlu0 %1156  ;;  %1928 = vrot.lane.b32.xlu2 %v8348_v38, %s7564_s17 }
 0x221   :  { %v1715_v10 = vpop.permute.xlu1 %1714 }
 0x222   :  { %v2227_v18 = vpop.permute.xlu2 %2226  ;;  %v3090_v0 = vsel %vm3054_vm6, %v3025_v35, %v1715_v10  ;;  %v8623_v13 = vld [vmem:[#allocation2 + $0xf1] sm:$0xff] }
 0x226   :  { %2696 = vrot.lane.b32.xlu0 %v8490_v15, %s7563_s16 }
 0x227   :  { %906 = vrot.lane.b32.xlu1 %v8258_v4, %s7558_s24 }
 0x228   :  { %v1971_v21 = vpop.permute.xlu0 %1970  ;;  %2742 = vrot.lane.b32.xlu2 %v8492_v25, %s7563_s16 }
 0x229   :  { %v1669_v31 = vpop.permute.xlu1 %1668  ;;  %v3155_v28 = vsel %vm3119_vm7, %v3090_v0, %v1971_v21  ;;  %v8563_v21 = vld [vmem:[#allocation2 + $0xe1] sm:$0xff] }
 0x22a   :  { %v2181_v48 = vpop.permute.xlu2 %2180  ;;  %v3220_v40 = vsel %vm3184_vm8, %v3155_v28, %v2227_v18 }
 0x22e   :  { %1162 = vrot.lane.b32.xlu0 %v8268_v41, %s7559_s25  ;;  %v2872_v41 = vsel %vm26_vm0, %v8091_v52, %v901_v37 }
 0x22f   :  { %1720 = vrot.lane.b32.xlu1 %v8411_v12, %s7561_s29  ;;  %v2937_v55 = vsel %vm2924_vm4, %v2872_v41, %v1157_v63  ;;  %v8555_v63 = vld [vmem:[#allocation2 + $0xe0] sm:$0xff] }
 0x230   :  { %v1925_v33 = vpop.permute.xlu0 %1924  ;;  %1208 = vrot.lane.b32.xlu2 %v8271_v17, %s7559_s25  ;;  %v3002_v44 = vsel %vm2989_vm5, %v2937_v55, %v1413_v49 }
 0x231   :  { %v2483_v4 = vpop.permute.xlu1 %2482  ;;  %v3067_v24 = vsel %vm3054_vm6, %v3002_v44, %v1669_v31 }
 0x232   :  { %v2437_v30 = vpop.permute.xlu2 %2436  ;;  %v3285_v17 = vsel %vm3249_vm9, %v3220_v40, %v2483_v4  ;;  %v3132_v51 = vsel %vm3119_vm7, %v3067_v24, %v1925_v33 }
 0x233   :  { %v3197_v56 = vsel %vm3184_vm8, %v3132_v51, %v2181_v48 }
 0x234   :  { %v3262_v53 = vsel %vm3249_vm9, %v3197_v56, %v2437_v30 }
 0x236   :  { %1976 = vrot.lane.b32.xlu0 %v8397_v2, %s7564_s17 }
 0x237   :  { %1674 = vrot.lane.b32.xlu1 %v8409_v11, %s7561_s29 }
 0x238   :  { %v2739_v43 = vpop.permute.xlu0 %2738  ;;  %1464 = vrot.lane.b32.xlu2 %v8381_v58, %s7560_s28 }
 0x239   :  { %v949_v42 = vpop.permute.xlu1 %948  ;;  %v3350_v52 = vsel %vm3314_vm10, %v3285_v17, %v2739_v43  ;;  %v8595_v17 = vld [vmem:[#allocation2 + $0x230] sm:$0xff] }
 0x23a   :  { %v903_v6 = vpop.permute.xlu2 %902  ;;  %7476 = vmatmul.msk.f32.gmra.mxu3 %vm3384_vm11, %v3350_v52  ;;  %v2896_v27 = vsel %vm26_vm0, %v8204_v57, %v949_v42 }
 0x23b   :  { %v2873_v57 = vsel %vm26_vm0, %v8160_v29, %v903_v6 }
 0x23e   :  { %1930 = vrot.lane.b32.xlu0 %v8433_v45, %s7564_s17 }
 0x23f   :  { %2488 = vrot.lane.b32.xlu1 %v8527_v54, %s7562_s15 }
 0x240   :  { %v1205_v16 = vpop.permute.xlu0 %1204  ;;  %1418 = vrot.lane.b32.xlu2 %v8395_v1, %s7560_s28 }
 0x241   :  { %v2693_v14 = vpop.permute.xlu1 %2692 }
 0x242   :  { %v1717_v59 = vpop.permute.xlu2 %1716  ;;  %v3327_v46 = vsel %vm3314_vm10, %v3262_v53, %v2693_v14  ;;  %v8615_v53 = vld [vmem:[#allocation2 + $0x232] sm:$0xff] }
 0x243   :  { %7453 = vmatmul.msk.f32.gmra.mxu0 %vm3384_vm11, %v3327_v46 }
 0x246   :  { %2744 = vrot.lane.b32.xlu0 %v8539_v60, %s7563_s16 }
 0x247   :  { %954 = vrot.lane.b32.xlu1 %v8317_v9, %s7558_s24 }
 0x248   :  { %v1461_v37 = vpop.permute.xlu0 %1460  ;;  %2232 = vrot.lane.b32.xlu2 %v8541_v61, %s7565_s18 }
 0x249   :  { %v1159_v5 = vpop.permute.xlu1 %1158 }
 0x24a   :  { %v1671_v49 = vpop.permute.xlu2 %1670  ;;  %v2938_v41 = vsel %vm2924_vm4, %v2873_v57, %v1159_v5 }
 0x24e   :  { %1210 = vrot.lane.b32.xlu0 %v8331_v20, %s7559_s25  ;;  %v2961_v20 = vsel %vm2924_vm4, %v2896_v27, %v1205_v16  ;;  %v8613_v16 = vld [vmem:[#allocation2 + $0xf0] sm:$0xff] }
 0x24f   :  { %2698 = vrot.lane.b32.xlu1 %v8553_v23, %s7563_s16  ;;  %v3026_v48 = vsel %vm2989_vm5, %v2961_v20, %v1461_v37  ;;  %v8625_v37 = vld [vmem:[#allocation2 + $0x231] sm:$0xff] }
 0x250   :  { %v1415_v10 = vpop.permute.xlu0 %1414  ;;  %2186 = vrot.lane.b32.xlu2 %v8555_v63, %s7565_s18  ;;  %v3091_v33 = vsel %vm3054_vm6, %v3026_v48, %v1717_v59 }
 0x251   :  { %v1973_v9 = vpop.permute.xlu1 %1972  ;;  %v3003_v40 = vsel %vm2989_vm5, %v2938_v41, %v1415_v10 }
 0x252   :  { %v2485_v18 = vpop.permute.xlu2 %2484  ;;  %v3156_v4 = vsel %vm3119_vm7, %v3091_v33, %v1973_v9  ;;  %v3068_v43 = vsel %vm3054_vm6, %v3003_v40, %v1671_v49 }
 0x256   :  { %1466 = vrot.lane.b32.xlu0 %v8446_v50, %s7560_s28 }
 0x257   :  { %1164 = vrot.lane.b32.xlu1 %v8348_v38, %s7559_s25  ;;  %v126_v38 = vld [vmem:[%s13497_s0 + $0x98] sm:$0xff] }
 0x258   :  { %v2229_v31 = vpop.permute.xlu0 %2228  ;;  %2442 = vrot.lane.b32.xlu2 %v8563_v21, %s7562_s15  ;;  %190 = vst.msk [vmem:[#allocation2 + $0xf9] sm:$0xff] %vm26_vm0, %v126_v38 }
 0x259   :  { %v1927_v62 = vpop.permute.xlu1 %1926  ;;  %v3221_v35 = vsel %vm3184_vm8, %v3156_v4, %v2229_v31 }
 0x25a   :  { %v951_v32 = vpop.permute.xlu2 %950  ;;  %v3286_v28 = vsel %vm3249_vm9, %v3221_v35, %v2485_v18  ;;  %v3133_v44 = vsel %vm3119_vm7, %v3068_v43, %v1927_v62  ;;  %v150_v18 = vld [vmem:[%s13497_s0 + $0x158] sm:$0xff] }
 0x25b   :  { %v2897_v9 = vsel %vm26_vm0, %v8304_v34, %v951_v32  ;;  %214 = vst.msk [vmem:[#allocation2 + $0x249] sm:$0xff] %vm26_vm0, %v150_v18 }
 0x25e   :  { %1420 = vrot.lane.b32.xlu0 %v8461_v26, %s7560_s28 }
 0x25f   :  { %1978 = vrot.lane.b32.xlu1 %v8492_v25, %s7564_s17  ;;  %v8648_v48 = vld [vmem:[#allocation2 + $0xf2] sm:$0xff] }
 0x260   :  { %v2183_v30 = vpop.permute.xlu0 %2182  ;;  %908 = vrot.lane.b32.xlu2 %v8363_v47, %s7558_s24  ;;  %v149_v47 = vld [vmem:[%s13497_s0 + $0x150] sm:$0xff] }
 0x261   :  { %v2741_v0 = vpop.permute.xlu1 %2740  ;;  %213 = vst.msk [vmem:[#allocation2 + $0x241] sm:$0xff] %vm26_vm0, %v149_v47  ;;  %v3198_v42 = vsel %vm3184_vm8, %v3133_v44, %v2183_v30 }
 0x262   :  { %v2695_v55 = vpop.permute.xlu2 %2694  ;;  %v3351_v29 = vsel %vm3314_vm10, %v3286_v28, %v2741_v0 }
 0x263   :  { %7477 = vmatmul.msk.f32.gmra.mxu3 %vm3384_vm11, %v3351_v29 }
 0x266   :  { %2234 = vrot.lane.b32.xlu0 %v8595_v17, %s7565_s18 }
 0x267   :  { %1932 = vrot.lane.b32.xlu1 %v8490_v15, %s7564_s17 }
 0x268   :  { %v2439_v52 = vpop.permute.xlu0 %2438  ;;  %1722 = vrot.lane.b32.xlu2 %v8459_v19, %s7561_s29  ;;  %v8661_v38 = vld [vmem:[#allocation2 + $0x240] sm:$0xff] }
 0x269   :  { %v3263_v24 = vsel %vm3249_vm9, %v3198_v42, %v2439_v52  ;;  %v1207_v6 = vpop.permute.xlu1 %1206  ;;  %v8674_v43 = vld [vmem:[#allocation2 + $0x241] sm:$0xff] }
 0x26a   :  { %v1161_v51 = vpop.permute.xlu2 %1160  ;;  %v3328_v56 = vsel %vm3314_vm10, %v3263_v24, %v2695_v55  ;;  %v2962_v20 = vsel %vm2924_vm4, %v2897_v9, %v1207_v6 }
 0x26b   :  { %7454 = vmatmul.msk.f32.gmra.mxu0 %vm3384_vm11, %v3328_v56 }
 0x26e   :  { %2188 = vrot.lane.b32.xlu0 %v8613_v16, %s7565_s18 }
 0x26f   :  { %2746 = vrot.lane.b32.xlu1 %v8615_v53, %s7563_s16 }
 0x270   :  { %v905_v14 = vpop.permute.xlu0 %904  ;;  %1676 = vrot.lane.b32.xlu2 %v8478_v3, %s7561_s29 }
 0x271   :  { %v1463_v59 = vpop.permute.xlu1 %1462  ;;  %v2874_v30 = vsel %vm26_vm0, %v8175_v7, %v905_v14  ;;  %v8676_v7 = vld [vmem:[#allocation2 + $0xf8] sm:$0xff] }
 0x272   :  { %v1975_v46 = vpop.permute.xlu2 %1974  ;;  %v3027_v31 = vsel %vm2989_vm5, %v2962_v20, %v1463_v59  ;;  %v2939_v28 = vsel %vm2924_vm4, %v2874_v30, %v1161_v51  ;;  %v8689_v51 = vld [vmem:[#allocation2 + $0xf9] sm:$0xff] }
 0x276   :  { %2444 = vrot.lane.b32.xlu0 %v8623_v13, %s7562_s15 }
 0x277   :  { %1212 = vrot.lane.b32.xlu1 %v8397_v2, %s7559_s25 }
 0x278   :  { %v1719_v5 = vpop.permute.xlu0 %1718  ;;  %2490 = vrot.lane.b32.xlu2 %v8625_v37, %s7562_s15 }
 0x279   :  { %v1417_v49 = vpop.permute.xlu1 %1416  ;;  %v3092_v34 = vsel %vm3054_vm6, %v3027_v31, %v1719_v5  ;;  %v8699_v5 = vld [vmem:[#allocation2 + $0x242] sm:$0xff] }
 0x27a   :  { %v1929_v10 = vpop.permute.xlu2 %1928  ;;  %v3157_v62 = vsel %vm3119_vm7, %v3092_v34, %v1975_v46  ;;  %v3004_v55 = vsel %vm2989_vm5, %v2939_v28, %v1417_v49  ;;  %v8697_v46 = vld [vmem:[#allocation2 + $0xfa] sm:$0xff]  ;;  %v128_v49 = vld [vmem:[%s13497_s0 + $0xa8] sm:$0xff] }
 0x27b   :  { %192 = vst.msk [vmem:[#allocation2 + $0x111] sm:$0xff] %vm26_vm0, %v128_v49  ;;  %v151_v28 = vld [vmem:[%s13497_s0 + $0x160] sm:$0xff] }
 0x27c   :  { %215 = vst.msk [vmem:[#allocation2 + $0x259] sm:$0xff] %vm26_vm0, %v151_v28 }
 0x27e   :  { %910 = vrot.lane.b32.xlu0 %v8409_v11, %s7558_s24 }
 0x27f   :  { %1468 = vrot.lane.b32.xlu1 %v8541_v61, %s7560_s28 }
 0x280   :  { %v1673_v2 = vpop.permute.xlu0 %1672  ;;  %956 = vrot.lane.b32.xlu2 %v8411_v12, %s7558_s24 }
 0x281   :  { %v2231_v27 = vpop.permute.xlu1 %2230  ;;  %v3069_v40 = vsel %vm3054_vm6, %v3004_v55, %v1673_v2 }
 0x282   :  { %v2743_v11 = vpop.permute.xlu2 %2742  ;;  %v3222_v12 = vsel %vm3184_vm8, %v3157_v62, %v2231_v27  ;;  %v3134_v47 = vsel %vm3119_vm7, %v3069_v40, %v1929_v10 }
 0x286   :  { %1724 = vrot.lane.b32.xlu0 %v8527_v54, %s7561_s29 }
 0x287   :  { %1422 = vrot.lane.b32.xlu1 %v8555_v63, %s7560_s28 }
 0x288   :  { %v2487_v32 = vpop.permute.xlu0 %2486  ;;  %2700 = vrot.lane.b32.xlu2 %v8648_v48, %s7563_s16 }
 0x289   :  { %v3287_v33 = vsel %vm3249_vm9, %v3222_v12, %v2487_v32  ;;  %v2185_v4 = vpop.permute.xlu1 %2184 }
 0x28a   :  { %v1209_v35 = vpop.permute.xlu2 %1208  ;;  %v3352_v57 = vsel %vm3314_vm10, %v3287_v33, %v2743_v11  ;;  %v3199_v44 = vsel %vm3184_vm8, %v3134_v47, %v2185_v4 }
 0x28b   :  { %7478 = vmatmul.msk.f32.gmra.mxu3 %vm3384_vm11, %v3352_v57 }
 0x28e   :  { %1678 = vrot.lane.b32.xlu0 %v8563_v21, %s7561_s29 }
 0x28f   :  { %2236 = vrot.lane.b32.xlu1 %v8661_v38, %s7565_s18 }
 0x290   :  { %v953_v0 = vpop.permute.xlu0 %952  ;;  %1166 = vrot.lane.b32.xlu2 %v8433_v45, %s7559_s25 }
 0x291   :  { %v2441_v41 = vpop.permute.xlu1 %2440  ;;  %v2898_v2 = vsel %vm26_vm0, %v8230_v8, %v953_v0  ;;  %v8743_v0 = vld [vmem:[#allocation2 + $0x249] sm:$0xff] }
 0x292   :  { %v1465_v29 = vpop.permute.xlu2 %1464  ;;  %v3264_v45 = vsel %vm3249_vm9, %v3199_v44, %v2441_v41  ;;  %v2963_v27 = vsel %vm2924_vm4, %v2898_v2, %v1209_v35 }
 0x293   :  { %v3028_v11 = vsel %vm2989_vm5, %v2963_v27, %v1465_v29 }
 0x296   :  { %2492 = vrot.lane.b32.xlu0 %v8674_v43, %s7562_s15 }
 0x297   :  { %2190 = vrot.lane.b32.xlu1 %v8676_v7, %s7565_s18 }
 0x298   :  { %v2697_v42 = vpop.permute.xlu0 %2696  ;;  %1980 = vrot.lane.b32.xlu2 %v8539_v60, %s7564_s17 }
 0x299   :  { %v907_v52 = vpop.permute.xlu1 %906  ;;  %v3329_v24 = vsel %vm3314_vm10, %v3264_v45, %v2697_v42  ;;  %v8759_v45 = vld [vmem:[#allocation2 + $0x24a] sm:$0xff] }
 0x29a   :  { %v1419_v6 = vpop.permute.xlu2 %1418  ;;  %7455 = vmatmul.msk.f32.gmra.mxu0 %vm3384_vm11, %v3329_v24  ;;  %v8761_v42 = vld [vmem:[#allocation2 + $0x248] sm:$0xff] }
 0x29e   :  { %958 = vrot.lane.b32.xlu0 %v8459_v19, %s7558_s24  ;;  %v127_v19 = vld [vmem:[%s13497_s0 + $0xa0] sm:$0xff] }
 0x29f   :  { %2446 = vrot.lane.b32.xlu1 %v8689_v51, %s7562_s15  ;;  %191 = vst.msk [vmem:[#allocation2 + $0x109] sm:$0xff] %vm26_vm0, %v127_v19 }
 0x2a0   :  { %v1163_v56 = vpop.permute.xlu0 %1162  ;;  %1934 = vrot.lane.b32.xlu2 %v8553_v23, %s7564_s17 }
 0x2a1   :  { %v1721_v14 = vpop.permute.xlu1 %1720 }
 0x2a2   :  { %v2233_v59 = vpop.permute.xlu2 %2232  ;;  %v3093_v34 = vsel %vm3054_vm6, %v3028_v11, %v1721_v14 }
 0x2a6   :  { %2702 = vrot.lane.b32.xlu0 %v8697_v46, %s7563_s16  ;;  %v8773_v14 = vld [vmem:[#allocation2 + $0x10a] sm:$0xff] }
 0x2a7   :  { %912 = vrot.lane.b32.xlu1 %v8478_v3, %s7558_s24  ;;  %v8825_v28 = vld [vmem:[#allocation2 + $0x110] sm:$0xff] }
 0x2a8   :  { %v1977_v10 = vpop.permute.xlu0 %1976  ;;  %2748 = vrot.lane.b32.xlu2 %v8699_v5, %s7563_s16 }
 0x2a9   :  { %v1675_v9 = vpop.permute.xlu1 %1674  ;;  %v3158_v8 = vsel %vm3119_vm7, %v3093_v34, %v1977_v10  ;;  %v8783_v10 = vld [vmem:[#allocation2 + $0x109] sm:$0xff] }
 0x2aa   :  { %v2187_v18 = vpop.permute.xlu2 %2186  ;;  %v3223_v12 = vsel %vm3184_vm8, %v3158_v8, %v2233_v59  ;;  %v8775_v59 = vld [vmem:[#allocation2 + $0x108] sm:$0xff] }
 0x2ae   :  { %1168 = vrot.lane.b32.xlu0 %v8490_v15, %s7559_s25  ;;  %v2875_v15 = vsel %vm26_vm0, %v8245_v22, %v907_v52  ;;  %v152_v52 = vld [vmem:[%s13497_s0 + $0x168] sm:$0xff] }
 0x2af   :  { %1726 = vrot.lane.b32.xlu1 %v8625_v37, %s7561_s29  ;;  %v2940_v62 = vsel %vm2924_vm4, %v2875_v15, %v1163_v56  ;;  %216 = vst.msk [vmem:[#allocation2 + $0x261] sm:$0xff] %vm26_vm0, %v152_v52  ;;  %v8841_v52 = vld [vmem:[#allocation2 + $0x259] sm:$0xff] }
 0x2b0   :  { %v1931_v3 = vpop.permute.xlu0 %1930  ;;  %1214 = vrot.lane.b32.xlu2 %v8492_v25, %s7559_s25  ;;  %v3005_v33 = vsel %vm2989_vm5, %v2940_v62, %v1419_v6 }
 0x2b1   :  { %v2489_v20 = vpop.permute.xlu1 %2488  ;;  %v3070_v35 = vsel %vm3054_vm6, %v3005_v33, %v1675_v9 }
 0x2b2   :  { %v2443_v31 = vpop.permute.xlu2 %2442  ;;  %v3288_v25 = vsel %vm3249_vm9, %v3223_v12, %v2489_v20  ;;  %v3135_v30 = vsel %vm3119_vm7, %v3070_v35, %v1931_v3 }
 0x2b3   :  { %v3200_v41 = vsel %vm3184_vm8, %v3135_v30, %v2187_v18 }
 0x2b4   :  { %v3265_v29 = vsel %vm3249_vm9, %v3200_v41, %v2443_v31 }
 0x2b6   :  { %1982 = vrot.lane.b32.xlu0 %v8615_v53, %s7564_s17  ;;  %v8827_v41 = vld [vmem:[#allocation2 + $0x25a] sm:$0xff] }
 0x2b7   :  { %1680 = vrot.lane.b32.xlu1 %v8623_v13, %s7561_s29 }
 0x2b8   :  { %v2745_v32 = vpop.permute.xlu0 %2744  ;;  %1470 = vrot.lane.b32.xlu2 %v8595_v17, %s7560_s28 }
 0x2b9   :  { %v955_v4 = vpop.permute.xlu1 %954  ;;  %v3353_v22 = vsel %vm3314_vm10, %v3288_v25, %v2745_v32 }
 0x2ba   :  { %v909_v57 = vpop.permute.xlu2 %908  ;;  %7479 = vmatmul.msk.f32.gmra.mxu3 %vm3384_vm11, %v3353_v22  ;;  %v2899_v9 = vsel %vm26_vm0, %v8333_v36, %v955_v4 }
 0x2bb   :  { %v2876_v36 = vsel %vm26_vm0, %v8351_v39, %v909_v57  ;;  %v8811_v39 = vld [vmem:[#allocation2 + $0x258] sm:$0xff] }
 0x2be   :  { %1936 = vrot.lane.b32.xlu0 %v8648_v48, %s7564_s17 }
 0x2bf   :  { %2494 = vrot.lane.b32.xlu1 %v8743_v0, %s7562_s15 }
 0x2c0   :  { %v1211_v55 = vpop.permute.xlu0 %1210  ;;  %1424 = vrot.lane.b32.xlu2 %v8613_v16, %s7560_s28 }
 0x2c1   :  { %v2699_v40 = vpop.permute.xlu1 %2698 }
 0x2c2   :  { %v1723_v47 = vpop.permute.xlu2 %1722  ;;  %v3330_v44 = vsel %vm3314_vm10, %v3265_v29, %v2699_v40 }
 0x2c3   :  { %7456 = vmatmul.msk.f32.gmra.mxu0 %vm3384_vm11, %v3330_v44  ;;  %v8839_v44 = vld [vmem:[#allocation2 + $0x111] sm:$0xff] }
 0x2c6   :  { %2750 = vrot.lane.b32.xlu0 %v8759_v45, %s7563_s16 }
 0x2c7   :  { %960 = vrot.lane.b32.xlu1 %v8527_v54, %s7558_s24 }
 0x2c8   :  { %v1467_v24 = vpop.permute.xlu0 %1466  ;;  %2238 = vrot.lane.b32.xlu2 %v8761_v42, %s7565_s18 }
 0x2c9   :  { %v1165_v6 = vpop.permute.xlu1 %1164 }
 0x2ca   :  { %v1677_v56 = vpop.permute.xlu2 %1676  ;;  %v2941_v15 = vsel %vm2924_vm4, %v2876_v36, %v1165_v6  ;;  %v8877_v36 = vld [vmem:[#allocation2 + $0x260] sm:$0xff] }
 0x2ce   :  { %1216 = vrot.lane.b32.xlu0 %v8539_v60, %s7559_s25  ;;  %v2964_v60 = vsel %vm2924_vm4, %v2899_v9, %v1211_v55  ;;  %v129_v55 = vld [vmem:[%s13497_s0 + $0xb0] sm:$0xff] }
 0x2cf   :  { %2704 = vrot.lane.b32.xlu1 %v8773_v14, %s7563_s16  ;;  %v3029_v2 = vsel %vm2989_vm5, %v2964_v60, %v1467_v24  ;;  %193 = vst.msk [vmem:[#allocation2 + $0x121] sm:$0xff] %vm26_vm0, %v129_v55 }
 0x2d0   :  { %v1421_v19 = vpop.permute.xlu0 %1420  ;;  %2192 = vrot.lane.b32.xlu2 %v8775_v59, %s7565_s18  ;;  %v3094_v20 = vsel %vm3054_vm6, %v3029_v2, %v1723_v47  ;;  %v8864_v2 = vld [vmem:[#allocation2 + $0x112] sm:$0xff] }
 0x2d1   :  { %v1979_v54 = vpop.permute.xlu1 %1978  ;;  %v3006_v25 = vsel %vm2989_vm5, %v2941_v15, %v1421_v19  ;;  %v130_v19 = vld [vmem:[%s13497_s0 + $0xb8] sm:$0xff] }
 0x2d2   :  { %v2491_v49 = vpop.permute.xlu2 %2490  ;;  %v3159_v11 = vsel %vm3119_vm7, %v3094_v20, %v1979_v54  ;;  %v3071_v32 = vsel %vm3054_vm6, %v3006_v25, %v1677_v56  ;;  %194 = vst.msk [vmem:[#allocation2 + $0x129] sm:$0xff] %vm26_vm0, %v130_v19 }
 0x2d6   :  { %1472 = vrot.lane.b32.xlu0 %v8661_v38, %s7560_s28  ;;  %v8909_v55 = vld [vmem:[#allocation2 + $0x121] sm:$0xff] }
 0x2d7   :  { %1170 = vrot.lane.b32.xlu1 %v8553_v23, %s7559_s25 }
 0x2d8   :  { %v2235_v18 = vpop.permute.xlu0 %2234  ;;  %2448 = vrot.lane.b32.xlu2 %v8783_v10, %s7562_s15 }
 0x2d9   :  { %v1933_v27 = vpop.permute.xlu1 %1932  ;;  %v3224_v31 = vsel %vm3184_vm8, %v3159_v11, %v2235_v18 }
 0x2da   :  { %v957_v3 = vpop.permute.xlu2 %956  ;;  %v3289_v8 = vsel %vm3249_vm9, %v3224_v31, %v2491_v49 }
 0x2db   :  { %v2900_v54 = vsel %vm26_vm0, %v8381_v58, %v957_v3 }
 0x2de   :  { %1426 = vrot.lane.b32.xlu0 %v8676_v7, %s7560_s28 }
 0x2df   :  { %1984 = vrot.lane.b32.xlu1 %v8699_v5, %s7564_s17 }
 0x2e0   :  { %v2189_v23 = vpop.permute.xlu0 %2188  ;;  %914 = vrot.lane.b32.xlu2 %v8563_v21, %s7558_s24  ;;  %v3136_v21 = vsel %vm3119_vm7, %v3071_v32, %v1933_v27  ;;  %v8890_v32 = vld [vmem:[#allocation2 + $0x261] sm:$0xff] }
 0x2e1   :  { %v2747_v34 = vpop.permute.xlu1 %2746  ;;  %v3201_v33 = vsel %vm3184_vm8, %v3136_v21, %v2189_v23 }
 0x2e2   :  { %v2701_v62 = vpop.permute.xlu2 %2700  ;;  %v3354_v12 = vsel %vm3314_vm10, %v3289_v8, %v2747_v34 }
 0x2e3   :  { %7480 = vmatmul.msk.f32.gmra.mxu3 %vm3384_vm11, %v3354_v12 }
 0x2e6   :  { %2240 = vrot.lane.b32.xlu0 %v8811_v39, %s7565_s18 }
 0x2e7   :  { %1938 = vrot.lane.b32.xlu1 %v8697_v46, %s7564_s17 }
 0x2e8   :  { %v2445_v4 = vpop.permute.xlu0 %2444  ;;  %1728 = vrot.lane.b32.xlu2 %v8674_v43, %s7561_s29 }
 0x2e9   :  { %v3266_v22 = vsel %vm3249_vm9, %v3201_v33, %v2445_v4  ;;  %v1213_v35 = vpop.permute.xlu1 %1212 }
 0x2ea   :  { %v1167_v57 = vpop.permute.xlu2 %1166  ;;  %v3331_v30 = vsel %vm3314_vm10, %v3266_v22, %v2701_v62  ;;  %v2965_v9 = vsel %vm2924_vm4, %v2900_v54, %v1213_v35 }
 0x2eb   :  { %7457 = vmatmul.msk.f32.gmra.mxu0 %vm3384_vm11, %v3331_v30 }
 0x2ee   :  { %2194 = vrot.lane.b32.xlu0 %v8825_v28, %s7565_s18 }
 0x2ef   :  { %2752 = vrot.lane.b32.xlu1 %v8827_v41, %s7563_s16 }
 0x2f0   :  { %v911_v29 = vpop.permute.xlu0 %910  ;;  %1682 = vrot.lane.b32.xlu2 %v8689_v51, %s7561_s29 }
 0x2f1   :  { %v1469_v40 = vpop.permute.xlu1 %1468  ;;  %v2877_v23 = vsel %vm26_vm0, %v8395_v1, %v911_v29  ;;  %v8892_v1 = vld [vmem:[#allocation2 + $0x120] sm:$0xff]  ;;  %v154_v29 = vld [vmem:[%s13497_s0 + $0x178] sm:$0xff] }
 0x2f2   :  { %v1981_v47 = vpop.permute.xlu2 %1980  ;;  %v3030_v18 = vsel %vm2989_vm5, %v2965_v9, %v1469_v40  ;;  %v2942_v8 = vsel %vm2924_vm4, %v2877_v23, %v1167_v57  ;;  %218 = vst.msk [vmem:[#allocation2 + $0x279] sm:$0xff] %vm26_vm0, %v154_v29  ;;  %v8987_v29 = vld [vmem:[#allocation2 + $0x128] sm:$0xff] }
 0x2f6   :  { %2450 = vrot.lane.b32.xlu0 %v8839_v44, %s7562_s15 }
 0x2f7   :  { %1218 = vrot.lane.b32.xlu1 %v8615_v53, %s7559_s25 }
 0x2f8   :  { %v1725_v24 = vpop.permute.xlu0 %1724  ;;  %2496 = vrot.lane.b32.xlu2 %v8841_v52, %s7562_s15 }
 0x2f9   :  { %v1423_v6 = vpop.permute.xlu1 %1422 }
 0x2fa   :  { %v1935_v56 = vpop.permute.xlu2 %1934  ;;  %v3007_v62 = vsel %vm2989_vm5, %v2942_v8, %v1423_v6  ;;  %v8921_v6 = vld [vmem:[#allocation2 + $0x122] sm:$0xff] }
 0x2fe   :  { %916 = vrot.lane.b32.xlu0 %v8623_v13, %s7558_s24  ;;  %v3095_v13 = vsel %vm3054_vm6, %v3030_v18, %v1725_v24 }
 0x2ff   :  { %1474 = vrot.lane.b32.xlu1 %v8761_v42, %s7560_s28  ;;  %v3160_v58 = vsel %vm3119_vm7, %v3095_v13, %v1981_v47 }
 0x300   :  { %v1679_v53 = vpop.permute.xlu0 %1678  ;;  %962 = vrot.lane.b32.xlu2 %v8625_v37, %s7558_s24 }
 0x301   :  { %v2237_v49 = vpop.permute.xlu1 %2236  ;;  %v3072_v25 = vsel %vm3054_vm6, %v3007_v62, %v1679_v53 }
 0x302   :  { %v2749_v60 = vpop.permute.xlu2 %2748  ;;  %v3225_v37 = vsel %vm3184_vm8, %v3160_v58, %v2237_v49  ;;  %v3137_v21 = vsel %vm3119_vm7, %v3072_v25, %v1935_v56  ;;  %v8923_v56 = vld [vmem:[#allocation2 + $0x262] sm:$0xff] }
 0x306   :  { %1730 = vrot.lane.b32.xlu0 %v8743_v0, %s7561_s29 }
 0x307   :  { %1428 = vrot.lane.b32.xlu1 %v8775_v59, %s7560_s28 }
 0x308   :  { %v2493_v27 = vpop.permute.xlu0 %2492  ;;  %2706 = vrot.lane.b32.xlu2 %v8864_v2, %s7563_s16 }
 0x309   :  { %v3290_v3 = vsel %vm3249_vm9, %v3225_v37, %v2493_v27  ;;  %v2191_v20 = vpop.permute.xlu1 %2190 }
 0x30a   :  { %v1215_v11 = vpop.permute.xlu2 %1214  ;;  %v3355_v31 = vsel %vm3314_vm10, %v3290_v3, %v2749_v60  ;;  %v3202_v33 = vsel %vm3184_vm8, %v3137_v21, %v2191_v20 }
 0x30b   :  { %7481 = vmatmul.msk.f32.gmra.mxu3 %vm3384_vm11, %v3355_v31 }
 0x30e   :  { %1684 = vrot.lane.b32.xlu0 %v8783_v10, %s7561_s29 }
 0x30f   :  { %2242 = vrot.lane.b32.xlu1 %v8877_v36, %s7565_s18 }
 0x310   :  { %v959_v34 = vpop.permute.xlu0 %958  ;;  %1172 = vrot.lane.b32.xlu2 %v8648_v48, %s7559_s25  ;;  %v153_v48 = vld [vmem:[%s13497_s0 + $0x170] sm:$0xff] }
 0x311   :  { %v2447_v15 = vpop.permute.xlu1 %2446  ;;  %217 = vst.msk [vmem:[#allocation2 + $0x271] sm:$0xff] %vm26_vm0, %v153_v48  ;;  %v2901_v53 = vsel %vm26_vm0, %v8446_v50, %v959_v34 }
 0x312   :  { %v1471_v12 = vpop.permute.xlu2 %1470  ;;  %v3267_v4 = vsel %vm3249_vm9, %v3202_v33, %v2447_v15  ;;  %v2966_v49 = vsel %vm2924_vm4, %v2901_v53, %v1215_v11 }
 0x313   :  { %v3031_v60 = vsel %vm2989_vm5, %v2966_v49, %v1471_v12 }
 0x316   :  { %2498 = vrot.lane.b32.xlu0 %v8890_v32, %s7562_s15 }
 0x317   :  { %2196 = vrot.lane.b32.xlu1 %v8892_v1, %s7565_s18 }
 0x318   :  { %v2703_v22 = vpop.permute.xlu0 %2702  ;;  %1986 = vrot.lane.b32.xlu2 %v8759_v45, %s7564_s17  ;;  %v8959_v34 = vld [vmem:[#allocation2 + $0x271] sm:$0xff] }
 0x319   :  { %v913_v35 = vpop.permute.xlu1 %912  ;;  %v3332_v57 = vsel %vm3314_vm10, %v3267_v4, %v2703_v22  ;;  %v8971_v48 = vld [vmem:[#allocation2 + $0x272] sm:$0xff]  ;;  %v131_v4 = vld [vmem:[%s13497_s0 + $0xc0] sm:$0xff] }
 0x31a   :  { %v1425_v30 = vpop.permute.xlu2 %1424  ;;  %7458 = vmatmul.msk.f32.gmra.mxu0 %vm3384_vm11, %v3332_v57  ;;  %v8973_v33 = vld [vmem:[#allocation2 + $0x270] sm:$0xff]  ;;  %195 = vst.msk [vmem:[#allocation2 + $0x139] sm:$0xff] %vm26_vm0, %v131_v4 }
 0x31e   :  { %964 = vrot.lane.b32.xlu0 %v8674_v43, %s7558_s24 }
 0x31f   :  { %2452 = vrot.lane.b32.xlu1 %v8909_v55, %s7562_s15 }
 0x320   :  { %v1169_v40 = vpop.permute.xlu0 %1168  ;;  %1940 = vrot.lane.b32.xlu2 %v8773_v14, %s7564_s17 }
 0x321   :  { %v1727_v47 = vpop.permute.xlu1 %1726  ;;  %v9055_v4 = vld [vmem:[#allocation2 + $0x139] sm:$0xff] }
 0x322   :  { %v2239_v24 = vpop.permute.xlu2 %2238  ;;  %v3096_v13 = vsel %vm3054_vm6, %v3031_v60, %v1727_v47 }
 0x326   :  { %2708 = vrot.lane.b32.xlu0 %v8921_v6, %s7563_s16 }
 0x327   :  { %918 = vrot.lane.b32.xlu1 %v8689_v51, %s7558_s24 }
 0x328   :  { %v1983_v43 = vpop.permute.xlu0 %1982  ;;  %2754 = vrot.lane.b32.xlu2 %v8923_v56, %s7563_s16 }
 0x329   :  { %v1681_v19 = vpop.permute.xlu1 %1680  ;;  %v3161_v50 = vsel %vm3119_vm7, %v3096_v13, %v1983_v43 }
 0x32a   :  { %v2193_v54 = vpop.permute.xlu2 %2192  ;;  %v3226_v37 = vsel %vm3184_vm8, %v3161_v50, %v2239_v24  ;;  %v8995_v24 = vld [vmem:[#allocation2 + $0x129] sm:$0xff] }
 0x32e   :  { %1174 = vrot.lane.b32.xlu0 %v8697_v46, %s7559_s25  ;;  %v2878_v46 = vsel %vm26_vm0, %v8461_v26, %v913_v35 }
 0x32f   :  { %1732 = vrot.lane.b32.xlu1 %v8841_v52, %s7561_s29  ;;  %v2943_v58 = vsel %vm2924_vm4, %v2878_v46, %v1169_v40 }
 0x330   :  { %v1937_v9 = vpop.permute.xlu0 %1936  ;;  %1220 = vrot.lane.b32.xlu2 %v8699_v5, %s7559_s25  ;;  %v3008_v3 = vsel %vm2989_vm5, %v2943_v58, %v1425_v30  ;;  %v8985_v30 = vld [vmem:[#allocation2 + $0x12a] sm:$0xff] }
 0x331   :  { %v2495_v51 = vpop.permute.xlu1 %2494  ;;  %v3073_v11 = vsel %vm3054_vm6, %v3008_v3, %v1681_v19 }
 0x332   :  { %v2449_v18 = vpop.permute.xlu2 %2448  ;;  %v3291_v5 = vsel %vm3249_vm9, %v3226_v37, %v2495_v51  ;;  %v3138_v23 = vsel %vm3119_vm7, %v3073_v11, %v1937_v9 }
 0x333   :  { %v3203_v8 = vsel %vm3184_vm8, %v3138_v23, %v2193_v54 }
 0x334   :  { %v3268_v62 = vsel %vm3249_vm9, %v3203_v8, %v2449_v18 }
 0x336   :  { %1988 = vrot.lane.b32.xlu0 %v8827_v41, %s7564_s17 }
 0x337   :  { %1686 = vrot.lane.b32.xlu1 %v8839_v44, %s7561_s29 }
 0x338   :  { %v2751_v27 = vpop.permute.xlu0 %2750  ;;  %1476 = vrot.lane.b32.xlu2 %v8811_v39, %s7560_s28 }
 0x339   :  { %v961_v20 = vpop.permute.xlu1 %960  ;;  %v3356_v26 = vsel %vm3314_vm10, %v3291_v5, %v2751_v27  ;;  %v9027_v5 = vld [vmem:[#allocation2 + $0x278] sm:$0xff] }
 0x33a   :  { %v915_v31 = vpop.permute.xlu2 %914  ;;  %7482 = vmatmul.msk.f32.gmra.mxu3 %vm3384_vm11, %v3356_v26  ;;  %v2902_v43 = vsel %vm26_vm0, %v8541_v61, %v961_v20 }
 0x33b   :  { %v2879_v61 = vsel %vm26_vm0, %v8555_v63, %v915_v31 }
 0x33e   :  { %1942 = vrot.lane.b32.xlu0 %v8864_v2, %s7564_s17 }
 0x33f   :  { %2500 = vrot.lane.b32.xlu1 %v8959_v34, %s7562_s15 }
 0x340   :  { %v1217_v15 = vpop.permute.xlu0 %1216  ;;  %1430 = vrot.lane.b32.xlu2 %v8825_v28, %s7560_s28 }
 0x341   :  { %v2705_v12 = vpop.permute.xlu1 %2704 }
 0x342   :  { %v1729_v25 = vpop.permute.xlu2 %1728  ;;  %v3333_v21 = vsel %vm3314_vm10, %v3268_v62, %v2705_v12  ;;  %v9047_v62 = vld [vmem:[#allocation2 + $0x27a] sm:$0xff] }
 0x343   :  { %7459 = vmatmul.msk.f32.gmra.mxu0 %vm3384_vm11, %v3333_v21 }
 0x346   :  { %2756 = vrot.lane.b32.xlu0 %v8971_v48, %s7563_s16 }
 0x347   :  { %966 = vrot.lane.b32.xlu1 %v8743_v0, %s7558_s24 }
 0x348   :  { %v1473_v22 = vpop.permute.xlu0 %1472  ;;  %2244 = vrot.lane.b32.xlu2 %v8973_v33, %s7565_s18 }
 0x349   :  { %v1171_v35 = vpop.permute.xlu1 %1170 }
 0x34a   :  { %v1683_v57 = vpop.permute.xlu2 %1682  ;;  %v2944_v46 = vsel %vm2924_vm4, %v2879_v61, %v1171_v35 }
 0x34e   :  { %1222 = vrot.lane.b32.xlu0 %v8759_v45, %s7559_s25  ;;  %v2967_v45 = vsel %vm2924_vm4, %v2902_v43, %v1217_v15  ;;  %v9045_v15 = vld [vmem:[#allocation2 + $0x138] sm:$0xff] }
 0x34f   :  { %2710 = vrot.lane.b32.xlu1 %v8985_v30, %s7563_s16  ;;  %v3032_v54 = vsel %vm2989_vm5, %v2967_v45, %v1473_v22  ;;  %v9057_v22 = vld [vmem:[#allocation2 + $0x279] sm:$0xff] }
 0x350   :  { %v1427_v40 = vpop.permute.xlu0 %1426  ;;  %2198 = vrot.lane.b32.xlu2 %v8987_v29, %s7565_s18  ;;  %v3097_v9 = vsel %vm3054_vm6, %v3032_v54, %v1729_v25 }
 0x351   :  { %v1985_v0 = vpop.permute.xlu1 %1984  ;;  %v3009_v37 = vsel %vm2989_vm5, %v2944_v46, %v1427_v40 }
 0x352   :  { %v2497_v47 = vpop.permute.xlu2 %2496  ;;  %v3162_v51 = vsel %vm3119_vm7, %v3097_v9, %v1985_v0  ;;  %v3074_v27 = vsel %vm3054_vm6, %v3009_v37, %v1683_v57 }
 0x356   :  { %1478 = vrot.lane.b32.xlu0 %v8877_v36, %s7560_s28 }
 0x357   :  { %1176 = vrot.lane.b32.xlu1 %v8773_v14, %s7559_s25  ;;  %v132_v14 = vld [vmem:[%s13497_s0 + $0xc8] sm:$0xff] }
 0x358   :  { %v2241_v19 = vpop.permute.xlu0 %2240  ;;  %2454 = vrot.lane.b32.xlu2 %v8995_v24, %s7562_s15  ;;  %196 = vst.msk [vmem:[#allocation2 + $0x141] sm:$0xff] %vm26_vm0, %v132_v14 }
 0x359   :  { %v1939_v53 = vpop.permute.xlu1 %1938  ;;  %v3227_v60 = vsel %vm3184_vm8, %v3162_v51, %v2241_v19 }
 0x35a   :  { %v963_v49 = vpop.permute.xlu2 %962  ;;  %v3292_v50 = vsel %vm3249_vm9, %v3227_v60, %v2497_v47  ;;  %v3139_v3 = vsel %vm3119_vm7, %v3074_v27, %v1939_v53  ;;  %v156_v47 = vld [vmem:[%s13497_s0 + $0x188] sm:$0xff] }
 0x35b   :  { %v2903_v0 = vsel %vm26_vm0, %v8595_v17, %v963_v49  ;;  %220 = vst.msk [vmem:[#allocation2 + $0x291] sm:$0xff] %vm26_vm0, %v156_v47 }
 0x35e   :  { %1432 = vrot.lane.b32.xlu0 %v8892_v1, %s7560_s28 }
 0x35f   :  { %1990 = vrot.lane.b32.xlu1 %v8923_v56, %s7564_s17  ;;  %v9080_v54 = vld [vmem:[#allocation2 + $0x13a] sm:$0xff] }
 0x360   :  { %v2195_v18 = vpop.permute.xlu0 %2194  ;;  %920 = vrot.lane.b32.xlu2 %v8783_v10, %s7558_s24  ;;  %v155_v10 = vld [vmem:[%s13497_s0 + $0x180] sm:$0xff] }
 0x361   :  { %v2753_v13 = vpop.permute.xlu1 %2752  ;;  %219 = vst.msk [vmem:[#allocation2 + $0x289] sm:$0xff] %vm26_vm0, %v155_v10  ;;  %v3204_v20 = vsel %vm3184_vm8, %v3139_v3, %v2195_v18 }
 0x362   :  { %v2707_v58 = vpop.permute.xlu2 %2706  ;;  %v3357_v63 = vsel %vm3314_vm10, %v3292_v50, %v2753_v13 }
 0x363   :  { %7483 = vmatmul.msk.f32.gmra.mxu3 %vm3384_vm11, %v3357_v63 }
 0x366   :  { %2246 = vrot.lane.b32.xlu0 %v9027_v5, %s7565_s18 }
 0x367   :  { %1944 = vrot.lane.b32.xlu1 %v8921_v6, %s7564_s17 }
 0x368   :  { %v2451_v26 = vpop.permute.xlu0 %2450  ;;  %1734 = vrot.lane.b32.xlu2 %v8890_v32, %s7561_s29  ;;  %v9093_v14 = vld [vmem:[#allocation2 + $0x288] sm:$0xff] }
 0x369   :  { %v3269_v11 = vsel %vm3249_vm9, %v3204_v20, %v2451_v26  ;;  %v1219_v31 = vpop.permute.xlu1 %1218  ;;  %v9106_v27 = vld [vmem:[#allocation2 + $0x289] sm:$0xff] }
 0x36a   :  { %v1173_v23 = vpop.permute.xlu2 %1172  ;;  %v3334_v8 = vsel %vm3314_vm10, %v3269_v11, %v2707_v58  ;;  %v2968_v45 = vsel %vm2924_vm4, %v2903_v0, %v1219_v31 }
 0x36b   :  { %7460 = vmatmul.msk.f32.gmra.mxu0 %vm3384_vm11, %v3334_v8 }
 0x36e   :  { %2200 = vrot.lane.b32.xlu0 %v9045_v15, %s7565_s18 }
 0x36f   :  { %2758 = vrot.lane.b32.xlu1 %v9047_v62, %s7563_s16 }
 0x370   :  { %v917_v12 = vpop.permute.xlu0 %916  ;;  %1688 = vrot.lane.b32.xlu2 %v8909_v55, %s7561_s29 }
 0x371   :  { %v1475_v25 = vpop.permute.xlu1 %1474  ;;  %v2880_v18 = vsel %vm26_vm0, %v8613_v16, %v917_v12  ;;  %v9108_v16 = vld [vmem:[#allocation2 + $0x140] sm:$0xff] }
 0x372   :  { %v1987_v21 = vpop.permute.xlu2 %1986  ;;  %v3033_v19 = vsel %vm2989_vm5, %v2968_v45, %v1475_v25  ;;  %v2945_v50 = vsel %vm2924_vm4, %v2880_v18, %v1173_v23  ;;  %v9121_v23 = vld [vmem:[#allocation2 + $0x141] sm:$0xff] }
 0x376   :  { %2456 = vrot.lane.b32.xlu0 %v9055_v4, %s7562_s15 }
 0x377   :  { %1224 = vrot.lane.b32.xlu1 %v8827_v41, %s7559_s25 }
 0x378   :  { %v1731_v35 = vpop.permute.xlu0 %1730  ;;  %2502 = vrot.lane.b32.xlu2 %v9057_v22, %s7562_s15 }
 0x379   :  { %v1429_v57 = vpop.permute.xlu1 %1428  ;;  %v3098_v17 = vsel %vm3054_vm6, %v3033_v19, %v1731_v35  ;;  %v9131_v35 = vld [vmem:[#allocation2 + $0x28a] sm:$0xff] }
 0x37a   :  { %v1941_v40 = vpop.permute.xlu2 %1940  ;;  %v3163_v53 = vsel %vm3119_vm7, %v3098_v17, %v1987_v21  ;;  %v3010_v58 = vsel %vm2989_vm5, %v2945_v50, %v1429_v57  ;;  %v9129_v21 = vld [vmem:[#allocation2 + $0x142] sm:$0xff]  ;;  %v134_v57 = vld [vmem:[%s13497_s0 + $0xd8] sm:$0xff]  ;;  %v157_v50 = vld [vmem:[%s13497_s0 + $0x190] sm:$0xff] }
 0x37b   :  { %198 = vst.msk [vmem:[#allocation2 + $0x159] sm:$0xff] %vm26_vm0, %v134_v57 }
 0x37c   :  { %221 = vst.msk [vmem:[#allocation2 + $0x2a1] sm:$0xff] %vm26_vm0, %v157_v50 }
 0x37e   :  { %922 = vrot.lane.b32.xlu0 %v8839_v44, %s7558_s24 }
 0x37f   :  { %1480 = vrot.lane.b32.xlu1 %v8973_v33, %s7560_s28 }
 0x380   :  { %v1685_v41 = vpop.permute.xlu0 %1684  ;;  %968 = vrot.lane.b32.xlu2 %v8841_v52, %s7558_s24 }
 0x381   :  { %v2243_v43 = vpop.permute.xlu1 %2242  ;;  %v3075_v37 = vsel %vm3054_vm6, %v3010_v58, %v1685_v41 }
 0x382   :  { %v2755_v44 = vpop.permute.xlu2 %2754  ;;  %v3228_v52 = vsel %vm3184_vm8, %v3163_v53, %v2243_v43  ;;  %v3140_v10 = vsel %vm3119_vm7, %v3075_v37, %v1941_v40 }
 0x386   :  { %1736 = vrot.lane.b32.xlu0 %v8959_v34, %s7561_s29 }
 0x387   :  { %1434 = vrot.lane.b32.xlu1 %v8987_v29, %s7560_s28 }
 0x388   :  { %v2499_v49 = vpop.permute.xlu0 %2498  ;;  %2712 = vrot.lane.b32.xlu2 %v9080_v54, %s7563_s16 }
 0x389   :  { %v3293_v9 = vsel %vm3249_vm9, %v3228_v52, %v2499_v49  ;;  %v2197_v51 = vpop.permute.xlu1 %2196 }
 0x38a   :  { %v1221_v60 = vpop.permute.xlu2 %1220  ;;  %v3358_v61 = vsel %vm3314_vm10, %v3293_v9, %v2755_v44  ;;  %v3205_v3 = vsel %vm3184_vm8, %v3140_v10, %v2197_v51 }
 0x38b   :  { %7484 = vmatmul.msk.f32.gmra.mxu3 %vm3384_vm11, %v3358_v61 }
 0x38e   :  { %1690 = vrot.lane.b32.xlu0 %v8995_v24, %s7561_s29 }
 0x38f   :  { %2248 = vrot.lane.b32.xlu1 %v9093_v14, %s7565_s18 }
 0x390   :  { %v965_v13 = vpop.permute.xlu0 %964  ;;  %1178 = vrot.lane.b32.xlu2 %v8864_v2, %s7559_s25 }
 0x391   :  { %v2453_v46 = vpop.permute.xlu1 %2452  ;;  %v2904_v41 = vsel %vm26_vm0, %v8661_v38, %v965_v13  ;;  %v9175_v13 = vld [vmem:[#allocation2 + $0x291] sm:$0xff] }
 0x392   :  { %v1477_v63 = vpop.permute.xlu2 %1476  ;;  %v3270_v2 = vsel %vm3249_vm9, %v3205_v3, %v2453_v46  ;;  %v2969_v43 = vsel %vm2924_vm4, %v2904_v41, %v1221_v60 }
 0x393   :  { %v3034_v44 = vsel %vm2989_vm5, %v2969_v43, %v1477_v63 }
 0x396   :  { %2504 = vrot.lane.b32.xlu0 %v9106_v27, %s7562_s15 }
 0x397   :  { %2202 = vrot.lane.b32.xlu1 %v9108_v16, %s7565_s18 }
 0x398   :  { %v2709_v20 = vpop.permute.xlu0 %2708  ;;  %1992 = vrot.lane.b32.xlu2 %v8971_v48, %s7564_s17 }
 0x399   :  { %v919_v26 = vpop.permute.xlu1 %918  ;;  %v3335_v11 = vsel %vm3314_vm10, %v3270_v2, %v2709_v20  ;;  %v9191_v2 = vld [vmem:[#allocation2 + $0x292] sm:$0xff] }
 0x39a   :  { %v1431_v31 = vpop.permute.xlu2 %1430  ;;  %7461 = vmatmul.msk.f32.gmra.mxu0 %vm3384_vm11, %v3335_v11  ;;  %v9193_v20 = vld [vmem:[#allocation2 + $0x290] sm:$0xff] }
 0x39e   :  { %970 = vrot.lane.b32.xlu0 %v8890_v32, %s7558_s24  ;;  %v133_v32 = vld [vmem:[%s13497_s0 + $0xd0] sm:$0xff] }
 0x39f   :  { %2458 = vrot.lane.b32.xlu1 %v9121_v23, %s7562_s15  ;;  %197 = vst.msk [vmem:[#allocation2 + $0x151] sm:$0xff] %vm26_vm0, %v133_v32 }
 0x3a0   :  { %v1175_v8 = vpop.permute.xlu0 %1174  ;;  %1946 = vrot.lane.b32.xlu2 %v8985_v30, %s7564_s17 }
 0x3a1   :  { %v1733_v12 = vpop.permute.xlu1 %1732 }
 0x3a2   :  { %v2245_v25 = vpop.permute.xlu2 %2244  ;;  %v3099_v17 = vsel %vm3054_vm6, %v3034_v44, %v1733_v12 }
 0x3a6   :  { %2714 = vrot.lane.b32.xlu0 %v9129_v21, %s7563_s16  ;;  %v9205_v12 = vld [vmem:[#allocation2 + $0x152] sm:$0xff] }
 0x3a7   :  { %924 = vrot.lane.b32.xlu1 %v8909_v55, %s7558_s24  ;;  %v9257_v50 = vld [vmem:[#allocation2 + $0x158] sm:$0xff] }
 0x3a8   :  { %v1989_v40 = vpop.permute.xlu0 %1988  ;;  %2760 = vrot.lane.b32.xlu2 %v9131_v35, %s7563_s16 }
 0x3a9   :  { %v1687_v0 = vpop.permute.xlu1 %1686  ;;  %v3164_v38 = vsel %vm3119_vm7, %v3099_v17, %v1989_v40  ;;  %v9215_v40 = vld [vmem:[#allocation2 + $0x151] sm:$0xff] }
 0x3aa   :  { %v2199_v47 = vpop.permute.xlu2 %2198  ;;  %v3229_v52 = vsel %vm3184_vm8, %v3164_v38, %v2245_v25  ;;  %v9207_v25 = vld [vmem:[#allocation2 + $0x150] sm:$0xff] }
 0x3ae   :  { %1180 = vrot.lane.b32.xlu0 %v8921_v6, %s7559_s25  ;;  %v2881_v6 = vsel %vm26_vm0, %v8676_v7, %v919_v26  ;;  %v158_v26 = vld [vmem:[%s13497_s0 + $0x198] sm:$0xff] }
 0x3af   :  { %1738 = vrot.lane.b32.xlu1 %v9057_v22, %s7561_s29  ;;  %v2946_v53 = vsel %vm2924_vm4, %v2881_v6, %v1175_v8  ;;  %222 = vst.msk [vmem:[#allocation2 + $0x2a9] sm:$0xff] %vm26_vm0, %v158_v26  ;;  %v9273_v26 = vld [vmem:[#allocation2 + $0x2a1] sm:$0xff] }
 0x3b0   :  { %v1943_v55 = vpop.permute.xlu0 %1942  ;;  %1226 = vrot.lane.b32.xlu2 %v8923_v56, %s7559_s25  ;;  %v3011_v9 = vsel %vm2989_vm5, %v2946_v53, %v1431_v31 }
 0x3b1   :  { %v2501_v45 = vpop.permute.xlu1 %2500  ;;  %v3076_v60 = vsel %vm3054_vm6, %v3011_v9, %v1687_v0 }
 0x3b2   :  { %v2455_v19 = vpop.permute.xlu2 %2454  ;;  %v3294_v56 = vsel %vm3249_vm9, %v3229_v52, %v2501_v45  ;;  %v3141_v18 = vsel %vm3119_vm7, %v3076_v60, %v1943_v55 }
 0x3b3   :  { %v3206_v46 = vsel %vm3184_vm8, %v3141_v18, %v2199_v47 }
 0x3b4   :  { %v3271_v63 = vsel %vm3249_vm9, %v3206_v46, %v2455_v19 }
 0x3b6   :  { %1994 = vrot.lane.b32.xlu0 %v9047_v62, %s7564_s17  ;;  %v9259_v46 = vld [vmem:[#allocation2 + $0x2a2] sm:$0xff] }
 0x3b7   :  { %1692 = vrot.lane.b32.xlu1 %v9055_v4, %s7561_s29 }
 0x3b8   :  { %v2757_v49 = vpop.permute.xlu0 %2756  ;;  %1482 = vrot.lane.b32.xlu2 %v9027_v5, %s7560_s28 }
 0x3b9   :  { %v967_v51 = vpop.permute.xlu1 %966  ;;  %v3359_v7 = vsel %vm3314_vm10, %v3294_v56, %v2757_v49 }
 0x3ba   :  { %v921_v61 = vpop.permute.xlu2 %920  ;;  %7485 = vmatmul.msk.f32.gmra.mxu3 %vm3384_vm11, %v3359_v7  ;;  %v2905_v0 = vsel %vm26_vm0, %v8761_v42, %v967_v51 }
 0x3bb   :  { %v2882_v42 = vsel %vm26_vm0, %v8775_v59, %v921_v61  ;;  %v9243_v59 = vld [vmem:[#allocation2 + $0x2a0] sm:$0xff] }
 0x3be   :  { %1948 = vrot.lane.b32.xlu0 %v9080_v54, %s7564_s17 }
 0x3bf   :  { %2506 = vrot.lane.b32.xlu1 %v9175_v13, %s7562_s15 }
 0x3c0   :  { %v1223_v58 = vpop.permute.xlu0 %1222  ;;  %1436 = vrot.lane.b32.xlu2 %v9045_v15, %s7560_s28 }
 0x3c1   :  { %v2711_v37 = vpop.permute.xlu1 %2710 }
 0x3c2   :  { %v1735_v10 = vpop.permute.xlu2 %1734  ;;  %v3336_v3 = vsel %vm3314_vm10, %v3271_v63, %v2711_v37 }
 0x3c3   :  { %7462 = vmatmul.msk.f32.gmra.mxu0 %vm3384_vm11, %v3336_v3  ;;  %v9271_v3 = vld [vmem:[#allocation2 + $0x159] sm:$0xff] }
 0x3c6   :  { %2762 = vrot.lane.b32.xlu0 %v9191_v2, %s7563_s16 }
 0x3c7   :  { %972 = vrot.lane.b32.xlu1 %v8959_v34, %s7558_s24 }
 0x3c8   :  { %v1479_v11 = vpop.permute.xlu0 %1478  ;;  %2250 = vrot.lane.b32.xlu2 %v9193_v20, %s7565_s18 }
 0x3c9   :  { %v1177_v31 = vpop.permute.xlu1 %1176 }
 0x3ca   :  { %v1689_v8 = vpop.permute.xlu2 %1688  ;;  %v2947_v6 = vsel %vm2924_vm4, %v2882_v42, %v1177_v31  ;;  %v9309_v42 = vld [vmem:[#allocation2 + $0x2a8] sm:$0xff] }
 0x3ce   :  { %1228 = vrot.lane.b32.xlu0 %v8971_v48, %s7559_s25  ;;  %v2970_v48 = vsel %vm2924_vm4, %v2905_v0, %v1223_v58  ;;  %v135_v58 = vld [vmem:[%s13497_s0 + $0xe0] sm:$0xff] }
 0x3cf   :  { %2716 = vrot.lane.b32.xlu1 %v9205_v12, %s7563_s16  ;;  %v3035_v41 = vsel %vm2989_vm5, %v2970_v48, %v1479_v11  ;;  %199 = vst.msk [vmem:[#allocation2 + $0x169] sm:$0xff] %vm26_vm0, %v135_v58 }
 0x3d0   :  { %v1433_v32 = vpop.permute.xlu0 %1432  ;;  %2204 = vrot.lane.b32.xlu2 %v9207_v25, %s7565_s18  ;;  %v3100_v45 = vsel %vm3054_vm6, %v3035_v41, %v1735_v10  ;;  %v9296_v41 = vld [vmem:[#allocation2 + $0x15a] sm:$0xff] }
 0x3d1   :  { %v1991_v34 = vpop.permute.xlu1 %1990  ;;  %v3012_v56 = vsel %vm2989_vm5, %v2947_v6, %v1433_v32  ;;  %v136_v32 = vld [vmem:[%s13497_s0 + $0xe8] sm:$0xff] }
 0x3d2   :  { %v2503_v57 = vpop.permute.xlu2 %2502  ;;  %v3165_v44 = vsel %vm3119_vm7, %v3100_v45, %v1991_v34  ;;  %v3077_v49 = vsel %vm3054_vm6, %v3012_v56, %v1689_v8  ;;  %200 = vst.msk [vmem:[#allocation2 + $0x171] sm:$0xff] %vm26_vm0, %v136_v32 }
 0x3d6   :  { %1484 = vrot.lane.b32.xlu0 %v9093_v14, %s7560_s28  ;;  %v9341_v58 = vld [vmem:[#allocation2 + $0x169] sm:$0xff] }
 0x3d7   :  { %1182 = vrot.lane.b32.xlu1 %v8985_v30, %s7559_s25 }
 0x3d8   :  { %v2247_v47 = vpop.permute.xlu0 %2246  ;;  %2460 = vrot.lane.b32.xlu2 %v9215_v40, %s7562_s15 }
 0x3d9   :  { %v1945_v43 = vpop.permute.xlu1 %1944  ;;  %v3230_v19 = vsel %vm3184_vm8, %v3165_v44, %v2247_v47 }
 0x3da   :  { %v969_v55 = vpop.permute.xlu2 %968  ;;  %v3295_v38 = vsel %vm3249_vm9, %v3230_v19, %v2503_v57 }
 0x3db   :  { %v2906_v34 = vsel %vm26_vm0, %v8811_v39, %v969_v55 }
 0x3de   :  { %1438 = vrot.lane.b32.xlu0 %v9108_v16, %s7560_s28 }
 0x3df   :  { %1996 = vrot.lane.b32.xlu1 %v9131_v35, %s7564_s17 }
 0x3e0   :  { %v2201_v30 = vpop.permute.xlu0 %2200  ;;  %926 = vrot.lane.b32.xlu2 %v8995_v24, %s7558_s24  ;;  %v3142_v24 = vsel %vm3119_vm7, %v3077_v49, %v1945_v43  ;;  %v9322_v49 = vld [vmem:[#allocation2 + $0x2a9] sm:$0xff] }
 0x3e1   :  { %v2759_v17 = vpop.permute.xlu1 %2758  ;;  %v3207_v9 = vsel %vm3184_vm8, %v3142_v24, %v2201_v30 }
 0x3e2   :  { %v2713_v53 = vpop.permute.xlu2 %2712  ;;  %v3360_v52 = vsel %vm3314_vm10, %v3295_v38, %v2759_v17 }
 0x3e3   :  { %7486 = vmatmul.msk.f32.gmra.mxu3 %vm3384_vm11, %v3360_v52 }
 0x3e6   :  { %2252 = vrot.lane.b32.xlu0 %v9243_v59, %s7565_s18 }
 0x3e7   :  { %1950 = vrot.lane.b32.xlu1 %v9129_v21, %s7564_s17 }
 0x3e8   :  { %v2457_v51 = vpop.permute.xlu0 %2456  ;;  %1740 = vrot.lane.b32.xlu2 %v9106_v27, %s7561_s29 }
 0x3e9   :  { %v3272_v7 = vsel %vm3249_vm9, %v3207_v9, %v2457_v51  ;;  %v1225_v60 = vpop.permute.xlu1 %1224 }
 0x3ea   :  { %v1179_v61 = vpop.permute.xlu2 %1178  ;;  %v3337_v18 = vsel %vm3314_vm10, %v3272_v7, %v2713_v53  ;;  %v2971_v0 = vsel %vm2924_vm4, %v2906_v34, %v1225_v60 }
 0x3eb   :  { %7463 = vmatmul.msk.f32.gmra.mxu0 %vm3384_vm11, %v3337_v18 }
 0x3ee   :  { %2206 = vrot.lane.b32.xlu0 %v9257_v50, %s7565_s18 }
 0x3ef   :  { %2764 = vrot.lane.b32.xlu1 %v9259_v46, %s7563_s16 }
 0x3f0   :  { %v923_v63 = vpop.permute.xlu0 %922  ;;  %1694 = vrot.lane.b32.xlu2 %v9121_v23, %s7561_s29 }
 0x3f1   :  { %v1481_v37 = vpop.permute.xlu1 %1480  ;;  %v2883_v30 = vsel %vm26_vm0, %v8825_v28, %v923_v63  ;;  %v9324_v28 = vld [vmem:[#allocation2 + $0x168] sm:$0xff] }
 0x3f2   :  { %v1993_v10 = vpop.permute.xlu2 %1992  ;;  %v3036_v47 = vsel %vm2989_vm5, %v2971_v0, %v1481_v37  ;;  %v2948_v38 = vsel %vm2924_vm4, %v2883_v30, %v1179_v61  ;;  %v160_v63 = vld [vmem:[%s13497_s0 + $0x1a8] sm:$0xff] }
 0x3f3   :  { %224 = vst.msk [vmem:[#allocation2 + $0x2c1] sm:$0xff] %vm26_vm0, %v160_v63  ;;  %v9419_v63 = vld [vmem:[#allocation2 + $0x172] sm:$0xff] }
 0x3f6   :  { %2462 = vrot.lane.b32.xlu0 %v9271_v3, %s7562_s15 }
 0x3f7   :  { %1230 = vrot.lane.b32.xlu1 %v9047_v62, %s7559_s25 }
 0x3f8   :  { %v1737_v11 = vpop.permute.xlu0 %1736  ;;  %2508 = vrot.lane.b32.xlu2 %v9273_v26, %s7562_s15 }
 0x3f9   :  { %v1435_v31 = vpop.permute.xlu1 %1434 }
 0x3fa   :  { %v1947_v8 = vpop.permute.xlu2 %1946  ;;  %v3013_v53 = vsel %vm2989_vm5, %v2948_v38, %v1435_v31  ;;  %v9353_v31 = vld [vmem:[#allocation2 + $0x16a] sm:$0xff] }
 0x3fe   :  { %928 = vrot.lane.b32.xlu0 %v9055_v4, %s7558_s24  ;;  %v3101_v4 = vsel %vm3054_vm6, %v3036_v47, %v1737_v11 }
 0x3ff   :  { %1486 = vrot.lane.b32.xlu1 %v9193_v20, %s7560_s28  ;;  %v3166_v39 = vsel %vm3119_vm7, %v3101_v4, %v1993_v10 }
 0x400   :  { %v1691_v62 = vpop.permute.xlu0 %1690  ;;  %974 = vrot.lane.b32.xlu2 %v9057_v22, %s7558_s24 }
 0x401   :  { %v2249_v57 = vpop.permute.xlu1 %2248  ;;  %v3078_v56 = vsel %vm3054_vm6, %v3013_v53, %v1691_v62 }
 0x402   :  { %v2761_v48 = vpop.permute.xlu2 %2760  ;;  %v3231_v22 = vsel %vm3184_vm8, %v3166_v39, %v2249_v57  ;;  %v3143_v24 = vsel %vm3119_vm7, %v3078_v56, %v1947_v8  ;;  %v9355_v8 = vld [vmem:[#allocation2 + $0x2aa] sm:$0xff] }
 0x406   :  { %1742 = vrot.lane.b32.xlu0 %v9175_v13, %s7561_s29 }
 0x407   :  { %1440 = vrot.lane.b32.xlu1 %v9207_v25, %s7560_s28 }
 0x408   :  { %v2505_v43 = vpop.permute.xlu0 %2504  ;;  %2718 = vrot.lane.b32.xlu2 %v9296_v41, %s7563_s16 }
 0x409   :  { %v3296_v55 = vsel %vm3249_vm9, %v3231_v22, %v2505_v43  ;;  %v2203_v45 = vpop.permute.xlu1 %2202 }
 0x40a   :  { %v1227_v44 = vpop.permute.xlu2 %1226  ;;  %v3361_v19 = vsel %vm3314_vm10, %v3296_v55, %v2761_v48  ;;  %v3208_v9 = vsel %vm3184_vm8, %v3143_v24, %v2203_v45 }
 0x40b   :  { %7487 = vmatmul.msk.f32.gmra.mxu3 %vm3384_vm11, %v3361_v19 }
 0x40e   :  { %1696 = vrot.lane.b32.xlu0 %v9215_v40, %s7561_s29 }
 0x40f   :  { %2254 = vrot.lane.b32.xlu1 %v9309_v42, %s7565_s18 }
 0x410   :  { %v971_v17 = vpop.permute.xlu0 %970  ;;  %1184 = vrot.lane.b32.xlu2 %v9080_v54, %s7559_s25  ;;  %v159_v54 = vld [vmem:[%s13497_s0 + $0x1a0] sm:$0xff] }
 0x411   :  { %v2459_v6 = vpop.permute.xlu1 %2458  ;;  %223 = vst.msk [vmem:[#allocation2 + $0x2b9] sm:$0xff] %vm26_vm0, %v159_v54  ;;  %v2907_v62 = vsel %vm26_vm0, %v8877_v36, %v971_v17  ;;  %v9402_v54 = vpop.f32.mrf.mxu0 }
 0x412   :  { %v1483_v52 = vpop.permute.xlu2 %1482  ;;  %v3273_v51 = vsel %vm3249_vm9, %v3208_v9, %v2459_v6  ;;  %v2972_v57 = vsel %vm2924_vm4, %v2907_v62, %v1227_v44 }
 0x413   :  { %v3037_v48 = vsel %vm2989_vm5, %v2972_v57, %v1483_v52 }
 0x416   :  { %2510 = vrot.lane.b32.xlu0 %v9322_v49, %s7562_s15 }
 0x417   :  { %2208 = vrot.lane.b32.xlu1 %v9324_v28, %s7565_s18 }
 0x418   :  { %v2715_v7 = vpop.permute.xlu0 %2714  ;;  %1998 = vrot.lane.b32.xlu2 %v9191_v2, %s7564_s17  ;;  %v9391_v17 = vld [vmem:[#allocation2 + $0x2b9] sm:$0xff] }
 0x419   :  { %v925_v60 = vpop.permute.xlu1 %924  ;;  %v3338_v61 = vsel %vm3314_vm10, %v3273_v51, %v2715_v7  ;;  %v9405_v9 = vld [vmem:[#allocation2 + $0x2ba] sm:$0xff]  ;;  %v137_v7 = vld [vmem:[%s13497_s0 + $0xf0] sm:$0xff] }
 0x41a   :  { %v1437_v18 = vpop.permute.xlu2 %1436  ;;  %7464 = vmatmul.msk.f32.gmra.mxu0 %vm3384_vm11, %v3338_v61  ;;  %v9407_v51 = vld [vmem:[#allocation2 + $0x2b8] sm:$0xff]  ;;  %201 = vst.msk [vmem:[#allocation2 + $0x181] sm:$0xff] %vm26_vm0, %v137_v7 }
 0x41e   :  { %976 = vrot.lane.b32.xlu0 %v9106_v27, %s7558_s24 }
 0x41f   :  { %2464 = vrot.lane.b32.xlu1 %v9341_v58, %s7562_s15 }
 0x420   :  { %v1181_v37 = vpop.permute.xlu0 %1180  ;;  %1952 = vrot.lane.b32.xlu2 %v9205_v12, %s7564_s17 }
 0x421   :  { %v1739_v10 = vpop.permute.xlu1 %1738 }
 0x422   :  { %v2251_v11 = vpop.permute.xlu2 %2250  ;;  %v3102_v4 = vsel %vm3054_vm6, %v3037_v48, %v1739_v10 }
 0x426   :  { %2720 = vrot.lane.b32.xlu0 %v9353_v31, %s7563_s16 }
 0x427   :  { %930 = vrot.lane.b32.xlu1 %v9121_v23, %s7558_s24 }
 0x428   :  { %v1995_v27 = vpop.permute.xlu0 %1994  ;;  %2766 = vrot.lane.b32.xlu2 %v9355_v8, %s7563_s16 }
 0x429   :  { %v1693_v32 = vpop.permute.xlu1 %1692  ;;  %v3167_v36 = vsel %vm3119_vm7, %v3102_v4, %v1995_v27  ;;  %v9429_v27 = vld [vmem:[#allocation2 + $0x171] sm:$0xff] }
 0x42a   :  { %v2205_v34 = vpop.permute.xlu2 %2204  ;;  %v3232_v22 = vsel %vm3184_vm8, %v3167_v36, %v2251_v11 }
 0x42e   :  { %1186 = vrot.lane.b32.xlu0 %v9129_v21, %s7559_s25  ;;  %v2884_v21 = vsel %vm26_vm0, %v8892_v1, %v925_v60 }
 0x42f   :  { %1744 = vrot.lane.b32.xlu1 %v9273_v26, %s7561_s29  ;;  %v2949_v39 = vsel %vm2924_vm4, %v2884_v21, %v1181_v37  ;;  %v9421_v37 = vld [vmem:[#allocation2 + $0x170] sm:$0xff] }
 0x430   :  { %v1949_v0 = vpop.permute.xlu0 %1948  ;;  %1232 = vrot.lane.b32.xlu2 %v9131_v35, %s7559_s25  ;;  %v3014_v55 = vsel %vm2989_vm5, %v2949_v39, %v1437_v18 }
 0x431   :  { %v2507_v23 = vpop.permute.xlu1 %2506  ;;  %v3079_v44 = vsel %vm3054_vm6, %v3014_v55, %v1693_v32 }
 0x432   :  { %v2461_v47 = vpop.permute.xlu2 %2460  ;;  %v3297_v35 = vsel %vm3249_vm9, %v3232_v22, %v2507_v23  ;;  %v3144_v30 = vsel %vm3119_vm7, %v3079_v44, %v1949_v0 }
 0x433   :  { %v3209_v38 = vsel %vm3184_vm8, %v3144_v30, %v2205_v34 }
 0x434   :  { %v3274_v53 = vsel %vm3249_vm9, %v3209_v38, %v2461_v47 }
 0x436   :  { %2000 = vrot.lane.b32.xlu0 %v9259_v46, %s7564_s17 }
 0x437   :  { %1698 = vrot.lane.b32.xlu1 %v9271_v3, %s7561_s29 }
 0x438   :  { %v2763_v43 = vpop.permute.xlu0 %2762  ;;  %1488 = vrot.lane.b32.xlu2 %v9243_v59, %s7560_s28 }
 0x439   :  { %v973_v45 = vpop.permute.xlu1 %972  ;;  %v3362_v1 = vsel %vm3314_vm10, %v3297_v35, %v2763_v43  ;;  %v9461_v43 = vld [vmem:[#allocation2 + $0x2c0] sm:$0xff] }
 0x43a   :  { %v927_v19 = vpop.permute.xlu2 %926  ;;  %7488 = vmatmul.msk.f32.gmra.mxu3 %vm3384_vm11, %v3362_v1  ;;  %v2908_v32 = vsel %vm26_vm0, %v8973_v33, %v973_v45 }
 0x43b   :  { %v2885_v33 = vsel %vm26_vm0, %v8987_v29, %v927_v19 }
 0x43e   :  { %1954 = vrot.lane.b32.xlu0 %v9296_v41, %s7564_s17 }
 0x43f   :  { %2512 = vrot.lane.b32.xlu1 %v9391_v17, %s7562_s15 }
 0x440   :  { %v1229_v6 = vpop.permute.xlu0 %1228  ;;  %1442 = vrot.lane.b32.xlu2 %v9257_v50, %s7560_s28 }
 0x441   :  { %v2717_v52 = vpop.permute.xlu1 %2716 }
 0x442   :  { %v3339_v56 = vsel %vm3314_vm10, %v3274_v53, %v2717_v52  ;;  %v1741_v24 = vpop.permute.xlu2 %1740  ;;  %v9478_v53 = vpop.f32.mrf.mxu0  ;;  %v9481_v52 = vld [vmem:[#allocation2 + $0x180] sm:$0xff] }
 0x443   :  { %7465 = vmatmul.msk.f32.gmra.mxu0 %vm3384_vm11, %v3339_v56  ;;  %v9483_v56 = vld [vmem:[#allocation2 + $0x2c2] sm:$0xff] }
 0x446   :  { %2768 = vrot.lane.b32.xlu0 %v9405_v9, %s7563_s16 }
 0x447   :  { %978 = vrot.lane.b32.xlu1 %v9175_v13, %s7558_s24 }
 0x448   :  { %v1485_v60 = vpop.permute.xlu0 %1484  ;;  %2256 = vrot.lane.b32.xlu2 %v9407_v51, %s7565_s18 }
 0x449   :  { %v1183_v61 = vpop.permute.xlu1 %1182 }
 0x44a   :  { %v1695_v18 = vpop.permute.xlu2 %1694  ;;  %v2950_v39 = vsel %vm2924_vm4, %v2885_v33, %v1183_v61  ;;  %v9491_v61 = vld [vmem:[#allocation2 + $0x181] sm:$0xff] }
 0x44e   :  { %1234 = vrot.lane.b32.xlu0 %v9191_v2, %s7559_s25  ;;  %v2973_v2 = vsel %vm2924_vm4, %v2908_v32, %v1229_v6 }
 0x44f   :  { %2722 = vrot.lane.b32.xlu1 %v9419_v63, %s7563_s16  ;;  %v3038_v62 = vsel %vm2989_vm5, %v2973_v2, %v1485_v60  ;;  %v162_v2 = vld [vmem:[%s13497_s0 + $0x1b8] sm:$0xff] }
 0x450   :  { %v1439_v10 = vpop.permute.xlu0 %1438  ;;  %2210 = vrot.lane.b32.xlu2 %v9421_v37, %s7565_s18  ;;  %v3103_v23 = vsel %vm3054_vm6, %v3038_v62, %v1741_v24  ;;  %226 = vst.msk [vmem:[#allocation2 + $0x2d9] sm:$0xff] %vm26_vm0, %v162_v2 }
 0x451   :  { %v1997_v13 = vpop.permute.xlu1 %1996  ;;  %v3015_v35 = vsel %vm2989_vm5, %v2950_v39, %v1439_v10 }
 0x452   :  { %v2509_v11 = vpop.permute.xlu2 %2508  ;;  %v3168_v48 = vsel %vm3119_vm7, %v3103_v23, %v1997_v13  ;;  %v3080_v55 = vsel %vm3054_vm6, %v3015_v35, %v1695_v18  ;;  %v9493_v18 = vld [vmem:[#allocation2 + $0x2c1] sm:$0xff] }
 0x456   :  { %1490 = vrot.lane.b32.xlu0 %v9309_v42, %s7560_s28 }
 0x457   :  { %1188 = vrot.lane.b32.xlu1 %v9205_v12, %s7559_s25  ;;  %v138_v12 = vld [vmem:[%s13497_s0 + $0xf8] sm:$0xff] }
 0x458   :  { %v2253_v34 = vpop.permute.xlu0 %2252  ;;  %2466 = vrot.lane.b32.xlu2 %v9429_v27, %s7562_s15  ;;  %202 = vst.msk [vmem:[#allocation2 + $0x189] sm:$0xff] %vm26_vm0, %v138_v12 }
 0x459   :  { %v1951_v57 = vpop.permute.xlu1 %1950  ;;  %v3233_v47 = vsel %vm3184_vm8, %v3168_v48, %v2253_v34 }
 0x45a   :  { %v975_v0 = vpop.permute.xlu2 %974  ;;  %v3298_v21 = vsel %vm3249_vm9, %v3233_v47, %v2509_v11  ;;  %v3145_v45 = vsel %vm3119_vm7, %v3080_v55, %v1951_v57 }
 0x45b   :  { %v2909_v32 = vsel %vm26_vm0, %v9027_v5, %v975_v0 }
 0x45e   :  { %1444 = vrot.lane.b32.xlu0 %v9324_v28, %s7560_s28 }
 0x45f   :  { %2002 = vrot.lane.b32.xlu1 %v9355_v8, %s7564_s17  ;;  %v9516_v0 = vld [vmem:[#allocation2 + $0x182] sm:$0xff] }
 0x460   :  { %v2207_v4 = vpop.permute.xlu0 %2206  ;;  %932 = vrot.lane.b32.xlu2 %v9215_v40, %s7558_s24  ;;  %v161_v40 = vld [vmem:[%s13497_s0 + $0x1b0] sm:$0xff] }
 0x461   :  { %v2765_v36 = vpop.permute.xlu1 %2764  ;;  %225 = vst.msk [vmem:[#allocation2 + $0x2d1] sm:$0xff] %vm26_vm0, %v161_v40  ;;  %v3210_v1 = vsel %vm3184_vm8, %v3145_v45, %v2207_v4 }
 0x462   :  { %v2719_v22 = vpop.permute.xlu2 %2718  ;;  %v3363_v29 = vsel %vm3314_vm10, %v3298_v21, %v2765_v36 }
 0x463   :  { %7489 = vmatmul.msk.f32.gmra.mxu3 %vm3384_vm11, %v3363_v29 }
 0x466   :  { %2258 = vrot.lane.b32.xlu0 %v9461_v43, %s7565_s18 }
 0x467   :  { %1956 = vrot.lane.b32.xlu1 %v9353_v31, %s7564_s17 }
 0x468   :  { %v2463_v44 = vpop.permute.xlu0 %2462  ;;  %1746 = vrot.lane.b32.xlu2 %v9322_v49, %s7561_s29  ;;  %v9529_v36 = vld [vmem:[#allocation2 + $0x2d0] sm:$0xff] }
 0x469   :  { %v3275_v19 = vsel %vm3249_vm9, %v3210_v1, %v2463_v44  ;;  %v1231_v30 = vpop.permute.xlu1 %1230  ;;  %v9542_v45 = vld [vmem:[#allocation2 + $0x2d1] sm:$0xff] }
 0x46a   :  { %v1185_v38 = vpop.permute.xlu2 %1184  ;;  %v3340_v6 = vsel %vm3314_vm10, %v3275_v19, %v2719_v22  ;;  %v2974_v62 = vsel %vm2924_vm4, %v2909_v32, %v1231_v30  ;;  %v9569_v32 = vld [vmem:[#allocation2 + $0x2d2] sm:$0xff] }
 0x46b   :  { %7466 = vmatmul.msk.f32.gmra.mxu0 %vm3384_vm11, %v3340_v6  ;;  %v9556_v6 = vpop.f32.mrf.mxu0 }
 0x46e   :  { %2212 = vrot.lane.b32.xlu0 %v9481_v52, %s7565_s18 }
 0x46f   :  { %2770 = vrot.lane.b32.xlu1 %v9483_v56, %s7563_s16 }
 0x470   :  { %v929_v24 = vpop.permute.xlu0 %928  ;;  %1700 = vrot.lane.b32.xlu2 %v9341_v58, %s7561_s29 }
 0x471   :  { %v1487_v7 = vpop.permute.xlu1 %1486  ;;  %v2886_v21 = vsel %vm26_vm0, %v9045_v15, %v929_v24  ;;  %v9544_v15 = vld [vmem:[#allocation2 + $0x188] sm:$0xff] }
 0x472   :  { %v1999_v60 = vpop.permute.xlu2 %1998  ;;  %v3039_v57 = vsel %vm2989_vm5, %v2974_v62, %v1487_v7  ;;  %v2951_v22 = vsel %vm2924_vm4, %v2886_v21, %v1185_v38  ;;  %v9559_v7 = vld [vmem:[#allocation2 + $0x189] sm:$0xff] }
 0x476   :  { %2468 = vrot.lane.b32.xlu0 %v9491_v61, %s7562_s15 }
 0x477   :  { %1236 = vrot.lane.b32.xlu1 %v9259_v46, %s7559_s25 }
 0x478   :  { %v1743_v10 = vpop.permute.xlu0 %1742  ;;  %2514 = vrot.lane.b32.xlu2 %v9493_v18, %s7562_s15 }
 0x479   :  { %v1441_v13 = vpop.permute.xlu1 %1440  ;;  %v3104_v5 = vsel %vm3054_vm6, %v3039_v57, %v1743_v10 }
 0x47a   :  { %v1953_v11 = vpop.permute.xlu2 %1952  ;;  %v3169_v23 = vsel %vm3119_vm7, %v3104_v5, %v1999_v60  ;;  %v3016_v35 = vsel %vm2989_vm5, %v2951_v22, %v1441_v13  ;;  %v9605_v22 = vld [vmem:[#allocation2 + $0x2d9] sm:$0xff] }
 0x47e   :  { %934 = vrot.lane.b32.xlu0 %v9271_v3, %s7558_s24 }
 0x47f   :  { %1492 = vrot.lane.b32.xlu1 %v9407_v51, %s7560_s28 }
 0x480   :  { %v1697_v46 = vpop.permute.xlu0 %1696  ;;  %980 = vrot.lane.b32.xlu2 %v9273_v26, %s7558_s24 }
 0x481   :  { %v2255_v34 = vpop.permute.xlu1 %2254  ;;  %v3081_v40 = vsel %vm3054_vm6, %v3016_v35, %v1697_v46 }
 0x482   :  { %v2767_v3 = vpop.permute.xlu2 %2766  ;;  %v3234_v26 = vsel %vm3184_vm8, %v3169_v23, %v2255_v34  ;;  %v3146_v1 = vsel %vm3119_vm7, %v3081_v40, %v1953_v11  ;;  %v9567_v11 = vld [vmem:[#allocation2 + $0x18a] sm:$0xff] }
 0x486   :  { %1748 = vrot.lane.b32.xlu0 %v9391_v17, %s7561_s29 }
 0x487   :  { %1446 = vrot.lane.b32.xlu1 %v9421_v37, %s7560_s28 }
 0x488   :  { %v2511_v48 = vpop.permute.xlu0 %2510  ;;  %2724 = vrot.lane.b32.xlu2 %v9516_v0, %s7563_s16 }
 0x489   :  { %v3299_v47 = vsel %vm3249_vm9, %v3234_v26, %v2511_v48  ;;  %v2209_v33 = vpop.permute.xlu1 %2208 }
 0x48a   :  { %v1233_v12 = vpop.permute.xlu2 %1232  ;;  %v3364_v4 = vsel %vm3314_vm10, %v3299_v47, %v2767_v3  ;;  %v3211_v44 = vsel %vm3184_vm8, %v3146_v1, %v2209_v33 }
 0x48b   :  { %7490 = vmatmul.msk.f32.gmra.mxu3 %vm3384_vm11, %v3364_v4 }
 0x48e   :  { %1702 = vrot.lane.b32.xlu0 %v9429_v27, %s7561_s29 }
 0x48f   :  { %2260 = vrot.lane.b32.xlu1 %v9529_v36, %s7565_s18 }
 0x490   :  { %v977_v39 = vpop.permute.xlu0 %976  ;;  %1190 = vrot.lane.b32.xlu2 %v9296_v41, %s7559_s25 }
 0x491   :  { %v2465_v29 = vpop.permute.xlu1 %2464  ;;  %v2910_v34 = vsel %vm26_vm0, %v9093_v14, %v977_v39 }
 0x492   :  { %v1489_v55 = vpop.permute.xlu2 %1488  ;;  %v3276_v41 = vsel %vm3249_vm9, %v3211_v44, %v2465_v29  ;;  %v2975_v62 = vsel %vm2924_vm4, %v2910_v34, %v1233_v12 }
 0x493   :  { %v3040_v57 = vsel %vm2989_vm5, %v2975_v62, %v1489_v55 }
 0x496   :  { %2516 = vrot.lane.b32.xlu0 %v9542_v45, %s7562_s15 }
 0x497   :  { %2214 = vrot.lane.b32.xlu1 %v9544_v15, %s7565_s18 }
 0x498   :  { %v2721_v19 = vpop.permute.xlu0 %2720  ;;  %2004 = vrot.lane.b32.xlu2 %v9405_v9, %s7564_s17 }
 0x499   :  { %v3341_v30 = vsel %vm3314_vm10, %v3276_v41, %v2721_v19  ;;  %v931_v38 = vpop.permute.xlu1 %930  ;;  %v9620_v41 = vpop.f32.mrf.mxu0  ;;  %v9625_v19 = vld [vmem:[#allocation2 + $0x2d8] sm:$0xff] }
 0x49a   :  { %v1443_v24 = vpop.permute.xlu2 %1442  ;;  %7467 = vmatmul.msk.f32.gmra.mxu0 %vm3384_vm11, %v3341_v30 }
 0x49e   :  { %982 = vrot.lane.b32.xlu0 %v9322_v49, %s7558_s24 }
 0x49f   :  { %2470 = vrot.lane.b32.xlu1 %v9559_v7, %s7562_s15 }
 0x4a0   :  { %v1187_v60 = vpop.permute.xlu0 %1186  ;;  %1958 = vrot.lane.b32.xlu2 %v9419_v63, %s7564_s17 }
 0x4a1   :  { %v1745_v10 = vpop.permute.xlu1 %1744 }
 0x4a2   :  { %v2257_v13 = vpop.permute.xlu2 %2256  ;;  %v3105_v23 = vsel %vm3054_vm6, %v3040_v57, %v1745_v10  ;;  %v650_v10 = vld [vmem:[#allocation2 + $0x198] sm:$0xff] }
 0x4a6   :  { %2726 = vrot.lane.b32.xlu0 %v9567_v11, %s7563_s16 }
 0x4a7   :  { %936 = vrot.lane.b32.xlu1 %v9341_v58, %s7558_s24 }
 0x4a8   :  { %v2001_v49 = vpop.permute.xlu0 %2000  ;;  %2772 = vrot.lane.b32.xlu2 %v9569_v32, %s7563_s16 }
 0x4a9   :  { %v1699_v2 = vpop.permute.xlu1 %1698  ;;  %v3170_v14 = vsel %vm3119_vm7, %v3105_v23, %v2001_v49 }
 0x4aa   :  { %v2211_v46 = vpop.permute.xlu2 %2210  ;;  %v3235_v48 = vsel %vm3184_vm8, %v3170_v14, %v2257_v13 }
 0x4ae   :  { %1192 = vrot.lane.b32.xlu0 %v9353_v31, %s7559_s25  ;;  %v2887_v31 = vsel %vm26_vm0, %v9108_v16, %v931_v38 }
 0x4af   :  { %1750 = vrot.lane.b32.xlu1 %v9493_v18, %s7561_s29  ;;  %v2952_v26 = vsel %vm2924_vm4, %v2887_v31, %v1187_v60  ;;  %v778_v60 = vld [vmem:[#allocation2 + $0x19a] sm:$0xff] }
 0x4b0   :  { %v1955_v3 = vpop.permute.xlu0 %1954  ;;  %1238 = vrot.lane.b32.xlu2 %v9355_v8, %s7559_s25  ;;  %v3017_v33 = vsel %vm2989_vm5, %v2952_v26, %v1443_v24 }
 0x4b1   :  { %v2513_v58 = vpop.permute.xlu1 %2512  ;;  %v3082_v4 = vsel %vm3054_vm6, %v3017_v33, %v1699_v2  ;;  %v714_v2 = vld [vmem:[#allocation2 + $0x199] sm:$0xff] }
 0x4b2   :  { %v2467_v5 = vpop.permute.xlu2 %2466  ;;  %v3300_v8 = vsel %vm3249_vm9, %v3235_v48, %v2513_v58  ;;  %v3147_v39 = vsel %vm3119_vm7, %v3082_v4, %v1955_v3 }
 0x4b3   :  { %v3212_v29 = vsel %vm3184_vm8, %v3147_v39, %v2211_v46 }
 0x4b4   :  { %v3277_v55 = vsel %vm3249_vm9, %v3212_v29, %v2467_v5  ;;  %v651_v29 = vld [vmem:[#allocation2 + $0x1a0] sm:$0xff] }
 0x4b6   :  { %2006 = vrot.lane.b32.xlu0 %v9483_v56, %s7564_s17 }
 0x4b7   :  { %1704 = vrot.lane.b32.xlu1 %v9491_v61, %s7561_s29  ;;  %v163_v61 = vld [vmem:[%s13497_s0 + $0x1c0] sm:$0xff] }
 0x4b8   :  { %v2769_v47 = vpop.permute.xlu0 %2768  ;;  %1494 = vrot.lane.b32.xlu2 %v9461_v43, %s7560_s28  ;;  %227 = vst.msk [vmem:[#allocation2 + $0x2e9] sm:$0xff] %vm26_vm0, %v163_v61  ;;  %v9679_v61 = vpop.f32.mrf.mxu0 }
 0x4b9   :  { %v979_v12 = vpop.permute.xlu1 %978  ;;  %v3365_v16 = vsel %vm3314_vm10, %v3300_v8, %v2769_v47 }
 0x4ba   :  { %v933_v21 = vpop.permute.xlu2 %932  ;;  %7491 = vmatmul.msk.f32.gmra.mxu3 %vm3384_vm11, %v3365_v16  ;;  %v2911_v46 = vsel %vm26_vm0, %v9193_v20, %v979_v12 }
 0x4bb   :  { %v2888_v20 = vsel %vm26_vm0, %v9207_v25, %v933_v21 }
 0x4be   :  { %1960 = vrot.lane.b32.xlu0 %v9516_v0, %s7564_s17  ;;  %v9623_v0 = vld [vmem:[#allocation2 + $0x2da] sm:$0xff] }
 0x4bf   :  { %2518 = vrot.lane.b32.xlu1 %v9605_v22, %s7562_s15  ;;  %v9666_v25 = vld [vmem:[#allocation2 + $0x2e8] sm:$0xff] }
 0x4c0   :  { %v1235_v35 = vpop.permute.xlu0 %1234  ;;  %1448 = vrot.lane.b32.xlu2 %v9481_v52, %s7560_s28  ;;  %v164_v52 = vld [vmem:[%s13497_s0 + $0x1c8] sm:$0xff] }
 0x4c1   :  { %v2723_v40 = vpop.permute.xlu1 %2722  ;;  %228 = vst.msk [vmem:[#allocation2 + $0x2f1] sm:$0xff] %vm26_vm0, %v164_v52  ;;  %v2976_v34 = vsel %vm2924_vm4, %v2911_v46, %v1235_v35  ;;  %v779_v46 = vld [vmem:[#allocation2 + $0x1a2] sm:$0xff] }
 0x4c2   :  { %v3342_v1 = vsel %vm3314_vm10, %v3277_v55, %v2723_v40  ;;  %v1747_v44 = vpop.permute.xlu2 %1746 }
 0x4c3   :  { %7468 = vmatmul.msk.f32.gmra.mxu0 %vm3384_vm11, %v3342_v1  ;;  %v715_v1 = vld [vmem:[#allocation2 + $0x1a1] sm:$0xff] }
 0x4c6   :  { %2774 = vrot.lane.b32.xlu0 %v9623_v0, %s7563_s16 }
 0x4c7   :  { %984 = vrot.lane.b32.xlu1 %v9391_v17, %s7558_s24 }
 0x4c8   :  { %v1491_v30 = vpop.permute.xlu0 %1490  ;;  %2262 = vrot.lane.b32.xlu2 %v9625_v19, %s7565_s18  ;;  %v9682_v35 = vld [vmem:[#allocation2 + $0x2ea] sm:$0xff] }
 0x4c9   :  { %v1189_v38 = vpop.permute.xlu1 %1188  ;;  %v3041_v62 = vsel %vm2989_vm5, %v2976_v34, %v1491_v30 }
 0x4ca   :  { %v1701_v24 = vpop.permute.xlu2 %1700  ;;  %v3106_v57 = vsel %vm3054_vm6, %v3041_v62, %v1747_v44  ;;  %v2953_v26 = vsel %vm2924_vm4, %v2888_v20, %v1189_v38  ;;  %v9689_v44 = vld [vmem:[#allocation2 + $0x2e9] sm:$0xff] }
 0x4ce   :  { %1240 = vrot.lane.b32.xlu0 %v9405_v9, %s7559_s25 }
 0x4cf   :  { %2728 = vrot.lane.b32.xlu1 %v778_v60, %s7563_s16 }
 0x4d0   :  { %v1445_v13 = vpop.permute.xlu0 %1444  ;;  %2216 = vrot.lane.b32.xlu2 %v650_v10, %s7565_s18 }
 0x4d1   :  { %v2003_v49 = vpop.permute.xlu1 %2002 }
 0x4d2   :  { %v2515_v17 = vpop.permute.xlu2 %2514  ;;  %v3171_v5 = vsel %vm3119_vm7, %v3106_v57, %v2003_v49  ;;  %v523_v57 = vld [vmem:[#allocation2 + $0x1c9] sm:$0xff] }
 0x4d6   :  { %1496 = vrot.lane.b32.xlu0 %v9529_v36, %s7560_s28 }
 0x4d7   :  { %1194 = vrot.lane.b32.xlu1 %v9419_v63, %s7559_s25 }
 0x4d8   :  { %v2259_v9 = vpop.permute.xlu0 %2258  ;;  %2472 = vrot.lane.b32.xlu2 %v714_v2, %s7562_s15  ;;  %v459_v2 = vld [vmem:[#allocation2 + $0x1c8] sm:$0xff] }
 0x4d9   :  { %v1957_v3 = vpop.permute.xlu1 %1956  ;;  %v3236_v23 = vsel %vm3184_vm8, %v3171_v5, %v2259_v9  ;;  %v9715_v5 = vld [vmem:[#allocation2 + $0x2f0] sm:$0xff] }
 0x4da   :  { %v981_v58 = vpop.permute.xlu2 %980  ;;  %v3301_v31 = vsel %vm3249_vm9, %v3236_v23, %v2515_v17  ;;  %v395_v23 = vld [vmem:[#allocation2 + $0x1b2] sm:$0xff] }
 0x4de   :  { %1450 = vrot.lane.b32.xlu0 %v9544_v15, %s7560_s28  ;;  %v3018_v15 = vsel %vm2989_vm5, %v2953_v26, %v1445_v13 }
 0x4df   :  { %2008 = vrot.lane.b32.xlu1 %v9569_v32, %s7564_s17  ;;  %v3083_v47 = vsel %vm3054_vm6, %v3018_v15, %v1701_v24  ;;  %v331_v24 = vld [vmem:[#allocation2 + $0x1b1] sm:$0xff] }
 0x4e0   :  { %v2213_v63 = vpop.permute.xlu0 %2212  ;;  %938 = vrot.lane.b32.xlu2 %v9429_v27, %s7558_s24  ;;  %v3148_v27 = vsel %vm3119_vm7, %v3083_v47, %v1957_v3  ;;  %v9726_v15 = vld [vmem:[#allocation2 + $0x2f1] sm:$0xff]  ;;  %v652_v47 = vld [vmem:[#allocation2 + $0x1e0] sm:$0xff] }
 0x4e1   :  { %v2771_v14 = vpop.permute.xlu1 %2770  ;;  %v3213_v33 = vsel %vm3184_vm8, %v3148_v27, %v2213_v63  ;;  %v165_v27 = vld [vmem:[%s13497_s0 + $0x1d0] sm:$0xff] }
 0x4e2   :  { %v2725_v48 = vpop.permute.xlu2 %2724  ;;  %v3366_v8 = vsel %vm3314_vm10, %v3301_v31, %v2771_v14  ;;  %229 = vst.msk [vmem:[#allocation2 + $0x301] sm:$0xff] %vm26_vm0, %v165_v27 }
 0x4e3   :  { %7492 = vmatmul.msk.f32.gmra.mxu3 %vm3384_vm11, %v3366_v8 }
 0x4e6   :  { %2264 = vrot.lane.b32.xlu0 %v9666_v25, %s7565_s18 }
 0x4e7   :  { %1962 = vrot.lane.b32.xlu1 %v9567_v11, %s7564_s17 }
 0x4e8   :  { %v2469_v12 = vpop.permute.xlu0 %2468  ;;  %1752 = vrot.lane.b32.xlu2 %v9542_v45, %s7561_s29 }
 0x4e9   :  { %v3278_v16 = vsel %vm3249_vm9, %v3213_v33, %v2469_v12  ;;  %v1237_v4 = vpop.permute.xlu1 %1236 }
 0x4ea   :  { %v1191_v21 = vpop.permute.xlu2 %1190  ;;  %v3343_v39 = vsel %vm3314_vm10, %v3278_v16, %v2725_v48 }
 0x4eb   :  { %7469 = vmatmul.msk.f32.gmra.mxu0 %vm3384_vm11, %v3343_v39  ;;  %v9741_v39 = vpop.f32.mrf.mxu0 }
 0x4ee   :  { %2218 = vrot.lane.b32.xlu0 %v651_v29, %s7565_s18 }
 0x4ef   :  { %2776 = vrot.lane.b32.xlu1 %v9682_v35, %s7563_s16 }
 0x4f0   :  { %v935_v11 = vpop.permute.xlu0 %934  ;;  %1706 = vrot.lane.b32.xlu2 %v9559_v7, %s7561_s29  ;;  %v2912_v7 = vsel %vm26_vm0, %v9243_v59, %v981_v58 }
 0x4f1   :  { %v1493_v55 = vpop.permute.xlu1 %1492  ;;  %v2977_v10 = vsel %vm2924_vm4, %v2912_v7, %v1237_v4  ;;  %v2889_v20 = vsel %vm26_vm0, %v9257_v50, %v935_v11  ;;  %v716_v11 = vld [vmem:[#allocation2 + $0x1e1] sm:$0xff]  ;;  %v9752_v7 = vld [vmem:[#allocation2 + $0x2f2] sm:$0xff] }
 0x4f2   :  { %v2005_v40 = vpop.permute.xlu2 %2004  ;;  %v3042_v49 = vsel %vm2989_vm5, %v2977_v10, %v1493_v55  ;;  %v2954_v14 = vsel %vm2924_vm4, %v2889_v20, %v1191_v21  ;;  %v587_v55 = vld [vmem:[#allocation2 + $0x1ca] sm:$0xff]  ;;  %v396_v10 = vld [vmem:[#allocation2 + $0x1ba] sm:$0xff] }
 0x4f6   :  { %2474 = vrot.lane.b32.xlu0 %v715_v1, %s7562_s15 }
 0x4f7   :  { %1242 = vrot.lane.b32.xlu1 %v9483_v56, %s7559_s25 }
 0x4f8   :  { %v1749_v52 = vpop.permute.xlu0 %1748  ;;  %2520 = vrot.lane.b32.xlu2 %v9689_v44, %s7562_s15 }
 0x4f9   :  { %v1447_v30 = vpop.permute.xlu1 %1446  ;;  %v3107_v17 = vsel %vm3054_vm6, %v3042_v49, %v1749_v52 }
 0x4fa   :  { %v1959_v38 = vpop.permute.xlu2 %1958  ;;  %v3172_v59 = vsel %vm3119_vm7, %v3107_v17, %v2005_v40  ;;  %v3019_v26 = vsel %vm2989_vm5, %v2954_v14, %v1447_v30  ;;  %v166_v40 = vld [vmem:[%s13497_s0 + $0x1d8] sm:$0xff] }
 0x4fb   :  { %230 = vst.msk [vmem:[#allocation2 + $0x309] sm:$0xff] %vm26_vm0, %v166_v40 }
 0x4fe   :  { %940 = vrot.lane.b32.xlu0 %v331_v24, %s7558_s24  ;;  %v332_v24 = vld [vmem:[#allocation2 + $0x1b9] sm:$0xff] }
 0x4ff   :  { %1498 = vrot.lane.b32.xlu1 %v9625_v19, %s7560_s28 }
 0x500   :  { %v1703_v60 = vpop.permute.xlu0 %1702  ;;  %986 = vrot.lane.b32.xlu2 %v9493_v18, %s7558_s24 }
 0x501   :  { %v2261_v56 = vpop.permute.xlu1 %2260  ;;  %v3084_v8 = vsel %vm3054_vm6, %v3019_v26, %v1703_v60  ;;  %v9784_v26 = vld [vmem:[#allocation2 + $0x301] sm:$0xff] }
 0x502   :  { %v2773_v13 = vpop.permute.xlu2 %2772  ;;  %v3237_v34 = vsel %vm3184_vm8, %v3172_v59, %v2261_v56  ;;  %v3149_v50 = vsel %vm3119_vm7, %v3084_v8, %v1959_v38  ;;  %v780_v38 = vld [vmem:[#allocation2 + $0x1e2] sm:$0xff] }
 0x506   :  { %1754 = vrot.lane.b32.xlu0 %v9605_v22, %s7561_s29 }
 0x507   :  { %1452 = vrot.lane.b32.xlu1 %v459_v2, %s7560_s28 }
 0x508   :  { %v2517_v18 = vpop.permute.xlu0 %2516  ;;  %2730 = vrot.lane.b32.xlu2 %v779_v46, %s7563_s16 }
 0x509   :  { %v3302_v9 = vsel %vm3249_vm9, %v3237_v34, %v2517_v18  ;;  %v2215_v62 = vpop.permute.xlu1 %2214 }
 0x50a   :  { %v1239_v3 = vpop.permute.xlu2 %1238  ;;  %v3367_v58 = vsel %vm3314_vm10, %v3302_v9, %v2773_v13  ;;  %v3214_v33 = vsel %vm3184_vm8, %v3149_v50, %v2215_v62 }
 0x50b   :  { %7493 = vmatmul.msk.f32.gmra.mxu3 %vm3384_vm11, %v3367_v58 }
 0x50e   :  { %1708 = vrot.lane.b32.xlu0 %v523_v57, %s7561_s29 }
 0x50f   :  { %2266 = vrot.lane.b32.xlu1 %v9715_v5, %s7565_s18 }
 0x510   :  { %v983_v63 = vpop.permute.xlu0 %982  ;;  %1196 = vrot.lane.b32.xlu2 %v395_v23, %s7559_s25 }
 0x511   :  { %v2471_v31 = vpop.permute.xlu1 %2470  ;;  %v2913_v13 = vsel %vm26_vm0, %v9309_v42, %v983_v63  ;;  %v524_v42 = vld [vmem:[#allocation2 + $0x1d1] sm:$0xff] }
 0x512   :  { %v1495_v48 = vpop.permute.xlu2 %1494  ;;  %v3279_v12 = vsel %vm3249_vm9, %v3214_v33, %v2471_v31  ;;  %v2978_v49 = vsel %vm2924_vm4, %v2913_v13, %v1239_v3  ;;  %v588_v31 = vld [vmem:[#allocation2 + $0x1d2] sm:$0xff] }
 0x513   :  { %v3043_v46 = vsel %vm2989_vm5, %v2978_v49, %v1495_v48  ;;  %v460_v48 = vld [vmem:[#allocation2 + $0x1d0] sm:$0xff] }
 0x516   :  { %2522 = vrot.lane.b32.xlu0 %v9726_v15, %s7562_s15 }
 0x517   :  { %2220 = vrot.lane.b32.xlu1 %v652_v47, %s7565_s18 }
 0x518   :  { %v2727_v16 = vpop.permute.xlu0 %2726  ;;  %2010 = vrot.lane.b32.xlu2 %v9623_v0, %s7564_s17 }
 0x519   :  { %v3344_v4 = vsel %vm3314_vm10, %v3279_v12, %v2727_v16  ;;  %v937_v21 = vpop.permute.xlu1 %936  ;;  %v9793_v16 = vpop.f32.mrf.mxu0 }
 0x51a   :  { %v1449_v29 = vpop.permute.xlu2 %1448  ;;  %7470 = vmatmul.msk.f32.gmra.mxu0 %vm3384_vm11, %v3344_v4  ;;  %v2890_v9 = vsel %vm26_vm0, %v9324_v28, %v937_v21  ;;  %v9796_v4 = vld [vmem:[#allocation2 + $0x302] sm:$0xff] }
 0x51b   :  { %v9798_v21 = vld [vmem:[#allocation2 + $0x300] sm:$0xff] }
 0x51e   :  { %988 = vrot.lane.b32.xlu0 %v9542_v45, %s7558_s24 }
 0x51f   :  { %2476 = vrot.lane.b32.xlu1 %v716_v11, %s7562_s15 }
 0x520   :  { %v1193_v1 = vpop.permute.xlu0 %1192  ;;  %1964 = vrot.lane.b32.xlu2 %v587_v55, %s7564_s17 }
 0x521   :  { %v1751_v52 = vpop.permute.xlu1 %1750  ;;  %v2955_v62 = vsel %vm2924_vm4, %v2890_v9, %v1193_v1  ;;  %v781_v1 = vld [vmem:[#allocation2 + $0x1ea] sm:$0xff] }
 0x522   :  { %v2263_v30 = vpop.permute.xlu2 %2262  ;;  %v3108_v34 = vsel %vm3054_vm6, %v3043_v46, %v1751_v52  ;;  %v3020_v57 = vsel %vm2989_vm5, %v2955_v62, %v1449_v29  ;;  %v167_v29 = vld [vmem:[%s13497_s0 + $0x1e0] sm:$0xff]  ;;  %v653_v52 = vld [vmem:[#allocation2 + $0x1e8] sm:$0xff] }
 0x523   :  { %231 = vst.msk [vmem:[#allocation2 + $0x319] sm:$0xff] %vm26_vm0, %v167_v29  ;;  %v9830_v46 = vld [vmem:[#allocation2 + $0x30a] sm:$0xff]  ;;  %v170_v29 = vld [vmem:[%s13497_s0 + $0x1f8] sm:$0xff] }
 0x524   :  { %234 = vst.msk [vmem:[#allocation2 + $0x339] sm:$0xff] %vm26_vm0, %v170_v29 }
 0x526   :  { %2732 = vrot.lane.b32.xlu0 %v780_v38, %s7563_s16 }
 0x527   :  { %942 = vrot.lane.b32.xlu1 %v332_v24, %s7558_s24 }
 0x528   :  { %v2007_v60 = vpop.permute.xlu0 %2006  ;;  %2778 = vrot.lane.b32.xlu2 %v9752_v7, %s7563_s16 }
 0x529   :  { %v1705_v45 = vpop.permute.xlu1 %1704  ;;  %v3173_v18 = vsel %vm3119_vm7, %v3108_v34, %v2007_v60  ;;  %v717_v60 = vld [vmem:[#allocation2 + $0x1e9] sm:$0xff] }
 0x52a   :  { %v2217_v56 = vpop.permute.xlu2 %2216  ;;  %v3238_v3 = vsel %vm3184_vm8, %v3173_v18, %v2263_v30  ;;  %v3085_v20 = vsel %vm3054_vm6, %v3020_v57, %v1705_v45  ;;  %v168_v30 = vld [vmem:[%s13497_s0 + $0x1e8] sm:$0xff] }
 0x52b   :  { %232 = vst.msk [vmem:[#allocation2 + $0x321] sm:$0xff] %vm26_vm0, %v168_v30 }
 0x52e   :  { %1198 = vrot.lane.b32.xlu0 %v396_v10, %s7559_s25 }
 0x52f   :  { %1756 = vrot.lane.b32.xlu1 %v9689_v44, %s7561_s29 }
 0x530   :  { %v1961_v17 = vpop.permute.xlu0 %1960  ;;  %1244 = vrot.lane.b32.xlu2 %v9569_v32, %s7559_s25 }
 0x531   :  { %v2519_v2 = vpop.permute.xlu1 %2518  ;;  %v3150_v14 = vsel %vm3119_vm7, %v3085_v20, %v1961_v17  ;;  %v9827_v17 = vld [vmem:[#allocation2 + $0x309] sm:$0xff] }
 0x532   :  { %v2473_v59 = vpop.permute.xlu2 %2472  ;;  %v3303_v32 = vsel %vm3249_vm9, %v3238_v3, %v2519_v2  ;;  %v3215_v8 = vsel %vm3184_vm8, %v3150_v14, %v2217_v56 }
 0x533   :  { %v3280_v50 = vsel %vm3249_vm9, %v3215_v8, %v2473_v59  ;;  %v9860_v8 = vpop.f32.mrf.mxu0 }
 0x536   :  { %2012 = vrot.lane.b32.xlu0 %v9682_v35, %s7564_s17 }
 0x537   :  { %1710 = vrot.lane.b32.xlu1 %v524_v42, %s7561_s29 }
 0x538   :  { %v2775_v58 = vpop.permute.xlu0 %2774  ;;  %1500 = vrot.lane.b32.xlu2 %v9666_v25, %s7560_s28 }
 0x539   :  { %v985_v23 = vpop.permute.xlu1 %984  ;;  %v3368_v28 = vsel %vm3314_vm10, %v3303_v32, %v2775_v58 }
 0x53a   :  { %v939_v63 = vpop.permute.xlu2 %938  ;;  %7494 = vmatmul.msk.f32.gmra.mxu3 %vm3384_vm11, %v3368_v28  ;;  %v2914_v45 = vsel %vm26_vm0, %v9407_v51, %v985_v23 }
 0x53b   :  { %v2891_v34 = vsel %vm26_vm0, %v9421_v37, %v939_v63  ;;  %v9847_v37 = vld [vmem:[#allocation2 + $0x308] sm:$0xff] }
 0x53e   :  { %1966 = vrot.lane.b32.xlu0 %v588_v31, %s7564_s17 }
 0x53f   :  { %2524 = vrot.lane.b32.xlu1 %v9784_v26, %s7562_s15 }
 0x540   :  { %v1241_v47 = vpop.permute.xlu0 %1240  ;;  %1454 = vrot.lane.b32.xlu2 %v460_v48, %s7560_s28 }
 0x541   :  { %v2729_v27 = vpop.permute.xlu1 %2728 }
 0x542   :  { %v3345_v33 = vsel %vm3314_vm10, %v3280_v50, %v2729_v27  ;;  %v1753_v12 = vpop.permute.xlu2 %1752 }
 0x543   :  { %7471 = vmatmul.msk.f32.gmra.mxu0 %vm3384_vm11, %v3345_v33  ;;  %v9871_v33 = vld [vmem:[#allocation2 + $0x31a] sm:$0xff] }
 0x546   :  { %2780 = vrot.lane.b32.xlu0 %v9796_v4, %s7563_s16 }
 0x547   :  { %990 = vrot.lane.b32.xlu1 %v9605_v22, %s7558_s24 }
 0x548   :  { %v1497_v11 = vpop.permute.xlu0 %1496  ;;  %2268 = vrot.lane.b32.xlu2 %v9798_v21, %s7565_s18 }
 0x549   :  { %v1195_v55 = vpop.permute.xlu1 %1194 }
 0x54a   :  { %v1707_v40 = vpop.permute.xlu2 %1706  ;;  %v2956_v62 = vsel %vm2924_vm4, %v2891_v34, %v1195_v55 }
 0x54e   :  { %1246 = vrot.lane.b32.xlu0 %v9623_v0, %s7559_s25  ;;  %v2979_v0 = vsel %vm2924_vm4, %v2914_v45, %v1241_v47  ;;  %v9902_v45 = vld [vmem:[#allocation2 + $0x321] sm:$0xff] }
 0x54f   :  { %2734 = vrot.lane.b32.xlu1 %v781_v1, %s7563_s16  ;;  %v3044_v10 = vsel %vm2989_vm5, %v2979_v0, %v1497_v11 }
 0x550   :  { %v1451_v22 = vpop.permute.xlu0 %1450  ;;  %2222 = vrot.lane.b32.xlu2 %v653_v52, %s7565_s18  ;;  %v3109_v2 = vsel %vm3054_vm6, %v3044_v10, %v1753_v12  ;;  %v169_v12 = vld [vmem:[%s13497_s0 + $0x1f0] sm:$0xff] }
 0x551   :  { %v2009_v38 = vpop.permute.xlu1 %2008  ;;  %v3021_v58 = vsel %vm2989_vm5, %v2956_v62, %v1451_v22  ;;  %233 = vst.msk [vmem:[#allocation2 + $0x331] sm:$0xff] %vm26_vm0, %v169_v12 }
 0x552   :  { %v2521_v24 = vpop.permute.xlu2 %2520  ;;  %v3174_v51 = vsel %vm3119_vm7, %v3109_v2, %v2009_v38  ;;  %v3086_v57 = vsel %vm3054_vm6, %v3021_v58, %v1707_v40  ;;  %v9887_v40 = vld [vmem:[#allocation2 + $0x319] sm:$0xff] }
 0x556   :  { %1758 = vrot.lane.b32.xlu0 %v9726_v15, %s7561_s29 }
 0x557   :  { %2014 = vrot.lane.b32.xlu1 %v9752_v7, %s7564_s17 }
 0x558   :  { %v2265_v56 = vpop.permute.xlu0 %2264  ;;  %2478 = vrot.lane.b32.xlu2 %v717_v60, %s7562_s15 }
 0x559   :  { %v1963_v13 = vpop.permute.xlu1 %1962  ;;  %v3239_v59 = vsel %vm3184_vm8, %v3174_v51, %v2265_v56  ;;  %v267_v51 = vld [vmem:[#allocation2 + $0x1b0] sm:$0xff] }
 0x55a   :  { %v987_v49 = vpop.permute.xlu2 %986  ;;  %v3304_v9 = vsel %vm3249_vm9, %v3239_v59, %v2521_v24  ;;  %v3151_v23 = vsel %vm3119_vm7, %v3086_v57, %v1963_v13  ;;  %v9899_v24 = vld [vmem:[#allocation2 + $0x320] sm:$0xff] }
 0x55b   :  { %v2915_v1 = vsel %vm26_vm0, %v9461_v43, %v987_v49 }
 0x55e   :  { %2526 = vrot.lane.b32.xlu0 %v9827_v17, %s7562_s15 }
 0x55f   :  { %2782 = vrot.lane.b32.xlu1 %v9830_v46, %s7563_s16 }
 0x560   :  { %v2219_v18 = vpop.permute.xlu0 %2218  ;;  %1502 = vrot.lane.b32.xlu2 %v9715_v5, %s7560_s28 }
 0x561   :  { %v2777_v42 = vpop.permute.xlu1 %2776  ;;  %v3216_v28 = vsel %vm3184_vm8, %v3151_v23, %v2219_v18 }
 0x562   :  { %v2731_v3 = vpop.permute.xlu2 %2730  ;;  %v3369_v32 = vsel %vm3314_vm10, %v3304_v9, %v2777_v42 }
 0x563   :  { %7495 = vmatmul.msk.f32.gmra.mxu3 %vm3384_vm11, %v3369_v32 }
 0x566   :  { %1248 = vrot.lane.b32.xlu0 %v9682_v35, %s7559_s25  ;;  %v9863_v35 = vld [vmem:[#allocation2 + $0x318] sm:$0xff] }
 0x567   :  { %1504 = vrot.lane.b32.xlu1 %v9798_v21, %s7560_s28 }
 0x568   :  { %v2475_v20 = vpop.permute.xlu0 %2474  ;;  %2270 = vrot.lane.b32.xlu2 %v9847_v37, %s7565_s18 }
 0x569   :  { %v3281_v63 = vsel %vm3249_vm9, %v3216_v28, %v2475_v20  ;;  %v1243_v14 = vpop.permute.xlu1 %1242  ;;  %v9937_v28 = vpop.f32.mrf.mxu0 }
 0x56a   :  { %v1197_v31 = vpop.permute.xlu2 %1196  ;;  %v3346_v48 = vsel %vm3314_vm10, %v3281_v63, %v2731_v3  ;;  %v2980_v30 = vsel %vm2924_vm4, %v2915_v1, %v1243_v14  ;;  %v9925_v3 = vld [vmem:[#allocation2 + $0x322] sm:$0xff]  ;;  %v744_v63 = vld [vmem:[#allocation2 + $0x331] sm:$0xff] }
 0x56b   :  { %7472 = vmatmul.msk.f32.gmra.mxu0 %vm3384_vm11, %v3346_v48  ;;  %v9940_v14 = vld [vmem:[#allocation2 + $0x332] sm:$0xff] }
 0x56c   :  { %v9958_v1 = vld [vmem:[#allocation2 + $0x338] sm:$0xff] }
 0x56e   :  { %2016 = vrot.lane.b32.xlu0 %v9796_v4, %s7564_s17 }
 0x56f   :  { %2272 = vrot.lane.b32.xlu1 %v9863_v35, %s7565_s18 }
 0x570   :  { %v941_v47 = vpop.permute.xlu0 %940  ;;  %992 = vrot.lane.b32.xlu2 %v9689_v44, %s7558_s24 }
 0x571   :  { %v1499_v50 = vpop.permute.xlu1 %1498  ;;  %v2892_v59 = vsel %vm26_vm0, %v267_v51, %v941_v47 }
 0x572   :  { %v2011_v27 = vpop.permute.xlu2 %2010  ;;  %v3045_v38 = vsel %vm2989_vm5, %v2980_v30, %v1499_v50  ;;  %v9947_v50 = vpop.f32.mrf.mxu0 }
 0x576   :  { %2784 = vrot.lane.b32.xlu0 %v9871_v33, %s7563_s16 }
 0x577   :  { %994 = vrot.lane.b32.xlu1 %v9726_v15, %s7558_s24 }
 0x578   :  { %v1755_v44 = vpop.permute.xlu0 %1754  ;;  %1760 = vrot.lane.b32.xlu2 %v9784_v26, %s7561_s29 }
 0x579   :  { %v1453_v11 = vpop.permute.xlu1 %1452  ;;  %v3110_v60 = vsel %vm3054_vm6, %v3045_v38, %v1755_v44 }
 0x57a   :  { %v1965_v55 = vpop.permute.xlu2 %1964  ;;  %v3175_v43 = vsel %vm3119_vm7, %v3110_v60, %v2011_v27  ;;  %v680_v27 = vld [vmem:[#allocation2 + $0x330] sm:$0xff]  ;;  %v809_v60 = vld [vmem:[#allocation2 + $0x33a] sm:$0xff] }
 0x57e   :  { %1506 = vrot.lane.b32.xlu0 %v9847_v37, %s7560_s28 }
 0x57f   :  { %1762 = vrot.lane.b32.xlu1 %v9827_v17, %s7561_s29 }
 0x580   :  { %v1709_v15 = vpop.permute.xlu0 %1708  ;;  %2528 = vrot.lane.b32.xlu2 %v9887_v40, %s7562_s15 }
 0x581   :  { %v2267_v52 = vpop.permute.xlu1 %2266 }
 0x582   :  { %v2779_v22 = vpop.permute.xlu2 %2778  ;;  %v3240_v0 = vsel %vm3184_vm8, %v3175_v43, %v2267_v52 }
 0x586   :  { %2274 = vrot.lane.b32.xlu0 %v9899_v24, %s7565_s18 }
 0x587   :  { %2530 = vrot.lane.b32.xlu1 %v9902_v45, %s7562_s15 }
 0x588   :  { %v2523_v56 = vpop.permute.xlu0 %2522  ;;  %1250 = vrot.lane.b32.xlu2 %v9752_v7, %s7559_s25  ;;  %v2957_v7 = vsel %vm2924_vm4, %v2892_v59, %v1197_v31 }
 0x589   :  { %v3305_v10 = vsel %vm3249_vm9, %v3240_v0, %v2523_v56  ;;  %v2221_v13 = vpop.permute.xlu1 %2220  ;;  %v3022_v42 = vsel %vm2989_vm5, %v2957_v7, %v1453_v11  ;;  %v9954_v11 = vpop.f32.mrf.mxu0 }
 0x58a   :  { %v1245_v49 = vpop.permute.xlu2 %1244  ;;  %v3370_v2 = vsel %vm3314_vm10, %v3305_v10, %v2779_v22  ;;  %v3087_v62 = vsel %vm3054_vm6, %v3022_v42, %v1709_v15  ;;  %v268_v22 = vld [vmem:[#allocation2 + $0x1b8] sm:$0xff] }
 0x58b   :  { %7496 = vmatmul.msk.f32.gmra.mxu3 %vm3384_vm11, %v3370_v2  ;;  %v3152_v32 = vsel %vm3119_vm7, %v3087_v62, %v1965_v55 }
 0x58e   :  { %996 = vrot.lane.b32.xlu0 %v9784_v26, %s7558_s24  ;;  %v3217_v26 = vsel %vm3184_vm8, %v3152_v32, %v2221_v13 }
 0x58f   :  { %1252 = vrot.lane.b32.xlu1 %v9796_v4, %s7559_s25 }
 0x590   :  { %v989_v34 = vpop.permute.xlu0 %988  ;;  %2018 = vrot.lane.b32.xlu2 %v9830_v46, %s7564_s17 }
 0x591   :  { %v2477_v18 = vpop.permute.xlu1 %2476  ;;  %v2916_v55 = vsel %vm26_vm0, %v9529_v36, %v989_v34  ;;  %v9969_v43 = vpop.f32.mrf.mxu0 }
 0x592   :  { %v1501_v9 = vpop.permute.xlu2 %1500  ;;  %v3282_v4 = vsel %vm3249_vm9, %v3217_v26, %v2477_v18 }
 0x596   :  { %1764 = vrot.lane.b32.xlu0 %v9887_v40, %s7561_s29 }
 0x597   :  { %2020 = vrot.lane.b32.xlu1 %v9871_v33, %s7564_s17 }
 0x598   :  { %v2733_v58 = vpop.permute.xlu0 %2732  ;;  %2786 = vrot.lane.b32.xlu2 %v9925_v3, %s7563_s16 }
 0x599   :  { %v3347_v57 = vsel %vm3314_vm10, %v3282_v4, %v2733_v58  ;;  %v943_v23 = vpop.permute.xlu1 %942  ;;  %v9986_v42 = vpop.f32.mrf.mxu0 }
 0x59a   :  { %v1455_v20 = vpop.permute.xlu2 %1454  ;;  %7473 = vmatmul.msk.f32.gmra.mxu0 %vm3384_vm11, %v3347_v57  ;;  %v2893_v56 = vsel %vm26_vm0, %v268_v22, %v943_v23  ;;  %v682_v57 = vld [vmem:[#allocation2 + $0x348] sm:$0xff] }
 0x59e   :  { %2532 = vrot.lane.b32.xlu0 %v744_v63, %s7562_s15 }
 0x59f   :  { %2788 = vrot.lane.b32.xlu1 %v9940_v14, %s7563_s16 }
 0x5a0   :  { %v1199_v31 = vpop.permute.xlu0 %1198  ;;  %1508 = vrot.lane.b32.xlu2 %v9863_v35, %s7560_s28 }
 0x5a1   :  { %v1757_v48 = vpop.permute.xlu1 %1756  ;;  %v2958_v10 = vsel %vm2924_vm4, %v2893_v56, %v1199_v31  ;;  %v9995_v23 = vpop.f32.mrf.mxu0  ;;  %v747_v56 = vld [vmem:[#allocation2 + $0x351] sm:$0xff] }
 0x5a2   :  { %v2269_v47 = vpop.permute.xlu2 %2268  ;;  %v3023_v2 = vsel %vm2989_vm5, %v2958_v10, %v1455_v20  ;;  %v746_v20 = vld [vmem:[#allocation2 + $0x349] sm:$0xff] }
 0x5a6   :  { %1254 = vrot.lane.b32.xlu0 %v9830_v46, %s7559_s25  ;;  %v2981_v46 = vsel %vm2924_vm4, %v2916_v55, %v1245_v49 }
 0x5a7   :  { %1510 = vrot.lane.b32.xlu1 %v9899_v24, %s7560_s28  ;;  %v3046_v30 = vsel %vm2989_vm5, %v2981_v46, %v1501_v9 }
 0x5a8   :  { %v2013_v12 = vpop.permute.xlu0 %2012  ;;  %2276 = vrot.lane.b32.xlu2 %v680_v27, %s7565_s18  ;;  %v3111_v36 = vsel %vm3054_vm6, %v3046_v30, %v1757_v48 }
 0x5a9   :  { %v1711_v29 = vpop.permute.xlu1 %1710  ;;  %v3176_v0 = vsel %vm3119_vm7, %v3111_v36, %v2013_v12 }
 0x5aa   :  { %v2223_v44 = vpop.permute.xlu2 %2222  ;;  %v3088_v34 = vsel %vm3054_vm6, %v3023_v2, %v1711_v29 }
 0x5ae   :  { %2022 = vrot.lane.b32.xlu0 %v9925_v3, %s7564_s17 }
 0x5af   :  { %2278 = vrot.lane.b32.xlu1 %v9958_v1, %s7565_s18 }
 0x5b0   :  { %v1967_v15 = vpop.permute.xlu0 %1966  ;;  %998 = vrot.lane.b32.xlu2 %v9827_v17, %s7558_s24  ;;  %v3241_v17 = vsel %vm3184_vm8, %v3176_v0, %v2269_v47 }
 0x5b1   :  { %v2525_v52 = vpop.permute.xlu1 %2524  ;;  %v3153_v18 = vsel %vm3119_vm7, %v3088_v34, %v1967_v15 }
 0x5b2   :  { %v2479_v38 = vpop.permute.xlu2 %2478  ;;  %v3306_v13 = vsel %vm3249_vm9, %v3241_v17, %v2525_v52  ;;  %v3218_v9 = vsel %vm3184_vm8, %v3153_v18, %v2223_v44  ;;  %v10006_v44 = vpop.f32.mrf.mxu0  ;;  %v811_v17 = vld [vmem:[#allocation2 + $0x352] sm:$0xff] }
 0x5b3   :  { %v3283_v32 = vsel %vm3249_vm9, %v3218_v9, %v2479_v38  ;;  %13595 = vst [vmem:[#allocation4_spill] sm:$0xff] %v10006_v44 }
 0x5b6   :  { %2790 = vrot.lane.b32.xlu0 %v809_v60, %s7563_s16 }
 0x5b7   :  { %1000 = vrot.lane.b32.xlu1 %v9887_v40, %s7558_s24  ;;  %v745_v40 = vld [vmem:[#allocation2 + $0x339] sm:$0xff] }
 0x5b8   :  { %v2781_v49 = vpop.permute.xlu0 %2780  ;;  %1766 = vrot.lane.b32.xlu2 %v9902_v45, %s7561_s29 }
 0x5b9   :  { %v991_v51 = vpop.permute.xlu1 %990  ;;  %v3371_v59 = vsel %vm3314_vm10, %v3306_v13, %v2781_v49 }
 0x5ba   :  { %7497 = vmatmul.msk.f32.gmra.mxu3 %vm3384_vm11, %v3371_v59  ;;  %v1503_v7 = vpop.permute.xlu2 %1502  ;;  %v2917_v31 = vsel %vm26_vm0, %v9625_v19, %v991_v51  ;;  %v10019_v22 = vpop.f32.mrf.mxu0 }
 0x5bb   :  { %13596 = vst [vmem:[#allocation5_spill] sm:$0xff] %v10019_v22 }
 0x5be   :  { %1512 = vrot.lane.b32.xlu0 %v680_v27, %s7560_s28 }
 0x5bf   :  { %1768 = vrot.lane.b32.xlu1 %v744_v63, %s7561_s29 }
 0x5c0   :  { %v1247_v62 = vpop.permute.xlu0 %1246  ;;  %2534 = vrot.lane.b32.xlu2 %v745_v40, %s7562_s15 }
 0x5c1   :  { %v2735_v26 = vpop.permute.xlu1 %2734  ;;  %v2982_v63 = vsel %vm2924_vm4, %v2917_v31, %v1247_v62 }
 0x5c2   :  { %v3348_v4 = vsel %vm3314_vm10, %v3283_v32, %v2735_v26  ;;  %v2271_v58 = vpop.permute.xlu2 %2270  ;;  %v3047_v47 = vsel %vm2989_vm5, %v2982_v63, %v1503_v7  ;;  %v10027_v10 = vpop.f32.mrf.mxu0  ;;  %v683_v7 = vld [vmem:[#allocation2 + $0x350] sm:$0xff] }
 0x5c3   :  { %7474 = vmatmul.msk.f32.gmra.mxu0 %vm3384_vm11, %v3348_v4  ;;  %13597 = vst [vmem:[#allocation6_spill] sm:$0xff] %v10027_v10 }
 0x5c6   :  { %2280 = vrot.lane.b32.xlu0 %v682_v57, %s7565_s18 }
 0x5c7   :  { %2536 = vrot.lane.b32.xlu1 %v746_v20, %s7562_s15 }
 0x5c8   :  { %v1759_v48 = vpop.permute.xlu0 %1758  ;;  %1256 = vrot.lane.b32.xlu2 %v9871_v33, %s7559_s25 }
 0x5c9   :  { %v2015_v27 = vpop.permute.xlu1 %2014  ;;  %v3112_v12 = vsel %vm3054_vm6, %v3047_v47, %v1759_v48 }
 0x5ca   :  { %v993_v29 = vpop.permute.xlu2 %992  ;;  %v3177_v19 = vsel %vm3119_vm7, %v3112_v12, %v2015_v27  ;;  %v10036_v59 = vpop.f32.mrf.mxu0 }
 0x5cb   :  { %v3242_v55 = vsel %vm3184_vm8, %v3177_v19, %v2271_v58  ;;  %13598 = vst [vmem:[#allocation7_spill] sm:$0xff] %v10036_v59 }
 0x5ce   :  { %1002 = vrot.lane.b32.xlu0 %v9902_v45, %s7558_s24  ;;  %v810_v45 = vld [vmem:[#allocation2 + $0x34a] sm:$0xff] }
 0x5cf   :  { %1258 = vrot.lane.b32.xlu1 %v9925_v3, %s7559_s25  ;;  %v2918_v3 = vsel %vm26_vm0, %v9666_v25, %v993_v29 }
 0x5d0   :  { %v2527_v46 = vpop.permute.xlu0 %2526  ;;  %2024 = vrot.lane.b32.xlu2 %v9940_v14, %s7564_s17 }
 0x5d1   :  { %v3307_v33 = vsel %vm3249_vm9, %v3242_v55, %v2527_v46  ;;  %v2783_v15 = vpop.permute.xlu1 %2782 }
 0x5d2   :  { %v3372_v52 = vsel %vm3314_vm10, %v3307_v33, %v2783_v15  ;;  %v1761_v30 = vpop.permute.xlu2 %1760  ;;  %v10045_v26 = vpop.f32.mrf.mxu0 }
 0x5d3   :  { %7498 = vmatmul.msk.f32.gmra.mxu3 %vm3384_vm11, %v3372_v52  ;;  %13600 = vst [vmem:[#allocation9_spill] sm:$0xff] %v10045_v26 }
 0x5d6   :  { %1770 = vrot.lane.b32.xlu0 %v745_v40, %s7561_s29 }
 0x5d7   :  { %2026 = vrot.lane.b32.xlu1 %v809_v60, %s7564_s17 }
 0x5d8   :  { %v1249_v38 = vpop.permute.xlu0 %1248  ;;  %2792 = vrot.lane.b32.xlu2 %v810_v45, %s7563_s16 }
 0x5d9   :  { %v1505_v14 = vpop.permute.xlu1 %1504  ;;  %v2983_v0 = vsel %vm2924_vm4, %v2918_v3, %v1249_v38 }
 0x5da   :  { %v2529_v36 = vpop.permute.xlu2 %2528  ;;  %v3048_v13 = vsel %vm2989_vm5, %v2983_v0, %v1505_v14  ;;  %v10051_v48 = vpop.f32.mrf.mxu0 }
 0x5db   :  { %v3113_v25 = vsel %vm3054_vm6, %v3048_v13, %v1761_v30  ;;  %13601 = vst [vmem:[#allocation10_spill] sm:$0xff] %v10051_v48 }
 0x5de   :  { %2538 = vrot.lane.b32.xlu0 %v747_v56, %s7562_s15 }
 0x5df   :  { %2794 = vrot.lane.b32.xlu1 %v811_v17, %s7563_s16 }
 0x5e0   :  { %v2017_v60 = vpop.permute.xlu0 %2016  ;;  %1514 = vrot.lane.b32.xlu2 %v9958_v1, %s7560_s28  ;;  %v10042_v1 = vpop.f32.mrf.mxu3 }
 0x5e1   :  { %v2273_v49 = vpop.permute.xlu1 %2272  ;;  %v3178_v2 = vsel %vm3119_vm7, %v3113_v25, %v2017_v60  ;;  %13599 = vst [vmem:[#allocation8_spill] sm:$0xff] %v10042_v1 }
 0x5e2   :  { %v1251_v51 = vpop.permute.xlu2 %1250  ;;  %v3243_v34 = vsel %vm3184_vm8, %v3178_v2, %v2273_v49  ;;  %v10060_v15 = vpop.f32.mrf.mxu0 }
 0x5e3   :  { %v3308_v18 = vsel %vm3249_vm9, %v3243_v34, %v2529_v36  ;;  %13603 = vst [vmem:[#allocation12_spill] sm:$0xff] %v10060_v15 }
 0x5e8   :  { %v2785_v40 = vpop.permute.xlu0 %2784  ;;  %2282 = vrot.lane.b32.xlu2 %v683_v7, %s7565_s18  ;;  %v10054_v27 = vpop.f32.mrf.mxu3 }
 0x5e9   :  { %v3373_v9 = vsel %vm3314_vm10, %v3308_v18, %v2785_v40  ;;  %v995_v62 = vpop.permute.xlu1 %994  ;;  %13602 = vst [vmem:[#allocation11_spill] sm:$0xff] %v10054_v27 }
 0x5ea   :  { %7499 = vmatmul.msk.f32.gmra.mxu3 %vm3384_vm11, %v3373_v9  ;;  %v2019_v32 = vpop.permute.xlu2 %2018  ;;  %v2919_v4 = vsel %vm26_vm0, %v9715_v5, %v995_v62  ;;  %v10067_v14 = vpop.f32.mrf.mxu0 }
 0x5eb   :  { %v2984_v57 = vsel %vm2924_vm4, %v2919_v4, %v1251_v51  ;;  %13605 = vst [vmem:[#allocation14_spill] sm:$0xff] %v10067_v14 }
 0x5f0   :  { %v1507_v58 = vpop.permute.xlu0 %1506  ;;  %v10063_v52 = vpop.f32.mrf.mxu3 }
 0x5f1   :  { %v1763_v20 = vpop.permute.xlu1 %1762  ;;  %v3049_v31 = vsel %vm2989_vm5, %v2984_v57, %v1507_v58  ;;  %13604 = vst [vmem:[#allocation13_spill] sm:$0xff] %v10063_v52 }
 0x5f2   :  { %v2787_v63 = vpop.permute.xlu2 %2786  ;;  %v3114_v47 = vsel %vm3054_vm6, %v3049_v31, %v1763_v20  ;;  %v10074_v49 = vpop.f32.mrf.mxu0 }
 0x5f3   :  { %v3179_v12 = vsel %vm3119_vm7, %v3114_v47, %v2019_v32  ;;  %13606 = vst [vmem:[#allocation15_spill] sm:$0xff] %v10074_v49 }
 0x5f8   :  { %v2275_v29 = vpop.permute.xlu0 %2274  ;;  %v10069_v36 = vpop.f32.mrf.mxu3 }
 0x5f9   :  { %v3244_v19 = vsel %vm3184_vm8, %v3179_v12, %v2275_v29  ;;  %v2531_v55 = vpop.permute.xlu1 %2530 }
 0x5fa   :  { %v3309_v5 = vsel %vm3249_vm9, %v3244_v19, %v2531_v55  ;;  %v1509_v46 = vpop.permute.xlu2 %1508  ;;  %v10083_v62 = vpop.f32.mrf.mxu0 }
 0x5fb   :  { %v3374_v33 = vsel %vm3314_vm10, %v3309_v5, %v2787_v63  ;;  %13607 = vst [vmem:[#allocation16_spill] sm:$0xff] %v10083_v62 }
 0x5fc   :  { %7500 = vmatmul.msk.f32.gmra.mxu3 %vm3384_vm11, %v3374_v33 }
 0x600   :  { %v997_v30 = vpop.permute.xlu0 %996  ;;  %v10077_v51 = vpop.f32.mrf.mxu3 }
 0x601   :  { %v1253_v45 = vpop.permute.xlu1 %1252  ;;  %v2920_v38 = vsel %vm26_vm0, %v9798_v21, %v997_v30 }
 0x602   :  { %v2277_v3 = vpop.permute.xlu2 %2276  ;;  %v2985_v0 = vsel %vm2924_vm4, %v2920_v38, %v1253_v45  ;;  %v10090_v63 = vpop.f32.mrf.mxu0  ;;  %v3860_v45 = vmul.f32 %v9478_v53, %v9478_v53 }
 0x603   :  { %v3050_v17 = vsel %vm2989_vm5, %v2985_v0, %v1509_v46  ;;  %13608 = vst [vmem:[#allocation17_spill] sm:$0xff] %v10090_v63  ;;  %v3859_v0 = vmul.f32 %v9402_v54, %v9402_v54 }
 0x608   :  { %v1765_v56 = vpop.permute.xlu0 %1764  ;;  %v10085_v32 = vpop.f32.mrf.mxu3 }
 0x609   :  { %v2021_v13 = vpop.permute.xlu1 %2020  ;;  %v3115_v60 = vsel %vm3054_vm6, %v3050_v17, %v1765_v56  ;;  %v3790_v56 = vadd.f32 %v9478_v53, %v9402_v54  ;;  %v3861_v17 = vmul.f32 %v9556_v6, %v9556_v6 }
 0x60a   :  { %v999_v25 = vpop.permute.xlu2 %998  ;;  %v3180_v2 = vsel %vm3119_vm7, %v3115_v60, %v2021_v13  ;;  %v10097_v46 = vpop.f32.mrf.mxu0 }
 0x60b   :  { %v3245_v21 = vsel %vm3184_vm8, %v3180_v2, %v2277_v3  ;;  %v2921_v4 = vsel %vm26_vm0, %v9847_v37, %v999_v25  ;;  %13609 = vst [vmem:[#allocation18_spill] sm:$0xff] %v10097_v46  ;;  %v3923_v25 = vadd.f32 %v3860_v45, %v3859_v0  ;;  %v3791_v2 = vadd.f32 %v3790_v56, %v9556_v6 }
 0x610   :  { %v2533_v34 = vpop.permute.xlu0 %2532  ;;  %v10092_v47 = vpop.f32.mrf.mxu3 }
 0x611   :  { %v3310_v7 = vsel %vm3249_vm9, %v3245_v21, %v2533_v34  ;;  %v2789_v18 = vpop.permute.xlu1 %2788  ;;  %v3862_v21 = vmul.f32 %v9620_v41, %v9620_v41 }
 0x612   :  { %v3375_v40 = vsel %vm3314_vm10, %v3310_v7, %v2789_v18  ;;  %v1767_v9 = vpop.permute.xlu2 %1766  ;;  %v10116_v34 = vpop.f32.mrf.mxu0  ;;  %v3924_v7 = vadd.f32 %v3923_v25, %v3861_v17  ;;  %v3792_v18 = vadd.f32 %v3791_v2, %v9620_v41 }
 0x613   :  { %7501 = vmatmul.msk.f32.gmra.mxu3 %vm3384_vm11, %v3375_v40  ;;  %13610 = vst [vmem:[#allocation19_spill] sm:$0xff] %v10116_v34  ;;  %v3863_v40 = vmul.f32 %v9679_v61, %v9679_v61 }
 0x618   :  { %v1255_v58 = vpop.permute.xlu0 %1254  ;;  %v10100_v30 = vpop.f32.mrf.mxu3 }
 0x619   :  { %v1511_v57 = vpop.permute.xlu1 %1510  ;;  %v2986_v31 = vsel %vm2924_vm4, %v2921_v4, %v1255_v58 }
 0x61a   :  { %v2535_v20 = vpop.permute.xlu2 %2534  ;;  %v3051_v12 = vsel %vm2989_vm5, %v2986_v31, %v1511_v57  ;;  %v3925_v57 = vadd.f32 %v3924_v7, %v3862_v21  ;;  %v3864_v31 = vmul.f32 %v9741_v39, %v9741_v39  ;;  %v10136_v0 = vpop.f32.mrf.mxu0  ;;  %v3868_v21 = vmul.f32 %v9947_v50, %v9947_v50 }
 0x61b   :  { %v3116_v19 = vsel %vm3054_vm6, %v3051_v12, %v1767_v9  ;;  %13611 = vst [vmem:[#allocation20_spill] sm:$0xff] %v10136_v0 }
 0x620   :  { %v2023_v29 = vpop.permute.xlu0 %2022  ;;  %v10121_v9 = vpop.f32.mrf.mxu3 }
 0x621   :  { %v2279_v55 = vpop.permute.xlu1 %2278  ;;  %v3181_v5 = vsel %vm3119_vm7, %v3116_v19, %v2023_v29  ;;  %v3926_v29 = vadd.f32 %v3925_v57, %v3863_v40 }
 0x622   :  { %v1257_v37 = vpop.permute.xlu2 %1256  ;;  %v3246_v33 = vsel %vm3184_vm8, %v3181_v5, %v2279_v55  ;;  %v3865_v55 = vmul.f32 %v9793_v16, %v9793_v16 }
 0x623   :  { %v3311_v3 = vsel %vm3249_vm9, %v3246_v33, %v2535_v20  ;;  %v3793_v20 = vadd.f32 %v3792_v18, %v9679_v61 }
 0x625   :  { %v3794_v19 = vadd.f32 %v3793_v20, %v9741_v39  ;;  %v3869_v20 = vmul.f32 %v9954_v11, %v9954_v11 }
 0x628   :  { %v2791_v38 = vpop.permute.xlu0 %2790 }
 0x629   :  { %v3376_v13 = vsel %vm3314_vm10, %v3311_v3, %v2791_v38  ;;  %v1001_v60 = vpop.permute.xlu1 %1000  ;;  %v3795_v3 = vadd.f32 %v3794_v19, %v9793_v16  ;;  %v3866_v38 = vmul.f32 %v9860_v8, %v9860_v8 }
 0x62a   :  { %7502 = vmatmul.msk.f32.gmra.mxu3 %vm3384_vm11, %v3376_v13  ;;  %v2922_v4 = vsel %vm26_vm0, %v9863_v35, %v1001_v60  ;;  %v2025_v58 = vpop.permute.xlu2 %2024  ;;  %v3927_v35 = vadd.f32 %v3926_v29, %v3864_v31  ;;  %v3867_v13 = vmul.f32 %v9937_v28, %v9937_v28 }
 0x62b   :  { %v2987_v5 = vsel %vm2924_vm4, %v2922_v4, %v1257_v37  ;;  %v3796_v17 = vadd.f32 %v3795_v3, %v9860_v8  ;;  %v10142_v37 = vpop.f32.mrf.mxu3  ;;  %v3871_v3 = vmul.f32 %v9986_v42, %v9986_v42 }
 0x62c   :  { %v3928_v56 = vadd.f32 %v3927_v35, %v3865_v55 }
 0x62d   :  { %v3797_v2 = vadd.f32 %v3796_v17, %v9937_v28 }
 0x62e   :  { %v3929_v25 = vadd.f32 %v3928_v56, %v3866_v38 }
 0x62f   :  { %v3798_v57 = vadd.f32 %v3797_v2, %v9947_v50 }
 0x630   :  { %v1513_v12 = vpop.permute.xlu0 %1512  ;;  %v3930_v4 = vadd.f32 %v3929_v25, %v3867_v13  ;;  %v3872_v13 = vmul.f32 %v9995_v23, %v9995_v23 }
 0x631   :  { %v1769_v33 = vpop.permute.xlu1 %1768  ;;  %v3052_v45 = vsel %vm2989_vm5, %v2987_v5, %v1513_v12  ;;  %v3799_v55 = vadd.f32 %v3798_v57, %v9954_v11  ;;  %v3870_v5 = vmul.f32 %v9969_v43, %v9969_v43 }
 0x632   :  { %v3117_v60 = vsel %vm3054_vm6, %v3052_v45, %v1769_v33  ;;  %v2793_v40 = vpop.permute.xlu2 %2792  ;;  %v3931_v19 = vadd.f32 %v3930_v4, %v3868_v21  ;;  %v10157_v33 = vpop.f32.mrf.mxu0  ;;  %v3873_v21 = vmul.f32 %v10006_v44, %v10006_v44  ;;  %v3874_v4 = vmul.f32 %v10019_v22, %v10019_v22 }
 0x633   :  { %v3182_v7 = vsel %vm3119_vm7, %v3117_v60, %v2025_v58  ;;  %13612 = vst [vmem:[#allocation21_spill] sm:$0xff] %v10157_v33  ;;  %v3800_v35 = vadd.f32 %v3799_v55, %v9969_v43  ;;  %v10163_v38 = vpop.f32.mrf.mxu3 }
 0x634   :  { %v3932_v45 = vadd.f32 %v3931_v19, %v3869_v20  ;;  %v3875_v19 = vmul.f32 %v10027_v10, %v10027_v10 }
 0x635   :  { %v3801_v17 = vadd.f32 %v3800_v35, %v9986_v42  ;;  %v3876_v35 = vmul.f32 %v10036_v59, %v10036_v59 }
 0x636   :  { %v3933_v56 = vadd.f32 %v3932_v45, %v3870_v5 }
 0x637   :  { %v3802_v2 = vadd.f32 %v3801_v17, %v9995_v23  ;;  %v3877_v17 = vmul.f32 %v10045_v26, %v10045_v26 }
 0x638   :  { %v2281_v18 = vpop.permute.xlu0 %2280  ;;  %v3934_v25 = vadd.f32 %v3933_v56, %v3871_v3 }
 0x639   :  { %v3247_v31 = vsel %vm3184_vm8, %v3182_v7, %v2281_v18  ;;  %v2537_v12 = vpop.permute.xlu1 %2536 }
 0x63a   :  { %v3312_v29 = vsel %vm3249_vm9, %v3247_v31, %v2537_v12  ;;  %v3935_v18 = vadd.f32 %v3934_v25, %v3872_v13  ;;  %v1515_v20 = vpop.permute.xlu2 %1514  ;;  %v10176_v31 = vpop.f32.mrf.mxu0 }
 0x63b   :  { %v3377_v58 = vsel %vm3314_vm10, %v3312_v29, %v2793_v40  ;;  %v3803_v40 = vadd.f32 %v3802_v2, %v10006_v44  ;;  %13613 = vst [vmem:[#allocation22_spill] sm:$0xff] %v10176_v31  ;;  %v10181_v55 = vpop.f32.mrf.mxu3 }
 0x63c   :  { %7503 = vmatmul.msk.f32.gmra.mxu3 %vm3384_vm11, %v3377_v58  ;;  %v3936_v12 = vadd.f32 %v3935_v18, %v3873_v21 }
 0x63d   :  { %v3804_v29 = vadd.f32 %v3803_v40, %v10019_v22 }
 0x63e   :  { %v3937_v58 = vadd.f32 %v3936_v12, %v3874_v4 }
 0x63f   :  { %v3805_v45 = vadd.f32 %v3804_v29, %v10027_v10 }
 0x640   :  { %v1003_v60 = vpop.permute.xlu0 %1002  ;;  %v3938_v3 = vadd.f32 %v3937_v58, %v3875_v19  ;;  %v3880_v58 = vmul.f32 %v10067_v14, %v10067_v14 }
 0x641   :  { %v1259_v7 = vpop.permute.xlu1 %1258  ;;  %v2923_v57 = vsel %vm26_vm0, %v9899_v24, %v1003_v60  ;;  %v3806_v56 = vadd.f32 %v3805_v45, %v10036_v59 }
 0x642   :  { %v2988_v5 = vsel %vm2924_vm4, %v2923_v57, %v1259_v7  ;;  %v3939_v2 = vadd.f32 %v3938_v3, %v3876_v35  ;;  %v3878_v7 = vmul.f32 %v10051_v48, %v10051_v48  ;;  %v10195_v18 = vpop.f32.mrf.mxu0  ;;  %v3879_v57 = vmul.f32 %v10060_v15, %v10060_v15 }
 0x643   :  { %v3053_v13 = vsel %vm2989_vm5, %v2988_v5, %v1515_v20  ;;  %v3807_v21 = vadd.f32 %v3806_v56, %v10045_v26  ;;  %13614 = vst [vmem:[#allocation23_spill] sm:$0xff] %v10195_v18  ;;  %v2283_v20 = vpop.permute.xlu2 %2282  ;;  %v10201_v29 = vpop.f32.mrf.mxu3  ;;  %v3881_v56 = vmul.f32 %v10074_v49, %v10074_v49 }
 0x644   :  { %v3940_v40 = vadd.f32 %v3939_v2, %v3877_v17 }
 0x645   :  { %v3808_v4 = vadd.f32 %v3807_v21, %v10051_v48  ;;  %v3882_v21 = vmul.f32 %v10083_v62, %v10083_v62 }
 0x646   :  { %v3941_v19 = vadd.f32 %v3940_v40, %v3878_v7 }
 0x647   :  { %v3809_v5 = vadd.f32 %v3808_v4, %v10060_v15 }
 0x648   :  { %v1771_v24 = vpop.permute.xlu0 %1770 }
 0x649   :  { %v2027_v60 = vpop.permute.xlu1 %2026  ;;  %v3118_v25 = vsel %vm3054_vm6, %v3053_v13, %v1771_v24  ;;  %v3942_v24 = vadd.f32 %v3941_v19, %v3879_v57  ;;  %v3810_v3 = vadd.f32 %v3809_v5, %v10067_v14  ;;  %v3883_v57 = vmul.f32 %v10090_v63, %v10090_v63 }
 0x64a   :  { %v3183_v12 = vsel %vm3119_vm7, %v3118_v25, %v2027_v60  ;;  %v10216_v7 = vpop.f32.mrf.mxu0  ;;  %v3884_v5 = vmul.f32 %v10097_v46, %v10097_v46 }
 0x64b   :  { %v3248_v45 = vsel %vm3184_vm8, %v3183_v12, %v2283_v20  ;;  %v3943_v25 = vadd.f32 %v3942_v24, %v3880_v58  ;;  %v3811_v2 = vadd.f32 %v3810_v3, %v10074_v49  ;;  %13615 = vst [vmem:[#allocation24_spill] sm:$0xff] %v10216_v7  ;;  %v10221_v12 = vpop.f32.mrf.mxu3 }
 0x64d   :  { %v3944_v40 = vadd.f32 %v3943_v25, %v3881_v56  ;;  %v3812_v4 = vadd.f32 %v3811_v2, %v10083_v62  ;;  %v3886_v56 = vmul.f32 %v10136_v0, %v10136_v0  ;;  %v3887_v25 = vmul.f32 %v10157_v33, %v10157_v33 }
 0x64f   :  { %v3945_v20 = vadd.f32 %v3944_v40, %v3882_v21  ;;  %v3813_v19 = vadd.f32 %v3812_v4, %v10090_v63  ;;  %v3888_v4 = vmul.f32 %v10176_v31, %v10176_v31 }
 0x650   :  { %v2539_v35 = vpop.permute.xlu0 %2538 }
 0x651   :  { %v3313_v17 = vsel %vm3249_vm9, %v3248_v45, %v2539_v35  ;;  %v2795_v13 = vpop.permute.xlu1 %2794  ;;  %v3946_v58 = vadd.f32 %v3945_v20, %v3883_v57  ;;  %v3814_v45 = vadd.f32 %v3813_v19, %v10097_v46  ;;  %v3885_v35 = vmul.f32 %v10116_v34, %v10116_v34 }
 0x652   :  { %v3378_v60 = vsel %vm3314_vm10, %v3313_v17, %v2795_v13  ;;  %v10232_v17 = vpop.f32.mrf.mxu0  ;;  %v3889_v19 = vmul.f32 %v10195_v18, %v10195_v18 }
 0x653   :  { %7504 = vmatmul.msk.f32.gmra.mxu3 %vm3384_vm11, %v3378_v60  ;;  %v3947_v24 = vadd.f32 %v3946_v58, %v3884_v5  ;;  %v3815_v3 = vadd.f32 %v3814_v45, %v10116_v34  ;;  %13616 = vst [vmem:[#allocation25_spill] sm:$0xff] %v10232_v17  ;;  %v10237_v2 = vpop.f32.mrf.mxu3  ;;  %v3890_v45 = vmul.f32 %v10216_v7, %v10216_v7 }
 0x655   :  { %v3948_v13 = vadd.f32 %v3947_v24, %v3885_v35  ;;  %v3816_v60 = vadd.f32 %v3815_v3, %v10136_v0 }
 0x657   :  { %v3949_v21 = vadd.f32 %v3948_v13, %v3886_v56  ;;  %v3817_v40 = vadd.f32 %v3816_v60, %v10157_v33  ;;  %v3891_v56 = vmul.f32 %v10232_v17, %v10232_v17 }
 0x659   :  { %v3950_v57 = vadd.f32 %v3949_v21, %v3887_v25  ;;  %v3818_v20 = vadd.f32 %v3817_v40, %v10176_v31 }
 0x65a   :  { %v10248_v35 = vpop.f32.mrf.mxu0 }
 0x65b   :  { %v3951_v5 = vadd.f32 %v3950_v57, %v3888_v4  ;;  %v3819_v58 = vadd.f32 %v3818_v20, %v10195_v18  ;;  %13617 = vst [vmem:[#allocation26_spill] sm:$0xff] %v10248_v35  ;;  %v10253_v13 = vpop.f32.mrf.mxu3  ;;  %v3892_v21 = vmul.f32 %v10248_v35, %v10248_v35  ;;  %v3893_v20 = vmul.f32 %v10042_v1, %v10042_v1 }
 0x65d   :  { %v3952_v24 = vadd.f32 %v3951_v5, %v3889_v19  ;;  %v3820_v3 = vadd.f32 %v3819_v58, %v10216_v7 }
 0x65f   :  { %v3953_v60 = vadd.f32 %v3952_v24, %v3890_v45  ;;  %v3821_v25 = vadd.f32 %v3820_v3, %v10232_v17  ;;  %v3894_v45 = vmul.f32 %v10054_v27, %v10054_v27 }
 0x661   :  { %v3954_v40 = vadd.f32 %v3953_v60, %v3891_v56  ;;  %v3822_v4 = vadd.f32 %v3821_v25, %v10248_v35  ;;  %v3895_v56 = vmul.f32 %v10063_v52, %v10063_v52 }
 0x663   :  { %v3955_v57 = vadd.f32 %v3954_v40, %v3892_v21  ;;  %v3823_v19 = vadd.f32 %v3822_v4, %v10042_v1  ;;  %v10262_v5 = vpop.f32.mrf.mxu3  ;;  %v3896_v40 = vmul.f32 %v10069_v36, %v10069_v36 }
 0x665   :  { %v3956_v58 = vadd.f32 %v3955_v57, %v3893_v20  ;;  %v3824_v24 = vadd.f32 %v3823_v19, %v10054_v27  ;;  %v3897_v20 = vmul.f32 %v10077_v51, %v10077_v51 }
 0x667   :  { %v3957_v3 = vadd.f32 %v3956_v58, %v3894_v45  ;;  %v3825_v60 = vadd.f32 %v3824_v24, %v10063_v52  ;;  %v3898_v24 = vmul.f32 %v10085_v32, %v10085_v32 }
 0x669   :  { %v3958_v21 = vadd.f32 %v3957_v3, %v3895_v56  ;;  %v3826_v4 = vadd.f32 %v3825_v60, %v10069_v36  ;;  %v3899_v56 = vmul.f32 %v10092_v47, %v10092_v47 }
 0x66b   :  { %v10270_v25 = vpop.f32.mrf.mxu3  ;;  %v3959_v57 = vadd.f32 %v3958_v21, %v3896_v40  ;;  %v3827_v19 = vadd.f32 %v3826_v4, %v10077_v51  ;;  %v3900_v4 = vmul.f32 %v10100_v30, %v10100_v30 }
 0x66d   :  { %v3960_v45 = vadd.f32 %v3959_v57, %v3897_v20  ;;  %v3828_v52 = vadd.f32 %v3827_v19, %v10085_v32  ;;  %v3901_v20 = vmul.f32 %v10121_v9, %v10121_v9 }
 0x66f   :  { %v3961_v3 = vadd.f32 %v3960_v45, %v3898_v24  ;;  %v3829_v60 = vadd.f32 %v3828_v52, %v10092_v47  ;;  %v3902_v52 = vmul.f32 %v10142_v37, %v10142_v37 }
 0x671   :  { %v3962_v40 = vadd.f32 %v3961_v3, %v3899_v56  ;;  %v3830_v27 = vadd.f32 %v3829_v60, %v10100_v30  ;;  %v3903_v56 = vmul.f32 %v10163_v38, %v10163_v38 }
 0x673   :  { %v10278_v58 = vpop.f32.mrf.mxu3  ;;  %v3963_v57 = vadd.f32 %v3962_v40, %v3900_v4  ;;  %v3831_v19 = vadd.f32 %v3830_v27, %v10121_v9  ;;  %v3904_v27 = vmul.f32 %v10181_v55, %v10181_v55 }
 0x675   :  { %v3964_v24 = vadd.f32 %v3963_v57, %v3901_v20  ;;  %v3832_v1 = vadd.f32 %v3831_v19, %v10142_v37  ;;  %v3905_v20 = vmul.f32 %v10201_v29, %v10201_v29 }
 0x677   :  { %v3965_v3 = vadd.f32 %v3964_v24, %v3902_v52  ;;  %v3833_v60 = vadd.f32 %v3832_v1, %v10163_v38  ;;  %v3906_v1 = vmul.f32 %v10221_v12, %v10221_v12 }
 0x679   :  { %v3966_v4 = vadd.f32 %v3965_v3, %v3903_v56  ;;  %v3834_v35 = vadd.f32 %v3833_v60, %v10181_v55  ;;  %v3907_v56 = vmul.f32 %v10237_v2, %v10237_v2 }
 0x67b   :  { %v10286_v21 = vpop.f32.mrf.mxu3  ;;  %v3967_v57 = vadd.f32 %v3966_v4, %v3904_v27  ;;  %v3835_v19 = vadd.f32 %v3834_v35, %v10201_v29  ;;  %v3908_v35 = vmul.f32 %v10253_v13, %v10253_v13 }
 0x67d   :  { %v3968_v52 = vadd.f32 %v3967_v57, %v3905_v20  ;;  %v3836_v17 = vadd.f32 %v3835_v19, %v10221_v12  ;;  %v3909_v20 = vmul.f32 %v10262_v5, %v10262_v5 }
 0x67f   :  { %v3969_v3 = vadd.f32 %v3968_v52, %v3906_v1  ;;  %v3837_v60 = vadd.f32 %v3836_v17, %v10237_v2  ;;  %v3910_v17 = vmul.f32 %v10270_v25, %v10270_v25 }
 0x681   :  { %v3970_v27 = vadd.f32 %v3969_v3, %v3907_v56  ;;  %v3838_v7 = vadd.f32 %v3837_v60, %v10253_v13  ;;  %v3911_v56 = vmul.f32 %v10278_v58, %v10278_v58 }
 0x683   :  { %v10294_v45 = vpop.f32.mrf.mxu3  ;;  %v3971_v57 = vadd.f32 %v3970_v27, %v3908_v35  ;;  %v3839_v19 = vadd.f32 %v3838_v7, %v10262_v5  ;;  %v3912_v7 = vmul.f32 %v10286_v21, %v10286_v21 }
 0x685   :  { %v3972_v1 = vadd.f32 %v3971_v57, %v3909_v20  ;;  %v3840_v18 = vadd.f32 %v3839_v19, %v10270_v25  ;;  %v3913_v20 = vmul.f32 %v10294_v45, %v10294_v45 }
 0x687   :  { %v3973_v3 = vadd.f32 %v3972_v1, %v3910_v17  ;;  %v3841_v60 = vadd.f32 %v3840_v18, %v10278_v58 }
 0x689   :  { %v3974_v35 = vadd.f32 %v3973_v3, %v3911_v56  ;;  %v3842_v31 = vadd.f32 %v3841_v60, %v10286_v21 }
 0x68b   :  { %v10302_v40 = vpop.f32.mrf.mxu3  ;;  %v3975_v57 = vadd.f32 %v3974_v35, %v3912_v7  ;;  %v3843_v19 = vadd.f32 %v3842_v31, %v10294_v45 }
 0x68c   :  { %v3914_v18 = vmul.f32 %v10302_v40, %v10302_v40 }
 0x68d   :  { %v3976_v17 = vadd.f32 %v3975_v57, %v3913_v20  ;;  %v3844_v33 = vadd.f32 %v3843_v19, %v10302_v40 }
 0x68f   :  { %v3977_v3 = vadd.f32 %v3976_v17, %v3914_v18 }
 0x693   :  { %v10310_v24 = vpop.f32.mrf.mxu3 }
 0x694   :  { %v3915_v56 = vmul.f32 %v10310_v24, %v10310_v24  ;;  %v3845_v60 = vadd.f32 %v3844_v33, %v10310_v24 }
 0x696   :  { %v3978_v7 = vadd.f32 %v3977_v3, %v3915_v56 }
 0x69b   :  { %v10318_v4 = vpop.f32.mrf.mxu3 }
 0x69c   :  { %v3846_v0 = vadd.f32 %v3845_v60, %v10318_v4  ;;  %v3916_v31 = vmul.f32 %v10318_v4, %v10318_v4 }
 0x69e   :  { %v3979_v57 = vadd.f32 %v3978_v7, %v3916_v31 }
 0x6a3   :  { %v10326_v52 = vpop.f32.mrf.mxu3 }
 0x6a4   :  { %v3847_v20 = vadd.f32 %v3846_v0, %v10326_v52  ;;  %v3917_v19 = vmul.f32 %v10326_v52, %v10326_v52 }
 0x6a6   :  { %v3980_v33 = vadd.f32 %v3979_v57, %v3917_v19 }
 0x6ab   :  { %v10334_v27 = vpop.f32.mrf.mxu3 }
 0x6ac   :  { %v3918_v17 = vmul.f32 %v10334_v27, %v10334_v27  ;;  %v3848_v34 = vadd.f32 %v3847_v20, %v10334_v27 }
 0x6ae   :  { %v3981_v56 = vadd.f32 %v3980_v33, %v3918_v17 }
 0x6b3   :  { %v10342_v1 = vpop.f32.mrf.mxu3 }
 0x6b4   :  { %v3919_v3 = vmul.f32 %v10342_v1, %v10342_v1  ;;  %v3849_v60 = vadd.f32 %v3848_v34, %v10342_v1 }
 0x6b6   :  { %v3982_v7 = vadd.f32 %v3981_v56, %v3919_v3 }
 0x6bb   :  { %v10350_v35 = vpop.f32.mrf.mxu3 }
 0x6bc   :  { %v3920_v0 = vmul.f32 %v10350_v35, %v10350_v35  ;;  %v3850_v31 = vadd.f32 %v3849_v60, %v10350_v35 }
 0x6be   :  { %v3983_v63 = vadd.f32 %v3982_v7, %v3920_v0 }
 0x6c3   :  { %v10360_v18 = vpop.f32.mrf.mxu3 }
 0x6c4   :  { %v3921_v46 = vmul.f32 %v10360_v18, %v10360_v18  ;;  %v3851_v57 = vadd.f32 %v3850_v31, %v10360_v18 }
 0x6c6   :  { %v3984_v20 = vadd.f32 %v3983_v63, %v3921_v46 }
 0x6d6   :  { %v3787_v19 = vpop.f32.mrf.mxu3 }
 0x6d7   :  { %v3852_v62 = vadd.f32 %v3851_v57, %v3787_v19  ;;  %v3922_v49 = vmul.f32 %v3787_v19, %v3787_v19 }
 0x6d9   :  { %v3853_v14 = vrot.slane %v3852_v62, 4  ;;  %v3985_v17 = vadd.f32 %v3984_v20, %v3922_v49 }
 0x6db   :  { %v3854_v33 = vadd.f32 %v3853_v14, %v3852_v62  ;;  %v3986_v34 = vrot.slane %v3985_v17, 4 }
 0x6dd   :  { %v3855_v15 = vrot.slane %v3854_v33, 2  ;;  %v3987_v48 = vadd.f32 %v3986_v34, %v3985_v17 }
 0x6df   :  { %v3856_v26 = vadd.f32 %v3855_v15, %v3854_v33  ;;  %v3988_v3 = vrot.slane %v3987_v48, 2 }
 0x6e1   :  { %v3857_v56 = vrot.slane %v3856_v26, 1  ;;  %v3989_v60 = vadd.f32 %v3988_v3, %v3987_v48 }
 0x6e3   :  { %v3858_v59 = vadd.f32 %v3857_v56, %v3856_v26  ;;  %v3990_v10 = vrot.slane %v3989_v60, 1  ;;  %v4008_v26 = vld [vmem:[%s13499_s2] sm:$0x1] }
 0x6e5   :  { %v3991_v22 = vadd.f32 %v3990_v10, %v3989_v60  ;;  %v3992_v0 = vmul.f32 0.001953125, %v3858_v59 }
 0x6e7   :  { %v3993_v7 = vmul.f32 0.001953125, %v3991_v22  ;;  %v3994_v31 = vmul.f32 %v3992_v0, %v3992_v0 }
 0x6e9   :  { %v3995_v44 = vsub.f32 %v3993_v7, %v3994_v31 }
 0x6eb   :  { %v3996_v63 = vmax.f32 %v3995_v44, 0.0  ;;  %v4010_v44 = vld [vmem:[%s13500_s3] sm:$0x1] }
 0x6ed   :  { %v3997_v46 = vadd.f32 1e-05, %v3996_v63 }
 0x6ef   :  { %7551 = vrsqrt.f32 %v3997_v46  ;;  %vm4004_vm13 = vweird.f32 %v3997_v46 }
 0x6f5   :  { %v7552_v57 = vpop.eup %7551 }
 0x6f6   :  { %v3999_v49 = vmul.f32 %v7552_v57, %v3997_v46  ;;  %vm4005_vm12 = vweird.f32 %v7552_v57 }
 0x6f7   :  { %vm4006_vm14 = vmor %vm4004_vm13, %vm4005_vm12 }
 0x6f8   :  { %v4000_v14 = vmul.f32 %v7552_v57, %v3999_v49 }
 0x6fa   :  { %v4001_v62 = vmul.f32 0.5, %v4000_v14 }
 0x6fc   :  { %v4002_v20 = vsub.f32 1.5, %v4001_v62 }
 0x6fe   :  { %v4003_v15 = vmul.f32 %v7552_v57, %v4002_v20 }
 0x700   :  { %v4007_v10 = vsel %vm4006_vm14, %v7552_v57, %v4003_v15  ;;  %v4942_v15 = vld [vmem:[%s13501_s4 + $0x70] sm:$0xff] }
 0x701   :  { %v4009_v22 = vmul.f32 %v4008_v26, %v4007_v10 }
 0x703   :  { %v4011_v59 = vmul.f32 %v4009_v22, %v3992_v0  ;;  %v10378_v48 = vperm.slane %v4009_v22, 0 }
 0x705   :  { %v4012_v17 = vsub.f32 %v4010_v44, %v4011_v59  ;;  %v4077_v33 = vmul.f32 %v10378_v48, %v3787_v19  ;;  %v4014_v60 = vmul.f32 %v10378_v48, %v9402_v54  ;;  %v4015_v7 = vmul.f32 %v10378_v48, %v9478_v53  ;;  %v4974_v59 = vld [vmem:[%s13501_s4 + $0x170] sm:$0xff] }
 0x706   :  { %v4016_v0 = vmul.f32 %v10378_v48, %v9556_v6  ;;  %v4017_v31 = vmul.f32 %v10378_v48, %v9620_v41  ;;  %v4018_v19 = vmul.f32 %v10378_v48, %v9679_v61  ;;  %v4019_v63 = vmul.f32 %v10378_v48, %v9741_v39 }
 0x707   :  { %v10381_v34 = vperm.slane %v4012_v17, 0  ;;  %v4020_v46 = vmul.f32 %v10378_v48, %v9793_v16  ;;  %v10400_v54 = vmul.f32 %v10378_v48, %v9860_v8  ;;  %v10404_v53 = vmul.f32 %v10378_v48, %v9937_v28 }
 0x708   :  { %v10408_v6 = vmul.f32 %v10378_v48, %v9947_v50  ;;  %v4051_v41 = vmul.f32 %v10378_v48, %v10069_v36  ;;  %v4052_v61 = vmul.f32 %v10378_v48, %v10077_v51  ;;  %v4053_v39 = vmul.f32 %v10378_v48, %v10085_v32 }
 0x709   :  { %v4144_v3 = vadd.f32 %v10381_v34, %v4077_v33  ;;  %v4054_v16 = vmul.f32 %v10378_v48, %v10092_v47  ;;  %v4055_v8 = vmul.f32 %v10378_v48, %v10100_v30  ;;  %v4056_v28 = vmul.f32 %v10378_v48, %v10121_v9 }
 0x70a   :  { %v4057_v50 = vmul.f32 %v10378_v48, %v10142_v37  ;;  %v4058_v36 = vmul.f32 %v10378_v48, %v10163_v38  ;;  %v4059_v51 = vmul.f32 %v10378_v48, %v10181_v55  ;;  %v4060_v32 = vmul.f32 %v10378_v48, %v10201_v29 }
 0x70b   :  { %v4208_v56 = vmax.f32 %v4144_v3, 0.0  ;;  %v4061_v47 = vmul.f32 %v10378_v48, %v10221_v12  ;;  %v4062_v30 = vmul.f32 %v10378_v48, %v10237_v2  ;;  %v4063_v9 = vmul.f32 %v10378_v48, %v10253_v13 }
 0x70c   :  { %v4064_v37 = vmul.f32 %v10378_v48, %v10262_v5  ;;  %v4065_v38 = vmul.f32 %v10378_v48, %v10270_v25  ;;  %v4066_v55 = vmul.f32 %v10378_v48, %v10278_v58  ;;  %v4067_v29 = vmul.f32 %v10378_v48, %v10286_v21 }
 0x70d   :  { %4350 = vst [vmem:[#allocation3 + $0x339] sm:$0xff] %v4208_v56  ;;  %v4068_v12 = vmul.f32 %v10378_v48, %v10294_v45  ;;  %v4069_v2 = vmul.f32 %v10378_v48, %v10302_v40  ;;  %v4070_v13 = vmul.f32 %v10378_v48, %v10310_v24  ;;  %v4071_v5 = vmul.f32 %v10378_v48, %v10318_v4  ;;  %v4943_v4 = vld [vmem:[%s13501_s4 + $0x78] sm:$0xff] }
 0x70e   :  { %v4072_v25 = vmul.f32 %v10378_v48, %v10326_v52  ;;  %v4073_v58 = vmul.f32 %v10378_v48, %v10334_v27  ;;  %v4074_v21 = vmul.f32 %v10378_v48, %v10342_v1  ;;  %v4075_v45 = vmul.f32 %v10378_v48, %v10350_v35  ;;  %v4975_v52 = vld [vmem:[%s13501_s4 + $0x178] sm:$0xff]  ;;  %5072 = vmatpush.msra.mxu1 %v4943_v4 }
 0x70f   :  { %v4076_v40 = vmul.f32 %v10378_v48, %v10360_v18  ;;  %v4081_v24 = vadd.f32 %v10381_v34, %v4014_v60  ;;  %v10464_v57 = vadd.f32 %v10381_v34, %v4015_v7  ;;  %v10473_v27 = vadd.f32 %v10381_v34, %v4016_v0  ;;  %7510 = vmatpush.msra.mxu2 %v4943_v4  ;;  %v4941_v60 = vld [vmem:[%s13501_s4 + $0x68] sm:$0xff] }
 0x710   :  { %v10476_v1 = vadd.f32 %v10381_v34, %v4017_v31  ;;  %v10479_v35 = vadd.f32 %v10381_v34, %v4018_v19  ;;  %v10482_v18 = vadd.f32 %v10381_v34, %v4019_v63  ;;  %v10485_v49 = vadd.f32 %v10381_v34, %v4020_v46  ;;  %5490 = vmatpush.msrb.mxu3 %v4975_v52  ;;  %v4973_v63 = vld [vmem:[%s13501_s4 + $0x168] sm:$0xff]  ;;  %v13618_v52 = vld [vmem:[#allocation4_spill] sm:$0xff] }
 0x711   :  { %v10488_v14 = vadd.f32 %v10381_v34, %v4051_v41  ;;  %v10491_v62 = vadd.f32 %v10381_v34, %v4052_v61  ;;  %v10494_v20 = vadd.f32 %v10381_v34, %v4053_v39  ;;  %v10500_v26 = vadd.f32 %v10381_v34, %v4054_v16  ;;  %5073 = vmatpush.msra.mxu1 %v4942_v15  ;;  %v4940_v16 = vld [vmem:[%s13501_s4 + $0x60] sm:$0xff] }
 0x712   :  { %v10503_v10 = vadd.f32 %v10381_v34, %v4055_v8  ;;  %v10506_v22 = vadd.f32 %v10381_v34, %v4056_v28  ;;  %v10509_v44 = vadd.f32 %v10381_v34, %v4057_v50  ;;  %v10515_v17 = vadd.f32 %v10381_v34, %v4058_v36  ;;  %7511 = vmatpush.msra.mxu2 %v4942_v15 }
 0x713   :  { %v10518_v33 = vadd.f32 %v10381_v34, %v4059_v51  ;;  %v10521_v3 = vadd.f32 %v10381_v34, %v4060_v32  ;;  %v10524_v56 = vadd.f32 %v10381_v34, %v4061_v47  ;;  %v10530_v7 = vadd.f32 %v10381_v34, %v4062_v30  ;;  %5491 = vmatpush.msrb.mxu3 %v4974_v59  ;;  %v4972_v51 = vld [vmem:[%s13501_s4 + $0x160] sm:$0xff] }
 0x714   :  { %v10533_v0 = vadd.f32 %v10381_v34, %v4063_v9  ;;  %v10536_v31 = vadd.f32 %v10381_v34, %v4064_v37  ;;  %v10539_v19 = vadd.f32 %v10381_v34, %v4065_v38  ;;  %v10545_v46 = vadd.f32 %v10381_v34, %v4066_v55  ;;  %5074 = vmatpush.msra.mxu1 %v4941_v60  ;;  %v4939_v37 = vld [vmem:[%s13501_s4 + $0x58] sm:$0xff] }
 0x715   :  { %v10548_v41 = vadd.f32 %v10381_v34, %v4067_v29  ;;  %v10551_v61 = vadd.f32 %v10381_v34, %v4068_v12  ;;  %v10554_v39 = vadd.f32 %v10381_v34, %v4069_v2  ;;  %v10560_v8 = vadd.f32 %v10381_v34, %v4070_v13  ;;  %7512 = vmatpush.msra.mxu2 %v4941_v60  ;;  %v4971_v2 = vld [vmem:[%s13501_s4 + $0x158] sm:$0xff]  ;;  %v4968_v60 = vld [vmem:[%s13501_s4 + $0x140] sm:$0xff] }
 0x716   :  { %v10563_v28 = vadd.f32 %v10381_v34, %v4071_v5  ;;  %v10566_v50 = vadd.f32 %v10381_v34, %v4072_v25  ;;  %v10569_v36 = vadd.f32 %v10381_v34, %v4073_v58  ;;  %v10575_v32 = vadd.f32 %v10381_v34, %v4074_v21  ;;  %5492 = vmatpush.msrb.mxu3 %v4973_v63  ;;  %v13620_v63 = vld [vmem:[#allocation6_spill] sm:$0xff] }
 0x717   :  { %v10578_v47 = vadd.f32 %v10381_v34, %v4075_v45  ;;  %v10581_v30 = vadd.f32 %v10381_v34, %v4076_v40  ;;  %v4145_v9 = vmax.f32 %v4081_v24, 0.0  ;;  %v4088_v38 = vadd.f32 %v10381_v34, %v10400_v54  ;;  %5075 = vmatpush.msra.mxu1 %v4940_v16  ;;  %7513 = vmatpush.msra.mxu2 %v4940_v16  ;;  %v4938_v54 = vld [vmem:[%s13501_s4 + $0x50] sm:$0xff] }
 0x718   :  { %v4146_v55 = vmax.f32 %v10464_v57, 0.0  ;;  %v4147_v29 = vmax.f32 %v10473_v27, 0.0  ;;  %v4148_v12 = vmax.f32 %v10476_v1, 0.0  ;;  %v4024_v13 = vmul.f32 %v10378_v48, %v9954_v11  ;;  %5493 = vmatpush.msrb.mxu3 %v4972_v51 }
 0x719   :  { %v4089_v5 = vadd.f32 %v10381_v34, %v10404_v53  ;;  %v4149_v25 = vmax.f32 %v10479_v35, 0.0  ;;  %4287 = vst [vmem:[#allocation3 + $0x19] sm:$0xff] %v4145_v9  ;;  %v4025_v58 = vmul.f32 %v10378_v48, %v9969_v43  ;;  %v4090_v21 = vadd.f32 %v10381_v34, %v10408_v6  ;;  %5076 = vmatpush.msra.mxu1 %v4939_v37  ;;  %v4970_v53 = vld [vmem:[%s13501_s4 + $0x150] sm:$0xff]  ;;  %v4937_v43 = vld [vmem:[%s13501_s4 + $0x48] sm:$0xff] }
 0x71a   :  { %v4150_v11 = vmax.f32 %v10482_v18, 0.0  ;;  %4288 = vst [vmem:[#allocation3 + $0x21] sm:$0xff] %v4146_v55  ;;  %v4026_v45 = vmul.f32 %v10378_v48, %v9986_v42  ;;  %v4091_v40 = vadd.f32 %v10381_v34, %v4024_v13  ;;  %v4151_v24 = vmax.f32 %v10485_v49, 0.0  ;;  %7514 = vmatpush.msra.mxu2 %v4939_v37  ;;  %5494 = vmatpush.msrb.mxu3 %v4971_v2  ;;  %v4969_v42 = vld [vmem:[%s13501_s4 + $0x148] sm:$0xff]  ;;  %v4935_v37 = vld [vmem:[%s13501_s4 + $0x38] sm:$0xff] }
 0x71b   :  { %4289 = vst [vmem:[#allocation3 + $0x31] sm:$0xff] %v4147_v29  ;;  %v4027_v6 = vmul.f32 %v10378_v48, %v9995_v23  ;;  %v4092_v57 = vadd.f32 %v10381_v34, %v4025_v58  ;;  %v4152_v4 = vmax.f32 %v4088_v38, 0.0  ;;  %5077 = vmatpush.msra.mxu1 %v4938_v54  ;;  %v4028_v27 = vmul.f32 %v10378_v48, %v13618_v52  ;;  %v4936_v23 = vld [vmem:[%s13501_s4 + $0x40] sm:$0xff]  ;;  %v13619_v18 = vld [vmem:[#allocation5_spill] sm:$0xff]  ;;  %v13621_v38 = vld [vmem:[#allocation7_spill] sm:$0xff] }
 0x71c   :  { %4290 = vst [vmem:[#allocation3 + $0x39] sm:$0xff] %v4148_v12  ;;  %v4093_v1 = vadd.f32 %v10381_v34, %v4026_v45  ;;  %v4153_v35 = vmax.f32 %v4089_v5, 0.0  ;;  %7515 = vmatpush.msra.mxu2 %v4938_v54  ;;  %5495 = vmatpush.msrb.mxu3 %v4970_v53  ;;  %v4029_v49 = vmul.f32 %v10378_v48, %v13619_v18  ;;  %v4154_v59 = vmax.f32 %v4090_v21, 0.0  ;;  %v4967_v2 = vld [vmem:[%s13501_s4 + $0x138] sm:$0xff]  ;;  %v13622_v13 = vld [vmem:[#allocation9_spill] sm:$0xff]  ;;  %v13623_v21 = vld [vmem:[#allocation10_spill] sm:$0xff] }
 0x71d   :  { %4291 = vst [vmem:[#allocation3 + $0x49] sm:$0xff] %v4149_v25  ;;  %v4094_v15 = vadd.f32 %v10381_v34, %v4027_v6  ;;  %5078 = vmatpush.msra.mxu1 %v4937_v43  ;;  %v4030_v16 = vmul.f32 %v10378_v48, %v13620_v63  ;;  %v4095_v51 = vadd.f32 %v10381_v34, %v4028_v27  ;;  %v4155_v9 = vmax.f32 %v4091_v40, 0.0  ;;  %v4991_v58 = vld [vmem:[%s13501_s4 + $0x1f8] sm:$0xff]  ;;  %v4934_v40 = vld [vmem:[%s13501_s4 + $0x30] sm:$0xff] }
 0x71e   :  { %4292 = vst [vmem:[#allocation3 + $0x51] sm:$0xff] %v4150_v11  ;;  %7516 = vmatpush.msra.mxu2 %v4937_v43  ;;  %5496 = vmatpush.msrb.mxu3 %v4969_v42  ;;  %v4031_v55 = vmul.f32 %v10378_v48, %v13621_v38  ;;  %v4096_v29 = vadd.f32 %v10381_v34, %v4029_v49  ;;  %v4156_v12 = vmax.f32 %v4092_v57, 0.0  ;;  %v4157_v54 = vmax.f32 %v4093_v1, 0.0  ;;  %v13625_v42 = vld [vmem:[#allocation14_spill] sm:$0xff] }
 0x71f   :  { %4293 = vst [vmem:[#allocation3 + $0x61] sm:$0xff] %v4151_v24  ;;  %5079 = vmatpush.msra.mxu1 %v4936_v23  ;;  %v4032_v5 = vmul.f32 %v10378_v48, %v13622_v13  ;;  %v4097_v25 = vadd.f32 %v10381_v34, %v4030_v16  ;;  %v4033_v11 = vmul.f32 %v10378_v48, %v13623_v21  ;;  %v4158_v45 = vmax.f32 %v4094_v15, 0.0  ;;  %v13624_v24 = vld [vmem:[#allocation12_spill] sm:$0xff] }
 0x720   :  { %4294 = vst [vmem:[#allocation3 + $0x69] sm:$0xff] %v4152_v4  ;;  %7517 = vmatpush.msra.mxu2 %v4936_v23  ;;  %5497 = vmatpush.msrb.mxu3 %v4968_v60  ;;  %v4098_v53 = vadd.f32 %v10381_v34, %v4031_v55  ;;  %v4034_v43 = vmul.f32 %v10378_v48, %v13624_v24  ;;  %v4159_v57 = vmax.f32 %v4095_v51, 0.0  ;;  %v4966_v4 = vld [vmem:[%s13501_s4 + $0x130] sm:$0xff]  ;;  %v4160_v1 = vmax.f32 %v4096_v29, 0.0  ;;  %v13626_v23 = vld [vmem:[#allocation15_spill] sm:$0xff]  ;;  %v13627_v60 = vld [vmem:[#allocation16_spill] sm:$0xff] }
 0x721   :  { %4295 = vst [vmem:[#allocation3 + $0x79] sm:$0xff] %v4153_v35  ;;  %5080 = vmatpush.msra.mxu1 %v4935_v37  ;;  %5699 = vmatpush.msrb.mxu0 %v4991_v58  ;;  %v4099_v6 = vadd.f32 %v10381_v34, %v4032_v5  ;;  %v4035_v52 = vmul.f32 %v10378_v48, %v13625_v42  ;;  %v4990_v35 = vld [vmem:[%s13501_s4 + $0x1f0] sm:$0xff]  ;;  %v4161_v15 = vmax.f32 %v4097_v25, 0.0  ;;  %v4964_v13 = vld [vmem:[%s13501_s4 + $0x120] sm:$0xff] }
 0x722   :  { %4296 = vst [vmem:[#allocation3 + $0x81] sm:$0xff] %v4154_v59  ;;  %7518 = vmatpush.msra.mxu2 %v4935_v37  ;;  %5498 = vmatpush.msrb.mxu3 %v4967_v2  ;;  %v10668_v27 = vadd.f32 %v10381_v34, %v4033_v11  ;;  %v4036_v18 = vmul.f32 %v10378_v48, %v13626_v23  ;;  %v4933_v59 = vld [vmem:[%s13501_s4 + $0x28] sm:$0xff]  ;;  %v4162_v51 = vmax.f32 %v4098_v53, 0.0  ;;  %v4932_v2 = vld [vmem:[%s13501_s4 + $0x20] sm:$0xff]  ;;  %v13629_v5 = vld [vmem:[#allocation18_spill] sm:$0xff] }
 0x723   :  { %4297 = vst [vmem:[#allocation3 + $0x91] sm:$0xff] %v4155_v9  ;;  %5081 = vmatpush.msra.mxu1 %v4934_v40  ;;  %v10676_v49 = vadd.f32 %v10381_v34, %v4034_v43  ;;  %v4037_v63 = vmul.f32 %v10378_v48, %v13627_v60  ;;  %v10684_v16 = vadd.f32 %v10381_v34, %v4035_v52  ;;  %v4965_v9 = vld [vmem:[%s13501_s4 + $0x128] sm:$0xff]  ;;  %v4163_v29 = vmax.f32 %v4099_v6, 0.0  ;;  %v4988_v21 = vld [vmem:[%s13501_s4 + $0x1e0] sm:$0xff]  ;;  %v4931_v11 = vld [vmem:[%s13501_s4 + $0x18] sm:$0xff] }
 0x724   :  { %4298 = vst [vmem:[#allocation3 + $0x99] sm:$0xff] %v4156_v12  ;;  %7519 = vmatpush.msra.mxu2 %v4934_v40  ;;  %5499 = vmatpush.msrb.mxu3 %v4966_v4  ;;  %v13628_v37 = vld [vmem:[#allocation17_spill] sm:$0xff]  ;;  %v10692_v55 = vadd.f32 %v10381_v34, %v4036_v18  ;;  %v4039_v25 = vmul.f32 %v10378_v48, %v13629_v5  ;;  %v4164_v58 = vmax.f32 %v10668_v27, 0.0  ;;  %v4963_v53 = vld [vmem:[%s13501_s4 + $0x118] sm:$0xff]  ;;  %v13631_v4 = vld [vmem:[#allocation20_spill] sm:$0xff] }
 0x725   :  { %4299 = vst [vmem:[#allocation3 + $0xa9] sm:$0xff] %v4157_v54  ;;  %5700 = vmatpush.msrb.mxu0 %v4990_v35  ;;  %5082 = vmatpush.msra.mxu1 %v4933_v59  ;;  %v4038_v38 = vmul.f32 %v10378_v48, %v13628_v37  ;;  %v4989_v12 = vld [vmem:[%s13501_s4 + $0x1e8] sm:$0xff]  ;;  %v10706_v54 = vadd.f32 %v10381_v34, %v4037_v63  ;;  %v4165_v43 = vmax.f32 %v10676_v49, 0.0  ;;  %v4987_v6 = vld [vmem:[%s13501_s4 + $0x1d8] sm:$0xff]  ;;  %v4166_v27 = vmax.f32 %v10684_v16, 0.0  ;;  %v13633_v60 = vld [vmem:[#allocation22_spill] sm:$0xff] }
 0x726   :  { %4300 = vst [vmem:[#allocation3 + $0xb1] sm:$0xff] %v4158_v45  ;;  %7520 = vmatpush.msra.mxu2 %v4933_v59  ;;  %5500 = vmatpush.msrb.mxu3 %v4965_v9  ;;  %v13630_v45 = vld [vmem:[#allocation19_spill] sm:$0xff]  ;;  %v4041_v42 = vmul.f32 %v10378_v48, %v13631_v4  ;;  %v4106_v52 = vadd.f32 %v10381_v34, %v4039_v25  ;;  %v13632_v35 = vld [vmem:[#allocation21_spill] sm:$0xff]  ;;  %v4167_v49 = vmax.f32 %v10692_v55, 0.0 }
 0x727   :  { %4301 = vst [vmem:[#allocation3 + $0xc1] sm:$0xff] %v4159_v57  ;;  %5701 = vmatpush.msrb.mxu0 %v4989_v12  ;;  %5083 = vmatpush.msra.mxu1 %v4932_v2  ;;  %v4040_v40 = vmul.f32 %v10378_v48, %v13630_v45  ;;  %v4105_v24 = vadd.f32 %v10381_v34, %v4038_v38  ;;  %v4930_v57 = vld [vmem:[%s13501_s4 + $0x10] sm:$0xff]  ;;  %v4929_v59 = vld [vmem:[%s13501_s4 + $0x8] sm:$0xff]  ;;  %v13634_v37 = vld [vmem:[#allocation23_spill] sm:$0xff] }
 0x728   :  { %4302 = vst [vmem:[#allocation3 + $0xc9] sm:$0xff] %v4160_v1  ;;  %7521 = vmatpush.msra.mxu2 %v4932_v2  ;;  %5501 = vmatpush.msrb.mxu3 %v4964_v13  ;;  %v4962_v1 = vld [vmem:[%s13501_s4 + $0x110] sm:$0xff]  ;;  %v4042_v23 = vmul.f32 %v10378_v48, %v13632_v35  ;;  %v4043_v63 = vmul.f32 %v10378_v48, %v13633_v60  ;;  %v4961_v9 = vld [vmem:[%s13501_s4 + $0x108] sm:$0xff]  ;;  %v4928_v2 = vld [vmem:[%s13501_s4] sm:$0xff] }
 0x729   :  { %4303 = vst [vmem:[#allocation3 + $0xd9] sm:$0xff] %v4161_v15  ;;  %5702 = vmatpush.msrb.mxu0 %v4988_v21  ;;  %5084 = vmatpush.msra.mxu1 %v4931_v11  ;;  %v4107_v18 = vadd.f32 %v10381_v34, %v4040_v40  ;;  %v4986_v15 = vld [vmem:[%s13501_s4 + $0x1d0] sm:$0xff]  ;;  %v4108_v16 = vadd.f32 %v10381_v34, %v4041_v42  ;;  %v4985_v12 = vld [vmem:[%s13501_s4 + $0x1c8] sm:$0xff]  ;;  %v13635_v13 = vld [vmem:[#allocation24_spill] sm:$0xff] }
 0x72a   :  { %4304 = vst [vmem:[#allocation3 + $0xe1] sm:$0xff] %v4162_v51  ;;  %7522 = vmatpush.msra.mxu2 %v4931_v11  ;;  %5502 = vmatpush.msrb.mxu3 %v4963_v53  ;;  %v4168_v51 = vmax.f32 %v10706_v54, 0.0  ;;  %v4044_v38 = vmul.f32 %v10378_v48, %v13634_v37  ;;  %v4109_v55 = vadd.f32 %v10381_v34, %v4042_v23  ;;  %v4170_v54 = vmax.f32 %v4106_v52, 0.0  ;;  %v13636_v21 = vld [vmem:[#allocation25_spill] sm:$0xff]  ;;  %v4984_v40 = vld [vmem:[%s13501_s4 + $0x1c0] sm:$0xff]  ;;  %v4983_v35 = vld [vmem:[%s13501_s4 + $0x1b8] sm:$0xff] }
 0x72b   :  { %4305 = vst [vmem:[#allocation3 + $0xf1] sm:$0xff] %v4163_v29  ;;  %5703 = vmatpush.msrb.mxu0 %v4987_v6  ;;  %5085 = vmatpush.msra.mxu1 %v4930_v57  ;;  %v4169_v29 = vmax.f32 %v4105_v24, 0.0  ;;  %v4045_v5 = vmul.f32 %v10378_v48, %v13635_v13  ;;  %v4110_v25 = vadd.f32 %v10381_v34, %v4043_v63  ;;  %v4171_v45 = vmax.f32 %v4107_v18, 0.0  ;;  %v13637_v24 = vld [vmem:[#allocation26_spill] sm:$0xff]  ;;  %v4479_v4 = vld [vmem:[#allocation3 + $0x2] sm:$0xff]  ;;  %v13639_v23 = vld [vmem:[#allocation11_spill] sm:$0xff] }
 0x72c   :  { %4306 = vst [vmem:[#allocation3 + $0xf9] sm:$0xff] %v4164_v58  ;;  %7523 = vmatpush.msra.mxu2 %v4930_v57  ;;  %5503 = vmatpush.msrb.mxu3 %v4962_v1  ;;  %v4960_v58 = vld [vmem:[%s13501_s4 + $0x100] sm:$0xff]  ;;  %v4046_v11 = vmul.f32 %v10378_v48, %v13636_v21  ;;  %v4111_v53 = vadd.f32 %v10381_v34, %v4044_v38  ;;  %v4172_v57 = vmax.f32 %v4108_v16, 0.0  ;;  %v4173_v1 = vmax.f32 %v4109_v55, 0.0  ;;  %v13640_v60 = vld [vmem:[#allocation13_spill] sm:$0xff]  ;;  %v4959_v13 = vld [vmem:[%s13501_s4 + $0xf8] sm:$0xff] }
 0x72d   :  { %4307 = vst [vmem:[#allocation3 + $0x109] sm:$0xff] %v4165_v43  ;;  %5704 = vmatpush.msrb.mxu0 %v4986_v15  ;;  %5086 = vmatpush.msra.mxu1 %v4929_v59  ;;  %v4047_v43 = vmul.f32 %v10378_v48, %v13637_v24  ;;  %v4112_v6 = vadd.f32 %v10381_v34, %v4045_v5  ;;  %v13638_v42 = vld [vmem:[#allocation8_spill] sm:$0xff]  ;;  %v4174_v15 = vmax.f32 %v4110_v25, 0.0  ;;  %v4480_v25 = vld [vmem:[#allocation3 + $0xa] sm:$0xff]  ;;  %v4184_v24 = vmax.f32 %v10494_v20, 0.0 }
 0x72e   :  { %4308 = vst [vmem:[#allocation3 + $0x111] sm:$0xff] %v4166_v27  ;;  %7524 = vmatpush.msra.mxu2 %v4929_v59  ;;  %5504 = vmatpush.msrb.mxu3 %v4961_v9  ;;  %v4048_v52 = vmul.f32 %v10378_v48, %v13638_v42  ;;  %v4113_v27 = vadd.f32 %v10381_v34, %v4046_v11  ;;  %v7555_v59 = vld [vmem:[#allocation3] sm:$0xff]  ;;  %v4982_v9 = vld [vmem:[%s13501_s4 + $0x1b0] sm:$0xff]  ;;  %v4182_v11 = vmax.f32 %v10488_v14, 0.0  ;;  %v4957_v14 = vld [vmem:[%s13501_s4 + $0xe8] sm:$0xff]  ;;  %v4187_v20 = vmax.f32 %v10506_v22, 0.0 }
 0x72f   :  { %4309 = vst [vmem:[#allocation3 + $0x121] sm:$0xff] %v4167_v49  ;;  %5705 = vmatpush.msrb.mxu0 %v4985_v12  ;;  %5087 = vmatpush.msra.mxu1 %v4928_v2  ;;  %v4049_v18 = vmul.f32 %v10378_v48, %v13639_v23  ;;  %v4114_v49 = vadd.f32 %v10381_v34, %v4047_v43  ;;  %v4176_v38 = vmax.f32 %v4112_v6, 0.0  ;;  %v4980_v5 = vld [vmem:[%s13501_s4 + $0x1a0] sm:$0xff]  ;;  %v4958_v21 = vld [vmem:[%s13501_s4 + $0xf0] sm:$0xff]  ;;  %v4185_v43 = vmax.f32 %v10500_v26, 0.0  ;;  %v4977_v6 = vld [vmem:[%s13501_s4 + $0x188] sm:$0xff] }
 0x730   :  { %4310 = vst [vmem:[#allocation3 + $0x129] sm:$0xff] %v4168_v51  ;;  %7525 = vmatpush.msra.mxu2 %v4928_v2  ;;  %5505 = vmatpush.msrb.mxu3 %v4960_v58  ;;  %v4050_v63 = vmul.f32 %v10378_v48, %v13640_v60  ;;  %v4115_v16 = vadd.f32 %v10381_v34, %v4048_v52  ;;  %v4175_v51 = vmax.f32 %v4111_v53, 0.0  ;;  %v4981_v48 = vld [vmem:[%s13501_s4 + $0x1a8] sm:$0xff]  ;;  %v4979_v58 = vld [vmem:[%s13501_s4 + $0x198] sm:$0xff]  ;;  %v4188_v26 = vmax.f32 %v10509_v44, 0.0  ;;  %v4956_v44 = vld [vmem:[%s13501_s4 + $0xe0] sm:$0xff] }
 0x731   :  { %4311 = vst [vmem:[#allocation3 + $0x139] sm:$0xff] %v4169_v29  ;;  %5706 = vmatpush.msrb.mxu0 %v4984_v40  ;;  %5088 = vmatmul.f32.vlgmr.msra.gmra.mxu1 %v7555_v59  ;;  %v4116_v37 = vadd.f32 %v10381_v34, %v4049_v18  ;;  %v4177_v29 = vmax.f32 %v4113_v27, 0.0  ;;  %v4178_v12 = vmax.f32 %v4114_v49, 0.0  ;;  %v5007_v53 = vld [vmem:[%s13501_s4 + $0x278] sm:$0xff]  ;;  %v4978_v40 = vld [vmem:[%s13501_s4 + $0x190] sm:$0xff]  ;;  %v4191_v22 = vmax.f32 %v10521_v3, 0.0 }
 0x732   :  { %4312 = vst [vmem:[#allocation3 + $0x141] sm:$0xff] %v4170_v54  ;;  %5184 = vmatmul.f32.vlgmr.msra.gmra.mxu2 %v7555_v59  ;;  %5506 = vmatmul.f32.vlgmr.msrb.gmra.mxu3 %v4479_v4  ;;  %v4117_v55 = vadd.f32 %v10381_v34, %v4050_v63  ;;  %v4179_v2 = vmax.f32 %v4115_v16, 0.0  ;;  %v4976_v4 = vld [vmem:[%s13501_s4 + $0x180] sm:$0xff]  ;;  %v4353_v42 = vld [vmem:[#allocation3 + $0x18] sm:$0xff]  ;;  %v4194_v3 = vmax.f32 %v10533_v0, 0.0  ;;  %v4195_v23 = vmax.f32 %v10536_v31, 0.0 }
 0x733   :  { %4313 = vst [vmem:[#allocation3 + $0x151] sm:$0xff] %v4171_v45  ;;  %5707 = vmatpush.msrb.mxu0 %v4983_v35  ;;  %v4180_v34 = vmax.f32 %v4116_v37, 0.0  ;;  %5281 = vmatpush.msrb.mxu2 %v4959_v13  ;;  %v4183_v45 = vmax.f32 %v10491_v62, 0.0  ;;  %v5006_v62 = vld [vmem:[%s13501_s4 + $0x270] sm:$0xff]  ;;  %v4481_v27 = vld [vmem:[#allocation3 + $0x1a] sm:$0xff]  ;;  %v4192_v35 = vmax.f32 %v10524_v56, 0.0 }
 0x734   :  { %4314 = vst [vmem:[#allocation3 + $0x159] sm:$0xff] %v4172_v57  ;;  %v4181_v54 = vmax.f32 %v4117_v55, 0.0  ;;  %5908 = vmatpush.msrb.mxu1 %v5007_v53  ;;  %v4186_v57 = vmax.f32 %v10503_v10, 0.0  ;;  %v4189_v10 = vmax.f32 %v10515_v17, 0.0  ;;  %v5005_v17 = vld [vmem:[%s13501_s4 + $0x268] sm:$0xff]  ;;  %v4196_v18 = vmax.f32 %v10539_v19, 0.0 }
 0x735   :  { %4315 = vst [vmem:[#allocation3 + $0x169] sm:$0xff] %v4173_v1  ;;  %5708 = vmatpush.msrb.mxu0 %v4982_v9  ;;  %5282 = vmatpush.msrb.mxu2 %v4958_v21  ;;  %v4190_v1 = vmax.f32 %v10518_v33, 0.0  ;;  %v4193_v33 = vmax.f32 %v10530_v7, 0.0  ;;  %v4197_v56 = vmax.f32 %v10545_v46, 0.0  ;;  %v4354_v49 = vld [vmem:[#allocation3 + $0x20] sm:$0xff]  ;;  %v4199_v0 = vmax.f32 %v10551_v61, 0.0 }
 0x736   :  { %4316 = vst [vmem:[#allocation3 + $0x171] sm:$0xff] %v4174_v15  ;;  %5909 = vmatpush.msrb.mxu1 %v5006_v62  ;;  %v4198_v15 = vmax.f32 %v10548_v41, 0.0  ;;  %v4200_v31 = vmax.f32 %v10554_v39, 0.0  ;;  %v4201_v19 = vmax.f32 %v10560_v8, 0.0  ;;  %v4202_v46 = vmax.f32 %v10563_v28, 0.0  ;;  %v4355_v63 = vld [vmem:[#allocation3 + $0x30] sm:$0xff] }
 0x737   :  { %4317 = vst [vmem:[#allocation3 + $0x181] sm:$0xff] %v4175_v51  ;;  %5709 = vmatpush.msrb.mxu0 %v4981_v48  ;;  %5283 = vmatpush.msrb.mxu2 %v4957_v14  ;;  %v4203_v41 = vmax.f32 %v10566_v50, 0.0  ;;  %v4204_v60 = vmax.f32 %v10569_v36, 0.0  ;;  %v4205_v61 = vmax.f32 %v10575_v32, 0.0  ;;  %v4206_v39 = vmax.f32 %v10578_v47, 0.0  ;;  %v4483_v8 = vld [vmem:[#allocation3 + $0x32] sm:$0xff] }
 0x738   :  { %4318 = vst [vmem:[#allocation3 + $0x189] sm:$0xff] %v4176_v38  ;;  %5910 = vmatpush.msrb.mxu1 %v5005_v17  ;;  %v4207_v28 = vmax.f32 %v10581_v30, 0.0  ;;  %v4955_v50 = vld [vmem:[%s13501_s4 + $0xd8] sm:$0xff]  ;;  %v5004_v36 = vld [vmem:[%s13501_s4 + $0x260] sm:$0xff]  ;;  %v4357_v51 = vld [vmem:[#allocation3 + $0x48] sm:$0xff] }
 0x739   :  { %4319 = vst [vmem:[#allocation3 + $0x1c9] sm:$0xff] %v4177_v29  ;;  %5710 = vmatpush.msrb.mxu0 %v4980_v5  ;;  %5091 = vmatmul.f32.gmra.mxu1 %v7555_v59  ;;  %v4356_v32 = vld [vmem:[#allocation3 + $0x38] sm:$0xff]  ;;  %v4485_v37 = vld [vmem:[#allocation3 + $0x4a] sm:$0xff]  ;;  %v4487_v5 = vld [vmem:[#allocation3 + $0x62] sm:$0xff] }
 0x73a   :  { %4320 = vst [vmem:[#allocation3 + $0x1d1] sm:$0xff] %v4178_v12  ;;  %5187 = vmatmul.f32.gmra.mxu2 %v7555_v59  ;;  %5509 = vmatmul.f32.gmra.mxu3 %v4480_v25  ;;  %v4482_v59 = vld [vmem:[#allocation3 + $0x22] sm:$0xff]  ;;  %v4484_v30 = vld [vmem:[#allocation3 + $0x3a] sm:$0xff]  ;;  %v4954_v38 = vld [vmem:[%s13501_s4 + $0xd0] sm:$0xff] }
 0x73b   :  { %4321 = vst [vmem:[#allocation3 + $0x1e1] sm:$0xff] %v4179_v2  ;;  %5711 = vmatpush.msrb.mxu0 %v4979_v58  ;;  %5284 = vmatpush.msrb.mxu2 %v4956_v44  ;;  %v5003_v55 = vld [vmem:[%s13501_s4 + $0x258] sm:$0xff]  ;;  %v4358_v29 = vld [vmem:[#allocation3 + $0x50] sm:$0xff]  ;;  %v4359_v2 = vld [vmem:[#allocation3 + $0x60] sm:$0xff] }
 0x73c   :  { %4322 = vst [vmem:[#allocation3 + $0x1e9] sm:$0xff] %v4180_v34  ;;  %5911 = vmatpush.msrb.mxu1 %v5004_v36  ;;  %v4486_v12 = vld [vmem:[#allocation3 + $0x52] sm:$0xff]  ;;  %v4953_v34 = vld [vmem:[%s13501_s4 + $0xc8] sm:$0xff] }
 0x73d   :  { %4323 = vst [vmem:[#allocation3 + $0x1f9] sm:$0xff] %v4181_v54  ;;  %5712 = vmatpush.msrb.mxu0 %v4978_v40  ;;  %5285 = vmatpush.msrb.mxu2 %v4955_v50  ;;  %v5002_v25 = vld [vmem:[%s13501_s4 + $0x250] sm:$0xff]  ;;  %v4360_v54 = vld [vmem:[#allocation3 + $0x68] sm:$0xff]  ;;  %v4952_v40 = vld [vmem:[%s13501_s4 + $0xc0] sm:$0xff] }
 0x73e   :  { %4324 = vst [vmem:[#allocation3 + $0x201] sm:$0xff] %v4182_v11  ;;  %5912 = vmatpush.msrb.mxu1 %v5003_v55  ;;  %v4488_v21 = vld [vmem:[#allocation3 + $0x6a] sm:$0xff]  ;;  %v4361_v11 = vld [vmem:[#allocation3 + $0x78] sm:$0xff] }
 0x73f   :  { %4325 = vst [vmem:[#allocation3 + $0x211] sm:$0xff] %v4183_v45  ;;  %5713 = vmatpush.msrb.mxu0 %v4977_v6  ;;  %5286 = vmatpush.msrb.mxu2 %v4954_v38  ;;  %v4489_v45 = vld [vmem:[#allocation3 + $0x7a] sm:$0xff]  ;;  %v5001_v14 = vld [vmem:[%s13501_s4 + $0x248] sm:$0xff]  ;;  %v4363_v6 = vld [vmem:[#allocation3 + $0x90] sm:$0xff] }
 0x740   :  { %4326 = vst [vmem:[#allocation3 + $0x219] sm:$0xff] %v4184_v24  ;;  %v10833_v52 = vld [vmem:[#allocation3 + $0x1c8] sm:$0xff]  ;;  %5913 = vmatpush.msrb.mxu1 %v5002_v25  ;;  %v4362_v24 = vld [vmem:[#allocation3 + $0x80] sm:$0xff]  ;;  %v4999_v17 = vld [vmem:[%s13501_s4 + $0x238] sm:$0xff] }
 0x741   :  { %4327 = vst [vmem:[#allocation3 + $0x229] sm:$0xff] %v4185_v43  ;;  %5714 = vmatpush.msrb.mxu0 %v4976_v4  ;;  %5094 = vmatmul.f32.gmra.mxu1 %v4353_v42  ;;  %v10852_v7 = vld [vmem:[#allocation3 + $0x1d0] sm:$0xff]  ;;  %v4490_v43 = vld [vmem:[#allocation3 + $0x82] sm:$0xff]  ;;  %v4951_v4 = vld [vmem:[%s13501_s4 + $0xb8] sm:$0xff] }
 0x742   :  { %4328 = vst [vmem:[#allocation3 + $0x231] sm:$0xff] %v4186_v57  ;;  %5190 = vmatmul.f32.gmra.mxu2 %v10833_v52  ;;  %5512 = vmatmul.f32.gmra.mxu3 %v4481_v27  ;;  %v10863_v16 = vld [vmem:[#allocation3 + $0x1e0] sm:$0xff]  ;;  %v4493_v44 = vld [vmem:[#allocation3 + $0xaa] sm:$0xff]  ;;  %v4369_v50 = vld [vmem:[#allocation3 + $0xd8] sm:$0xff] }
 0x743   :  { %4329 = vst [vmem:[#allocation3 + $0x241] sm:$0xff] %v4187_v20  ;;  %5715 = vmatmul.f32.vlgmr.msrb.gmra.mxu0 %v4353_v42  ;;  %v10873_v47 = vld [vmem:[#allocation3 + $0x1e8] sm:$0xff]  ;;  %5287 = vmatpush.msrb.mxu2 %v4953_v34  ;;  %v4491_v20 = vld [vmem:[#allocation3 + $0x92] sm:$0xff]  ;;  %v5000_v42 = vld [vmem:[%s13501_s4 + $0x240] sm:$0xff] }
 0x744   :  { %4330 = vst [vmem:[#allocation3 + $0x249] sm:$0xff] %v4188_v26  ;;  %v10876_v9 = vld [vmem:[#allocation3 + $0x1f8] sm:$0xff]  ;;  %5914 = vmatpush.msrb.mxu1 %v5001_v14 }
 0x745   :  { %4331 = vst [vmem:[#allocation3 + $0x259] sm:$0xff] %v4189_v10  ;;  %v10885_v48 = vld [vmem:[#allocation3 + $0x200] sm:$0xff]  ;;  %5288 = vmatpush.msrb.mxu2 %v4952_v40  ;;  %v4364_v26 = vld [vmem:[#allocation3 + $0x98] sm:$0xff] }
 0x746   :  { %4332 = vst [vmem:[#allocation3 + $0x261] sm:$0xff] %v4190_v1  ;;  %v10888_v13 = vld [vmem:[#allocation3 + $0x210] sm:$0xff]  ;;  %5915 = vmatpush.msrb.mxu1 %v5000_v42  ;;  %v4492_v10 = vld [vmem:[#allocation3 + $0x9a] sm:$0xff]  ;;  %v4365_v1 = vld [vmem:[#allocation3 + $0xa8] sm:$0xff] }
 0x747   :  { %4333 = vst [vmem:[#allocation3 + $0x271] sm:$0xff] %v4191_v22  ;;  %v10897_v58 = vld [vmem:[#allocation3 + $0x218] sm:$0xff]  ;;  %5289 = vmatpush.msrb.mxu2 %v4951_v4 }
 0x748   :  { %4334 = vst [vmem:[#allocation3 + $0x279] sm:$0xff] %v4192_v35  ;;  %v10900_v53 = vld [vmem:[#allocation3 + $0x228] sm:$0xff]  ;;  %v4950_v35 = vld [vmem:[%s13501_s4 + $0xb0] sm:$0xff]  ;;  %5916 = vmatpush.msrb.mxu1 %v4999_v17  ;;  %v4947_v14 = vld [vmem:[%s13501_s4 + $0x98] sm:$0xff] }
 0x749   :  { %4335 = vst [vmem:[#allocation3 + $0x289] sm:$0xff] %v4193_v33  ;;  %5097 = vmatmul.f32.gmra.mxu1 %v4354_v49  ;;  %v10909_v62 = vld [vmem:[#allocation3 + $0x230] sm:$0xff]  ;;  %5290 = vmatpush.msrb.mxu2 %v4950_v35  ;;  %v4372_v42 = vld [vmem:[#allocation3 + $0xf8] sm:$0xff] }
 0x74a   :  { %4336 = vst [vmem:[#allocation3 + $0x291] sm:$0xff] %v4194_v3  ;;  %5193 = vmatmul.f32.gmra.mxu2 %v10852_v7  ;;  %5515 = vmatmul.f32.gmra.mxu3 %v4482_v59  ;;  %v10912_v57 = vld [vmem:[#allocation3 + $0x240] sm:$0xff]  ;;  %v4366_v33 = vld [vmem:[#allocation3 + $0xb0] sm:$0xff]  ;;  %v4949_v59 = vld [vmem:[%s13501_s4 + $0xa8] sm:$0xff] }
 0x74b   :  { %4337 = vst [vmem:[#allocation3 + $0x2a1] sm:$0xff] %v4195_v23  ;;  %5718 = vmatmul.f32.gmra.mxu0 %v4354_v49  ;;  %v10921_v27 = vld [vmem:[#allocation3 + $0x248] sm:$0xff]  ;;  %v4494_v23 = vld [vmem:[#allocation3 + $0xb2] sm:$0xff]  ;;  %5291 = vmatpush.msrb.mxu2 %v4949_v59 }
 0x74c   :  { %4338 = vst [vmem:[#allocation3 + $0x2a9] sm:$0xff] %v4196_v18  ;;  %v10924_v22 = vld [vmem:[#allocation3 + $0x258] sm:$0xff] }
 0x74d   :  { %4339 = vst [vmem:[#allocation3 + $0x2b9] sm:$0xff] %v4197_v56  ;;  %v10933_v3 = vld [vmem:[#allocation3 + $0x260] sm:$0xff]  ;;  %v4499_v40 = vld [vmem:[#allocation3 + $0xf2] sm:$0xff] }
 0x74e   :  { %4340 = vst [vmem:[#allocation3 + $0x2c1] sm:$0xff] %v4198_v15  ;;  %v4367_v56 = vld [vmem:[#allocation3 + $0xc0] sm:$0xff]  ;;  %v10938_v49 = vld [vmem:[#allocation3 + $0x270] sm:$0xff]  ;;  %v4995_v59 = vld [vmem:[%s13501_s4 + $0x218] sm:$0xff] }
 0x74f   :  { %4341 = vst [vmem:[#allocation3 + $0x2d1] sm:$0xff] %v4199_v0  ;;  %v4495_v15 = vld [vmem:[#allocation3 + $0xc2] sm:$0xff]  ;;  %v4998_v0 = vld [vmem:[%s13501_s4 + $0x230] sm:$0xff] }
 0x750   :  { %4342 = vst [vmem:[#allocation3 + $0x2d9] sm:$0xff] %v4200_v31  ;;  %5917 = vmatpush.msrb.mxu1 %v4998_v0  ;;  %v10964_v36 = vld [vmem:[#allocation3 + $0x288] sm:$0xff] }
 0x751   :  { %4343 = vst [vmem:[#allocation3 + $0x2e9] sm:$0xff] %v4201_v19  ;;  %5100 = vmatmul.f32.gmra.mxu1 %v4355_v63 }
 0x752   :  { %4344 = vst [vmem:[#allocation3 + $0x2f1] sm:$0xff] %v4202_v46  ;;  %5196 = vmatmul.f32.gmra.mxu2 %v10863_v16  ;;  %5518 = vmatmul.f32.gmra.mxu3 %v4483_v8 }
 0x753   :  { %4345 = vst [vmem:[#allocation3 + $0x301] sm:$0xff] %v4203_v41  ;;  %5721 = vmatmul.f32.gmra.mxu0 %v4355_v63  ;;  %v4368_v41 = vld [vmem:[#allocation3 + $0xc8] sm:$0xff] }
 0x754   :  { %4346 = vst [vmem:[#allocation3 + $0x309] sm:$0xff] %v4204_v60  ;;  %v10953_v60 = vld [vmem:[#allocation3 + $0x278] sm:$0xff] }
 0x755   :  { %4347 = vst [vmem:[#allocation3 + $0x319] sm:$0xff] %v4205_v61  ;;  %v4496_v61 = vld [vmem:[#allocation3 + $0xca] sm:$0xff] }
 0x756   :  { %4348 = vst [vmem:[#allocation3 + $0x321] sm:$0xff] %v4206_v39 }
 0x757   :  { %4349 = vst [vmem:[#allocation3 + $0x331] sm:$0xff] %v4207_v28 }
 0x759   :  { %5103 = vmatmul.f32.gmra.mxu1 %v4356_v32 }
 0x75a   :  { %5199 = vmatmul.f32.gmra.mxu2 %v10873_v47  ;;  %5521 = vmatmul.f32.gmra.mxu3 %v4484_v30  ;;  %v4948_v30 = vld [vmem:[%s13501_s4 + $0xa0] sm:$0xff] }
 0x75b   :  { %5724 = vmatmul.f32.gmra.mxu0 %v4356_v32  ;;  %v4497_v32 = vld [vmem:[#allocation3 + $0xda] sm:$0xff]  ;;  %5292 = vmatpush.msrb.mxu2 %v4948_v30 }
 0x75c   :  { %v11037_v30 = vld [vmem:[#allocation3 + $0x2c0] sm:$0xff] }
 0x75d   :  { %5293 = vmatpush.msrb.mxu2 %v4947_v14  ;;  %v4375_v14 = vld [vmem:[#allocation3 + $0x120] sm:$0xff] }
 0x761   :  { %5106 = vmatmul.f32.gmra.mxu1 %v4357_v51 }
 0x762   :  { %5202 = vmatmul.f32.gmra.mxu2 %v10876_v9  ;;  %5524 = vmatmul.f32.gmra.mxu3 %v4485_v37 }
 0x763   :  { %5727 = vmatmul.f32.gmra.mxu0 %v4357_v51  ;;  %v4997_v51 = vld [vmem:[%s13501_s4 + $0x228] sm:$0xff] }
 0x764   :  { %5918 = vmatpush.msrb.mxu1 %v4997_v51  ;;  %v4502_v51 = vld [vmem:[#allocation3 + $0x112] sm:$0xff] }
 0x769   :  { %5109 = vmatmul.f32.gmra.mxu1 %v4358_v29 }
 0x76a   :  { %5205 = vmatmul.f32.gmra.mxu2 %v10885_v48  ;;  %5527 = vmatmul.f32.gmra.mxu3 %v4486_v12  ;;  %v4370_v12 = vld [vmem:[#allocation3 + $0xe0] sm:$0xff] }
 0x76b   :  { %5730 = vmatmul.f32.gmra.mxu0 %v4358_v29 }
 0x771   :  { %5112 = vmatmul.f32.gmra.mxu1 %v4359_v2 }
 0x772   :  { %5208 = vmatmul.f32.gmra.mxu2 %v10888_v13  ;;  %5530 = vmatmul.f32.gmra.mxu3 %v4487_v5  ;;  %v4498_v5 = vld [vmem:[#allocation3 + $0xe2] sm:$0xff] }
 0x773   :  { %5733 = vmatmul.f32.gmra.mxu0 %v4359_v2  ;;  %v10981_v2 = vld [vmem:[#allocation3 + $0x290] sm:$0xff] }
 0x779   :  { %5115 = vmatmul.f32.gmra.mxu1 %v4360_v54 }
 0x77a   :  { %5211 = vmatmul.f32.gmra.mxu2 %v10897_v58  ;;  %5533 = vmatmul.f32.gmra.mxu3 %v4488_v21 }
 0x77b   :  { %5736 = vmatmul.f32.gmra.mxu0 %v4360_v54 }
 0x781   :  { %5118 = vmatmul.f32.gmra.mxu1 %v4361_v11 }
 0x782   :  { %5214 = vmatmul.f32.gmra.mxu2 %v10900_v53  ;;  %5536 = vmatmul.f32.gmra.mxu3 %v4489_v45  ;;  %v10992_v45 = vld [vmem:[#allocation3 + $0x2a0] sm:$0xff] }
 0x783   :  { %5739 = vmatmul.f32.gmra.mxu0 %v4361_v11  ;;  %v4371_v11 = vld [vmem:[#allocation3 + $0xf0] sm:$0xff] }
 0x789   :  { %5121 = vmatmul.f32.gmra.mxu1 %v4362_v24 }
 0x78a   :  { %5217 = vmatmul.f32.gmra.mxu2 %v10909_v62  ;;  %5539 = vmatmul.f32.gmra.mxu3 %v4490_v43 }
 0x78b   :  { %5742 = vmatmul.f32.gmra.mxu0 %v4362_v24  ;;  %v4996_v24 = vld [vmem:[%s13501_s4 + $0x220] sm:$0xff] }
 0x78c   :  { %5919 = vmatpush.msrb.mxu1 %v4996_v24  ;;  %v11048_v24 = vld [vmem:[#allocation3 + $0x2d0] sm:$0xff] }
 0x78e   :  { %5920 = vmatpush.msrb.mxu1 %v4995_v59 }
 0x791   :  { %5124 = vmatmul.f32.gmra.mxu1 %v4363_v6 }
 0x792   :  { %5220 = vmatmul.f32.gmra.mxu2 %v10912_v57  ;;  %5542 = vmatmul.f32.gmra.mxu3 %v4491_v20 }
 0x793   :  { %5745 = vmatmul.f32.gmra.mxu0 %v4363_v6 }
 0x799   :  { %5127 = vmatmul.f32.gmra.mxu1 %v4364_v26 }
 0x79a   :  { %5223 = vmatmul.f32.gmra.mxu2 %v10921_v27  ;;  %5545 = vmatmul.f32.gmra.mxu3 %v4492_v10  ;;  %v4500_v10 = vld [vmem:[#allocation3 + $0xfa] sm:$0xff] }
 0x79b   :  { %5748 = vmatmul.f32.gmra.mxu0 %v4364_v26  ;;  %v11009_v26 = vld [vmem:[#allocation3 + $0x2a8] sm:$0xff] }
 0x7a1   :  { %5130 = vmatmul.f32.gmra.mxu1 %v4365_v1 }
 0x7a2   :  { %5226 = vmatmul.f32.gmra.mxu2 %v10924_v22  ;;  %5548 = vmatmul.f32.gmra.mxu3 %v4493_v44 }
 0x7a3   :  { %5751 = vmatmul.f32.gmra.mxu0 %v4365_v1 }
 0x7a9   :  { %5133 = vmatmul.f32.gmra.mxu1 %v4366_v33 }
 0x7aa   :  { %5229 = vmatmul.f32.gmra.mxu2 %v10933_v3  ;;  %5551 = vmatmul.f32.gmra.mxu3 %v4494_v23  ;;  %v11020_v23 = vld [vmem:[#allocation3 + $0x2b8] sm:$0xff] }
 0x7ab   :  { %5754 = vmatmul.f32.gmra.mxu0 %v4366_v33  ;;  %v4373_v33 = vld [vmem:[#allocation3 + $0x108] sm:$0xff] }
 0x7ae   :  { %v10936_v18 = vpop.f32.mrf.mxu1 }
 0x7b1   :  { %5136 = vmatmul.f32.gmra.mxu1 %v4367_v56 }
 0x7b2   :  { %5232 = vmatmul.f32.gmra.mxu2 %v10938_v49  ;;  %5554 = vmatmul.f32.gmra.mxu3 %v4495_v15  ;;  %v4946_v15 = vld [vmem:[%s13501_s4 + $0x90] sm:$0xff] }
 0x7b3   :  { %5757 = vmatmul.f32.gmra.mxu0 %v4367_v56  ;;  %v4501_v56 = vld [vmem:[#allocation3 + $0x10a] sm:$0xff]  ;;  %5294 = vmatpush.msrb.mxu2 %v4946_v15 }
 0x7b5   :  { %v10947_v31 = vpop.f32.mrf.mxu2  ;;  %v10949_v19 = vpop.f32.mrf.mxu3 }
 0x7b6   :  { %13641 = vst [vmem:[#allocation4_spill] sm:$0xff] %v10947_v31  ;;  %v10951_v46 = vpop.f32.mrf.mxu1  ;;  %v11093_v31 = vld [vmem:[#allocation3 + $0x2f0] sm:$0xff] }
 0x7b9   :  { %5139 = vmatmul.f32.gmra.mxu1 %v4368_v41 }
 0x7ba   :  { %5235 = vmatmul.f32.gmra.mxu2 %v10953_v60  ;;  %5557 = vmatmul.f32.gmra.mxu3 %v4496_v61 }
 0x7bb   :  { %5760 = vmatmul.f32.gmra.mxu0 %v4368_v41 }
 0x7bd   :  { %v10956_v63 = vpop.f32.mrf.mxu2  ;;  %v10958_v39 = vpop.f32.mrf.mxu3 }
 0x7be   :  { %13642 = vst [vmem:[#allocation5_spill] sm:$0xff] %v10956_v63  ;;  %v10960_v8 = vpop.f32.mrf.mxu1 }
 0x7c0   :  { %v10962_v28 = vpop.f32.mrf.mxu0 }
 0x7c1   :  { %5142 = vmatmul.f32.gmra.mxu1 %v4369_v50 }
 0x7c2   :  { %5238 = vmatmul.f32.gmra.mxu2 %v10964_v36  ;;  %5560 = vmatmul.f32.gmra.mxu3 %v4497_v32  ;;  %v4374_v32 = vld [vmem:[#allocation3 + $0x110] sm:$0xff] }
 0x7c3   :  { %5763 = vmatmul.f32.gmra.mxu0 %v4369_v50 }
 0x7c5   :  { %v10973_v37 = vpop.f32.mrf.mxu2  ;;  %v10975_v38 = vpop.f32.mrf.mxu3 }
 0x7c6   :  { %13643 = vst [vmem:[#allocation6_spill] sm:$0xff] %v10973_v37  ;;  %v10977_v55 = vpop.f32.mrf.mxu1 }
 0x7c8   :  { %v10979_v29 = vpop.f32.mrf.mxu0 }
 0x7c9   :  { %5145 = vmatmul.f32.gmra.mxu1 %v4370_v12 }
 0x7ca   :  { %5241 = vmatmul.f32.gmra.mxu2 %v10981_v2  ;;  %5563 = vmatmul.f32.gmra.mxu3 %v4498_v5 }
 0x7cb   :  { %5766 = vmatmul.f32.gmra.mxu0 %v4370_v12 }
 0x7cd   :  { %v10984_v34 = vpop.f32.mrf.mxu2  ;;  %v10986_v25 = vpop.f32.mrf.mxu3 }
 0x7ce   :  { %13644 = vst [vmem:[#allocation7_spill] sm:$0xff] %v10984_v34  ;;  %v10988_v54 = vpop.f32.mrf.mxu1 }
 0x7d0   :  { %v10990_v21 = vpop.f32.mrf.mxu0 }
 0x7d1   :  { %5148 = vmatmul.f32.gmra.mxu1 %v4371_v11 }
 0x7d2   :  { %5244 = vmatmul.f32.gmra.mxu2 %v10992_v45  ;;  %5566 = vmatmul.f32.gmra.mxu3 %v4499_v40 }
 0x7d3   :  { %5769 = vmatmul.f32.gmra.mxu0 %v4371_v11 }
 0x7d5   :  { %v11001_v43 = vpop.f32.mrf.mxu2  ;;  %v11003_v6 = vpop.f32.mrf.mxu3 }
 0x7d6   :  { %13645 = vst [vmem:[#allocation9_spill] sm:$0xff] %v11001_v43  ;;  %v11005_v20 = vpop.f32.mrf.mxu1  ;;  %v4505_v43 = vld [vmem:[#allocation3 + $0x13a] sm:$0xff] }
 0x7d8   :  { %v11007_v4 = vpop.f32.mrf.mxu0 }
 0x7d9   :  { %5151 = vmatmul.f32.gmra.mxu1 %v4372_v42 }
 0x7da   :  { %5247 = vmatmul.f32.gmra.mxu2 %v11009_v26  ;;  %5569 = vmatmul.f32.gmra.mxu3 %v4500_v10  ;;  %v4945_v10 = vld [vmem:[%s13501_s4 + $0x88] sm:$0xff] }
 0x7db   :  { %5772 = vmatmul.f32.gmra.mxu0 %v4372_v42  ;;  %v4503_v42 = vld [vmem:[#allocation3 + $0x122] sm:$0xff]  ;;  %5295 = vmatpush.msrb.mxu2 %v4945_v10 }
 0x7dd   :  { %v11012_v1 = vpop.f32.mrf.mxu2  ;;  %v11014_v44 = vpop.f32.mrf.mxu3 }
 0x7de   :  { %13646 = vst [vmem:[#allocation10_spill] sm:$0xff] %v11012_v1  ;;  %v11016_v35 = vpop.f32.mrf.mxu1  ;;  %v11076_v1 = vld [vmem:[#allocation3 + $0x2e8] sm:$0xff] }
 0x7df   :  { %13647 = vst [vmem:[#allocation12_spill] sm:$0xff] %v11014_v44 }
 0x7e0   :  { %13648 = vst [vmem:[#allocation14_spill] sm:$0xff] %v11016_v35  ;;  %v11018_v17 = vpop.f32.mrf.mxu0 }
 0x7e1   :  { %5154 = vmatmul.f32.gmra.mxu1 %v4373_v33 }
 0x7e2   :  { %5250 = vmatmul.f32.gmra.mxu2 %v11020_v23  ;;  %5572 = vmatmul.f32.gmra.mxu3 %v4501_v56 }
 0x7e3   :  { %5775 = vmatmul.f32.gmra.mxu0 %v4373_v33  ;;  %v4994_v33 = vld [vmem:[%s13501_s4 + $0x210] sm:$0xff] }
 0x7e4   :  { %5921 = vmatpush.msrb.mxu1 %v4994_v33 }
 0x7e5   :  { %v11029_v0 = vpop.f32.mrf.mxu2  ;;  %v11031_v41 = vpop.f32.mrf.mxu3 }
 0x7e6   :  { %13649 = vst [vmem:[#allocation15_spill] sm:$0xff] %v11029_v0  ;;  %v11033_v61 = vpop.f32.mrf.mxu1  ;;  %v4377_v0 = vld [vmem:[#allocation3 + $0x138] sm:$0xff] }
 0x7e7   :  { %13650 = vst [vmem:[#allocation16_spill] sm:$0xff] %v11031_v41  ;;  %v4819_v41 = vld [vmem:[#allocation3 + $0x111] sm:$0xff] }
 0x7e8   :  { %13651 = vst [vmem:[#allocation17_spill] sm:$0xff] %v11033_v61  ;;  %v11035_v50 = vpop.f32.mrf.mxu0 }
 0x7e9   :  { %13652 = vst [vmem:[#allocation18_spill] sm:$0xff] %v11035_v50  ;;  %5157 = vmatmul.f32.gmra.mxu1 %v4374_v32 }
 0x7ea   :  { %5253 = vmatmul.f32.gmra.mxu2 %v11037_v30  ;;  %5575 = vmatmul.f32.gmra.mxu3 %v4502_v51  ;;  %v4376_v51 = vld [vmem:[#allocation3 + $0x128] sm:$0xff] }
 0x7eb   :  { %5778 = vmatmul.f32.gmra.mxu0 %v4374_v32 }
 0x7ed   :  { %v11040_v12 = vpop.f32.mrf.mxu2  ;;  %v11042_v5 = vpop.f32.mrf.mxu3 }
 0x7ee   :  { %13653 = vst [vmem:[#allocation19_spill] sm:$0xff] %v11040_v12  ;;  %v11044_v11 = vpop.f32.mrf.mxu1  ;;  %v4504_v12 = vld [vmem:[#allocation3 + $0x12a] sm:$0xff] }
 0x7ef   :  { %13654 = vst [vmem:[#allocation20_spill] sm:$0xff] %v11042_v5  ;;  %v4512_v5 = vld [vmem:[#allocation3 + $0x1ba] sm:$0xff] }
 0x7f0   :  { %13655 = vst [vmem:[#allocation21_spill] sm:$0xff] %v11044_v11  ;;  %v11046_v40 = vpop.f32.mrf.mxu0  ;;  %v5038_v11 = vld [vmem:[%s13501_s4 + $0x370] sm:$0xff] }
 0x7f1   :  { %13656 = vst [vmem:[#allocation22_spill] sm:$0xff] %v11046_v40  ;;  %5160 = vmatmul.f32.gmra.mxu1 %v4375_v14 }
 0x7f2   :  { %5256 = vmatmul.f32.gmra.mxu2 %v11048_v24  ;;  %5578 = vmatmul.f32.gmra.mxu3 %v4503_v42  ;;  %v11065_v42 = vld [vmem:[#allocation3 + $0x2d8] sm:$0xff] }
 0x7f3   :  { %5781 = vmatmul.f32.gmra.mxu0 %v4375_v14 }
 0x7f5   :  { %v11057_v56 = vpop.f32.mrf.mxu2  ;;  %v11059_v15 = vpop.f32.mrf.mxu3 }
 0x7f6   :  { %13657 = vst [vmem:[#allocation23_spill] sm:$0xff] %v11057_v56  ;;  %v11061_v59 = vpop.f32.mrf.mxu1 }
 0x7f7   :  { %13658 = vst [vmem:[#allocation24_spill] sm:$0xff] %v11059_v15 }
 0x7f8   :  { %13659 = vst [vmem:[#allocation25_spill] sm:$0xff] %v11061_v59  ;;  %v11063_v32 = vpop.f32.mrf.mxu0  ;;  %v4509_v59 = vld [vmem:[#allocation3 + $0x16a] sm:$0xff] }
 0x7f9   :  { %13660 = vst [vmem:[#allocation26_spill] sm:$0xff] %v11063_v32  ;;  %5163 = vmatmul.f32.gmra.mxu1 %v4376_v51  ;;  %v4511_v32 = vld [vmem:[#allocation3 + $0x1b2] sm:$0xff] }
 0x7fa   :  { %5259 = vmatmul.f32.gmra.mxu2 %v11065_v42  ;;  %5581 = vmatmul.f32.gmra.mxu3 %v4504_v12  ;;  %v4944_v12 = vld [vmem:[%s13501_s4 + $0x80] sm:$0xff] }
 0x7fb   :  { %5784 = vmatmul.f32.gmra.mxu0 %v4376_v51  ;;  %5296 = vmatpush.msrb.mxu2 %v4944_v12  ;;  %v4993_v51 = vld [vmem:[%s13501_s4 + $0x208] sm:$0xff] }
 0x7fc   :  { %5922 = vmatpush.msrb.mxu1 %v4993_v51 }
 0x7fd   :  { %v11068_v14 = vpop.f32.mrf.mxu2  ;;  %v11070_v10 = vpop.f32.mrf.mxu3 }
 0x7fe   :  { %13661 = vst [vmem:[#allocation8_spill] sm:$0xff] %v11068_v14  ;;  %v11072_v33 = vpop.f32.mrf.mxu1 }
 0x7ff   :  { %13662 = vst [vmem:[#allocation11_spill] sm:$0xff] %v11070_v10 }
 0x800   :  { %13663 = vst [vmem:[#allocation13_spill] sm:$0xff] %v11072_v33  ;;  %v11074_v56 = vpop.f32.mrf.mxu0  ;;  %v4506_v33 = vld [vmem:[#allocation3 + $0x142] sm:$0xff] }
 0x801   :  { %13664 = vst [vmem:[#allocation27_spill] sm:$0xff] %v11074_v56  ;;  %5166 = vmatmul.f32.gmra.mxu1 %v4377_v0  ;;  %v4380_v56 = vld [vmem:[#allocation3 + $0x158] sm:$0xff] }
 0x802   :  { %5262 = vmatmul.f32.gmra.mxu2 %v11076_v1  ;;  %5584 = vmatmul.f32.gmra.mxu3 %v4505_v43  ;;  %v4378_v43 = vld [vmem:[#allocation3 + $0x140] sm:$0xff] }
 0x803   :  { %5787 = vmatmul.f32.gmra.mxu0 %v4377_v0 }
 0x805   :  { %v11085_v14 = vpop.f32.mrf.mxu2  ;;  %v11087_v34 = vpop.f32.mrf.mxu3 }
 0x806   :  { %13665 = vst [vmem:[#allocation28_spill] sm:$0xff] %v11085_v14  ;;  %v11089_v37 = vpop.f32.mrf.mxu1 }
 0x807   :  { %13666 = vst [vmem:[#allocation29_spill] sm:$0xff] %v11087_v34  ;;  %v5039_v34 = vld [vmem:[%s13501_s4 + $0x378] sm:$0xff] }
 0x808   :  { %13667 = vst [vmem:[#allocation30_spill] sm:$0xff] %v11089_v37  ;;  %v11091_v63 = vpop.f32.mrf.mxu0  ;;  %v4379_v37 = vld [vmem:[#allocation3 + $0x150] sm:$0xff]  ;;  %6326 = vmatpush.msra.mxu3 %v5039_v34  ;;  %v11124_v34 = vld [vmem:[#allocation3 + $0x308] sm:$0xff] }
 0x809   :  { %13668 = vst [vmem:[#allocation31_spill] sm:$0xff] %v11091_v63  ;;  %5169 = vmatmul.f32.gmra.mxu1 %v4378_v43  ;;  %v4992_v63 = vld [vmem:[%s13501_s4 + $0x200] sm:$0xff] }
 0x80a   :  { %5265 = vmatmul.f32.gmra.mxu2 %v11093_v31  ;;  %5587 = vmatmul.f32.gmra.mxu3 %v4506_v33  ;;  %v11110_v33 = vld [vmem:[#allocation3 + $0x300] sm:$0xff] }
 0x80b   :  { %5790 = vmatmul.f32.gmra.mxu0 %v4378_v43  ;;  %v4507_v43 = vld [vmem:[#allocation3 + $0x152] sm:$0xff]  ;;  %5923 = vmatpush.msrb.mxu1 %v4992_v63 }
 0x80c   :  { %v5055_v63 = vld [vmem:[%s13501_s4 + $0x3f8] sm:$0xff]  ;;  %6327 = vmatpush.msra.mxu3 %v5038_v11  ;;  %v4608_v11 = vld [vmem:[#allocation3 + $0x21] sm:$0xff] }
 0x80d   :  { %v11096_v0 = vpop.f32.mrf.mxu2  ;;  %v11098_v12 = vpop.f32.mrf.mxu3  ;;  %6535 = vmatpush.msra.mxu0 %v5055_v63 }
 0x80e   :  { %13669 = vst [vmem:[#allocation32_spill] sm:$0xff] %v11096_v0  ;;  %v11100_v51 = vpop.f32.mrf.mxu1  ;;  %v5023_v0 = vld [vmem:[%s13501_s4 + $0x2f8] sm:$0xff] }
 0x80f   :  { %13670 = vst [vmem:[#allocation33_spill] sm:$0xff] %v11098_v12  ;;  %6117 = vmatpush.msra.mxu2 %v5023_v0 }
 0x810   :  { %13671 = vst [vmem:[#allocation34_spill] sm:$0xff] %v11100_v51  ;;  %v11102_v14 = vpop.f32.mrf.mxu0 }
 0x811   :  { %13672 = vst [vmem:[#allocation35_spill] sm:$0xff] %v11102_v14  ;;  %5172 = vmatmul.f32.gmra.mxu1 %v4379_v37 }
 0x812   :  { %5268 = vmatmul.f32.gmra.mxu2 %v11110_v33  ;;  %5590 = vmatmul.f32.gmra.mxu3 %v4507_v43  ;;  %v4508_v43 = vld [vmem:[#allocation3 + $0x15a] sm:$0xff] }
 0x813   :  { %5793 = vmatmul.f32.gmra.mxu0 %v4379_v37 }
 0x815   :  { %v11116_v51 = vpop.f32.mrf.mxu2  ;;  %v11118_v12 = vpop.f32.mrf.mxu3 }
 0x816   :  { %13673 = vst [vmem:[#allocation36_spill] sm:$0xff] %v11116_v51  ;;  %v11120_v14 = vpop.f32.mrf.mxu1 }
 0x817   :  { %13674 = vst [vmem:[#allocation37_spill] sm:$0xff] %v11118_v12  ;;  %v4381_v12 = vld [vmem:[#allocation3 + $0x168] sm:$0xff] }
 0x818   :  { %13675 = vst [vmem:[#allocation38_spill] sm:$0xff] %v11120_v14  ;;  %v11122_v10 = vpop.f32.mrf.mxu0 }
 0x819   :  { %13676 = vst [vmem:[#allocation39_spill] sm:$0xff] %v11122_v10  ;;  %5175 = vmatmul.f32.gmra.mxu1 %v4380_v56  ;;  %v11138_v10 = vld [vmem:[#allocation3 + $0x318] sm:$0xff] }
 0x81a   :  { %5271 = vmatmul.f32.gmra.mxu2 %v11124_v34  ;;  %5593 = vmatmul.f32.gmra.mxu3 %v4508_v43 }
 0x81b   :  { %5796 = vmatmul.f32.gmra.mxu0 %v4380_v56  ;;  %v11144_v56 = vld [vmem:[%s13501_s4 + $0x478] sm:$0xff] }
 0x81c   :  { %6744 = vmatpush.msra.mxu1 %v11144_v56 }
 0x81d   :  { %v11130_v37 = vpop.f32.mrf.mxu2  ;;  %v11132_v0 = vpop.f32.mrf.mxu3 }
 0x81e   :  { %13677 = vst [vmem:[#allocation40_spill] sm:$0xff] %v11130_v37  ;;  %v11134_v51 = vpop.f32.mrf.mxu1 }
 0x81f   :  { %13678 = vst [vmem:[#allocation41_spill] sm:$0xff] %v11132_v0  ;;  %v4382_v0 = vld [vmem:[#allocation3 + $0x170] sm:$0xff] }
 0x820   :  { %13679 = vst [vmem:[#allocation42_spill] sm:$0xff] %v11134_v51  ;;  %v11136_v14 = vpop.f32.mrf.mxu0 }
 0x821   :  { %13680 = vst [vmem:[#allocation43_spill] sm:$0xff] %v11136_v14  ;;  %5178 = vmatmul.f32.gmra.mxu1 %v4381_v12  ;;  %v11155_v14 = vld [vmem:[#allocation3 + $0x320] sm:$0xff] }
 0x822   :  { %5274 = vmatmul.f32.gmra.mxu2 %v11138_v10  ;;  %5596 = vmatmul.f32.gmra.mxu3 %v4509_v59  ;;  %v4510_v59 = vld [vmem:[#allocation3 + $0x172] sm:$0xff] }
 0x823   :  { %5799 = vmatmul.f32.gmra.mxu0 %v4381_v12 }
 0x825   :  { %v11147_v43 = vpop.f32.mrf.mxu2  ;;  %v11149_v63 = vpop.f32.mrf.mxu3 }
 0x826   :  { %13681 = vst [vmem:[#allocation44_spill] sm:$0xff] %v11147_v43  ;;  %v11151_v37 = vpop.f32.mrf.mxu1 }
 0x827   :  { %13682 = vst [vmem:[#allocation45_spill] sm:$0xff] %v11149_v63  ;;  %v4415_v63 = vld [vmem:[#allocation3 + $0x1] sm:$0xff] }
 0x828   :  { %13683 = vst [vmem:[#allocation46_spill] sm:$0xff] %v11151_v37  ;;  %v11153_v51 = vpop.f32.mrf.mxu0 }
 0x829   :  { %13684 = vst [vmem:[#allocation47_spill] sm:$0xff] %v11153_v51  ;;  %5181 = vmatmul.f32.gmra.mxu1 %v4382_v0  ;;  %v4607_v51 = vld [vmem:[#allocation3 + $0x19] sm:$0xff] }
 0x82a   :  { %5277 = vmatmul.f32.gmra.mxu2 %v11155_v14  ;;  %5599 = vmatmul.f32.gmra.mxu3 %v4510_v59  ;;  %v5022_v59 = vld [vmem:[%s13501_s4 + $0x2f0] sm:$0xff] }
 0x82b   :  { %5802 = vmatmul.f32.gmra.mxu0 %v4382_v0  ;;  %v4573_v0 = vld [vmem:[#allocation3 + $0x180] sm:$0xff]  ;;  %6118 = vmatpush.msra.mxu2 %v5022_v59 }
 0x82d   :  { %v11158_v12 = vpop.f32.mrf.mxu2  ;;  %v11160_v15 = vpop.f32.mrf.mxu3 }
 0x82e   :  { %13685 = vst [vmem:[#allocation48_spill] sm:$0xff] %v11158_v12  ;;  %v11162_v43 = vpop.f32.mrf.mxu1 }
 0x82f   :  { %13686 = vst [vmem:[#allocation49_spill] sm:$0xff] %v11160_v15 }
 0x830   :  { %13687 = vst [vmem:[#allocation50_spill] sm:$0xff] %v11162_v43  ;;  %v11164_v37 = vpop.f32.mrf.mxu0 }
 0x831   :  { %13688 = vst [vmem:[#allocation51_spill] sm:$0xff] %v11164_v37  ;;  %5924 = vmatmul.f32.vlgmr.msrb.gmra.mxu1 %v4607_v51  ;;  %v4416_v37 = vld [vmem:[#allocation3 + $0x9] sm:$0xff] }
 0x832   :  { %5297 = vmatmul.f32.vlgmr.msrb.gmra.mxu2 %v4415_v63  ;;  %5602 = vmatmul.f32.gmra.mxu3 %v4511_v32  ;;  %v4574_v32 = vld [vmem:[#allocation3 + $0x188] sm:$0xff]  ;;  %v5054_v63 = vld [vmem:[%s13501_s4 + $0x3f0] sm:$0xff] }
 0x833   :  { %5805 = vmatmul.f32.gmra.mxu0 %v4573_v0 }
 0x834   :  { %6536 = vmatpush.msra.mxu0 %v5054_v63 }
 0x835   :  { %v11172_v12 = vpop.f32.mrf.mxu2  ;;  %v11174_v43 = vpop.f32.mrf.mxu3 }
 0x836   :  { %13689 = vst [vmem:[#allocation52_spill] sm:$0xff] %v11172_v12  ;;  %v11176_v15 = vpop.f32.mrf.mxu1 }
 0x837   :  { %13690 = vst [vmem:[#allocation53_spill] sm:$0xff] %v11174_v43  ;;  %v11191_v43 = vld [vmem:[#allocation3 + $0x31] sm:$0xff] }
 0x838   :  { %13691 = vst [vmem:[#allocation54_spill] sm:$0xff] %v11176_v15  ;;  %v11178_v40 = vpop.f32.mrf.mxu0 }
 0x839   :  { %13692 = vst [vmem:[#allocation55_spill] sm:$0xff] %v11178_v40  ;;  %5927 = vmatmul.f32.gmra.mxu1 %v4608_v11  ;;  %v4513_v40 = vld [vmem:[#allocation3 + $0x1ca] sm:$0xff] }
 0x83a   :  { %5300 = vmatmul.f32.gmra.mxu2 %v4416_v37  ;;  %5605 = vmatmul.f32.gmra.mxu3 %v4512_v5  ;;  %v11198_v5 = vld [vmem:[%s13501_s4 + $0x470] sm:$0xff] }
 0x83b   :  { %5808 = vmatmul.f32.gmra.mxu0 %v4574_v32  ;;  %6745 = vmatpush.msra.mxu1 %v11198_v5 }
 0x83d   :  { %v11183_v0 = vpop.f32.mrf.mxu2  ;;  %v11185_v59 = vpop.f32.mrf.mxu3 }
 0x83e   :  { %13693 = vst [vmem:[#allocation56_spill] sm:$0xff] %v11183_v0  ;;  %v11187_v12 = vpop.f32.mrf.mxu1 }
 0x83f   :  { %13694 = vst [vmem:[#allocation57_spill] sm:$0xff] %v11185_v59 }
 0x840   :  { %13695 = vst [vmem:[#allocation58_spill] sm:$0xff] %v11187_v12  ;;  %v11189_v15 = vpop.f32.mrf.mxu0  ;;  %v4610_v12 = vld [vmem:[#allocation3 + $0x39] sm:$0xff] }
 0x841   :  { %13696 = vst [vmem:[#allocation59_spill] sm:$0xff] %v11189_v15  ;;  %5930 = vmatmul.f32.gmra.mxu1 %v11191_v43 }
 0x842   :  { %5303 = vmatmul.f32.gmra.mxu2 %v4607_v51  ;;  %5608 = vmatmul.f32.gmra.mxu3 %v4513_v40  ;;  %v4514_v51 = vld [vmem:[#allocation3 + $0x1d2] sm:$0xff] }
 0x843   :  { %5811 = vmatmul.f32.gmra.mxu0 %v10833_v52 }
 0x845   :  { %v11201_v37 = vpop.f32.mrf.mxu2  ;;  %v11203_v32 = vpop.f32.mrf.mxu3 }
 0x846   :  { %13697 = vst [vmem:[#allocation60_spill] sm:$0xff] %v11201_v37  ;;  %v11205_v63 = vpop.f32.mrf.mxu1 }
 0x847   :  { %13698 = vst [vmem:[#allocation61_spill] sm:$0xff] %v11203_v32  ;;  %v4611_v32 = vld [vmem:[#allocation3 + $0x49] sm:$0xff] }
 0x848   :  { %13699 = vst [vmem:[#allocation62_spill] sm:$0xff] %v11205_v63  ;;  %v11207_v0 = vpop.f32.mrf.mxu0  ;;  %v5037_v63 = vld [vmem:[%s13501_s4 + $0x368] sm:$0xff] }
 0x849   :  { %13700 = vst [vmem:[#allocation63_spill] sm:$0xff] %v11207_v0  ;;  %5933 = vmatmul.f32.gmra.mxu1 %v4610_v12  ;;  %v4515_v0 = vld [vmem:[#allocation3 + $0x1e2] sm:$0xff]  ;;  %6328 = vmatpush.msra.mxu3 %v5037_v63  ;;  %v4516_v63 = vld [vmem:[#allocation3 + $0x1ea] sm:$0xff] }
 0x84a   :  { %5306 = vmatmul.f32.gmra.mxu2 %v4608_v11  ;;  %5611 = vmatmul.f32.gmra.mxu3 %v4514_v51 }
 0x84b   :  { %5814 = vmatmul.f32.gmra.mxu0 %v10852_v7  ;;  %v5021_v7 = vld [vmem:[%s13501_s4 + $0x2e8] sm:$0xff] }
 0x84c   :  { %6119 = vmatpush.msra.mxu2 %v5021_v7 }
 0x84d   :  { %v11210_v52 = vpop.f32.mrf.mxu2  ;;  %v11212_v40 = vpop.f32.mrf.mxu3 }
 0x84e   :  { %13701 = vst [vmem:[#allocation64_spill] sm:$0xff] %v11210_v52  ;;  %v11214_v59 = vpop.f32.mrf.mxu1 }
 0x84f   :  { %13702 = vst [vmem:[#allocation65_spill] sm:$0xff] %v11212_v40  ;;  %v4612_v40 = vld [vmem:[#allocation3 + $0x51] sm:$0xff] }
 0x850   :  { %13703 = vst [vmem:[#allocation66_spill] sm:$0xff] %v11214_v59  ;;  %v11216_v37 = vpop.f32.mrf.mxu0 }
 0x851   :  { %13704 = vst [vmem:[#allocation67_spill] sm:$0xff] %v11216_v37  ;;  %5936 = vmatmul.f32.gmra.mxu1 %v4611_v32 }
 0x852   :  { %5309 = vmatmul.f32.gmra.mxu2 %v11191_v43  ;;  %5614 = vmatmul.f32.gmra.mxu3 %v4515_v0 }
 0x853   :  { %5817 = vmatmul.f32.gmra.mxu0 %v10863_v16  ;;  %v5053_v16 = vld [vmem:[%s13501_s4 + $0x3e8] sm:$0xff] }
 0x854   :  { %6537 = vmatpush.msra.mxu0 %v5053_v16 }
 0x855   :  { %v11226_v11 = vpop.f32.mrf.mxu2  ;;  %v11228_v51 = vpop.f32.mrf.mxu3 }
 0x856   :  { %13705 = vst [vmem:[#allocation68_spill] sm:$0xff] %v11226_v11  ;;  %v11230_v52 = vpop.f32.mrf.mxu1 }
 0x857   :  { %13706 = vst [vmem:[#allocation69_spill] sm:$0xff] %v11228_v51  ;;  %v4613_v51 = vld [vmem:[#allocation3 + $0x61] sm:$0xff] }
 0x858   :  { %13707 = vst [vmem:[#allocation70_spill] sm:$0xff] %v11230_v52  ;;  %v11232_v59 = vpop.f32.mrf.mxu0 }
 0x859   :  { %13708 = vst [vmem:[#allocation71_spill] sm:$0xff] %v11232_v59  ;;  %5939 = vmatmul.f32.gmra.mxu1 %v4612_v40  ;;  %v4517_v59 = vld [vmem:[#allocation3 + $0x1fa] sm:$0xff] }
 0x85a   :  { %5312 = vmatmul.f32.gmra.mxu2 %v4610_v12  ;;  %5617 = vmatmul.f32.gmra.mxu3 %v4516_v63 }
 0x85b   :  { %5820 = vmatmul.f32.gmra.mxu0 %v10873_v47  ;;  %v11250_v47 = vld [vmem:[%s13501_s4 + $0x468] sm:$0xff] }
 0x85c   :  { %6746 = vmatpush.msra.mxu1 %v11250_v47 }
 0x85d   :  { %v11238_v0 = vpop.f32.mrf.mxu2  ;;  %v11240_v7 = vpop.f32.mrf.mxu3 }
 0x85e   :  { %13709 = vst [vmem:[#allocation72_spill] sm:$0xff] %v11238_v0  ;;  %v11242_v11 = vpop.f32.mrf.mxu1 }
 0x85f   :  { %13710 = vst [vmem:[#allocation73_spill] sm:$0xff] %v11240_v7 }
 0x860   :  { %13711 = vst [vmem:[#allocation74_spill] sm:$0xff] %v11242_v11  ;;  %v11244_v52 = vpop.f32.mrf.mxu0  ;;  %v4614_v11 = vld [vmem:[#allocation3 + $0x69] sm:$0xff] }
 0x861   :  { %13712 = vst [vmem:[#allocation75_spill] sm:$0xff] %v11244_v52  ;;  %5942 = vmatmul.f32.gmra.mxu1 %v4613_v51 }
 0x862   :  { %5315 = vmatmul.f32.gmra.mxu2 %v4611_v32  ;;  %5620 = vmatmul.f32.gmra.mxu3 %v4517_v59  ;;  %v4518_v32 = vld [vmem:[#allocation3 + $0x202] sm:$0xff] }
 0x863   :  { %5823 = vmatmul.f32.gmra.mxu0 %v10876_v9 }
 0x865   :  { %v11253_v12 = vpop.f32.mrf.mxu2  ;;  %v11255_v63 = vpop.f32.mrf.mxu3 }
 0x866   :  { %13713 = vst [vmem:[#allocation76_spill] sm:$0xff] %v11253_v12  ;;  %v11257_v16 = vpop.f32.mrf.mxu1 }
 0x867   :  { %13714 = vst [vmem:[#allocation77_spill] sm:$0xff] %v11255_v63  ;;  %v4615_v63 = vld [vmem:[#allocation3 + $0x79] sm:$0xff] }
 0x868   :  { %13715 = vst [vmem:[#allocation78_spill] sm:$0xff] %v11257_v16  ;;  %v11259_v0 = vpop.f32.mrf.mxu0  ;;  %v5036_v16 = vld [vmem:[%s13501_s4 + $0x360] sm:$0xff] }
 0x869   :  { %13716 = vst [vmem:[#allocation79_spill] sm:$0xff] %v11259_v0  ;;  %5945 = vmatmul.f32.gmra.mxu1 %v4614_v11  ;;  %v4519_v0 = vld [vmem:[#allocation3 + $0x212] sm:$0xff]  ;;  %6329 = vmatpush.msra.mxu3 %v5036_v16 }
 0x86a   :  { %5318 = vmatmul.f32.gmra.mxu2 %v4612_v40  ;;  %5623 = vmatmul.f32.gmra.mxu3 %v4518_v32 }
 0x86b   :  { %5826 = vmatmul.f32.gmra.mxu0 %v10885_v48  ;;  %v5020_v48 = vld [vmem:[%s13501_s4 + $0x2e0] sm:$0xff] }
 0x86c   :  { %6120 = vmatpush.msra.mxu2 %v5020_v48 }
 0x86d   :  { %v11262_v9 = vpop.f32.mrf.mxu2  ;;  %v11264_v59 = vpop.f32.mrf.mxu3 }
 0x86e   :  { %13717 = vst [vmem:[#allocation80_spill] sm:$0xff] %v11262_v9  ;;  %v11266_v7 = vpop.f32.mrf.mxu1 }
 0x86f   :  { %13718 = vst [vmem:[#allocation81_spill] sm:$0xff] %v11264_v59  ;;  %v4616_v59 = vld [vmem:[#allocation3 + $0x81] sm:$0xff] }
 0x870   :  { %13719 = vst [vmem:[#allocation82_spill] sm:$0xff] %v11266_v7  ;;  %v11268_v12 = vpop.f32.mrf.mxu0 }
 0x871   :  { %13720 = vst [vmem:[#allocation83_spill] sm:$0xff] %v11268_v12  ;;  %5948 = vmatmul.f32.gmra.mxu1 %v4615_v63  ;;  %v4520_v12 = vld [vmem:[#allocation3 + $0x21a] sm:$0xff] }
 0x872   :  { %5321 = vmatmul.f32.gmra.mxu2 %v4613_v51  ;;  %5626 = vmatmul.f32.gmra.mxu3 %v4519_v0 }
 0x873   :  { %5829 = vmatmul.f32.gmra.mxu0 %v10888_v13  ;;  %v5052_v13 = vld [vmem:[%s13501_s4 + $0x3e0] sm:$0xff] }
 0x874   :  { %6538 = vmatpush.msra.mxu0 %v5052_v13 }
 0x875   :  { %v11277_v40 = vpop.f32.mrf.mxu2  ;;  %v11279_v32 = vpop.f32.mrf.mxu3 }
 0x876   :  { %13721 = vst [vmem:[#allocation84_spill] sm:$0xff] %v11277_v40  ;;  %v11281_v9 = vpop.f32.mrf.mxu1  ;;  %v4617_v40 = vld [vmem:[#allocation3 + $0x91] sm:$0xff] }
 0x877   :  { %13722 = vst [vmem:[#allocation85_spill] sm:$0xff] %v11279_v32  ;;  %v4628_v32 = vld [vmem:[#allocation3 + $0x111] sm:$0xff] }
 0x878   :  { %13723 = vst [vmem:[#allocation86_spill] sm:$0xff] %v11281_v9  ;;  %v11283_v7 = vpop.f32.mrf.mxu0  ;;  %v4521_v9 = vld [vmem:[#allocation3 + $0x22a] sm:$0xff] }
 0x879   :  { %13724 = vst [vmem:[#allocation87_spill] sm:$0xff] %v11283_v7  ;;  %5951 = vmatmul.f32.gmra.mxu1 %v4616_v59  ;;  %v4532_v7 = vld [vmem:[#allocation3 + $0x2aa] sm:$0xff] }
 0x87a   :  { %5324 = vmatmul.f32.gmra.mxu2 %v4614_v11  ;;  %5629 = vmatmul.f32.gmra.mxu3 %v4520_v12 }
 0x87b   :  { %5832 = vmatmul.f32.gmra.mxu0 %v10897_v58  ;;  %v11301_v58 = vld [vmem:[%s13501_s4 + $0x460] sm:$0xff] }
 0x87c   :  { %6747 = vmatpush.msra.mxu1 %v11301_v58 }
 0x87d   :  { %v11289_v51 = vpop.f32.mrf.mxu2  ;;  %v11291_v0 = vpop.f32.mrf.mxu3 }
 0x87e   :  { %13725 = vst [vmem:[#allocation88_spill] sm:$0xff] %v11289_v51  ;;  %v11293_v16 = vpop.f32.mrf.mxu1 }
 0x87f   :  { %13726 = vst [vmem:[#allocation89_spill] sm:$0xff] %v11291_v0 }
 0x880   :  { %13727 = vst [vmem:[#allocation90_spill] sm:$0xff] %v11293_v16  ;;  %v11295_v48 = vpop.f32.mrf.mxu0  ;;  %v4618_v16 = vld [vmem:[#allocation3 + $0x99] sm:$0xff] }
 0x881   :  { %13728 = vst [vmem:[#allocation91_spill] sm:$0xff] %v11295_v48  ;;  %5954 = vmatmul.f32.gmra.mxu1 %v4617_v40  ;;  %v4531_v48 = vld [vmem:[#allocation3 + $0x2a2] sm:$0xff] }
 0x882   :  { %5327 = vmatmul.f32.gmra.mxu2 %v4615_v63  ;;  %5632 = vmatmul.f32.gmra.mxu3 %v4521_v9  ;;  %v4522_v63 = vld [vmem:[#allocation3 + $0x232] sm:$0xff] }
 0x883   :  { %5835 = vmatmul.f32.gmra.mxu0 %v10900_v53 }
 0x885   :  { %v11304_v11 = vpop.f32.mrf.mxu2  ;;  %v11306_v12 = vpop.f32.mrf.mxu3 }
 0x886   :  { %13729 = vst [vmem:[#allocation92_spill] sm:$0xff] %v11304_v11  ;;  %v11308_v13 = vpop.f32.mrf.mxu1 }
 0x887   :  { %13730 = vst [vmem:[#allocation93_spill] sm:$0xff] %v11306_v12  ;;  %v4619_v12 = vld [vmem:[#allocation3 + $0xa9] sm:$0xff] }
 0x888   :  { %13731 = vst [vmem:[#allocation94_spill] sm:$0xff] %v11308_v13  ;;  %v11310_v51 = vpop.f32.mrf.mxu0  ;;  %v5035_v13 = vld [vmem:[%s13501_s4 + $0x358] sm:$0xff] }
 0x889   :  { %13732 = vst [vmem:[#allocation95_spill] sm:$0xff] %v11310_v51  ;;  %5957 = vmatmul.f32.gmra.mxu1 %v4618_v16  ;;  %v4523_v51 = vld [vmem:[#allocation3 + $0x242] sm:$0xff]  ;;  %6330 = vmatpush.msra.mxu3 %v5035_v13 }
 0x88a   :  { %5330 = vmatmul.f32.gmra.mxu2 %v4616_v59  ;;  %5635 = vmatmul.f32.gmra.mxu3 %v4522_v63 }
 0x88b   :  { %5838 = vmatmul.f32.gmra.mxu0 %v10909_v62  ;;  %v5019_v62 = vld [vmem:[%s13501_s4 + $0x2d8] sm:$0xff] }
 0x88c   :  { %6121 = vmatpush.msra.mxu2 %v5019_v62 }
 0x88d   :  { %v11313_v53 = vpop.f32.mrf.mxu2  ;;  %v11315_v9 = vpop.f32.mrf.mxu3 }
 0x88e   :  { %13733 = vst [vmem:[#allocation96_spill] sm:$0xff] %v11313_v53  ;;  %v11317_v0 = vpop.f32.mrf.mxu1 }
 0x88f   :  { %13734 = vst [vmem:[#allocation97_spill] sm:$0xff] %v11315_v9  ;;  %v4620_v9 = vld [vmem:[#allocation3 + $0xb1] sm:$0xff] }
 0x890   :  { %13735 = vst [vmem:[#allocation98_spill] sm:$0xff] %v11317_v0  ;;  %v11319_v11 = vpop.f32.mrf.mxu0 }
 0x891   :  { %13736 = vst [vmem:[#allocation99_spill] sm:$0xff] %v11319_v11  ;;  %5960 = vmatmul.f32.gmra.mxu1 %v4619_v12  ;;  %v4524_v11 = vld [vmem:[#allocation3 + $0x24a] sm:$0xff] }
 0x892   :  { %5333 = vmatmul.f32.gmra.mxu2 %v4617_v40  ;;  %5638 = vmatmul.f32.gmra.mxu3 %v4523_v51 }
 0x893   :  { %5841 = vmatmul.f32.gmra.mxu0 %v10912_v57  ;;  %v5051_v57 = vld [vmem:[%s13501_s4 + $0x3d8] sm:$0xff] }
 0x894   :  { %6539 = vmatpush.msra.mxu0 %v5051_v57 }
 0x895   :  { %v11328_v59 = vpop.f32.mrf.mxu2  ;;  %v11330_v63 = vpop.f32.mrf.mxu3 }
 0x896   :  { %13737 = vst [vmem:[#allocation100_spill] sm:$0xff] %v11328_v59  ;;  %v11332_v53 = vpop.f32.mrf.mxu1  ;;  %v4621_v59 = vld [vmem:[#allocation3 + $0xc1] sm:$0xff] }
 0x897   :  { %13738 = vst [vmem:[#allocation101_spill] sm:$0xff] %v11330_v63 }
 0x898   :  { %13739 = vst [vmem:[#allocation102_spill] sm:$0xff] %v11332_v53  ;;  %v11334_v0 = vpop.f32.mrf.mxu0  ;;  %v4525_v53 = vld [vmem:[#allocation3 + $0x25a] sm:$0xff] }
 0x899   :  { %13740 = vst [vmem:[#allocation103_spill] sm:$0xff] %v11334_v0  ;;  %5963 = vmatmul.f32.gmra.mxu1 %v4620_v9 }
 0x89a   :  { %5336 = vmatmul.f32.gmra.mxu2 %v4618_v16  ;;  %5641 = vmatmul.f32.gmra.mxu3 %v4524_v11 }
 0x89b   :  { %5844 = vmatmul.f32.gmra.mxu0 %v10921_v27  ;;  %v11352_v27 = vld [vmem:[%s13501_s4 + $0x458] sm:$0xff] }
 0x89c   :  { %6748 = vmatpush.msra.mxu1 %v11352_v27 }
 0x89d   :  { %v11340_v40 = vpop.f32.mrf.mxu2  ;;  %v11342_v51 = vpop.f32.mrf.mxu3 }
 0x89e   :  { %13741 = vst [vmem:[#allocation104_spill] sm:$0xff] %v11340_v40  ;;  %v11344_v13 = vpop.f32.mrf.mxu1 }
 0x89f   :  { %13742 = vst [vmem:[#allocation105_spill] sm:$0xff] %v11342_v51 }
 0x8a0   :  { %13743 = vst [vmem:[#allocation106_spill] sm:$0xff] %v11344_v13  ;;  %v11346_v62 = vpop.f32.mrf.mxu0  ;;  %v4622_v13 = vld [vmem:[#allocation3 + $0xc9] sm:$0xff] }
 0x8a1   :  { %13744 = vst [vmem:[#allocation107_spill] sm:$0xff] %v11346_v62  ;;  %5966 = vmatmul.f32.gmra.mxu1 %v4621_v59  ;;  %v4528_v62 = vld [vmem:[#allocation3 + $0x27a] sm:$0xff] }
 0x8a2   :  { %5339 = vmatmul.f32.gmra.mxu2 %v4619_v12  ;;  %5644 = vmatmul.f32.gmra.mxu3 %v4525_v53  ;;  %v4526_v12 = vld [vmem:[#allocation3 + $0x262] sm:$0xff] }
 0x8a3   :  { %5847 = vmatmul.f32.gmra.mxu0 %v10924_v22 }
 0x8a5   :  { %v11355_v16 = vpop.f32.mrf.mxu2  ;;  %v11357_v11 = vpop.f32.mrf.mxu3 }
 0x8a6   :  { %13745 = vst [vmem:[#allocation108_spill] sm:$0xff] %v11355_v16  ;;  %v11359_v57 = vpop.f32.mrf.mxu1 }
 0x8a7   :  { %13746 = vst [vmem:[#allocation109_spill] sm:$0xff] %v11357_v11  ;;  %v4623_v11 = vld [vmem:[#allocation3 + $0xd9] sm:$0xff] }
 0x8a8   :  { %13747 = vst [vmem:[#allocation110_spill] sm:$0xff] %v11359_v57  ;;  %v11361_v40 = vpop.f32.mrf.mxu0  ;;  %v5034_v57 = vld [vmem:[%s13501_s4 + $0x350] sm:$0xff] }
 0x8a9   :  { %13748 = vst [vmem:[#allocation111_spill] sm:$0xff] %v11361_v40  ;;  %5969 = vmatmul.f32.gmra.mxu1 %v4622_v13  ;;  %v4527_v40 = vld [vmem:[#allocation3 + $0x272] sm:$0xff]  ;;  %6331 = vmatpush.msra.mxu3 %v5034_v57 }
 0x8aa   :  { %5342 = vmatmul.f32.gmra.mxu2 %v4620_v9  ;;  %5647 = vmatmul.f32.gmra.mxu3 %v4526_v12 }
 0x8ab   :  { %5850 = vmatmul.f32.gmra.mxu0 %v10933_v3  ;;  %v5018_v3 = vld [vmem:[%s13501_s4 + $0x2d0] sm:$0xff] }
 0x8ac   :  { %6122 = vmatpush.msra.mxu2 %v5018_v3 }
 0x8ad   :  { %v11364_v22 = vpop.f32.mrf.mxu2  ;;  %v11366_v53 = vpop.f32.mrf.mxu3 }
 0x8ae   :  { %13749 = vst [vmem:[#allocation112_spill] sm:$0xff] %v11364_v22  ;;  %v11368_v51 = vpop.f32.mrf.mxu1 }
 0x8af   :  { %13750 = vst [vmem:[#allocation113_spill] sm:$0xff] %v11366_v53 }
 0x8b0   :  { %v11370_v16 = vpop.f32.mrf.mxu0 }
 0x8b1   :  { %13751 = vst [vmem:[#allocation114_spill] sm:$0xff] %v11370_v16  ;;  %5972 = vmatmul.f32.gmra.mxu1 %v4623_v11  ;;  %v4624_v16 = vld [vmem:[#allocation3 + $0xe1] sm:$0xff] }
 0x8b2   :  { %5345 = vmatmul.f32.gmra.mxu2 %v4621_v59  ;;  %5650 = vmatmul.f32.gmra.mxu3 %v4527_v40 }
 0x8b3   :  { %5853 = vmatmul.f32.gmra.mxu0 %v10938_v49  ;;  %v5050_v49 = vld [vmem:[%s13501_s4 + $0x3d0] sm:$0xff] }
 0x8b4   :  { %6540 = vmatpush.msra.mxu0 %v5050_v49 }
 0x8b5   :  { %v11379_v9 = vpop.f32.mrf.mxu2  ;;  %v11381_v12 = vpop.f32.mrf.mxu3 }
 0x8b6   :  { %13752 = vst [vmem:[#allocation115_spill] sm:$0xff] %v11381_v12  ;;  %v11383_v22 = vpop.f32.mrf.mxu1  ;;  %v4625_v12 = vld [vmem:[#allocation3 + $0xf1] sm:$0xff] }
 0x8b8   :  { %v11385_v53 = vpop.f32.mrf.mxu0 }
 0x8b9   :  { %13753 = vst [vmem:[#allocation116_spill] sm:$0xff] %v11385_v53  ;;  %5975 = vmatmul.f32.gmra.mxu1 %v4624_v16  ;;  %v4529_v53 = vld [vmem:[#allocation3 + $0x28a] sm:$0xff] }
 0x8ba   :  { %5348 = vmatmul.f32.gmra.mxu2 %v4622_v13  ;;  %5653 = vmatmul.f32.gmra.mxu3 %v4528_v62 }
 0x8bb   :  { %5856 = vmatmul.f32.gmra.mxu0 %v10953_v60  ;;  %v11403_v60 = vld [vmem:[%s13501_s4 + $0x450] sm:$0xff] }
 0x8bc   :  { %6749 = vmatpush.msra.mxu1 %v11403_v60 }
 0x8bd   :  { %v11391_v59 = vpop.f32.mrf.mxu2  ;;  %v11393_v40 = vpop.f32.mrf.mxu3 }
 0x8be   :  { %13754 = vst [vmem:[#allocation117_spill] sm:$0xff] %v11393_v40  ;;  %v11395_v57 = vpop.f32.mrf.mxu1 }
 0x8c0   :  { %v11397_v3 = vpop.f32.mrf.mxu0 }
 0x8c1   :  { %13755 = vst [vmem:[#allocation118_spill] sm:$0xff] %v11397_v3  ;;  %5978 = vmatmul.f32.gmra.mxu1 %v4625_v12  ;;  %v4626_v3 = vld [vmem:[#allocation3 + $0xf9] sm:$0xff] }
 0x8c2   :  { %5351 = vmatmul.f32.gmra.mxu2 %v4623_v11  ;;  %5656 = vmatmul.f32.gmra.mxu3 %v4529_v53  ;;  %v4530_v11 = vld [vmem:[#allocation3 + $0x292] sm:$0xff] }
 0x8c3   :  { %5859 = vmatmul.f32.gmra.mxu0 %v10964_v36 }
 0x8c5   :  { %v11406_v13 = vpop.f32.mrf.mxu2  ;;  %v11408_v62 = vpop.f32.mrf.mxu3 }
 0x8c6   :  { %13756 = vst [vmem:[#allocation119_spill] sm:$0xff] %v11408_v62  ;;  %v11410_v49 = vpop.f32.mrf.mxu1  ;;  %v4627_v62 = vld [vmem:[#allocation3 + $0x109] sm:$0xff] }
 0x8c8   :  { %v11412_v40 = vpop.f32.mrf.mxu0 }
 0x8c9   :  { %13757 = vst [vmem:[#allocation120_spill] sm:$0xff] %v11412_v40  ;;  %5981 = vmatmul.f32.gmra.mxu1 %v4626_v3  ;;  %v5033_v40 = vld [vmem:[%s13501_s4 + $0x348] sm:$0xff] }
 0x8ca   :  { %5354 = vmatmul.f32.gmra.mxu2 %v4624_v16  ;;  %5659 = vmatmul.f32.gmra.mxu3 %v4530_v11 }
 0x8cb   :  { %5862 = vmatmul.f32.gmra.mxu0 %v10981_v2  ;;  %6332 = vmatpush.msra.mxu3 %v5033_v40  ;;  %v5017_v2 = vld [vmem:[%s13501_s4 + $0x2c8] sm:$0xff] }
 0x8cc   :  { %6123 = vmatpush.msra.mxu2 %v5017_v2 }
 0x8cd   :  { %v11415_v36 = vpop.f32.mrf.mxu2  ;;  %v11417_v53 = vpop.f32.mrf.mxu3 }
 0x8ce   :  { %13758 = vst [vmem:[#allocation121_spill] sm:$0xff] %v11417_v53  ;;  %v11419_v63 = vpop.f32.mrf.mxu1 }
 0x8cf   :  { %13759 = vst [vmem:[#allocation122_spill] sm:$0xff] %v11419_v63  ;;  %v4822_v63 = vld [vmem:[#allocation3 + $0x139] sm:$0xff] }
 0x8d0   :  { %v11421_v0 = vpop.f32.mrf.mxu0 }
 0x8d1   :  { %13760 = vst [vmem:[#allocation123_spill] sm:$0xff] %v11421_v0  ;;  %5984 = vmatmul.f32.gmra.mxu1 %v4627_v62 }
 0x8d2   :  { %5357 = vmatmul.f32.gmra.mxu2 %v4625_v12  ;;  %5662 = vmatmul.f32.gmra.mxu3 %v4531_v48 }
 0x8d3   :  { %5865 = vmatmul.f32.gmra.mxu0 %v10992_v45  ;;  %v5049_v45 = vld [vmem:[%s13501_s4 + $0x3c8] sm:$0xff] }
 0x8d4   :  { %6541 = vmatpush.msra.mxu0 %v5049_v45 }
 0x8d5   :  { %v11430_v16 = vpop.f32.mrf.mxu2  ;;  %v11432_v11 = vpop.f32.mrf.mxu3 }
 0x8d6   :  { %13761 = vst [vmem:[#allocation124_spill] sm:$0xff] %v11432_v11  ;;  %v11434_v53 = vpop.f32.mrf.mxu1  ;;  %v4629_v11 = vld [vmem:[#allocation3 + $0x121] sm:$0xff] }
 0x8d7   :  { %13762 = vst [vmem:[#allocation125_spill] sm:$0xff] %v11434_v53  ;;  %v11912_v53 = vld [vmem:[#allocation3 + $0x2c1] sm:$0xff] }
 0x8d8   :  { %v11436_v0 = vpop.f32.mrf.mxu0  ;;  %13883 = vst [vmem:[#allocation246_spill] sm:$0xff] %v11912_v53 }
 0x8d9   :  { %13763 = vst [vmem:[#allocation126_spill] sm:$0xff] %v11436_v0  ;;  %5987 = vmatmul.f32.gmra.mxu1 %v4628_v32  ;;  %v4533_v0 = vld [vmem:[#allocation3 + $0x2ba] sm:$0xff] }
 0x8da   :  { %5360 = vmatmul.f32.gmra.mxu2 %v4626_v3  ;;  %5665 = vmatmul.f32.gmra.mxu3 %v4532_v7 }
 0x8db   :  { %5868 = vmatmul.f32.gmra.mxu0 %v11009_v26  ;;  %v11454_v26 = vld [vmem:[%s13501_s4 + $0x448] sm:$0xff] }
 0x8dc   :  { %6750 = vmatpush.msra.mxu1 %v11454_v26 }
 0x8dd   :  { %v11442_v48 = vpop.f32.mrf.mxu2  ;;  %v11444_v12 = vpop.f32.mrf.mxu3 }
 0x8de   :  { %13764 = vst [vmem:[#allocation127_spill] sm:$0xff] %v11444_v12  ;;  %v11446_v40 = vpop.f32.mrf.mxu1 }
 0x8df   :  { %13765 = vst [vmem:[#allocation128_spill] sm:$0xff] %v11446_v40  ;;  %v4756_v40 = vld [vmem:[#allocation3 + $0x120] sm:$0xff] }
 0x8e0   :  { %v11448_v2 = vpop.f32.mrf.mxu0 }
 0x8e1   :  { %13766 = vst [vmem:[#allocation129_spill] sm:$0xff] %v11448_v2  ;;  %5990 = vmatmul.f32.gmra.mxu1 %v4629_v11  ;;  %v4630_v2 = vld [vmem:[#allocation3 + $0x129] sm:$0xff] }
 0x8e2   :  { %5363 = vmatmul.f32.gmra.mxu2 %v4627_v62  ;;  %5668 = vmatmul.f32.gmra.mxu3 %v4533_v0  ;;  %v4534_v62 = vld [vmem:[#allocation3 + $0x2c2] sm:$0xff] }
 0x8e3   :  { %5871 = vmatmul.f32.gmra.mxu0 %v11020_v23  ;;  %v5299_v23 = vadd.f32 %v11379_v9, %v10936_v18  ;;  %v5016_v18 = vld [vmem:[%s13501_s4 + $0x2c0] sm:$0xff] }
 0x8e4   :  { %6124 = vmatpush.msra.mxu2 %v5016_v18 }
 0x8e5   :  { %v11457_v7 = vpop.f32.mrf.mxu2  ;;  %v11459_v3 = vpop.f32.mrf.mxu3 }
 0x8e6   :  { %13767 = vst [vmem:[#allocation130_spill] sm:$0xff] %v11457_v7  ;;  %v11461_v45 = vpop.f32.mrf.mxu1  ;;  %v4820_v7 = vld [vmem:[#allocation3 + $0x121] sm:$0xff] }
 0x8e7   :  { %13768 = vst [vmem:[#allocation131_spill] sm:$0xff] %v11459_v3  ;;  %v5508_v3 = vadd.f32 %v10949_v19, %v5299_v23 }
 0x8e8   :  { %13769 = vst [vmem:[#allocation132_spill] sm:$0xff] %v11461_v45  ;;  %v11463_v12 = vpop.f32.mrf.mxu0 }
 0x8e9   :  { %13770 = vst [vmem:[#allocation133_spill] sm:$0xff] %v11463_v12  ;;  %5993 = vmatmul.f32.gmra.mxu1 %v4630_v2  ;;  %v4631_v12 = vld [vmem:[#allocation3 + $0x139] sm:$0xff]  ;;  %v5717_v19 = vadd.f32 %v10962_v28, %v5508_v3 }
 0x8ea   :  { %5366 = vmatmul.f32.gmra.mxu2 %v4628_v32  ;;  %5671 = vmatmul.f32.gmra.mxu3 %v4534_v62  ;;  %v5032_v32 = vld [vmem:[%s13501_s4 + $0x340] sm:$0xff]  ;;  %v4535_v62 = vld [vmem:[#allocation3 + $0x2d2] sm:$0xff] }
 0x8eb   :  { %5874 = vmatmul.f32.gmra.mxu0 %v11037_v30  ;;  %6333 = vmatpush.msra.mxu3 %v5032_v32  ;;  %v4632_v32 = vld [vmem:[#allocation3 + $0x141] sm:$0xff] }
 0x8ec   :  { %v5048_v28 = vld [vmem:[%s13501_s4 + $0x3c0] sm:$0xff] }
 0x8ed   :  { %v11468_v0 = vpop.f32.mrf.mxu2  ;;  %v11470_v52 = vpop.f32.mrf.mxu3  ;;  %6542 = vmatpush.msra.mxu0 %v5048_v28 }
 0x8ee   :  { %13771 = vst [vmem:[#allocation134_spill] sm:$0xff] %v11468_v0  ;;  %v11472_v37 = vpop.f32.mrf.mxu1  ;;  %v4818_v0 = vld [vmem:[#allocation3 + $0x109] sm:$0xff] }
 0x8ef   :  { %13772 = vst [vmem:[#allocation135_spill] sm:$0xff] %v11470_v52  ;;  %v11492_v52 = vadd.f32 %v11368_v51, %v5717_v19  ;;  %v4633_v19 = vld [vmem:[#allocation3 + $0x151] sm:$0xff] }
 0x8f0   :  { %13773 = vst [vmem:[#allocation136_spill] sm:$0xff] %v11472_v37  ;;  %v11475_v15 = vpop.f32.mrf.mxu0 }
 0x8f1   :  { %13774 = vst [vmem:[#allocation137_spill] sm:$0xff] %v11475_v15  ;;  %5996 = vmatmul.f32.gmra.mxu1 %v4631_v12 }
 0x8f2   :  { %5369 = vmatmul.f32.gmra.mxu2 %v4629_v11  ;;  %5674 = vmatmul.f32.gmra.mxu3 %v4535_v62 }
 0x8f3   :  { %5877 = vmatmul.f32.gmra.mxu0 %v11048_v24  ;;  %v4536_v24 = vld [vmem:[#allocation3 + $0x2da] sm:$0xff] }
 0x8f5   :  { %v11485_v30 = vpop.f32.mrf.mxu2  ;;  %v11487_v9 = vpop.f32.mrf.mxu3 }
 0x8f6   :  { %13775 = vst [vmem:[#allocation138_spill] sm:$0xff] %v11485_v30  ;;  %v11489_v23 = vpop.f32.mrf.mxu1 }
 0x8f7   :  { %13776 = vst [vmem:[#allocation139_spill] sm:$0xff] %v11487_v9  ;;  %v4537_v9 = vld [vmem:[#allocation3 + $0x2ea] sm:$0xff] }
 0x8f8   :  { %13777 = vst [vmem:[#allocation140_spill] sm:$0xff] %v11489_v23  ;;  %v11494_v11 = vpop.f32.mrf.mxu0 }
 0x8f9   :  { %13778 = vst [vmem:[#allocation141_spill] sm:$0xff] %v11494_v11  ;;  %5999 = vmatmul.f32.gmra.mxu1 %v4632_v32 }
 0x8fa   :  { %5372 = vmatmul.f32.gmra.mxu2 %v4630_v2  ;;  %5677 = vmatmul.f32.gmra.mxu3 %v4536_v24  ;;  %v11515_v2 = vld [vmem:[%s13501_s4 + $0x440] sm:$0xff] }
 0x8fb   :  { %5880 = vmatmul.f32.gmra.mxu0 %v11065_v42  ;;  %v5031_v42 = vld [vmem:[%s13501_s4 + $0x338] sm:$0xff]  ;;  %6751 = vmatpush.msra.mxu1 %v11515_v2 }
 0x8fc   :  { %6334 = vmatpush.msra.mxu3 %v5031_v42  ;;  %v4538_v42 = vld [vmem:[#allocation3 + $0x2f2] sm:$0xff] }
 0x8fd   :  { %v11500_v3 = vpop.f32.mrf.mxu2  ;;  %v11502_v62 = vpop.f32.mrf.mxu3 }
 0x8fe   :  { %13779 = vst [vmem:[#allocation142_spill] sm:$0xff] %v11500_v3  ;;  %v11504_v51 = vpop.f32.mrf.mxu1  ;;  %v11885_v3 = vld [vmem:[#allocation3 + $0x2a9] sm:$0xff] }
 0x8ff   :  { %13780 = vst [vmem:[#allocation143_spill] sm:$0xff] %v11502_v62  ;;  %v5030_v62 = vld [vmem:[%s13501_s4 + $0x330] sm:$0xff] }
 0x900   :  { %13781 = vst [vmem:[#allocation144_spill] sm:$0xff] %v11504_v51  ;;  %v11506_v18 = vpop.f32.mrf.mxu0  ;;  %6335 = vmatpush.msra.mxu3 %v5030_v62  ;;  %v4635_v62 = vld [vmem:[#allocation3 + $0x169] sm:$0xff]  ;;  %v4814_v51 = vld [vmem:[#allocation3 + $0xd9] sm:$0xff] }
 0x901   :  { %13782 = vst [vmem:[#allocation145_spill] sm:$0xff] %v11506_v18  ;;  %6002 = vmatmul.f32.gmra.mxu1 %v4633_v19  ;;  %v5029_v18 = vld [vmem:[%s13501_s4 + $0x328] sm:$0xff] }
 0x902   :  { %5375 = vmatmul.f32.gmra.mxu2 %v4631_v12  ;;  %5680 = vmatmul.f32.gmra.mxu3 %v4537_v9 }
 0x903   :  { %5883 = vmatmul.f32.gmra.mxu0 %v11076_v1  ;;  %v4634_v1 = vld [vmem:[#allocation3 + $0x159] sm:$0xff]  ;;  %6336 = vmatpush.msra.mxu3 %v5029_v18  ;;  %v5025_v18 = vld [vmem:[%s13501_s4 + $0x308] sm:$0xff] }
 0x905   :  { %v11518_v24 = vpop.f32.mrf.mxu2  ;;  %v11520_v28 = vpop.f32.mrf.mxu3 }
 0x906   :  { %13783 = vst [vmem:[#allocation146_spill] sm:$0xff] %v11518_v24  ;;  %v11522_v12 = vpop.f32.mrf.mxu1  ;;  %v4816_v24 = vld [vmem:[#allocation3 + $0xf1] sm:$0xff] }
 0x907   :  { %13784 = vst [vmem:[#allocation147_spill] sm:$0xff] %v11520_v28  ;;  %v5028_v28 = vld [vmem:[%s13501_s4 + $0x320] sm:$0xff] }
 0x908   :  { %13785 = vst [vmem:[#allocation148_spill] sm:$0xff] %v11522_v12  ;;  %v11524_v9 = vpop.f32.mrf.mxu0  ;;  %6337 = vmatpush.msra.mxu3 %v5028_v28  ;;  %v5024_v28 = vld [vmem:[%s13501_s4 + $0x300] sm:$0xff] }
 0x909   :  { %13786 = vst [vmem:[#allocation149_spill] sm:$0xff] %v11524_v9  ;;  %6005 = vmatmul.f32.gmra.mxu1 %v4634_v1  ;;  %v5027_v9 = vld [vmem:[%s13501_s4 + $0x318] sm:$0xff] }
 0x90a   :  { %5378 = vmatmul.f32.gmra.mxu2 %v4632_v32  ;;  %5683 = vmatmul.f32.gmra.mxu3 %v4538_v42  ;;  %v4539_v42 = vld [vmem:[#allocation3 + $0x302] sm:$0xff] }
 0x90b   :  { %5886 = vmatmul.f32.gmra.mxu0 %v11093_v31  ;;  %6338 = vmatpush.msra.mxu3 %v5027_v9  ;;  %v5026_v31 = vld [vmem:[%s13501_s4 + $0x310] sm:$0xff]  ;;  %v5015_v9 = vld [vmem:[%s13501_s4 + $0x2b8] sm:$0xff] }
 0x90c   :  { %6125 = vmatpush.msra.mxu2 %v5015_v9  ;;  %v4540_v9 = vld [vmem:[#allocation3 + $0x30a] sm:$0xff] }
 0x90d   :  { %v11539_v11 = vpop.f32.mrf.mxu2  ;;  %v11541_v15 = vpop.f32.mrf.mxu3  ;;  %6339 = vmatpush.msra.mxu3 %v5026_v31 }
 0x90e   :  { %13787 = vst [vmem:[#allocation150_spill] sm:$0xff] %v11539_v11  ;;  %v11543_v12 = vpop.f32.mrf.mxu1  ;;  %v4815_v11 = vld [vmem:[#allocation3 + $0xe1] sm:$0xff] }
 0x90f   :  { %13788 = vst [vmem:[#allocation151_spill] sm:$0xff] %v11541_v15  ;;  %6340 = vmatpush.msra.mxu3 %v5025_v18  ;;  %v5047_v15 = vld [vmem:[%s13501_s4 + $0x3b8] sm:$0xff] }
 0x910   :  { %13789 = vst [vmem:[#allocation152_spill] sm:$0xff] %v11543_v12  ;;  %v11545_v32 = vpop.f32.mrf.mxu0  ;;  %6543 = vmatpush.msra.mxu0 %v5047_v15  ;;  %v4636_v18 = vld [vmem:[#allocation3 + $0x171] sm:$0xff]  ;;  %v5045_v15 = vld [vmem:[%s13501_s4 + $0x3a8] sm:$0xff] }
 0x911   :  { %13790 = vst [vmem:[#allocation153_spill] sm:$0xff] %v11545_v32  ;;  %6008 = vmatmul.f32.gmra.mxu1 %v4635_v62  ;;  %6341 = vmatpush.msra.mxu3 %v5024_v28  ;;  %v5046_v32 = vld [vmem:[%s13501_s4 + $0x3b0] sm:$0xff] }
 0x912   :  { %5381 = vmatmul.f32.gmra.mxu2 %v4633_v19  ;;  %5686 = vmatmul.f32.gmra.mxu3 %v4539_v42  ;;  %v4811_v12 = vld [vmem:[#allocation3 + $0xb1] sm:$0xff] }
 0x913   :  { %5889 = vmatmul.f32.gmra.mxu0 %v11110_v33  ;;  %7526 = vmatpush.msrb.mxu3 %v11144_v56  ;;  %v5044_v56 = vld [vmem:[%s13501_s4 + $0x3a0] sm:$0xff] }
 0x914   :  { %6544 = vmatpush.msra.mxu0 %v5046_v32  ;;  %v5043_v32 = vld [vmem:[%s13501_s4 + $0x398] sm:$0xff] }
 0x915   :  { %v11563_v31 = vpop.f32.mrf.mxu2  ;;  %v11565_v19 = vpop.f32.mrf.mxu3  ;;  %7527 = vmatpush.msrb.mxu3 %v11198_v5 }
 0x916   :  { %13791 = vst [vmem:[#allocation154_spill] sm:$0xff] %v11563_v31  ;;  %v11567_v42 = vpop.f32.mrf.mxu1  ;;  %6545 = vmatpush.msra.mxu0 %v5045_v15  ;;  %v5042_v15 = vld [vmem:[%s13501_s4 + $0x390] sm:$0xff] }
 0x917   :  { %13792 = vst [vmem:[#allocation155_spill] sm:$0xff] %v11565_v19  ;;  %7528 = vmatpush.msrb.mxu3 %v11250_v47  ;;  %v4541_v47 = vld [vmem:[#allocation3 + $0x31a] sm:$0xff]  ;;  %v4640_v19 = vld [vmem:[#allocation3 + $0x1d1] sm:$0xff] }
 0x918   :  { %13793 = vst [vmem:[#allocation156_spill] sm:$0xff] %v11567_v42  ;;  %v11570_v33 = vpop.f32.mrf.mxu0  ;;  %6546 = vmatpush.msra.mxu0 %v5044_v56 }
 0x919   :  { %13794 = vst [vmem:[#allocation157_spill] sm:$0xff] %v11570_v33  ;;  %6011 = vmatmul.f32.gmra.mxu1 %v4636_v18  ;;  %7529 = vmatpush.msrb.mxu3 %v11301_v58  ;;  %v5041_v58 = vld [vmem:[%s13501_s4 + $0x388] sm:$0xff] }
 0x91a   :  { %5384 = vmatmul.f32.gmra.mxu2 %v4634_v1  ;;  %5689 = vmatmul.f32.gmra.mxu3 %v4540_v9  ;;  %v11597_v9 = vld [vmem:[#allocation3 + $0x181] sm:$0xff] }
 0x91b   :  { %5892 = vmatmul.f32.gmra.mxu0 %v11124_v34  ;;  %7530 = vmatpush.msrb.mxu3 %v11352_v27  ;;  %v5063_v27 = vld [vmem:[%s13501_s4 + $0x438] sm:$0xff] }
 0x91c   :  { %6547 = vmatpush.msra.mxu0 %v5043_v32  ;;  %6752 = vmatpush.msra.mxu1 %v5063_v27 }
 0x91d   :  { %v11584_v28 = vpop.f32.mrf.mxu2  ;;  %v11586_v5 = vpop.f32.mrf.mxu3  ;;  %7531 = vmatpush.msrb.mxu3 %v11403_v60 }
 0x91e   :  { %13795 = vst [vmem:[#allocation158_spill] sm:$0xff] %v11584_v28  ;;  %v11592_v1 = vpop.f32.mrf.mxu1  ;;  %6548 = vmatpush.msra.mxu0 %v5042_v15  ;;  %v4812_v28 = vld [vmem:[#allocation3 + $0xc1] sm:$0xff] }
 0x91f   :  { %13796 = vst [vmem:[#allocation159_spill] sm:$0xff] %v11586_v5  ;;  %7532 = vmatpush.msrb.mxu3 %v11454_v26  ;;  %v4542_v26 = vld [vmem:[#allocation3 + $0x322] sm:$0xff]  ;;  %v4736_v5 = vld [vmem:[#allocation3 + $0x30] sm:$0xff] }
 0x920   :  { %13797 = vst [vmem:[#allocation160_spill] sm:$0xff] %v11592_v1  ;;  %v11595_v34 = vpop.f32.mrf.mxu0  ;;  %6549 = vmatpush.msra.mxu0 %v5041_v58  ;;  %v4447_v58 = vld [vmem:[#allocation3 + $0x1b1] sm:$0xff]  ;;  %v4807_v1 = vld [vmem:[#allocation3 + $0x81] sm:$0xff] }
 0x921   :  { %13798 = vst [vmem:[#allocation161_spill] sm:$0xff] %v11595_v34  ;;  %6014 = vmatmul.f32.gmra.mxu1 %v11597_v9  ;;  %7533 = vmatpush.msrb.mxu3 %v11515_v2  ;;  %v4448_v34 = vld [vmem:[#allocation3 + $0x1b9] sm:$0xff] }
 0x922   :  { %5387 = vmatmul.f32.gmra.mxu2 %v4635_v62  ;;  %5692 = vmatmul.f32.gmra.mxu3 %v4541_v47  ;;  %v11624_v47 = vld [vmem:[#allocation3 + $0x189] sm:$0xff] }
 0x923   :  { %5895 = vmatmul.f32.gmra.mxu0 %v11138_v10  ;;  %v5040_v10 = vld [vmem:[%s13501_s4 + $0x380] sm:$0xff]  ;;  %7534 = vmatpush.msrb.mxu3 %v5063_v27 }
 0x924   :  { %6550 = vmatpush.msra.mxu0 %v5040_v10  ;;  %v4605_v10 = vld [vmem:[#allocation3 + $0x330] sm:$0xff] }
 0x925   :  { %v11612_v56 = vpop.f32.mrf.mxu2  ;;  %v11614_v32 = vpop.f32.mrf.mxu3 }
 0x926   :  { %13799 = vst [vmem:[#allocation162_spill] sm:$0xff] %v11612_v56  ;;  %v11620_v60 = vpop.f32.mrf.mxu1  ;;  %v4810_v56 = vld [vmem:[#allocation3 + $0xa9] sm:$0xff] }
 0x927   :  { %13800 = vst [vmem:[#allocation163_spill] sm:$0xff] %v11614_v32 }
 0x928   :  { %13801 = vst [vmem:[#allocation164_spill] sm:$0xff] %v11620_v60  ;;  %v11622_v62 = vpop.f32.mrf.mxu0 }
 0x929   :  { %13802 = vst [vmem:[#allocation165_spill] sm:$0xff] %v11622_v62  ;;  %6017 = vmatmul.f32.gmra.mxu1 %v11624_v47  ;;  %v4639_v62 = vld [vmem:[#allocation3 + $0x1c9] sm:$0xff] }
 0x92a   :  { %5390 = vmatmul.f32.gmra.mxu2 %v4636_v18  ;;  %5695 = vmatmul.f32.gmra.mxu3 %v4542_v26  ;;  %v5014_v18 = vld [vmem:[%s13501_s4 + $0x2b0] sm:$0xff] }
 0x92b   :  { %5898 = vmatmul.f32.gmra.mxu0 %v11155_v14  ;;  %6126 = vmatpush.msra.mxu2 %v5014_v18 }
 0x92d   :  { %v11628_v15 = vpop.f32.mrf.mxu2  ;;  %v11630_v32 = vpop.f32.mrf.mxu3 }
 0x92e   :  { %13803 = vst [vmem:[#allocation166_spill] sm:$0xff] %v11628_v15  ;;  %v11632_v2 = vpop.f32.mrf.mxu1  ;;  %v4808_v15 = vld [vmem:[#allocation3 + $0x91] sm:$0xff] }
 0x92f   :  { %13804 = vst [vmem:[#allocation167_spill] sm:$0xff] %v11630_v32 }
 0x930   :  { %13805 = vst [vmem:[#allocation168_spill] sm:$0xff] %v11632_v2  ;;  %v11634_v27 = vpop.f32.mrf.mxu0 }
 0x931   :  { %13806 = vst [vmem:[#allocation169_spill] sm:$0xff] %v11634_v27  ;;  %6020 = vmatmul.f32.gmra.mxu1 %v4639_v62 }
 0x932   :  { %5393 = vmatmul.f32.gmra.mxu2 %v4447_v58  ;;  %6342 = vmatmul.f32.vlgmr.msra.gmra.mxu3 %v4736_v5  ;;  %v4737_v58 = vld [vmem:[#allocation3 + $0x38] sm:$0xff] }
 0x933   :  { %5901 = vmatmul.f32.gmra.mxu0 %v4605_v10  ;;  %v4606_v5 = vld [vmem:[#allocation3 + $0x338] sm:$0xff] }
 0x935   :  { %v11639_v14 = vpop.f32.mrf.mxu2  ;;  %v11641_v26 = vpop.f32.mrf.mxu3 }
 0x936   :  { %13807 = vst [vmem:[#allocation170_spill] sm:$0xff] %v11639_v14  ;;  %v11643_v32 = vpop.f32.mrf.mxu1  ;;  %v4806_v14 = vld [vmem:[#allocation3 + $0x79] sm:$0xff] }
 0x937   :  { %13808 = vst [vmem:[#allocation171_spill] sm:$0xff] %v11641_v26  ;;  %v11655_v26 = vld [vmem:[#allocation3 + $0x1e1] sm:$0xff] }
 0x938   :  { %13809 = vst [vmem:[#allocation172_spill] sm:$0xff] %v11643_v32  ;;  %v11645_v27 = vpop.f32.mrf.mxu0 }
 0x939   :  { %13810 = vst [vmem:[#allocation173_spill] sm:$0xff] %v11645_v27  ;;  %6023 = vmatmul.f32.gmra.mxu1 %v4640_v19  ;;  %v4738_v27 = vld [vmem:[#allocation3 + $0x48] sm:$0xff] }
 0x93a   :  { %5396 = vmatmul.f32.gmra.mxu2 %v4448_v34  ;;  %6345 = vmatmul.f32.gmra.mxu3 %v4737_v58  ;;  %v5062_v34 = vld [vmem:[%s13501_s4 + $0x430] sm:$0xff] }
 0x93b   :  { %5904 = vmatmul.f32.gmra.mxu0 %v4606_v5  ;;  %6753 = vmatpush.msra.mxu1 %v5062_v34 }
 0x93c   :  { %7535 = vmatpush.msrb.mxu3 %v5062_v34 }
 0x93d   :  { %v11647_v33 = vpop.f32.mrf.mxu2  ;;  %v11649_v10 = vpop.f32.mrf.mxu3 }
 0x93e   :  { %13811 = vst [vmem:[#allocation174_spill] sm:$0xff] %v11647_v33  ;;  %v11651_v18 = vpop.f32.mrf.mxu1  ;;  %v4804_v33 = vld [vmem:[#allocation3 + $0x61] sm:$0xff] }
 0x93f   :  { %13812 = vst [vmem:[#allocation175_spill] sm:$0xff] %v11649_v10 }
 0x940   :  { %13813 = vst [vmem:[#allocation176_spill] sm:$0xff] %v11651_v18  ;;  %v11653_v2 = vpop.f32.mrf.mxu0  ;;  %v11670_v18 = vld [vmem:[#allocation3 + $0x1e9] sm:$0xff] }
 0x941   :  { %13814 = vst [vmem:[#allocation177_spill] sm:$0xff] %v11653_v2  ;;  %6026 = vmatmul.f32.gmra.mxu1 %v11655_v26 }
 0x942   :  { %5399 = vmatmul.f32.gmra.mxu2 %v4639_v62  ;;  %6348 = vmatmul.f32.gmra.mxu3 %v4738_v27  ;;  %v4739_v62 = vld [vmem:[#allocation3 + $0x50] sm:$0xff] }
 0x943   :  { %6551 = vmatmul.f32.vlgmr.msra.gmra.mxu0 %v11191_v43  ;;  %v4801_v43 = vld [vmem:[#allocation3 + $0x39] sm:$0xff] }
 0x945   :  { %v11662_v58 = vpop.f32.mrf.mxu2  ;;  %v11664_v5 = vpop.f32.mrf.mxu3 }
 0x946   :  { %13815 = vst [vmem:[#allocation178_spill] sm:$0xff] %v11662_v58  ;;  %v11666_v10 = vpop.f32.mrf.mxu1  ;;  %v4803_v58 = vld [vmem:[#allocation3 + $0x51] sm:$0xff] }
 0x947   :  { %13816 = vst [vmem:[#allocation179_spill] sm:$0xff] %v11664_v5 }
 0x948   :  { %13817 = vst [vmem:[#allocation180_spill] sm:$0xff] %v11666_v10  ;;  %v11668_v2 = vpop.f32.mrf.mxu0  ;;  %v11681_v10 = vld [vmem:[#allocation3 + $0x1f9] sm:$0xff] }
 0x949   :  { %13818 = vst [vmem:[#allocation181_spill] sm:$0xff] %v11668_v2  ;;  %6029 = vmatmul.f32.gmra.mxu1 %v11670_v18  ;;  %v4740_v2 = vld [vmem:[#allocation3 + $0x60] sm:$0xff] }
 0x94a   :  { %5402 = vmatmul.f32.gmra.mxu2 %v4640_v19  ;;  %6351 = vmatmul.f32.gmra.mxu3 %v4739_v62  ;;  %v4802_v19 = vld [vmem:[#allocation3 + $0x49] sm:$0xff] }
 0x94b   :  { %6554 = vmatmul.f32.gmra.mxu0 %v4801_v43  ;;  %v5013_v62 = vld [vmem:[%s13501_s4 + $0x2a8] sm:$0xff] }
 0x94c   :  { %6127 = vmatpush.msra.mxu2 %v5013_v62 }
 0x94d   :  { %v11673_v27 = vpop.f32.mrf.mxu2  ;;  %v11675_v34 = vpop.f32.mrf.mxu3 }
 0x94e   :  { %13819 = vst [vmem:[#allocation182_spill] sm:$0xff] %v11673_v27  ;;  %v11677_v32 = vpop.f32.mrf.mxu1  ;;  %v11696_v27 = vld [vmem:[#allocation3 + $0x201] sm:$0xff] }
 0x94f   :  { %13820 = vst [vmem:[#allocation183_spill] sm:$0xff] %v11675_v34 }
 0x950   :  { %13821 = vst [vmem:[#allocation184_spill] sm:$0xff] %v11677_v32  ;;  %v11679_v5 = vpop.f32.mrf.mxu0 }
 0x951   :  { %13822 = vst [vmem:[#allocation185_spill] sm:$0xff] %v11679_v5  ;;  %6032 = vmatmul.f32.gmra.mxu1 %v11681_v10 }
 0x952   :  { %5405 = vmatmul.f32.gmra.mxu2 %v11655_v26  ;;  %6354 = vmatmul.f32.gmra.mxu3 %v4740_v2  ;;  %v4741_v2 = vld [vmem:[#allocation3 + $0x68] sm:$0xff] }
 0x953   :  { %6557 = vmatmul.f32.gmra.mxu0 %v4802_v19 }
 0x955   :  { %v11688_v43 = vpop.f32.mrf.mxu2  ;;  %v11690_v34 = vpop.f32.mrf.mxu3 }
 0x956   :  { %13823 = vst [vmem:[#allocation186_spill] sm:$0xff] %v11688_v43  ;;  %v11692_v5 = vpop.f32.mrf.mxu1 }
 0x957   :  { %13824 = vst [vmem:[#allocation187_spill] sm:$0xff] %v11690_v34 }
 0x958   :  { %13825 = vst [vmem:[#allocation188_spill] sm:$0xff] %v11692_v5  ;;  %v11694_v32 = vpop.f32.mrf.mxu0  ;;  %v11708_v5 = vld [vmem:[#allocation3 + $0x211] sm:$0xff] }
 0x959   :  { %13826 = vst [vmem:[#allocation189_spill] sm:$0xff] %v11694_v32  ;;  %6035 = vmatmul.f32.gmra.mxu1 %v11696_v27  ;;  %v4742_v32 = vld [vmem:[#allocation3 + $0x78] sm:$0xff] }
 0x95a   :  { %5408 = vmatmul.f32.gmra.mxu2 %v11670_v18  ;;  %6357 = vmatmul.f32.gmra.mxu3 %v4741_v2 }
 0x95b   :  { %6560 = vmatmul.f32.gmra.mxu0 %v4803_v58  ;;  %v5061_v58 = vld [vmem:[%s13501_s4 + $0x428] sm:$0xff] }
 0x95c   :  { %6754 = vmatpush.msra.mxu1 %v5061_v58  ;;  %7536 = vmatpush.msrb.mxu3 %v5061_v58 }
 0x95d   :  { %v11700_v19 = vpop.f32.mrf.mxu2  ;;  %v11702_v62 = vpop.f32.mrf.mxu3 }
 0x95e   :  { %13827 = vst [vmem:[#allocation190_spill] sm:$0xff] %v11700_v19  ;;  %v11704_v43 = vpop.f32.mrf.mxu1  ;;  %v11723_v19 = vld [vmem:[#allocation3 + $0x219] sm:$0xff] }
 0x95f   :  { %13828 = vst [vmem:[#allocation191_spill] sm:$0xff] %v11702_v62 }
 0x960   :  { %13829 = vst [vmem:[#allocation192_spill] sm:$0xff] %v11704_v43  ;;  %v11706_v34 = vpop.f32.mrf.mxu0 }
 0x961   :  { %13830 = vst [vmem:[#allocation193_spill] sm:$0xff] %v11706_v34  ;;  %6038 = vmatmul.f32.gmra.mxu1 %v11708_v5 }
 0x962   :  { %5411 = vmatmul.f32.gmra.mxu2 %v11681_v10  ;;  %6360 = vmatmul.f32.gmra.mxu3 %v4742_v32  ;;  %v4743_v32 = vld [vmem:[#allocation3 + $0x80] sm:$0xff] }
 0x963   :  { %6563 = vmatmul.f32.gmra.mxu0 %v4804_v33  ;;  %v4805_v33 = vld [vmem:[#allocation3 + $0x69] sm:$0xff] }
 0x965   :  { %v11715_v2 = vpop.f32.mrf.mxu2  ;;  %v11717_v62 = vpop.f32.mrf.mxu3 }
 0x966   :  { %13831 = vst [vmem:[#allocation194_spill] sm:$0xff] %v11715_v2  ;;  %v11719_v34 = vpop.f32.mrf.mxu1 }
 0x967   :  { %13832 = vst [vmem:[#allocation195_spill] sm:$0xff] %v11717_v62 }
 0x968   :  { %13833 = vst [vmem:[#allocation196_spill] sm:$0xff] %v11719_v34  ;;  %v11721_v43 = vpop.f32.mrf.mxu0  ;;  %v11735_v34 = vld [vmem:[#allocation3 + $0x229] sm:$0xff] }
 0x969   :  { %13834 = vst [vmem:[#allocation197_spill] sm:$0xff] %v11721_v43  ;;  %6041 = vmatmul.f32.gmra.mxu1 %v11723_v19  ;;  %v4744_v43 = vld [vmem:[#allocation3 + $0x90] sm:$0xff] }
 0x96a   :  { %5414 = vmatmul.f32.gmra.mxu2 %v11696_v27  ;;  %6363 = vmatmul.f32.gmra.mxu3 %v4743_v32  ;;  %v5012_v32 = vld [vmem:[%s13501_s4 + $0x2a0] sm:$0xff] }
 0x96b   :  { %6566 = vmatmul.f32.gmra.mxu0 %v4805_v33  ;;  %6128 = vmatpush.msra.mxu2 %v5012_v32 }
 0x96d   :  { %v11727_v60 = vpop.f32.mrf.mxu2  ;;  %v11729_v58 = vpop.f32.mrf.mxu3 }
 0x96e   :  { %13835 = vst [vmem:[#allocation198_spill] sm:$0xff] %v11727_v60  ;;  %v11731_v2 = vpop.f32.mrf.mxu1  ;;  %v11750_v60 = vld [vmem:[#allocation3 + $0x231] sm:$0xff] }
 0x96f   :  { %13836 = vst [vmem:[#allocation199_spill] sm:$0xff] %v11729_v58 }
 0x970   :  { %13837 = vst [vmem:[#allocation200_spill] sm:$0xff] %v11731_v2  ;;  %v11733_v62 = vpop.f32.mrf.mxu0 }
 0x971   :  { %13838 = vst [vmem:[#allocation201_spill] sm:$0xff] %v11733_v62  ;;  %6044 = vmatmul.f32.gmra.mxu1 %v11735_v34 }
 0x972   :  { %5417 = vmatmul.f32.gmra.mxu2 %v11708_v5  ;;  %6366 = vmatmul.f32.gmra.mxu3 %v4744_v43  ;;  %v4745_v43 = vld [vmem:[#allocation3 + $0x98] sm:$0xff] }
 0x973   :  { %6569 = vmatmul.f32.gmra.mxu0 %v4806_v14 }
 0x975   :  { %v11742_v33 = vpop.f32.mrf.mxu2  ;;  %v11744_v58 = vpop.f32.mrf.mxu3 }
 0x976   :  { %13839 = vst [vmem:[#allocation202_spill] sm:$0xff] %v11742_v33  ;;  %v11746_v62 = vpop.f32.mrf.mxu1 }
 0x977   :  { %13840 = vst [vmem:[#allocation203_spill] sm:$0xff] %v11744_v58 }
 0x978   :  { %13841 = vst [vmem:[#allocation204_spill] sm:$0xff] %v11746_v62  ;;  %v11748_v2 = vpop.f32.mrf.mxu0  ;;  %v11762_v62 = vld [vmem:[#allocation3 + $0x241] sm:$0xff] }
 0x979   :  { %13842 = vst [vmem:[#allocation205_spill] sm:$0xff] %v11748_v2  ;;  %6047 = vmatmul.f32.gmra.mxu1 %v11750_v60  ;;  %v4746_v2 = vld [vmem:[#allocation3 + $0xa8] sm:$0xff] }
 0x97a   :  { %5420 = vmatmul.f32.gmra.mxu2 %v11723_v19  ;;  %6369 = vmatmul.f32.gmra.mxu3 %v4745_v43 }
 0x97b   :  { %6572 = vmatmul.f32.gmra.mxu0 %v4807_v1  ;;  %v5060_v1 = vld [vmem:[%s13501_s4 + $0x420] sm:$0xff] }
 0x97c   :  { %6755 = vmatpush.msra.mxu1 %v5060_v1  ;;  %7537 = vmatpush.msrb.mxu3 %v5060_v1 }
 0x97d   :  { %v11754_v14 = vpop.f32.mrf.mxu2  ;;  %v11756_v32 = vpop.f32.mrf.mxu3 }
 0x97e   :  { %13843 = vst [vmem:[#allocation206_spill] sm:$0xff] %v11754_v14  ;;  %v11758_v33 = vpop.f32.mrf.mxu1  ;;  %v11777_v14 = vld [vmem:[#allocation3 + $0x249] sm:$0xff] }
 0x97f   :  { %13844 = vst [vmem:[#allocation207_spill] sm:$0xff] %v11756_v32 }
 0x980   :  { %13845 = vst [vmem:[#allocation208_spill] sm:$0xff] %v11758_v33  ;;  %v11760_v58 = vpop.f32.mrf.mxu0 }
 0x981   :  { %13846 = vst [vmem:[#allocation209_spill] sm:$0xff] %v11760_v58  ;;  %6050 = vmatmul.f32.gmra.mxu1 %v11762_v62 }
 0x982   :  { %5423 = vmatmul.f32.gmra.mxu2 %v11735_v34  ;;  %6372 = vmatmul.f32.gmra.mxu3 %v4746_v2  ;;  %v4747_v2 = vld [vmem:[#allocation3 + $0xb0] sm:$0xff] }
 0x983   :  { %6575 = vmatmul.f32.gmra.mxu0 %v4808_v15  ;;  %v4809_v15 = vld [vmem:[#allocation3 + $0x99] sm:$0xff] }
 0x985   :  { %v11769_v43 = vpop.f32.mrf.mxu2  ;;  %v11771_v32 = vpop.f32.mrf.mxu3 }
 0x986   :  { %13847 = vst [vmem:[#allocation210_spill] sm:$0xff] %v11769_v43  ;;  %v11773_v58 = vpop.f32.mrf.mxu1 }
 0x987   :  { %13848 = vst [vmem:[#allocation211_spill] sm:$0xff] %v11771_v32 }
 0x988   :  { %13849 = vst [vmem:[#allocation212_spill] sm:$0xff] %v11773_v58  ;;  %v11775_v33 = vpop.f32.mrf.mxu0  ;;  %v11789_v58 = vld [vmem:[#allocation3 + $0x259] sm:$0xff] }
 0x989   :  { %13850 = vst [vmem:[#allocation213_spill] sm:$0xff] %v11775_v33  ;;  %6053 = vmatmul.f32.gmra.mxu1 %v11777_v14  ;;  %v4748_v33 = vld [vmem:[#allocation3 + $0xc0] sm:$0xff] }
 0x98a   :  { %5426 = vmatmul.f32.gmra.mxu2 %v11750_v60  ;;  %6375 = vmatmul.f32.gmra.mxu3 %v4747_v2  ;;  %v5011_v2 = vld [vmem:[%s13501_s4 + $0x298] sm:$0xff] }
 0x98b   :  { %6578 = vmatmul.f32.gmra.mxu0 %v4809_v15  ;;  %6129 = vmatpush.msra.mxu2 %v5011_v2 }
 0x98d   :  { %v11781_v42 = vpop.f32.mrf.mxu2  ;;  %v11783_v1 = vpop.f32.mrf.mxu3 }
 0x98e   :  { %13851 = vst [vmem:[#allocation214_spill] sm:$0xff] %v11781_v42  ;;  %v11785_v43 = vpop.f32.mrf.mxu1  ;;  %v11804_v42 = vld [vmem:[#allocation3 + $0x261] sm:$0xff] }
 0x98f   :  { %13852 = vst [vmem:[#allocation215_spill] sm:$0xff] %v11783_v1 }
 0x990   :  { %13853 = vst [vmem:[#allocation216_spill] sm:$0xff] %v11785_v43  ;;  %v11787_v32 = vpop.f32.mrf.mxu0 }
 0x991   :  { %13854 = vst [vmem:[#allocation217_spill] sm:$0xff] %v11787_v32  ;;  %6056 = vmatmul.f32.gmra.mxu1 %v11789_v58 }
 0x992   :  { %5429 = vmatmul.f32.gmra.mxu2 %v11762_v62  ;;  %6378 = vmatmul.f32.gmra.mxu3 %v4748_v33  ;;  %v4749_v33 = vld [vmem:[#allocation3 + $0xc8] sm:$0xff] }
 0x993   :  { %6581 = vmatmul.f32.gmra.mxu0 %v4810_v56 }
 0x995   :  { %v11796_v15 = vpop.f32.mrf.mxu2  ;;  %v11798_v1 = vpop.f32.mrf.mxu3 }
 0x996   :  { %13855 = vst [vmem:[#allocation218_spill] sm:$0xff] %v11796_v15  ;;  %v11800_v32 = vpop.f32.mrf.mxu1 }
 0x997   :  { %13856 = vst [vmem:[#allocation219_spill] sm:$0xff] %v11798_v1 }
 0x998   :  { %13857 = vst [vmem:[#allocation220_spill] sm:$0xff] %v11800_v32  ;;  %v11802_v43 = vpop.f32.mrf.mxu0  ;;  %v11816_v32 = vld [vmem:[#allocation3 + $0x271] sm:$0xff] }
 0x999   :  { %13858 = vst [vmem:[#allocation221_spill] sm:$0xff] %v11802_v43  ;;  %6059 = vmatmul.f32.gmra.mxu1 %v11804_v42  ;;  %v4750_v43 = vld [vmem:[#allocation3 + $0xd8] sm:$0xff] }
 0x99a   :  { %5432 = vmatmul.f32.gmra.mxu2 %v11777_v14  ;;  %6381 = vmatmul.f32.gmra.mxu3 %v4749_v33 }
 0x99b   :  { %6584 = vmatmul.f32.gmra.mxu0 %v4811_v12  ;;  %v5059_v12 = vld [vmem:[%s13501_s4 + $0x418] sm:$0xff] }
 0x99c   :  { %6756 = vmatpush.msra.mxu1 %v5059_v12  ;;  %7538 = vmatpush.msrb.mxu3 %v5059_v12 }
 0x99d   :  { %v11808_v56 = vpop.f32.mrf.mxu2  ;;  %v11810_v2 = vpop.f32.mrf.mxu3 }
 0x99e   :  { %13859 = vst [vmem:[#allocation222_spill] sm:$0xff] %v11808_v56  ;;  %v11812_v15 = vpop.f32.mrf.mxu1  ;;  %v11831_v56 = vld [vmem:[#allocation3 + $0x279] sm:$0xff] }
 0x99f   :  { %13860 = vst [vmem:[#allocation223_spill] sm:$0xff] %v11810_v2 }
 0x9a0   :  { %13861 = vst [vmem:[#allocation224_spill] sm:$0xff] %v11812_v15  ;;  %v11814_v1 = vpop.f32.mrf.mxu0 }
 0x9a1   :  { %13862 = vst [vmem:[#allocation225_spill] sm:$0xff] %v11814_v1  ;;  %6062 = vmatmul.f32.gmra.mxu1 %v11816_v32 }
 0x9a2   :  { %5435 = vmatmul.f32.gmra.mxu2 %v11789_v58  ;;  %6384 = vmatmul.f32.gmra.mxu3 %v4750_v43  ;;  %v4751_v43 = vld [vmem:[#allocation3 + $0xe0] sm:$0xff] }
 0x9a3   :  { %6587 = vmatmul.f32.gmra.mxu0 %v4812_v28  ;;  %v4813_v28 = vld [vmem:[#allocation3 + $0xc9] sm:$0xff] }
 0x9a5   :  { %v11823_v33 = vpop.f32.mrf.mxu2  ;;  %v11825_v2 = vpop.f32.mrf.mxu3 }
 0x9a6   :  { %13863 = vst [vmem:[#allocation226_spill] sm:$0xff] %v11823_v33  ;;  %v11827_v1 = vpop.f32.mrf.mxu1 }
 0x9a7   :  { %13864 = vst [vmem:[#allocation227_spill] sm:$0xff] %v11825_v2 }
 0x9a8   :  { %13865 = vst [vmem:[#allocation228_spill] sm:$0xff] %v11827_v1  ;;  %v11829_v15 = vpop.f32.mrf.mxu0  ;;  %v11843_v1 = vld [vmem:[#allocation3 + $0x289] sm:$0xff] }
 0x9a9   :  { %13866 = vst [vmem:[#allocation229_spill] sm:$0xff] %v11829_v15  ;;  %6065 = vmatmul.f32.gmra.mxu1 %v11831_v56  ;;  %v4752_v15 = vld [vmem:[#allocation3 + $0xf0] sm:$0xff] }
 0x9aa   :  { %5438 = vmatmul.f32.gmra.mxu2 %v11804_v42  ;;  %6387 = vmatmul.f32.gmra.mxu3 %v4751_v43  ;;  %v5010_v43 = vld [vmem:[%s13501_s4 + $0x290] sm:$0xff] }
 0x9ab   :  { %6590 = vmatmul.f32.gmra.mxu0 %v4813_v28  ;;  %6130 = vmatpush.msra.mxu2 %v5010_v43 }
 0x9ad   :  { %v11835_v31 = vpop.f32.mrf.mxu2  ;;  %v11837_v12 = vpop.f32.mrf.mxu3 }
 0x9ae   :  { %13867 = vst [vmem:[#allocation230_spill] sm:$0xff] %v11835_v31  ;;  %v11839_v33 = vpop.f32.mrf.mxu1  ;;  %v11858_v31 = vld [vmem:[#allocation3 + $0x291] sm:$0xff] }
 0x9af   :  { %13868 = vst [vmem:[#allocation231_spill] sm:$0xff] %v11837_v12 }
 0x9b0   :  { %13869 = vst [vmem:[#allocation232_spill] sm:$0xff] %v11839_v33  ;;  %v11841_v2 = vpop.f32.mrf.mxu0 }
 0x9b1   :  { %13870 = vst [vmem:[#allocation233_spill] sm:$0xff] %v11841_v2  ;;  %6068 = vmatmul.f32.gmra.mxu1 %v11843_v1 }
 0x9b2   :  { %5441 = vmatmul.f32.gmra.mxu2 %v11816_v32  ;;  %6390 = vmatmul.f32.gmra.mxu3 %v4752_v15  ;;  %v4753_v15 = vld [vmem:[#allocation3 + $0xf8] sm:$0xff] }
 0x9b3   :  { %6593 = vmatmul.f32.gmra.mxu0 %v4814_v51 }
 0x9b5   :  { %v11850_v28 = vpop.f32.mrf.mxu2  ;;  %v11852_v12 = vpop.f32.mrf.mxu3 }
 0x9b6   :  { %13871 = vst [vmem:[#allocation234_spill] sm:$0xff] %v11850_v28  ;;  %v11854_v2 = vpop.f32.mrf.mxu1 }
 0x9b7   :  { %13872 = vst [vmem:[#allocation235_spill] sm:$0xff] %v11854_v2  ;;  %v11870_v2 = vld [vmem:[#allocation3 + $0x2a1] sm:$0xff] }
 0x9b8   :  { %v11856_v33 = vpop.f32.mrf.mxu0 }
 0x9b9   :  { %13873 = vst [vmem:[#allocation236_spill] sm:$0xff] %v11856_v33  ;;  %6071 = vmatmul.f32.gmra.mxu1 %v11858_v31  ;;  %v4754_v33 = vld [vmem:[#allocation3 + $0x108] sm:$0xff] }
 0x9ba   :  { %5444 = vmatmul.f32.gmra.mxu2 %v11831_v56  ;;  %6393 = vmatmul.f32.gmra.mxu3 %v4753_v15 }
 0x9bb   :  { %6596 = vmatmul.f32.gmra.mxu0 %v4815_v11  ;;  %v5058_v11 = vld [vmem:[%s13501_s4 + $0x410] sm:$0xff] }
 0x9bc   :  { %6757 = vmatpush.msra.mxu1 %v5058_v11  ;;  %7539 = vmatpush.msrb.mxu3 %v5058_v11 }
 0x9bd   :  { %v11862_v51 = vpop.f32.mrf.mxu2  ;;  %v11864_v43 = vpop.f32.mrf.mxu3 }
 0x9be   :  { %13874 = vst [vmem:[#allocation237_spill] sm:$0xff] %v11862_v51  ;;  %v11866_v28 = vpop.f32.mrf.mxu1 }
 0x9bf   :  { %13875 = vst [vmem:[#allocation238_spill] sm:$0xff] %v11866_v28 }
 0x9c0   :  { %v11868_v23 = vpop.f32.mrf.mxu0 }
 0x9c1   :  { %6074 = vmatmul.f32.gmra.mxu1 %v11870_v2 }
 0x9c2   :  { %5447 = vmatmul.f32.gmra.mxu2 %v11843_v1  ;;  %6396 = vmatmul.f32.gmra.mxu3 %v4754_v33  ;;  %v4755_v33 = vld [vmem:[#allocation3 + $0x110] sm:$0xff] }
 0x9c3   :  { %6599 = vmatmul.f32.gmra.mxu0 %v4816_v24  ;;  %v4817_v24 = vld [vmem:[#allocation3 + $0xf9] sm:$0xff] }
 0x9c5   :  { %v11877_v15 = vpop.f32.mrf.mxu2  ;;  %v11879_v28 = vpop.f32.mrf.mxu3 }
 0x9c6   :  { %13876 = vst [vmem:[#allocation239_spill] sm:$0xff] %v11877_v15  ;;  %v11881_v51 = vpop.f32.mrf.mxu1 }
 0x9c7   :  { %13877 = vst [vmem:[#allocation240_spill] sm:$0xff] %v11881_v51  ;;  %v11897_v51 = vld [vmem:[#allocation3 + $0x2b9] sm:$0xff] }
 0x9c8   :  { %v11883_v37 = vpop.f32.mrf.mxu0 }
 0x9c9   :  { %6077 = vmatmul.f32.gmra.mxu1 %v11885_v3 }
 0x9ca   :  { %5450 = vmatmul.f32.gmra.mxu2 %v11858_v31  ;;  %6399 = vmatmul.f32.gmra.mxu3 %v4755_v33  ;;  %v5009_v33 = vld [vmem:[%s13501_s4 + $0x288] sm:$0xff] }
 0x9cb   :  { %6602 = vmatmul.f32.gmra.mxu0 %v4817_v24  ;;  %6131 = vmatpush.msra.mxu2 %v5009_v33 }
 0x9cd   :  { %v11889_v45 = vpop.f32.mrf.mxu2  ;;  %v11891_v11 = vpop.f32.mrf.mxu3 }
 0x9ce   :  { %13878 = vst [vmem:[#allocation241_spill] sm:$0xff] %v11889_v45  ;;  %v11893_v15 = vpop.f32.mrf.mxu1 }
 0x9cf   :  { %13879 = vst [vmem:[#allocation242_spill] sm:$0xff] %v11893_v15 }
 0x9d0   :  { %v11895_v30 = vpop.f32.mrf.mxu0 }
 0x9d1   :  { %6080 = vmatmul.f32.gmra.mxu1 %v11897_v51 }
 0x9d2   :  { %5453 = vmatmul.f32.gmra.mxu2 %v11870_v2  ;;  %6402 = vmatmul.f32.gmra.mxu3 %v4756_v40  ;;  %v4757_v40 = vld [vmem:[#allocation3 + $0x128] sm:$0xff] }
 0x9d3   :  { %6605 = vmatmul.f32.gmra.mxu0 %v4818_v0 }
 0x9d5   :  { %v11904_v24 = vpop.f32.mrf.mxu2  ;;  %v11906_v15 = vpop.f32.mrf.mxu3 }
 0x9d6   :  { %13880 = vst [vmem:[#allocation243_spill] sm:$0xff] %v11904_v24  ;;  %v11908_v45 = vpop.f32.mrf.mxu1 }
 0x9d7   :  { %13881 = vst [vmem:[#allocation244_spill] sm:$0xff] %v11906_v15  ;;  %v4758_v15 = vld [vmem:[#allocation3 + $0x138] sm:$0xff] }
 0x9d8   :  { %13882 = vst [vmem:[#allocation245_spill] sm:$0xff] %v11908_v45  ;;  %v11910_v61 = vpop.f32.mrf.mxu0  ;;  %v11924_v45 = vld [vmem:[#allocation3 + $0x2d1] sm:$0xff] }
 0x9d9   :  { %6083 = vmatmul.f32.gmra.mxu1 %v11912_v53  ;;  %13888 = vst [vmem:[#allocation251_spill] sm:$0xff] %v11924_v45 }
 0x9da   :  { %5456 = vmatmul.f32.gmra.mxu2 %v11885_v3  ;;  %6405 = vmatmul.f32.gmra.mxu3 %v4757_v40 }
 0x9db   :  { %6608 = vmatmul.f32.gmra.mxu0 %v4819_v41  ;;  %v5057_v41 = vld [vmem:[%s13501_s4 + $0x408] sm:$0xff] }
 0x9dc   :  { %6758 = vmatpush.msra.mxu1 %v5057_v41  ;;  %7540 = vmatpush.msrb.mxu3 %v5057_v41 }
 0x9dd   :  { %v11916_v0 = vpop.f32.mrf.mxu2  ;;  %v11918_v33 = vpop.f32.mrf.mxu3 }
 0x9de   :  { %13884 = vst [vmem:[#allocation247_spill] sm:$0xff] %v11916_v0  ;;  %v11920_v24 = vpop.f32.mrf.mxu1 }
 0x9df   :  { %13885 = vst [vmem:[#allocation248_spill] sm:$0xff] %v11918_v33  ;;  %v11937_v33 = vld [vmem:[#allocation3 + $0x2d9] sm:$0xff] }
 0x9e0   :  { %13886 = vst [vmem:[#allocation249_spill] sm:$0xff] %v11920_v24  ;;  %v11922_v50 = vpop.f32.mrf.mxu0 }
 0x9e1   :  { %13887 = vst [vmem:[#allocation250_spill] sm:$0xff] %v11922_v50  ;;  %6086 = vmatmul.f32.gmra.mxu1 %v11924_v45  ;;  %v4759_v50 = vld [vmem:[#allocation3 + $0x140] sm:$0xff] }
 0x9e2   :  { %5459 = vmatmul.f32.gmra.mxu2 %v11897_v51  ;;  %6408 = vmatmul.f32.gmra.mxu3 %v4758_v15  ;;  %13892 = vst [vmem:[#allocation255_spill] sm:$0xff] %v11937_v33 }
 0x9e3   :  { %6611 = vmatmul.f32.gmra.mxu0 %v4820_v7  ;;  %v4821_v7 = vld [vmem:[#allocation3 + $0x129] sm:$0xff] }
 0x9e5   :  { %v11931_v40 = vpop.f32.mrf.mxu2  ;;  %v11933_v24 = vpop.f32.mrf.mxu3 }
 0x9e6   :  { %13889 = vst [vmem:[#allocation252_spill] sm:$0xff] %v11931_v40  ;;  %v11935_v0 = vpop.f32.mrf.mxu1 }
 0x9e7   :  { %13890 = vst [vmem:[#allocation253_spill] sm:$0xff] %v11933_v24  ;;  %v4663_v24 = vld [vmem:[#allocation3 + $0x2e9] sm:$0xff] }
 0x9e8   :  { %13891 = vst [vmem:[#allocation254_spill] sm:$0xff] %v11935_v0  ;;  %v11940_v15 = vpop.f32.mrf.mxu0  ;;  %v4760_v0 = vld [vmem:[#allocation3 + $0x150] sm:$0xff] }
 0x9e9   :  { %6089 = vmatmul.f32.gmra.mxu1 %v11937_v33  ;;  %13893 = vst [vmem:[#allocation256_spill] sm:$0xff] %v11940_v15  ;;  %v5008_v15 = vld [vmem:[%s13501_s4 + $0x280] sm:$0xff] }
 0x9ea   :  { %5462 = vmatmul.f32.gmra.mxu2 %v11912_v53  ;;  %6411 = vmatmul.f32.gmra.mxu3 %v4759_v50  ;;  %v4761_v53 = vld [vmem:[#allocation3 + $0x158] sm:$0xff] }
 0x9eb   :  { %6614 = vmatmul.f32.gmra.mxu0 %v4821_v7  ;;  %6132 = vmatpush.msra.mxu2 %v5008_v15 }
 0x9ed   :  { %v11943_v35 = vpop.f32.mrf.mxu2  ;;  %v11945_v41 = vpop.f32.mrf.mxu3 }
 0x9ee   :  { %13894 = vst [vmem:[#allocation257_spill] sm:$0xff] %v11943_v35  ;;  %v11947_v40 = vpop.f32.mrf.mxu1 }
 0x9ef   :  { %13895 = vst [vmem:[#allocation258_spill] sm:$0xff] %v11945_v41  ;;  %v4664_v41 = vld [vmem:[#allocation3 + $0x2f1] sm:$0xff] }
 0x9f0   :  { %13896 = vst [vmem:[#allocation259_spill] sm:$0xff] %v11947_v40  ;;  %v11953_v50 = vpop.f32.mrf.mxu0 }
 0x9f1   :  { %6092 = vmatmul.f32.gmra.mxu1 %v4663_v24  ;;  %13897 = vst [vmem:[#allocation260_spill] sm:$0xff] %v11953_v50 }
 0x9f2   :  { %5465 = vmatmul.f32.gmra.mxu2 %v11924_v45  ;;  %6414 = vmatmul.f32.gmra.mxu3 %v4760_v0  ;;  %v4823_v0 = vld [vmem:[#allocation3 + $0x141] sm:$0xff] }
 0x9f3   :  { %6617 = vmatmul.f32.gmra.mxu0 %v4822_v63 }
 0x9f5   :  { %v11955_v7 = vpop.f32.mrf.mxu2  ;;  %v11957_v35 = vpop.f32.mrf.mxu3 }
 0x9f6   :  { %13898 = vst [vmem:[#allocation261_spill] sm:$0xff] %v11955_v7  ;;  %v11959_v40 = vpop.f32.mrf.mxu1  ;;  %v4665_v7 = vld [vmem:[#allocation3 + $0x301] sm:$0xff] }
 0x9f7   :  { %13899 = vst [vmem:[#allocation262_spill] sm:$0xff] %v11957_v35  ;;  %v4762_v35 = vld [vmem:[#allocation3 + $0x168] sm:$0xff] }
 0x9f8   :  { %13900 = vst [vmem:[#allocation263_spill] sm:$0xff] %v11959_v40  ;;  %v11968_v50 = vpop.f32.mrf.mxu0  ;;  %v4824_v40 = vld [vmem:[#allocation3 + $0x151] sm:$0xff] }
 0x9f9   :  { %6095 = vmatmul.f32.gmra.mxu1 %v4664_v41  ;;  %13904 = vst [vmem:[#allocation267_spill] sm:$0xff] %v11968_v50 }
 0x9fa   :  { %5468 = vmatmul.f32.gmra.mxu2 %v11937_v33  ;;  %6417 = vmatmul.f32.gmra.mxu3 %v4761_v53  ;;  %v5056_v53 = vld [vmem:[%s13501_s4 + $0x400] sm:$0xff] }
 0x9fb   :  { %6620 = vmatmul.f32.gmra.mxu0 %v4823_v0  ;;  %6759 = vmatpush.msra.mxu1 %v5056_v53 }
 0x9fc   :  { %7541 = vmatpush.msrb.mxu3 %v5056_v53  ;;  %v4667_v53 = vld [vmem:[#allocation3 + $0x319] sm:$0xff] }
 0x9fd   :  { %v11962_v45 = vpop.f32.mrf.mxu2  ;;  %v11964_v63 = vpop.f32.mrf.mxu3 }
 0x9fe   :  { %13901 = vst [vmem:[#allocation264_spill] sm:$0xff] %v11962_v45  ;;  %v11966_v15 = vpop.f32.mrf.mxu1 }
 0x9ff   :  { %13902 = vst [vmem:[#allocation265_spill] sm:$0xff] %v11964_v63  ;;  %v4666_v63 = vld [vmem:[#allocation3 + $0x309] sm:$0xff] }
 0xa00   :  { %13903 = vst [vmem:[#allocation266_spill] sm:$0xff] %v11966_v15  ;;  %v11979_v50 = vpop.f32.mrf.mxu0 }
 0xa01   :  { %6098 = vmatmul.f32.gmra.mxu1 %v4665_v7  ;;  %13908 = vst [vmem:[#allocation271_spill] sm:$0xff] %v11979_v50 }
 0xa02   :  { %5471 = vmatmul.f32.gmra.mxu2 %v4663_v24  ;;  %6420 = vmatmul.f32.gmra.mxu3 %v4762_v35  ;;  %v4763_v24 = vld [vmem:[#allocation3 + $0x170] sm:$0xff]  ;;  %v4825_v35 = vld [vmem:[#allocation3 + $0x159] sm:$0xff] }
 0xa03   :  { %6623 = vmatmul.f32.gmra.mxu0 %v4824_v40 }
 0xa05   :  { %v11973_v0 = vpop.f32.mrf.mxu2  ;;  %v11977_v15 = vpop.f32.mrf.mxu3 }
 0xa06   :  { %13905 = vst [vmem:[#allocation268_spill] sm:$0xff] %v11973_v0  ;;  %v11975_v45 = vpop.f32.mrf.mxu1  ;;  %v4764_v0 = vld [vmem:[#allocation3 + $0x180] sm:$0xff] }
 0xa07   :  { %13906 = vst [vmem:[#allocation269_spill] sm:$0xff] %v11975_v45  ;;  %v4826_v45 = vld [vmem:[#allocation3 + $0x169] sm:$0xff] }
 0xa08   :  { %13907 = vst [vmem:[#allocation270_spill] sm:$0xff] %v11977_v15  ;;  %v11987_v15 = vpop.f32.mrf.mxu0 }
 0xa09   :  { %6101 = vmatmul.f32.gmra.mxu1 %v4666_v63 }
 0xa0a   :  { %5474 = vmatmul.f32.gmra.mxu2 %v4664_v41  ;;  %6423 = vmatmul.f32.gmra.mxu3 %v4763_v24  ;;  %v4668_v24 = vld [vmem:[#allocation3 + $0x321] sm:$0xff] }
 0xa0b   :  { %6626 = vmatmul.f32.gmra.mxu0 %v4825_v35  ;;  %v4765_v35 = vld [vmem:[#allocation3 + $0x188] sm:$0xff] }
 0xa0d   :  { %v11981_v40 = vpop.f32.mrf.mxu2  ;;  %v11985_v44 = vpop.f32.mrf.mxu3 }
 0xa0e   :  { %13909 = vst [vmem:[#allocation272_spill] sm:$0xff] %v11981_v40  ;;  %v11983_v33 = vpop.f32.mrf.mxu1 }
 0xa0f   :  { %13910 = vst [vmem:[#allocation273_spill] sm:$0xff] %v11983_v33  ;;  %v4827_v33 = vld [vmem:[#allocation3 + $0x171] sm:$0xff] }
 0xa10   :  { %13911 = vst [vmem:[#allocation274_spill] sm:$0xff] %v11985_v44  ;;  %v11995_v44 = vpop.f32.mrf.mxu0 }
 0xa11   :  { %6104 = vmatmul.f32.gmra.mxu1 %v4667_v53 }
 0xa12   :  { %5477 = vmatmul.f32.gmra.mxu2 %v4665_v7  ;;  %6426 = vmatmul.f32.gmra.mxu3 %v4764_v0 }
 0xa13   :  { %6629 = vmatmul.f32.gmra.mxu0 %v4826_v45  ;;  %v4669_v45 = vld [vmem:[#allocation3 + $0x331] sm:$0xff] }
 0xa15   :  { %v11989_v50 = vpop.f32.mrf.mxu2  ;;  %v11993_v40 = vpop.f32.mrf.mxu3 }
 0xa16   :  { %13912 = vst [vmem:[#allocation275_spill] sm:$0xff] %v11989_v50  ;;  %v11991_v41 = vpop.f32.mrf.mxu1  ;;  %v12001_v50 = vld [vmem:[#allocation3] sm:$0xff] }
 0xa17   :  { %13913 = vst [vmem:[#allocation276_spill] sm:$0xff] %v11991_v41 }
 0xa18   :  { %13914 = vst [vmem:[#allocation277_spill] sm:$0xff] %v11993_v40  ;;  %v12011_v41 = vpop.f32.mrf.mxu0  ;;  %v4768_v40 = vld [vmem:[#allocation3 + $0x1e0] sm:$0xff] }
 0xa19   :  { %6107 = vmatmul.f32.gmra.mxu1 %v4668_v24  ;;  %13917 = vst [vmem:[#allocation280_spill] sm:$0xff] %v12001_v50 }
 0xa1a   :  { %5480 = vmatmul.f32.gmra.mxu2 %v4666_v63  ;;  %6429 = vmatmul.f32.gmra.mxu3 %v4765_v35  ;;  %13921 = vst [vmem:[#allocation284_spill] sm:$0xff] %v12011_v41 }
 0xa1b   :  { %6632 = vmatmul.f32.gmra.mxu0 %v4827_v33 }
 0xa1d   :  { %v11997_v7 = vpop.f32.mrf.mxu2  ;;  %v12007_v33 = vpop.f32.mrf.mxu3 }
 0xa1e   :  { %13915 = vst [vmem:[#allocation278_spill] sm:$0xff] %v11997_v7  ;;  %v11999_v0 = vpop.f32.mrf.mxu1  ;;  %v4670_v7 = vld [vmem:[#allocation3 + $0x339] sm:$0xff] }
 0xa1f   :  { %13916 = vst [vmem:[#allocation279_spill] sm:$0xff] %v11999_v0  ;;  %v4830_v0 = vld [vmem:[#allocation3 + $0x199] sm:$0xff] }
 0xa20   :  { %13919 = vst [vmem:[#allocation282_spill] sm:$0xff] %v12007_v33  ;;  %v12021_v33 = vpop.f32.mrf.mxu0 }
 0xa21   :  { %6110 = vmatmul.f32.gmra.mxu1 %v4669_v45  ;;  %13925 = vst [vmem:[#allocation288_spill] sm:$0xff] %v12021_v33 }
 0xa22   :  { %5483 = vmatmul.f32.gmra.mxu2 %v4667_v53  ;;  %6432 = vmatmul.f32.gmra.mxu3 %v12001_v50 }
 0xa23   :  { %6635 = vmatmul.f32.gmra.mxu0 %v11597_v9 }
 0xa25   :  { %v12005_v63 = vpop.f32.mrf.mxu2  ;;  %v12019_v9 = vpop.f32.mrf.mxu3 }
 0xa26   :  { %13918 = vst [vmem:[#allocation281_spill] sm:$0xff] %v12005_v63  ;;  %v12009_v35 = vpop.f32.mrf.mxu1  ;;  %v4864_v63 = vld [vmem:[#allocation3 + $0x32] sm:$0xff] }
 0xa27   :  { %13920 = vst [vmem:[#allocation283_spill] sm:$0xff] %v12009_v35  ;;  %v4671_v35 = vld [vmem:[#allocation3 + $0x1a] sm:$0xff] }
 0xa28   :  { %13924 = vst [vmem:[#allocation287_spill] sm:$0xff] %v12019_v9  ;;  %v12029_v33 = vpop.f32.mrf.mxu0 }
 0xa29   :  { %6113 = vmatmul.f32.gmra.mxu1 %v4670_v7 }
 0xa2a   :  { %5486 = vmatmul.f32.gmra.mxu2 %v4668_v24  ;;  %6435 = vmatmul.f32.gmra.mxu3 %v12001_v50  ;;  %v4672_v50 = vld [vmem:[#allocation3 + $0x22] sm:$0xff] }
 0xa2b   :  { %6638 = vmatmul.f32.gmra.mxu0 %v11624_v47  ;;  %v4831_v47 = vld [vmem:[#allocation3 + $0x1a1] sm:$0xff] }
 0xa2d   :  { %v12015_v53 = vpop.f32.mrf.mxu2  ;;  %v12027_v9 = vpop.f32.mrf.mxu3 }
 0xa2e   :  { %13922 = vst [vmem:[#allocation285_spill] sm:$0xff] %v12015_v53  ;;  %v12017_v45 = vpop.f32.mrf.mxu1  ;;  %v4865_v53 = vld [vmem:[#allocation3 + $0x3a] sm:$0xff] }
 0xa2f   :  { %13923 = vst [vmem:[#allocation286_spill] sm:$0xff] %v12017_v45  ;;  %v4769_v45 = vld [vmem:[#allocation3 + $0x1e8] sm:$0xff] }
 0xa30   :  { %13928 = vst [vmem:[#allocation291_spill] sm:$0xff] %v12027_v9  ;;  %v4771_v9 = vld [vmem:[#allocation3 + $0x200] sm:$0xff] }
 0xa31   :  { %6760 = vmatmul.f32.vlgmr.msra.gmra.mxu1 %v4864_v63 }
 0xa32   :  { %6133 = vmatmul.f32.vlgmr.msra.gmra.mxu2 %v4671_v35  ;;  %6438 = vmatmul.f32.gmra.mxu3 %v4768_v40  ;;  %v4770_v35 = vld [vmem:[#allocation3 + $0x1f8] sm:$0xff] }
 0xa33   :  { %6641 = vmatmul.f32.gmra.mxu0 %v4830_v0  ;;  %v4866_v0 = vld [vmem:[#allocation3 + $0x4a] sm:$0xff] }
 0xa35   :  { %v12023_v24 = vpop.f32.mrf.mxu2 }
 0xa36   :  { %13926 = vst [vmem:[#allocation289_spill] sm:$0xff] %v12023_v24  ;;  %v12025_v7 = vpop.f32.mrf.mxu1  ;;  %v12038_v24 = vpop.f32.mrf.mxu0 }
 0xa37   :  { %13927 = vst [vmem:[#allocation290_spill] sm:$0xff] %v12025_v7  ;;  %v12036_v7 = vpop.f32.mrf.mxu3 }
 0xa38   :  { %13931 = vst [vmem:[#allocation294_spill] sm:$0xff] %v12036_v7  ;;  %v4772_v7 = vld [vmem:[#allocation3 + $0x210] sm:$0xff] }
 0xa39   :  { %6763 = vmatmul.f32.gmra.mxu1 %v4865_v53 }
 0xa3a   :  { %6136 = vmatmul.f32.gmra.mxu2 %v4672_v50  ;;  %6441 = vmatmul.f32.gmra.mxu3 %v4769_v45 }
 0xa3b   :  { %6644 = vmatmul.f32.gmra.mxu0 %v4831_v47  ;;  %v4867_v47 = vld [vmem:[#allocation3 + $0x52] sm:$0xff] }
 0xa3d   :  { %v12031_v41 = vpop.f32.mrf.mxu2 }
 0xa3e   :  { %13929 = vst [vmem:[#allocation292_spill] sm:$0xff] %v12031_v41  ;;  %v12033_v40 = vpop.f32.mrf.mxu1  ;;  %v4868_v41 = vld [vmem:[#allocation3 + $0x62] sm:$0xff] }
 0xa3f   :  { %13930 = vst [vmem:[#allocation293_spill] sm:$0xff] %v12033_v40 }
 0xa41   :  { %6766 = vmatmul.f32.gmra.mxu1 %v4866_v0 }
 0xa42   :  { %6139 = vmatmul.f32.gmra.mxu2 %v4864_v63  ;;  %6444 = vmatmul.f32.gmra.mxu3 %v4770_v35  ;;  %v12047_v63 = vpop.f32.mrf.mxu3  ;;  %v12051_v35 = vpop.f32.mrf.mxu0 }
 0xa43   :  { %6647 = vmatmul.f32.gmra.mxu0 %v11655_v26 }
 0xa45   :  { %v12040_v50 = vpop.f32.mrf.mxu2 }
 0xa46   :  { %13932 = vst [vmem:[#allocation295_spill] sm:$0xff] %v12040_v50  ;;  %v12042_v45 = vpop.f32.mrf.mxu1  ;;  %v4773_v50 = vld [vmem:[#allocation3 + $0x218] sm:$0xff] }
 0xa47   :  { %13933 = vst [vmem:[#allocation296_spill] sm:$0xff] %v12042_v45 }
 0xa49   :  { %6769 = vmatmul.f32.gmra.mxu1 %v4867_v47 }
 0xa4a   :  { %6142 = vmatmul.f32.gmra.mxu2 %v4865_v53  ;;  %6447 = vmatmul.f32.gmra.mxu3 %v4771_v9  ;;  %v4869_v9 = vld [vmem:[#allocation3 + $0x6a] sm:$0xff] }
 0xa4b   :  { %6650 = vmatmul.f32.gmra.mxu0 %v11670_v18  ;;  %v12058_v18 = vpop.f32.mrf.mxu3 }
 0xa4c   :  { %13938 = vst [vmem:[#allocation301_spill] sm:$0xff] %v12058_v18 }
 0xa4d   :  { %v12045_v40 = vpop.f32.mrf.mxu2 }
 0xa4e   :  { %13934 = vst [vmem:[#allocation297_spill] sm:$0xff] %v12045_v40  ;;  %v12049_v26 = vpop.f32.mrf.mxu1  ;;  %v12060_v40 = vpop.f32.mrf.mxu0 }
 0xa4f   :  { %13935 = vst [vmem:[#allocation298_spill] sm:$0xff] %v12049_v26 }
 0xa51   :  { %6772 = vmatmul.f32.gmra.mxu1 %v4868_v41 }
 0xa52   :  { %6145 = vmatmul.f32.gmra.mxu2 %v4866_v0  ;;  %6450 = vmatmul.f32.gmra.mxu3 %v4772_v7  ;;  %v4774_v0 = vld [vmem:[#allocation3 + $0x228] sm:$0xff] }
 0xa53   :  { %6653 = vmatmul.f32.gmra.mxu0 %v11681_v10  ;;  %v4870_v10 = vld [vmem:[#allocation3 + $0x7a] sm:$0xff] }
 0xa55   :  { %v12054_v45 = vpop.f32.mrf.mxu2 }
 0xa56   :  { %13936 = vst [vmem:[#allocation299_spill] sm:$0xff] %v12054_v45  ;;  %v12056_v53 = vpop.f32.mrf.mxu1  ;;  %v12067_v45 = vpop.f32.mrf.mxu3 }
 0xa57   :  { %13937 = vst [vmem:[#allocation300_spill] sm:$0xff] %v12056_v53  ;;  %v12069_v53 = vpop.f32.mrf.mxu0 }
 0xa58   :  { %13941 = vst [vmem:[#allocation304_spill] sm:$0xff] %v12067_v45  ;;  %v4776_v45 = vld [vmem:[#allocation3 + $0x240] sm:$0xff] }
 0xa59   :  { %6775 = vmatmul.f32.gmra.mxu1 %v4869_v9 }
 0xa5a   :  { %6148 = vmatmul.f32.gmra.mxu2 %v4867_v47  ;;  %6453 = vmatmul.f32.gmra.mxu3 %v4773_v50  ;;  %v4775_v47 = vld [vmem:[#allocation3 + $0x230] sm:$0xff] }
 0xa5b   :  { %6656 = vmatmul.f32.gmra.mxu0 %v11696_v27  ;;  %v4871_v27 = vld [vmem:[#allocation3 + $0x82] sm:$0xff] }
 0xa5d   :  { %v12063_v26 = vpop.f32.mrf.mxu2 }
 0xa5e   :  { %13939 = vst [vmem:[#allocation302_spill] sm:$0xff] %v12063_v26  ;;  %v12065_v7 = vpop.f32.mrf.mxu1 }
 0xa5f   :  { %13940 = vst [vmem:[#allocation303_spill] sm:$0xff] %v12065_v7  ;;  %v12077_v7 = vpop.f32.mrf.mxu3  ;;  %v12079_v26 = vpop.f32.mrf.mxu0 }
 0xa60   :  { %13944 = vst [vmem:[#allocation307_spill] sm:$0xff] %v12077_v7  ;;  %v4777_v7 = vld [vmem:[#allocation3 + $0x248] sm:$0xff] }
 0xa61   :  { %6778 = vmatmul.f32.gmra.mxu1 %v4870_v10 }
 0xa62   :  { %6151 = vmatmul.f32.gmra.mxu2 %v4868_v41  ;;  %6456 = vmatmul.f32.gmra.mxu3 %v4774_v0 }
 0xa63   :  { %6659 = vmatmul.f32.gmra.mxu0 %v11708_v5  ;;  %v4872_v5 = vld [vmem:[#allocation3 + $0x92] sm:$0xff] }
 0xa65   :  { %v12072_v18 = vpop.f32.mrf.mxu2 }
 0xa66   :  { %13942 = vst [vmem:[#allocation305_spill] sm:$0xff] %v12072_v18  ;;  %v12074_v50 = vpop.f32.mrf.mxu1  ;;  %v4873_v18 = vld [vmem:[#allocation3 + $0x9a] sm:$0xff] }
 0xa67   :  { %13943 = vst [vmem:[#allocation306_spill] sm:$0xff] %v12074_v50 }
 0xa69   :  { %6781 = vmatmul.f32.gmra.mxu1 %v4871_v27 }
 0xa6a   :  { %6154 = vmatmul.f32.gmra.mxu2 %v4869_v9  ;;  %6459 = vmatmul.f32.gmra.mxu3 %v4775_v47  ;;  %v12088_v9 = vpop.f32.mrf.mxu3  ;;  %v12092_v47 = vpop.f32.mrf.mxu0 }
 0xa6b   :  { %6662 = vmatmul.f32.gmra.mxu0 %v11723_v19 }
 0xa6d   :  { %v12081_v41 = vpop.f32.mrf.mxu2 }
 0xa6e   :  { %13945 = vst [vmem:[#allocation308_spill] sm:$0xff] %v12081_v41  ;;  %v12083_v0 = vpop.f32.mrf.mxu1  ;;  %v4778_v41 = vld [vmem:[#allocation3 + $0x258] sm:$0xff] }
 0xa6f   :  { %13946 = vst [vmem:[#allocation309_spill] sm:$0xff] %v12083_v0 }
 0xa71   :  { %6784 = vmatmul.f32.gmra.mxu1 %v4872_v5 }
 0xa72   :  { %6157 = vmatmul.f32.gmra.mxu2 %v4870_v10  ;;  %6462 = vmatmul.f32.gmra.mxu3 %v4776_v45  ;;  %v4874_v10 = vld [vmem:[#allocation3 + $0xaa] sm:$0xff] }
 0xa73   :  { %6665 = vmatmul.f32.gmra.mxu0 %v11735_v34  ;;  %v12099_v34 = vpop.f32.mrf.mxu3 }
 0xa74   :  { %13951 = vst [vmem:[#allocation314_spill] sm:$0xff] %v12099_v34 }
 0xa75   :  { %v12086_v50 = vpop.f32.mrf.mxu2 }
 0xa76   :  { %13947 = vst [vmem:[#allocation310_spill] sm:$0xff] %v12086_v50  ;;  %v12090_v19 = vpop.f32.mrf.mxu1  ;;  %v12101_v50 = vpop.f32.mrf.mxu0 }
 0xa77   :  { %13948 = vst [vmem:[#allocation311_spill] sm:$0xff] %v12090_v19 }
 0xa79   :  { %6787 = vmatmul.f32.gmra.mxu1 %v4873_v18 }
 0xa7a   :  { %6160 = vmatmul.f32.gmra.mxu2 %v4871_v27  ;;  %6465 = vmatmul.f32.gmra.mxu3 %v4777_v7  ;;  %v4779_v27 = vld [vmem:[#allocation3 + $0x260] sm:$0xff] }
 0xa7b   :  { %6668 = vmatmul.f32.gmra.mxu0 %v11750_v60  ;;  %v4875_v60 = vld [vmem:[#allocation3 + $0xb2] sm:$0xff] }
 0xa7d   :  { %v12095_v0 = vpop.f32.mrf.mxu2 }
 0xa7e   :  { %13949 = vst [vmem:[#allocation312_spill] sm:$0xff] %v12095_v0  ;;  %v12097_v45 = vpop.f32.mrf.mxu1  ;;  %v12108_v0 = vpop.f32.mrf.mxu3 }
 0xa7f   :  { %13950 = vst [vmem:[#allocation313_spill] sm:$0xff] %v12097_v45  ;;  %v12110_v45 = vpop.f32.mrf.mxu0 }
 0xa80   :  { %13954 = vst [vmem:[#allocation317_spill] sm:$0xff] %v12108_v0  ;;  %v4781_v0 = vld [vmem:[#allocation3 + $0x278] sm:$0xff] }
 0xa81   :  { %6790 = vmatmul.f32.gmra.mxu1 %v4874_v10 }
 0xa82   :  { %6163 = vmatmul.f32.gmra.mxu2 %v4872_v5  ;;  %6468 = vmatmul.f32.gmra.mxu3 %v4778_v41  ;;  %v4780_v5 = vld [vmem:[#allocation3 + $0x270] sm:$0xff] }
 0xa83   :  { %6671 = vmatmul.f32.gmra.mxu0 %v11762_v62  ;;  %v4876_v62 = vld [vmem:[#allocation3 + $0xc2] sm:$0xff] }
 0xa85   :  { %v12104_v19 = vpop.f32.mrf.mxu2 }
 0xa86   :  { %13952 = vst [vmem:[#allocation315_spill] sm:$0xff] %v12104_v19  ;;  %v12106_v7 = vpop.f32.mrf.mxu1 }
 0xa87   :  { %13953 = vst [vmem:[#allocation316_spill] sm:$0xff] %v12106_v7  ;;  %v12118_v7 = vpop.f32.mrf.mxu3  ;;  %v12120_v19 = vpop.f32.mrf.mxu0 }
 0xa88   :  { %13957 = vst [vmem:[#allocation320_spill] sm:$0xff] %v12118_v7  ;;  %v4782_v7 = vld [vmem:[#allocation3 + $0x288] sm:$0xff] }
 0xa89   :  { %6793 = vmatmul.f32.gmra.mxu1 %v4875_v60 }
 0xa8a   :  { %6166 = vmatmul.f32.gmra.mxu2 %v4873_v18  ;;  %6471 = vmatmul.f32.gmra.mxu3 %v4779_v27 }
 0xa8b   :  { %6674 = vmatmul.f32.gmra.mxu0 %v11777_v14  ;;  %v4877_v14 = vld [vmem:[#allocation3 + $0xca] sm:$0xff] }
 0xa8d   :  { %v12113_v34 = vpop.f32.mrf.mxu2 }
 0xa8e   :  { %13955 = vst [vmem:[#allocation318_spill] sm:$0xff] %v12113_v34  ;;  %v12115_v41 = vpop.f32.mrf.mxu1  ;;  %v4878_v34 = vld [vmem:[#allocation3 + $0xda] sm:$0xff] }
 0xa8f   :  { %13956 = vst [vmem:[#allocation319_spill] sm:$0xff] %v12115_v41 }
 0xa91   :  { %6796 = vmatmul.f32.gmra.mxu1 %v4876_v62 }
 0xa92   :  { %6169 = vmatmul.f32.gmra.mxu2 %v4874_v10  ;;  %6474 = vmatmul.f32.gmra.mxu3 %v4780_v5  ;;  %v12129_v10 = vpop.f32.mrf.mxu3  ;;  %v12133_v5 = vpop.f32.mrf.mxu0 }
 0xa93   :  { %6677 = vmatmul.f32.gmra.mxu0 %v11789_v58  ;;  %13961 = vst [vmem:[#allocation324_spill] sm:$0xff] %v12129_v10  ;;  %v4881_v10 = vld [vmem:[#allocation3 + $0xfa] sm:$0xff] }
 0xa95   :  { %v12122_v18 = vpop.f32.mrf.mxu2 }
 0xa96   :  { %13958 = vst [vmem:[#allocation321_spill] sm:$0xff] %v12122_v18  ;;  %v12124_v27 = vpop.f32.mrf.mxu1  ;;  %v4783_v18 = vld [vmem:[#allocation3 + $0x290] sm:$0xff] }
 0xa97   :  { %13959 = vst [vmem:[#allocation322_spill] sm:$0xff] %v12124_v27 }
 0xa99   :  { %6799 = vmatmul.f32.gmra.mxu1 %v4877_v14 }
 0xa9a   :  { %6172 = vmatmul.f32.gmra.mxu2 %v4875_v60  ;;  %6477 = vmatmul.f32.gmra.mxu3 %v4781_v0  ;;  %v4879_v60 = vld [vmem:[#allocation3 + $0xe2] sm:$0xff] }
 0xa9b   :  { %6680 = vmatmul.f32.gmra.mxu0 %v11804_v42  ;;  %v12140_v42 = vpop.f32.mrf.mxu3 }
 0xa9c   :  { %13965 = vst [vmem:[#allocation328_spill] sm:$0xff] %v12140_v42 }
 0xa9d   :  { %v12127_v41 = vpop.f32.mrf.mxu2 }
 0xa9e   :  { %13960 = vst [vmem:[#allocation323_spill] sm:$0xff] %v12127_v41  ;;  %v12131_v58 = vpop.f32.mrf.mxu1  ;;  %v12142_v41 = vpop.f32.mrf.mxu0 }
 0xa9f   :  { %13962 = vst [vmem:[#allocation325_spill] sm:$0xff] %v12131_v58 }
 0xaa1   :  { %6802 = vmatmul.f32.gmra.mxu1 %v4878_v34 }
 0xaa2   :  { %6175 = vmatmul.f32.gmra.mxu2 %v4876_v62  ;;  %6480 = vmatmul.f32.gmra.mxu3 %v4782_v7  ;;  %v4880_v62 = vld [vmem:[#allocation3 + $0xf2] sm:$0xff] }
 0xaa3   :  { %6683 = vmatmul.f32.gmra.mxu0 %v11816_v32  ;;  %v5302_v32 = vadd.f32 %v11391_v59, %v10951_v46  ;;  %v5305_v46 = vadd.f32 %v11406_v13, %v10960_v8 }
 0xaa5   :  { %v12136_v27 = vpop.f32.mrf.mxu2 }
 0xaa6   :  { %13963 = vst [vmem:[#allocation326_spill] sm:$0xff] %v12136_v27  ;;  %v12138_v0 = vpop.f32.mrf.mxu1  ;;  %v4784_v27 = vld [vmem:[#allocation3 + $0x2a0] sm:$0xff]  ;;  %v12151_v42 = vpop.f32.mrf.mxu0 }
 0xaa7   :  { %13964 = vst [vmem:[#allocation327_spill] sm:$0xff] %v12138_v0  ;;  %v12149_v0 = vpop.f32.mrf.mxu3 }
 0xaa8   :  { %13967 = vst [vmem:[#allocation330_spill] sm:$0xff] %v12149_v0 }
 0xaa9   :  { %6805 = vmatmul.f32.gmra.mxu1 %v4879_v60 }
 0xaaa   :  { %6178 = vmatmul.f32.gmra.mxu2 %v4877_v14  ;;  %6483 = vmatmul.f32.gmra.mxu3 %v4783_v18  ;;  %v5511_v18 = vadd.f32 %v10958_v39, %v5302_v32  ;;  %v5514_v39 = vadd.f32 %v10975_v38, %v5305_v46  ;;  %v4786_v38 = vld [vmem:[#allocation3 + $0x2b8] sm:$0xff] }
 0xaab   :  { %6686 = vmatmul.f32.gmra.mxu0 %v11831_v56  ;;  %v4883_v46 = vld [vmem:[#allocation3 + $0x112] sm:$0xff] }
 0xaac   :  { %v5720_v0 = vadd.f32 %v10979_v29, %v5511_v18  ;;  %v4882_v18 = vld [vmem:[#allocation3 + $0x10a] sm:$0xff] }
 0xaad   :  { %v12145_v58 = vpop.f32.mrf.mxu2 }
 0xaae   :  { %13966 = vst [vmem:[#allocation329_spill] sm:$0xff] %v12145_v58  ;;  %v6761_v7 = vpop.f32.mrf.mxu1  ;;  %v5929_v8 = vadd.f32 %v11383_v22, %v5720_v0  ;;  %v12168_v13 = vpop.f32.mrf.mxu0 }
 0xab1   :  { %6808 = vmatmul.f32.gmra.mxu1 %v4880_v62 }
 0xab2   :  { %6181 = vmatmul.f32.gmra.mxu2 %v4878_v34  ;;  %6486 = vmatmul.f32.gmra.mxu3 %v4784_v27  ;;  %v4785_v34 = vld [vmem:[#allocation3 + $0x2a8] sm:$0xff] }
 0xab3   :  { %6689 = vmatmul.f32.gmra.mxu0 %v11843_v1 }
 0xab5   :  { %v6134_v56 = vpop.f32.mrf.mxu2 }
 0xab6   :  { %v6135_v14 = vadd.f32 %v6134_v56, %v11492_v52  ;;  %v6764_v58 = vpop.f32.mrf.mxu1  ;;  %v12163_v52 = vpop.f32.mrf.mxu3 }
 0xab8   :  { %v6344_v59 = vadd.f32 %v11852_v12, %v6135_v14 }
 0xab9   :  { %6811 = vmatmul.f32.gmra.mxu1 %v4881_v10 }
 0xaba   :  { %v6553_v27 = vadd.f32 %v11868_v23, %v6344_v59  ;;  %6184 = vmatmul.f32.gmra.mxu2 %v4879_v60  ;;  %6489 = vmatmul.f32.gmra.mxu3 %v4785_v34  ;;  %v5308_v23 = vadd.f32 %v11415_v36, %v10977_v55 }
 0xabb   :  { %6692 = vmatmul.f32.gmra.mxu0 %v11858_v31  ;;  %v5723_v31 = vadd.f32 %v10990_v21, %v5514_v39  ;;  %v12182_v21 = vpop.f32.mrf.mxu0 }
 0xabc   :  { %v12165_v1 = vadd.f32 %v6761_v7, %v6553_v27  ;;  %v5517_v22 = vadd.f32 %v10986_v25, %v5308_v23  ;;  %v4787_v25 = vld [vmem:[#allocation3 + $0x2c0] sm:$0xff] }
 0xabd   :  { %v6137_v12 = vpop.f32.mrf.mxu2  ;;  %v5932_v56 = vadd.f32 %v11395_v57, %v5723_v31 }
 0xabe   :  { %13968 = vst [vmem:[#allocation331_spill] sm:$0xff] %v12165_v1  ;;  %v6138_v29 = vadd.f32 %v6137_v12, %v5929_v8  ;;  %v6767_v32 = vpop.f32.mrf.mxu1  ;;  %v12180_v36 = vpop.f32.mrf.mxu3 }
 0xac0   :  { %v6347_v60 = vadd.f32 %v11864_v43, %v6138_v29 }
 0xac1   :  { %6814 = vmatmul.f32.gmra.mxu1 %v4882_v18 }
 0xac2   :  { %v6556_v7 = vadd.f32 %v11883_v37, %v6347_v60  ;;  %6187 = vmatmul.f32.gmra.mxu2 %v4880_v62  ;;  %6492 = vmatmul.f32.gmra.mxu3 %v4786_v38  ;;  %v5311_v37 = vadd.f32 %v11430_v16, %v10988_v54  ;;  %v13975_v60 = vld [vmem:[#allocation130_spill] sm:$0xff]  ;;  %v13976_v38 = vld [vmem:[#allocation244_spill] sm:$0xff] }
 0xac3   :  { %6695 = vmatmul.f32.gmra.mxu0 %v11870_v2  ;;  %v5726_v2 = vadd.f32 %v11007_v4, %v5517_v22  ;;  %v5314_v4 = vadd.f32 %v11442_v48, %v11005_v20  ;;  %v13973_v48 = vld [vmem:[#allocation122_spill] sm:$0xff] }
 0xac4   :  { %v12177_v0 = vadd.f32 %v6764_v58, %v6556_v7  ;;  %v5520_v57 = vadd.f32 %v11003_v6, %v5311_v37  ;;  %v4788_v6 = vld [vmem:[#allocation3 + $0x2d0] sm:$0xff] }
 0xac5   :  { %v6140_v55 = vpop.f32.mrf.mxu2  ;;  %v5935_v34 = vadd.f32 %v11410_v49, %v5726_v2  ;;  %v13971_v49 = vld [vmem:[#allocation12_spill] sm:$0xff]  ;;  %v4885_v22 = vld [vmem:[#allocation3 + $0x12a] sm:$0xff] }
 0xac6   :  { %13969 = vst [vmem:[#allocation332_spill] sm:$0xff] %v12177_v0  ;;  %v6141_v43 = vadd.f32 %v6140_v55, %v5932_v56  ;;  %v6770_v14 = vpop.f32.mrf.mxu1  ;;  %v12196_v27 = vpop.f32.mrf.mxu3  ;;  %v5729_v39 = vadd.f32 %v11018_v17, %v5520_v57  ;;  %v5523_v12 = vadd.f32 %v13971_v49, %v5314_v4  ;;  %v13974_v17 = vld [vmem:[#allocation14_spill] sm:$0xff]  ;;  %v4789_v56 = vld [vmem:[#allocation3 + $0x2d8] sm:$0xff]  ;;  %v13983_v4 = vld [vmem:[#allocation17_spill] sm:$0xff] }
 0xac7   :  { %v5317_v31 = vadd.f32 %v13975_v60, %v13974_v17  ;;  %v13978_v55 = vld [vmem:[#allocation250_spill] sm:$0xff] }
 0xac8   :  { %v6350_v62 = vadd.f32 %v11879_v28, %v6141_v43  ;;  %v5938_v29 = vadd.f32 %v13973_v48, %v5729_v39  ;;  %v13979_v37 = vld [vmem:[#allocation246_spill] sm:$0xff]  ;;  %v4790_v48 = vld [vmem:[#allocation3 + $0x2e8] sm:$0xff] }
 0xac9   :  { %6817 = vmatmul.f32.gmra.mxu1 %v4883_v46  ;;  %v13986_v49 = vld [vmem:[#allocation22_spill] sm:$0xff] }
 0xaca   :  { %v6559_v58 = vadd.f32 %v11895_v30, %v6350_v62  ;;  %6190 = vmatmul.f32.gmra.mxu2 %v4881_v10  ;;  %6495 = vmatmul.f32.gmra.mxu3 %v4787_v25  ;;  %v4884_v10 = vld [vmem:[#allocation3 + $0x122] sm:$0xff] }
 0xacb   :  { %6698 = vmatmul.f32.gmra.mxu0 %v11885_v3  ;;  %v12200_v3 = vpop.f32.mrf.mxu0  ;;  %v13980_v62 = vld [vmem:[#allocation16_spill] sm:$0xff] }
 0xacc   :  { %v12191_v59 = vadd.f32 %v6767_v32, %v6559_v58  ;;  %v5526_v2 = vadd.f32 %v13980_v62, %v5317_v31  ;;  %v13982_v58 = vld [vmem:[#allocation125_spill] sm:$0xff] }
 0xacd   :  { %v6143_v54 = vpop.f32.mrf.mxu2 }
 0xace   :  { %13970 = vst [vmem:[#allocation333_spill] sm:$0xff] %v12191_v59  ;;  %v6144_v16 = vadd.f32 %v6143_v54, %v5935_v34  ;;  %v6773_v28 = vpop.f32.mrf.mxu1  ;;  %v4704_v59 = vld [vmem:[#allocation3 + $0x1d2] sm:$0xff] }
 0xad0   :  { %v6353_v30 = vadd.f32 %v11891_v11, %v6144_v16 }
 0xad1   :  { %6820 = vmatmul.f32.gmra.mxu1 %v4884_v10 }
 0xad2   :  { %v6562_v8 = vadd.f32 %v11910_v61, %v6353_v30  ;;  %6193 = vmatmul.f32.gmra.mxu2 %v4882_v18  ;;  %6498 = vmatmul.f32.gmra.mxu3 %v4788_v6  ;;  %v13977_v61 = vld [vmem:[#allocation18_spill] sm:$0xff]  ;;  %v13985_v6 = vld [vmem:[#allocation248_spill] sm:$0xff] }
 0xad3   :  { %6701 = vmatmul.f32.gmra.mxu0 %v11897_v51  ;;  %v5732_v18 = vadd.f32 %v13977_v61, %v5523_v12  ;;  %v12212_v51 = vpop.f32.mrf.mxu3  ;;  %v13984_v30 = vld [vmem:[#allocation134_spill] sm:$0xff]  ;;  %v5735_v12 = vadd.f32 %v13986_v49, %v5526_v2  ;;  %v14000_v49 = vld [vmem:[#allocation132_spill] sm:$0xff] }
 0xad4   :  { %v12205_v20 = vadd.f32 %v6770_v14, %v6562_v8  ;;  %v12215_v14 = vpop.f32.mrf.mxu0  ;;  %v5320_v39 = vadd.f32 %v13984_v30, %v13983_v4  ;;  %v13996_v4 = vld [vmem:[#allocation260_spill] sm:$0xff]  ;;  %v13997_v30 = vld [vmem:[#allocation255_spill] sm:$0xff] }
 0xad5   :  { %v6146_v11 = vpop.f32.mrf.mxu2  ;;  %v5941_v57 = vadd.f32 %v13982_v58, %v5732_v18  ;;  %v4887_v58 = vld [vmem:[#allocation3 + $0x142] sm:$0xff] }
 0xad6   :  { %13972 = vst [vmem:[#allocation12_spill] sm:$0xff] %v12205_v20  ;;  %v6147_v32 = vadd.f32 %v6146_v11, %v5938_v29  ;;  %v6776_v23 = vpop.f32.mrf.mxu1  ;;  %v13987_v29 = vld [vmem:[#allocation256_spill] sm:$0xff] }
 0xad8   :  { %v6356_v7 = vadd.f32 %v13976_v38, %v6147_v32  ;;  %v13989_v32 = vld [vmem:[#allocation20_spill] sm:$0xff] }
 0xad9   :  { %6823 = vmatmul.f32.gmra.mxu1 %v4885_v22  ;;  %v5529_v17 = vadd.f32 %v13989_v32, %v5320_v39  ;;  %v13991_v38 = vld [vmem:[#allocation128_spill] sm:$0xff] }
 0xada   :  { %v6565_v43 = vadd.f32 %v13978_v55, %v6356_v7  ;;  %6196 = vmatmul.f32.gmra.mxu2 %v4883_v46  ;;  %6501 = vmatmul.f32.gmra.mxu3 %v4789_v56  ;;  %v4886_v46 = vld [vmem:[#allocation3 + $0x13a] sm:$0xff]  ;;  %v5944_v7 = vadd.f32 %v13991_v38, %v5735_v12  ;;  %v14002_v38 = vld [vmem:[#allocation142_spill] sm:$0xff] }
 0xadb   :  { %6704 = vmatmul.f32.gmra.mxu0 %v13979_v37  ;;  %v12229_v60 = vpop.f32.mrf.mxu3  ;;  %v13993_v37 = vld [vmem:[#allocation138_spill] sm:$0xff]  ;;  %v13998_v39 = vld [vmem:[#allocation24_spill] sm:$0xff] }
 0xadc   :  { %v12219_v25 = vadd.f32 %v6773_v28, %v6565_v43  ;;  %v13988_v28 = vld [vmem:[#allocation251_spill] sm:$0xff]  ;;  %v12234_v61 = vpop.f32.mrf.mxu0  ;;  %v13992_v43 = vld [vmem:[#allocation21_spill] sm:$0xff] }
 0xadd   :  { %v6149_v34 = vpop.f32.mrf.mxu2  ;;  %v5323_v62 = vadd.f32 %v13993_v37, %v13992_v43  ;;  %v14004_v43 = vld [vmem:[#allocation27_spill] sm:$0xff] }
 0xade   :  { %13981 = vst [vmem:[#allocation122_spill] sm:$0xff] %v12219_v25  ;;  %v6150_v54 = vadd.f32 %v6149_v34, %v5941_v57  ;;  %v6779_v16 = vpop.f32.mrf.mxu1  ;;  %v13995_v57 = vld [vmem:[#allocation26_spill] sm:$0xff] }
 0xadf   :  { %v5738_v34 = vadd.f32 %v13995_v57, %v5529_v17  ;;  %v14001_v17 = vld [vmem:[#allocation25_spill] sm:$0xff]  ;;  %v14006_v57 = vld [vmem:[#allocation11_spill] sm:$0xff] }
 0xae0   :  { %v6359_v8 = vadd.f32 %v13985_v6, %v6150_v54  ;;  %v4791_v54 = vld [vmem:[#allocation3 + $0x2f0] sm:$0xff]  ;;  %v5532_v6 = vadd.f32 %v13998_v39, %v5323_v62  ;;  %v4792_v62 = vld [vmem:[#allocation3 + $0x300] sm:$0xff] }
 0xae1   :  { %6826 = vmatmul.f32.gmra.mxu1 %v4886_v46  ;;  %v5947_v12 = vadd.f32 %v14000_v49, %v5738_v34 }
 0xae2   :  { %v6568_v11 = vadd.f32 %v13987_v29, %v6359_v8  ;;  %6199 = vmatmul.f32.gmra.mxu2 %v4884_v10  ;;  %6504 = vmatmul.f32.gmra.mxu3 %v4790_v48  ;;  %v13994_v10 = vld [vmem:[#allocation253_spill] sm:$0xff]  ;;  %v5741_v37 = vadd.f32 %v14004_v43, %v5532_v6 }
 0xae3   :  { %6707 = vmatmul.f32.gmra.mxu0 %v13988_v28  ;;  %v12246_v29 = vpop.f32.mrf.mxu3 }
 0xae4   :  { %v12231_v31 = vadd.f32 %v6776_v23, %v6568_v11  ;;  %v12248_v32 = vpop.f32.mrf.mxu0 }
 0xae5   :  { %v6152_v18 = vpop.f32.mrf.mxu2 }
 0xae6   :  { %13990 = vst [vmem:[#allocation14_spill] sm:$0xff] %v12231_v31  ;;  %v6153_v56 = vadd.f32 %v6152_v18, %v5944_v7  ;;  %v6782_v55 = vpop.f32.mrf.mxu1  ;;  %v5326_v7 = vadd.f32 %v14002_v38, %v14001_v17  ;;  %v14011_v17 = vld [vmem:[#allocation262_spill] sm:$0xff] }
 0xae7   :  { %v14047_v31 = vld [vmem:[#allocation46_spill] sm:$0xff] }
 0xae8   :  { %v6362_v2 = vadd.f32 %v13994_v10, %v6153_v56  ;;  %v4888_v56 = vld [vmem:[#allocation3 + $0x152] sm:$0xff]  ;;  %v5535_v34 = vadd.f32 %v14006_v57, %v5326_v7  ;;  %v4793_v7 = vld [vmem:[#allocation3 + $0x308] sm:$0xff]  ;;  %v14016_v57 = vld [vmem:[#allocation140_spill] sm:$0xff] }
 0xae9   :  { %6829 = vmatmul.f32.gmra.mxu1 %v4887_v58 }
 0xaea   :  { %v6571_v23 = vadd.f32 %v13996_v4, %v6362_v2  ;;  %6202 = vmatmul.f32.gmra.mxu2 %v4885_v22  ;;  %6507 = vmatmul.f32.gmra.mxu3 %v4791_v54  ;;  %v14003_v22 = vld [vmem:[#allocation258_spill] sm:$0xff]  ;;  %v14008_v4 = vld [vmem:[#allocation136_spill] sm:$0xff] }
 0xaeb   :  { %6710 = vmatmul.f32.gmra.mxu0 %v13997_v30  ;;  %v4854_v2 = vld [vmem:[#allocation3 + $0x2e9] sm:$0xff] }
 0xaec   :  { %v12243_v8 = vadd.f32 %v6779_v16, %v6571_v23  ;;  %v14005_v16 = vld [vmem:[#allocation267_spill] sm:$0xff]  ;;  %v5950_v23 = vadd.f32 %v14008_v4, %v5741_v37  ;;  %v12265_v43 = vpop.f32.mrf.mxu0 }
 0xaed   :  { %v6155_v48 = vpop.f32.mrf.mxu2  ;;  %v4855_v37 = vld [vmem:[#allocation3 + $0x2f1] sm:$0xff] }
 0xaee   :  { %13999 = vst [vmem:[#allocation130_spill] sm:$0xff] %v12243_v8  ;;  %v6156_v11 = vadd.f32 %v6155_v48, %v5947_v12  ;;  %v6785_v28 = vpop.f32.mrf.mxu1  ;;  %v14009_v12 = vld [vmem:[#allocation13_spill] sm:$0xff]  ;;  %v14010_v48 = vld [vmem:[#allocation146_spill] sm:$0xff] }
 0xaef   :  { %v5329_v6 = vadd.f32 %v14010_v48, %v14009_v12  ;;  %v14018_v12 = vld [vmem:[#allocation150_spill] sm:$0xff] }
 0xaf0   :  { %v6365_v18 = vadd.f32 %v14003_v22, %v6156_v11  ;;  %v12261_v11 = vpop.f32.mrf.mxu3  ;;  %v14012_v22 = vld [vmem:[#allocation31_spill] sm:$0xff] }
 0xaf1   :  { %6832 = vmatmul.f32.gmra.mxu1 %v4888_v56 }
 0xaf2   :  { %v6574_v10 = vadd.f32 %v14005_v16, %v6365_v18  ;;  %6205 = vmatmul.f32.gmra.mxu2 %v4886_v46  ;;  %6510 = vmatmul.f32.gmra.mxu3 %v4792_v62  ;;  %v4889_v46 = vld [vmem:[#allocation3 + $0x15a] sm:$0xff]  ;;  %v5744_v18 = vadd.f32 %v14012_v22, %v5535_v34  ;;  %v14014_v16 = vld [vmem:[#allocation29_spill] sm:$0xff]  ;;  %v14017_v34 = vld [vmem:[#allocation30_spill] sm:$0xff] }
 0xaf3   :  { %6713 = vmatmul.f32.gmra.mxu0 %v4854_v2  ;;  %v5332_v48 = vadd.f32 %v14018_v12, %v14017_v34  ;;  %v14024_v34 = vld [vmem:[#allocation34_spill] sm:$0xff] }
 0xaf4   :  { %v12256_v54 = vadd.f32 %v6782_v55, %v6574_v10  ;;  %v14013_v55 = vld [vmem:[#allocation271_spill] sm:$0xff]  ;;  %v5538_v10 = vadd.f32 %v14014_v16, %v5329_v6  ;;  %v5953_v4 = vadd.f32 %v14016_v57, %v5744_v18  ;;  %v4856_v6 = vld [vmem:[#allocation3 + $0x301] sm:$0xff]  ;;  %v12279_v18 = vpop.f32.mrf.mxu0  ;;  %v14025_v12 = vld [vmem:[#allocation154_spill] sm:$0xff] }
 0xaf5   :  { %v6158_v30 = vpop.f32.mrf.mxu2  ;;  %v14023_v57 = vld [vmem:[#allocation144_spill] sm:$0xff] }
 0xaf6   :  { %14007 = vst [vmem:[#allocation244_spill] sm:$0xff] %v12256_v54  ;;  %v6159_v39 = vadd.f32 %v6158_v30, %v5950_v23  ;;  %v6788_v49 = vpop.f32.mrf.mxu1  ;;  %v4890_v54 = vld [vmem:[#allocation3 + $0x16a] sm:$0xff] }
 0xaf8   :  { %v6368_v38 = vadd.f32 %v14011_v17, %v6159_v39  ;;  %v14019_v17 = vld [vmem:[#allocation265_spill] sm:$0xff] }
 0xaf9   :  { %6835 = vmatmul.f32.gmra.mxu1 %v4889_v46 }
 0xafa   :  { %v6577_v62 = vadd.f32 %v14013_v55, %v6368_v38  ;;  %6208 = vmatmul.f32.gmra.mxu2 %v4887_v58  ;;  %6513 = vmatmul.f32.gmra.mxu3 %v4793_v7  ;;  %v14020_v38 = vld [vmem:[#allocation35_spill] sm:$0xff]  ;;  %v12276_v55 = vpop.f32.mrf.mxu3 }
 0xafb   :  { %6716 = vmatmul.f32.gmra.mxu0 %v4855_v37  ;;  %v5747_v58 = vadd.f32 %v14020_v38, %v5538_v10  ;;  %v4794_v7 = vld [vmem:[#allocation3 + $0x318] sm:$0xff]  ;;  %v14026_v38 = vld [vmem:[#allocation270_spill] sm:$0xff] }
 0xafc   :  { %v12269_v2 = vadd.f32 %v6785_v28, %v6577_v62  ;;  %v14021_v62 = vld [vmem:[#allocation33_spill] sm:$0xff] }
 0xafd   :  { %v6161_v23 = vpop.f32.mrf.mxu2  ;;  %v5541_v37 = vadd.f32 %v14021_v62, %v5332_v48  ;;  %v14028_v48 = vld [vmem:[#allocation37_spill] sm:$0xff] }
 0xafe   :  { %14015 = vst [vmem:[#allocation18_spill] sm:$0xff] %v12269_v2  ;;  %v6162_v30 = vadd.f32 %v6161_v23, %v5953_v4  ;;  %v6791_v39 = vpop.f32.mrf.mxu1  ;;  %v5956_v4 = vadd.f32 %v14023_v57, %v5747_v58  ;;  %v4795_v2 = vld [vmem:[#allocation3 + $0x320] sm:$0xff] }
 0xaff   :  { %v14030_v57 = vld [vmem:[#allocation148_spill] sm:$0xff] }
 0xb00   :  { %v6371_v22 = vadd.f32 %v14019_v17, %v6162_v30  ;;  %v5335_v17 = vadd.f32 %v14025_v12, %v14024_v34  ;;  %v14031_v12 = vld [vmem:[#allocation38_spill] sm:$0xff] }
 0xb01   :  { %6838 = vmatmul.f32.gmra.mxu1 %v4890_v54 }
 0xb02   :  { %v6580_v28 = vadd.f32 %v11987_v15, %v6371_v22  ;;  %6211 = vmatmul.f32.gmra.mxu2 %v4888_v56  ;;  %6516 = vmatmul.f32.gmra.mxu3 %v4794_v7  ;;  %v4891_v56 = vld [vmem:[#allocation3 + $0x172] sm:$0xff]  ;;  %v5544_v58 = vadd.f32 %v14028_v48, %v5335_v17  ;;  %v14035_v48 = vld [vmem:[#allocation284_spill] sm:$0xff] }
 0xb03   :  { %6719 = vmatmul.f32.gmra.mxu0 %v4856_v6  ;;  %v14027_v22 = vld [vmem:[#allocation39_spill] sm:$0xff]  ;;  %v4796_v17 = vld [vmem:[#allocation3 + $0x330] sm:$0xff] }
 0xb04   :  { %v12282_v16 = vadd.f32 %v6788_v49, %v6580_v28  ;;  %v5750_v7 = vadd.f32 %v14027_v22, %v5541_v37  ;;  %v4857_v49 = vld [vmem:[#allocation3 + $0x309] sm:$0xff]  ;;  %v12291_v28 = vpop.f32.mrf.mxu3  ;;  %v14034_v22 = vld [vmem:[#allocation43_spill] sm:$0xff] }
 0xb05   :  { %v6164_v23 = vpop.f32.mrf.mxu2 }
 0xb06   :  { %14022 = vst [vmem:[#allocation250_spill] sm:$0xff] %v12282_v16  ;;  %v6165_v10 = vadd.f32 %v6164_v23, %v5956_v4  ;;  %v6794_v30 = vpop.f32.mrf.mxu1  ;;  %v5959_v4 = vadd.f32 %v14030_v57, %v5750_v7  ;;  %v12296_v23 = vpop.f32.mrf.mxu0  ;;  %v4858_v7 = vld [vmem:[#allocation3 + $0x319] sm:$0xff]  ;;  %v14040_v16 = vld [vmem:[#allocation162_spill] sm:$0xff] }
 0xb08   :  { %v6374_v15 = vadd.f32 %v14026_v38, %v6165_v10  ;;  %v14032_v38 = vld [vmem:[#allocation158_spill] sm:$0xff] }
 0xb09   :  { %6841 = vmatmul.f32.gmra.mxu1 %v4891_v56 }
 0xb0a   :  { %v6583_v6 = vadd.f32 %v11995_v44, %v6374_v15  ;;  %6214 = vmatmul.f32.gmra.mxu2 %v4889_v46  ;;  %6519 = vmatmul.f32.gmra.mxu3 %v4795_v2  ;;  %v5338_v44 = vadd.f32 %v14032_v38, %v14031_v12  ;;  %v14033_v46 = vld [vmem:[#allocation274_spill] sm:$0xff]  ;;  %v4892_v15 = vld [vmem:[#allocation3 + $0x182] sm:$0xff] }
 0xb0b   :  { %6722 = vmatmul.f32.gmra.mxu0 %v4857_v49  ;;  %v5753_v49 = vadd.f32 %v14034_v22, %v5544_v58  ;;  %v14039_v22 = vld [vmem:[#allocation42_spill] sm:$0xff] }
 0xb0c   :  { %v12293_v62 = vadd.f32 %v6791_v39, %v6583_v6  ;;  %v14036_v6 = vld [vmem:[#allocation41_spill] sm:$0xff]  ;;  %v12307_v38 = vpop.f32.mrf.mxu3 }
 0xb0d   :  { %v6167_v10 = vpop.f32.mrf.mxu2  ;;  %v5547_v57 = vadd.f32 %v14036_v6, %v5338_v44  ;;  %v4797_v44 = vld [vmem:[#allocation3 + $0x338] sm:$0xff] }
 0xb0e   :  { %14029 = vst [vmem:[#allocation246_spill] sm:$0xff] %v12293_v62  ;;  %v6168_v37 = vadd.f32 %v6167_v10, %v5959_v4  ;;  %v6797_v34 = vpop.f32.mrf.mxu1  ;;  %v14038_v10 = vld [vmem:[#allocation152_spill] sm:$0xff]  ;;  %v12309_v58 = vpop.f32.mrf.mxu0 }
 0xb0f   :  { %v5962_v62 = vadd.f32 %v14038_v10, %v5753_v49  ;;  %v4859_v49 = vld [vmem:[#allocation3 + $0x321] sm:$0xff] }
 0xb10   :  { %v6377_v2 = vadd.f32 %v14033_v46, %v6168_v37 }
 0xb11   :  { %6844 = vmatmul.f32.gmra.mxu1 %v4892_v15 }
 0xb12   :  { %v6586_v39 = vadd.f32 %v14035_v48, %v6377_v2  ;;  %6217 = vmatmul.f32.gmra.mxu2 %v4890_v54  ;;  %6522 = vmatmul.f32.gmra.mxu3 %v4796_v17  ;;  %v5341_v2 = vadd.f32 %v14040_v16, %v14039_v22  ;;  %v14041_v54 = vld [vmem:[#allocation277_spill] sm:$0xff] }
 0xb13   :  { %6725 = vmatmul.f32.gmra.mxu0 %v4858_v7  ;;  %v4893_v48 = vld [vmem:[#allocation3 + $0x18a] sm:$0xff]  ;;  %v14042_v7 = vld [vmem:[#allocation47_spill] sm:$0xff] }
 0xb14   :  { %v12304_v4 = vadd.f32 %v6794_v30, %v6586_v39  ;;  %v5756_v8 = vadd.f32 %v14042_v7, %v5547_v57  ;;  %v14043_v30 = vld [vmem:[#allocation288_spill] sm:$0xff]  ;;  %v14048_v57 = vld [vmem:[#allocation166_spill] sm:$0xff]  ;;  %v12322_v25 = vpop.f32.mrf.mxu3 }
 0xb15   :  { %v6170_v12 = vpop.f32.mrf.mxu2  ;;  %v5344_v7 = vadd.f32 %v14048_v57, %v14047_v31  ;;  %v14054_v31 = vld [vmem:[#allocation160_spill] sm:$0xff] }
 0xb16   :  { %14037 = vst [vmem:[#allocation16_spill] sm:$0xff] %v12304_v4  ;;  %v6171_v37 = vadd.f32 %v6170_v12, %v5962_v62  ;;  %v6800_v46 = vpop.f32.mrf.mxu1  ;;  %v14044_v62 = vld [vmem:[#allocation45_spill] sm:$0xff]  ;;  %v14046_v12 = vld [vmem:[#allocation156_spill] sm:$0xff] }
 0xb17   :  { %v5550_v6 = vadd.f32 %v14044_v62, %v5341_v2  ;;  %v5965_v4 = vadd.f32 %v14046_v12, %v5756_v8  ;;  %v4860_v8 = vld [vmem:[#allocation3 + $0x331] sm:$0xff]  ;;  %v14051_v2 = vld [vmem:[#allocation280_spill] sm:$0xff] }
 0xb18   :  { %v6380_v17 = vadd.f32 %v14041_v54, %v6171_v37  ;;  %v4894_v54 = vld [vmem:[#allocation3 + $0x19a] sm:$0xff] }
 0xb19   :  { %6847 = vmatmul.f32.gmra.mxu1 %v4893_v48 }
 0xb1a   :  { %v6589_v39 = vadd.f32 %v14043_v30, %v6380_v17  ;;  %6220 = vmatmul.f32.gmra.mxu2 %v4891_v56  ;;  %6525 = vmatmul.f32.gmra.mxu3 %v4797_v44  ;;  %v14049_v17 = vld [vmem:[#allocation282_spill] sm:$0xff]  ;;  %v14050_v44 = vld [vmem:[#allocation51_spill] sm:$0xff] }
 0xb1b   :  { %6728 = vmatmul.f32.gmra.mxu0 %v4859_v49  ;;  %v5759_v30 = vadd.f32 %v14050_v44, %v5550_v6  ;;  %v12326_v49 = vpop.f32.mrf.mxu0  ;;  %v4895_v6 = vld [vmem:[#allocation3 + $0x1a2] sm:$0xff]  ;;  %v14056_v44 = vld [vmem:[#allocation170_spill] sm:$0xff] }
 0xb1c   :  { %v12317_v10 = vadd.f32 %v6797_v34, %v6589_v39  ;;  %v12338_v20 = vpop.f32.mrf.mxu3 }
 0xb1d   :  { %v6173_v16 = vpop.f32.mrf.mxu2  ;;  %v5968_v12 = vadd.f32 %v14054_v31, %v5759_v30  ;;  %v14061_v31 = vld [vmem:[#allocation164_spill] sm:$0xff] }
 0xb1e   :  { %14045 = vst [vmem:[#allocation125_spill] sm:$0xff] %v12317_v10  ;;  %v6174_v22 = vadd.f32 %v6173_v16, %v5965_v4  ;;  %v6803_v37 = vpop.f32.mrf.mxu1  ;;  %v14052_v4 = vld [vmem:[#allocation49_spill] sm:$0xff]  ;;  %v14057_v10 = vld [vmem:[#allocation287_spill] sm:$0xff] }
 0xb1f   :  { %v5553_v39 = vadd.f32 %v14052_v4, %v5344_v7 }
 0xb20   :  { %v6383_v56 = vadd.f32 %v14049_v17, %v6174_v22  ;;  %v14055_v17 = vld [vmem:[#allocation50_spill] sm:$0xff] }
 0xb21   :  { %6850 = vmatmul.f32.gmra.mxu1 %v4894_v54  ;;  %v5347_v54 = vadd.f32 %v14056_v44, %v14055_v17  ;;  %v4896_v44 = vld [vmem:[#allocation3 + $0x1e2] sm:$0xff] }
 0xb22   :  { %v6592_v34 = vadd.f32 %v12029_v33, %v6383_v56  ;;  %6223 = vmatmul.f32.gmra.mxu2 %v4892_v15  ;;  %6528 = vmatmul.f32.gmra.mxu3 %v14051_v2  ;;  %v14058_v15 = vld [vmem:[#allocation55_spill] sm:$0xff] }
 0xb23   :  { %6731 = vmatmul.f32.gmra.mxu0 %v4860_v8  ;;  %v5762_v56 = vadd.f32 %v14058_v15, %v5553_v39  ;;  %v12342_v30 = vpop.f32.mrf.mxu0  ;;  %v4703_v15 = vld [vmem:[#allocation3 + $0x1ca] sm:$0xff] }
 0xb24   :  { %v12331_v62 = vadd.f32 %v6800_v46, %v6592_v34  ;;  %v4861_v46 = vld [vmem:[#allocation3 + $0x339] sm:$0xff]  ;;  %v14059_v34 = vld [vmem:[#allocation53_spill] sm:$0xff] }
 0xb25   :  { %v6176_v16 = vpop.f32.mrf.mxu2  ;;  %v5556_v8 = vadd.f32 %v14059_v34, %v5347_v54 }
 0xb26   :  { %14053 = vst [vmem:[#allocation17_spill] sm:$0xff] %v12331_v62  ;;  %v6177_v22 = vadd.f32 %v6176_v16, %v5968_v12  ;;  %v6806_v57 = vpop.f32.mrf.mxu1 }
 0xb28   :  { %v6386_v33 = vadd.f32 %v14057_v10, %v6177_v22  ;;  %v5971_v10 = vadd.f32 %v14061_v31, %v5762_v56  ;;  %v14062_v22 = vld [vmem:[#allocation54_spill] sm:$0xff]  ;;  %v14068_v56 = vld [vmem:[#allocation168_spill] sm:$0xff] }
 0xb29   :  { %6853 = vmatmul.f32.gmra.mxu1 %v4895_v6  ;;  %v14063_v6 = vld [vmem:[#allocation174_spill] sm:$0xff] }
 0xb2a   :  { %v6595_v7 = vadd.f32 %v12038_v24, %v6386_v33  ;;  %6226 = vmatmul.f32.gmra.mxu2 %v4893_v48  ;;  %6531 = vmatmul.f32.gmra.mxu3 %v14051_v2  ;;  %v5350_v17 = vadd.f32 %v14063_v6, %v14062_v22  ;;  %v14064_v24 = vld [vmem:[#allocation291_spill] sm:$0xff]  ;;  %v14069_v22 = vld [vmem:[#allocation58_spill] sm:$0xff] }
 0xb2b   :  { %6734 = vmatmul.f32.gmra.mxu0 %v4861_v46  ;;  %v14065_v33 = vld [vmem:[#allocation59_spill] sm:$0xff]  ;;  %v14070_v6 = vld [vmem:[#allocation178_spill] sm:$0xff] }
 0xb2c   :  { %v12345_v4 = vadd.f32 %v6803_v37, %v6595_v7  ;;  %v5765_v2 = vadd.f32 %v14065_v33, %v5556_v8  ;;  %v14066_v37 = vld [vmem:[#allocation57_spill] sm:$0xff]  ;;  %v14072_v33 = vld [vmem:[#allocation63_spill] sm:$0xff] }
 0xb2d   :  { %v6179_v12 = vpop.f32.mrf.mxu2  ;;  %v5559_v54 = vadd.f32 %v14066_v37, %v5350_v17  ;;  %v4897_v8 = vld [vmem:[#allocation3 + $0x1ea] sm:$0xff] }
 0xb2e   :  { %14060 = vst [vmem:[#allocation134_spill] sm:$0xff] %v12345_v4  ;;  %v6180_v39 = vadd.f32 %v6179_v12, %v5971_v10  ;;  %v6809_v16 = vpop.f32.mrf.mxu1  ;;  %v5974_v34 = vadd.f32 %v14068_v56, %v5765_v2  ;;  %v14075_v2 = vld [vmem:[#allocation172_spill] sm:$0xff] }
 0xb2f   :  { %v5768_v62 = vadd.f32 %v14072_v33, %v5559_v54  ;;  %v4898_v54 = vld [vmem:[#allocation3 + $0x1fa] sm:$0xff] }
 0xb30   :  { %v6389_v48 = vadd.f32 %v14064_v24, %v6180_v39  ;;  %v5353_v39 = vadd.f32 %v14070_v6, %v14069_v22  ;;  %v14071_v24 = vld [vmem:[#allocation294_spill] sm:$0xff]  ;;  %v14078_v6 = vld [vmem:[#allocation67_spill] sm:$0xff] }
 0xb31   :  { %6856 = vmatmul.f32.gmra.mxu1 %v4896_v44 }
 0xb32   :  { %v6598_v46 = vadd.f32 %v12051_v35, %v6389_v48  ;;  %6229 = vmatmul.f32.gmra.mxu2 %v4703_v15  ;;  %v5977_v15 = vadd.f32 %v14075_v2, %v5768_v62  ;;  %v14081_v62 = vld [vmem:[#allocation176_spill] sm:$0xff]  ;;  %v14082_v2 = vld [vmem:[#allocation66_spill] sm:$0xff] }
 0xb34   :  { %v12354_v7 = vadd.f32 %v6806_v57, %v6598_v46  ;;  %v14073_v57 = vld [vmem:[#allocation61_spill] sm:$0xff] }
 0xb35   :  { %v6182_v31 = vpop.f32.mrf.mxu2  ;;  %v5562_v17 = vadd.f32 %v14073_v57, %v5353_v39 }
 0xb36   :  { %14067 = vst [vmem:[#allocation248_spill] sm:$0xff] %v12354_v7  ;;  %v6183_v10 = vadd.f32 %v6182_v31, %v5974_v34  ;;  %v6812_v12 = vpop.f32.mrf.mxu1  ;;  %v14076_v34 = vld [vmem:[#allocation62_spill] sm:$0xff] }
 0xb37   :  { %v14077_v31 = vld [vmem:[#allocation182_spill] sm:$0xff] }
 0xb38   :  { %v6392_v4 = vadd.f32 %v14071_v24, %v6183_v10  ;;  %v5356_v10 = vadd.f32 %v14077_v31, %v14076_v34  ;;  %v5771_v24 = vadd.f32 %v14078_v6, %v5562_v17  ;;  %v4899_v34 = vld [vmem:[#allocation3 + $0x202] sm:$0xff]  ;;  %v14085_v17 = vld [vmem:[#allocation71_spill] sm:$0xff] }
 0xb39   :  { %6859 = vmatmul.f32.gmra.mxu1 %v4897_v8 }
 0xb3a   :  { %v6601_v35 = vadd.f32 %v12060_v40, %v6392_v4  ;;  %6232 = vmatmul.f32.gmra.mxu2 %v4704_v59  ;;  %v14079_v59 = vld [vmem:[#allocation65_spill] sm:$0xff]  ;;  %v5980_v39 = vadd.f32 %v14081_v62, %v5771_v24  ;;  %v14089_v62 = vld [vmem:[#allocation70_spill] sm:$0xff] }
 0xb3b   :  { %v5565_v4 = vadd.f32 %v14079_v59, %v5356_v10 }
 0xb3c   :  { %v12363_v48 = vadd.f32 %v6809_v16, %v6601_v35 }
 0xb3d   :  { %v6185_v46 = vpop.f32.mrf.mxu2  ;;  %v5774_v31 = vadd.f32 %v14085_v17, %v5565_v4  ;;  %v14092_v4 = vld [vmem:[#allocation75_spill] sm:$0xff] }
 0xb3e   :  { %14074 = vst [vmem:[#allocation22_spill] sm:$0xff] %v12363_v48  ;;  %v6186_v37 = vadd.f32 %v6185_v46, %v5977_v15  ;;  %v6815_v56 = vpop.f32.mrf.mxu1  ;;  %v14083_v15 = vld [vmem:[#allocation186_spill] sm:$0xff] }
 0xb3f   :  { %v5359_v46 = vadd.f32 %v14083_v15, %v14082_v2  ;;  %v4900_v15 = vld [vmem:[#allocation3 + $0x212] sm:$0xff] }
 0xb40   :  { %v6395_v22 = vadd.f32 %v12047_v63, %v6186_v37  ;;  %v14084_v63 = vld [vmem:[#allocation301_spill] sm:$0xff] }
 0xb41   :  { %6862 = vmatmul.f32.gmra.mxu1 %v4898_v54 }
 0xb42   :  { %v6604_v40 = vadd.f32 %v12069_v53, %v6395_v22  ;;  %6235 = vmatmul.f32.gmra.mxu2 %v4896_v44  ;;  %v14086_v44 = vld [vmem:[#allocation69_spill] sm:$0xff]  ;;  %v14088_v22 = vld [vmem:[#allocation180_spill] sm:$0xff] }
 0xb43   :  { %v5983_v6 = vadd.f32 %v14088_v22, %v5774_v31  ;;  %v14096_v22 = vld [vmem:[#allocation74_spill] sm:$0xff] }
 0xb44   :  { %v12372_v16 = vadd.f32 %v6812_v12, %v6604_v40  ;;  %v5568_v12 = vadd.f32 %v14086_v44, %v5359_v46 }
 0xb45   :  { %v6188_v33 = vpop.f32.mrf.mxu2 }
 0xb46   :  { %14080 = vst [vmem:[#allocation256_spill] sm:$0xff] %v12372_v16  ;;  %v6189_v35 = vadd.f32 %v6188_v33, %v5980_v39  ;;  %v6818_v57 = vpop.f32.mrf.mxu1  ;;  %v14090_v39 = vld [vmem:[#allocation190_spill] sm:$0xff] }
 0xb47   :  { %v5362_v33 = vadd.f32 %v14090_v39, %v14089_v62  ;;  %v4901_v39 = vld [vmem:[#allocation3 + $0x21a] sm:$0xff] }
 0xb48   :  { %v6398_v37 = vadd.f32 %v14084_v63, %v6189_v35  ;;  %v14091_v35 = vld [vmem:[#allocation304_spill] sm:$0xff]  ;;  %v5777_v63 = vadd.f32 %v14092_v4, %v5568_v12  ;;  %v14099_v12 = vld [vmem:[#allocation79_spill] sm:$0xff] }
 0xb49   :  { %6865 = vmatmul.f32.gmra.mxu1 %v4899_v34 }
 0xb4a   :  { %v6607_v53 = vadd.f32 %v12079_v26, %v6398_v37  ;;  %6238 = vmatmul.f32.gmra.mxu2 %v4897_v8  ;;  %v14093_v8 = vld [vmem:[#allocation73_spill] sm:$0xff]  ;;  %v14095_v37 = vld [vmem:[#allocation184_spill] sm:$0xff] }
 0xb4b   :  { %v5986_v17 = vadd.f32 %v14095_v37, %v5777_v63  ;;  %v14103_v37 = vld [vmem:[#allocation78_spill] sm:$0xff] }
 0xb4c   :  { %v12381_v10 = vadd.f32 %v6815_v56, %v6607_v53  ;;  %v5571_v56 = vadd.f32 %v14093_v8, %v5362_v33 }
 0xb4d   :  { %v6191_v24 = vpop.f32.mrf.mxu2 }
 0xb4e   :  { %14087 = vst [vmem:[#allocation251_spill] sm:$0xff] %v12381_v10  ;;  %v6192_v40 = vadd.f32 %v6191_v24, %v5983_v6  ;;  %v6821_v59 = vpop.f32.mrf.mxu1  ;;  %v14097_v6 = vld [vmem:[#allocation194_spill] sm:$0xff] }
 0xb4f   :  { %v5365_v24 = vadd.f32 %v14097_v6, %v14096_v22  ;;  %v4902_v22 = vld [vmem:[#allocation3 + $0x22a] sm:$0xff] }
 0xb50   :  { %v6401_v2 = vadd.f32 %v14091_v35, %v6192_v40  ;;  %v14098_v40 = vld [vmem:[#allocation307_spill] sm:$0xff]  ;;  %v5780_v35 = vadd.f32 %v14099_v12, %v5571_v56 }
 0xb51   :  { %6868 = vmatmul.f32.gmra.mxu1 %v4900_v15  ;;  %v14105_v56 = vld [vmem:[#allocation83_spill] sm:$0xff] }
 0xb52   :  { %v6610_v26 = vadd.f32 %v12092_v47, %v6401_v2  ;;  %6241 = vmatmul.f32.gmra.mxu2 %v4898_v54  ;;  %v14100_v54 = vld [vmem:[#allocation77_spill] sm:$0xff]  ;;  %v14102_v2 = vld [vmem:[#allocation188_spill] sm:$0xff] }
 0xb53   :  { %v5989_v4 = vadd.f32 %v14102_v2, %v5780_v35  ;;  %v14110_v2 = vld [vmem:[#allocation202_spill] sm:$0xff] }
 0xb54   :  { %v12390_v46 = vadd.f32 %v6818_v57, %v6610_v26  ;;  %v5574_v57 = vadd.f32 %v14100_v54, %v5365_v24  ;;  %v14109_v54 = vld [vmem:[#allocation82_spill] sm:$0xff] }
 0xb55   :  { %v6194_v31 = vpop.f32.mrf.mxu2 }
 0xb56   :  { %14094 = vst [vmem:[#allocation20_spill] sm:$0xff] %v12390_v46  ;;  %v6195_v53 = vadd.f32 %v6194_v31, %v5986_v17  ;;  %v6824_v44 = vpop.f32.mrf.mxu1  ;;  %v14104_v17 = vld [vmem:[#allocation198_spill] sm:$0xff]  ;;  %v5783_v6 = vadd.f32 %v14105_v56, %v5574_v57  ;;  %v14112_v57 = vld [vmem:[#allocation87_spill] sm:$0xff] }
 0xb57   :  { %v5368_v31 = vadd.f32 %v14104_v17, %v14103_v37 }
 0xb58   :  { %v6404_v62 = vadd.f32 %v14098_v40, %v6195_v53  ;;  %v14108_v40 = vld [vmem:[#allocation192_spill] sm:$0xff] }
 0xb59   :  { %6871 = vmatmul.f32.gmra.mxu1 %v4901_v39 }
 0xb5a   :  { %v6613_v47 = vadd.f32 %v12101_v50, %v6404_v62  ;;  %6244 = vmatmul.f32.gmra.mxu2 %v4899_v34  ;;  %v14106_v34 = vld [vmem:[#allocation81_spill] sm:$0xff]  ;;  %v5992_v62 = vadd.f32 %v14108_v40, %v5783_v6  ;;  %v14117_v40 = vld [vmem:[#allocation206_spill] sm:$0xff] }
 0xb5c   :  { %v12399_v33 = vadd.f32 %v6821_v59, %v6613_v47  ;;  %v5577_v59 = vadd.f32 %v14106_v34, %v5368_v31  ;;  %v14115_v31 = vld [vmem:[#allocation196_spill] sm:$0xff]  ;;  %v14116_v34 = vld [vmem:[#allocation86_spill] sm:$0xff] }
 0xb5d   :  { %v6197_v63 = vpop.f32.mrf.mxu2 }
 0xb5e   :  { %14101 = vst [vmem:[#allocation128_spill] sm:$0xff] %v12399_v33  ;;  %v6198_v26 = vadd.f32 %v6197_v63, %v5989_v4  ;;  %v6827_v8 = vpop.f32.mrf.mxu1  ;;  %v5371_v4 = vadd.f32 %v14110_v2, %v14109_v54  ;;  %v5786_v37 = vadd.f32 %v14112_v57, %v5577_v59  ;;  %v4904_v54 = vld [vmem:[#allocation3 + $0x242] sm:$0xff]  ;;  %v14119_v59 = vld [vmem:[#allocation91_spill] sm:$0xff] }
 0xb60   :  { %v6407_v53 = vadd.f32 %v12088_v9, %v6198_v26  ;;  %v14111_v9 = vld [vmem:[#allocation314_spill] sm:$0xff] }
 0xb61   :  { %6874 = vmatmul.f32.gmra.mxu1 %v4902_v22  ;;  %v4903_v26 = vld [vmem:[#allocation3 + $0x232] sm:$0xff] }
 0xb62   :  { %v6616_v50 = vadd.f32 %v12110_v45, %v6407_v53  ;;  %6247 = vmatmul.f32.gmra.mxu2 %v4900_v15  ;;  %v14113_v15 = vld [vmem:[#allocation85_spill] sm:$0xff]  ;;  %v5995_v53 = vadd.f32 %v14115_v31, %v5786_v37  ;;  %v14124_v31 = vld [vmem:[#allocation210_spill] sm:$0xff] }
 0xb64   :  { %v12408_v24 = vadd.f32 %v6824_v44, %v6616_v50  ;;  %v5580_v44 = vadd.f32 %v14113_v15, %v5371_v4  ;;  %v14123_v15 = vld [vmem:[#allocation90_spill] sm:$0xff] }
 0xb65   :  { %v6200_v12 = vpop.f32.mrf.mxu2 }
 0xb66   :  { %14107 = vst [vmem:[#allocation21_spill] sm:$0xff] %v12408_v24  ;;  %v6201_v35 = vadd.f32 %v6200_v12, %v5992_v62  ;;  %v6830_v47 = vpop.f32.mrf.mxu1  ;;  %v5374_v62 = vadd.f32 %v14117_v40, %v14116_v34  ;;  %v14118_v12 = vld [vmem:[#allocation317_spill] sm:$0xff]  ;;  %v5789_v2 = vadd.f32 %v14119_v59, %v5580_v44  ;;  %v14126_v44 = vld [vmem:[#allocation95_spill] sm:$0xff] }
 0xb67   :  { %v4905_v34 = vld [vmem:[#allocation3 + $0x24a] sm:$0xff] }
 0xb68   :  { %v6410_v63 = vadd.f32 %v14111_v9, %v6201_v35  ;;  %v14122_v9 = vld [vmem:[#allocation200_spill] sm:$0xff] }
 0xb69   :  { %6877 = vmatmul.f32.gmra.mxu1 %v4903_v26 }
 0xb6a   :  { %v6619_v45 = vadd.f32 %v12120_v19, %v6410_v63  ;;  %6250 = vmatmul.f32.gmra.mxu2 %v4901_v39  ;;  %v14120_v39 = vld [vmem:[#allocation89_spill] sm:$0xff]  ;;  %v5998_v63 = vadd.f32 %v14122_v9, %v5789_v2  ;;  %v14131_v9 = vld [vmem:[#allocation214_spill] sm:$0xff] }
 0xb6c   :  { %v12417_v17 = vadd.f32 %v6827_v8, %v6619_v45  ;;  %v5583_v8 = vadd.f32 %v14120_v39, %v5374_v62  ;;  %v14130_v39 = vld [vmem:[#allocation94_spill] sm:$0xff] }
 0xb6d   :  { %v6203_v56 = vpop.f32.mrf.mxu2 }
 0xb6e   :  { %14114 = vst [vmem:[#allocation138_spill] sm:$0xff] %v12417_v17  ;;  %v6204_v6 = vadd.f32 %v6203_v56, %v5995_v53  ;;  %v6833_v50 = vpop.f32.mrf.mxu1  ;;  %v5377_v53 = vadd.f32 %v14124_v31, %v14123_v15  ;;  %v14125_v56 = vld [vmem:[#allocation320_spill] sm:$0xff]  ;;  %v5792_v40 = vadd.f32 %v14126_v44, %v5583_v8  ;;  %v14133_v8 = vld [vmem:[#allocation99_spill] sm:$0xff] }
 0xb6f   :  { %v4906_v15 = vld [vmem:[#allocation3 + $0x25a] sm:$0xff] }
 0xb70   :  { %v6413_v35 = vadd.f32 %v14118_v12, %v6204_v6  ;;  %v14129_v12 = vld [vmem:[#allocation204_spill] sm:$0xff] }
 0xb71   :  { %6880 = vmatmul.f32.gmra.mxu1 %v4904_v54 }
 0xb72   :  { %v6622_v19 = vadd.f32 %v12133_v5, %v6413_v35  ;;  %6253 = vmatmul.f32.gmra.mxu2 %v4902_v22  ;;  %v14127_v22 = vld [vmem:[#allocation93_spill] sm:$0xff]  ;;  %v6001_v35 = vadd.f32 %v14129_v12, %v5792_v40  ;;  %v14138_v12 = vld [vmem:[#allocation218_spill] sm:$0xff] }
 0xb74   :  { %v12426_v4 = vadd.f32 %v6830_v47, %v6622_v19  ;;  %v5586_v47 = vadd.f32 %v14127_v22, %v5377_v53  ;;  %v14137_v22 = vld [vmem:[#allocation98_spill] sm:$0xff] }
 0xb75   :  { %v6206_v57 = vpop.f32.mrf.mxu2 }
 0xb76   :  { %14121 = vst [vmem:[#allocation253_spill] sm:$0xff] %v12426_v4  ;;  %v6207_v37 = vadd.f32 %v6206_v57, %v5998_v63  ;;  %v6836_v45 = vpop.f32.mrf.mxu1  ;;  %v5380_v63 = vadd.f32 %v14131_v9, %v14130_v39  ;;  %v14132_v57 = vld [vmem:[#allocation324_spill] sm:$0xff]  ;;  %v5795_v31 = vadd.f32 %v14133_v8, %v5586_v47  ;;  %v14140_v47 = vld [vmem:[#allocation103_spill] sm:$0xff] }
 0xb77   :  { %v4907_v39 = vld [vmem:[#allocation3 + $0x262] sm:$0xff] }
 0xb78   :  { %v6416_v6 = vadd.f32 %v14125_v56, %v6207_v37  ;;  %v14136_v56 = vld [vmem:[#allocation208_spill] sm:$0xff] }
 0xb79   :  { %6883 = vmatmul.f32.gmra.mxu1 %v4905_v34 }
 0xb7a   :  { %v6625_v5 = vadd.f32 %v12142_v41, %v6416_v6  ;;  %6256 = vmatmul.f32.gmra.mxu2 %v4903_v26  ;;  %v14134_v26 = vld [vmem:[#allocation97_spill] sm:$0xff]  ;;  %v6004_v6 = vadd.f32 %v14136_v56, %v5795_v31  ;;  %v14145_v56 = vld [vmem:[#allocation222_spill] sm:$0xff] }
 0xb7c   :  { %v12435_v62 = vadd.f32 %v6833_v50, %v6625_v5  ;;  %v5589_v50 = vadd.f32 %v14134_v26, %v5380_v63  ;;  %v14144_v26 = vld [vmem:[#allocation102_spill] sm:$0xff] }
 0xb7d   :  { %v6209_v59 = vpop.f32.mrf.mxu2 }
 0xb7e   :  { %14128 = vst [vmem:[#allocation26_spill] sm:$0xff] %v12435_v62  ;;  %v6210_v2 = vadd.f32 %v6209_v59, %v6001_v35  ;;  %v6839_v19 = vpop.f32.mrf.mxu1  ;;  %v5383_v35 = vadd.f32 %v14138_v12, %v14137_v22  ;;  %v14139_v59 = vld [vmem:[#allocation328_spill] sm:$0xff]  ;;  %v5798_v9 = vadd.f32 %v14140_v47, %v5589_v50  ;;  %v4908_v22 = vld [vmem:[#allocation3 + $0x272] sm:$0xff] }
 0xb7f   :  { %v14147_v50 = vld [vmem:[#allocation107_spill] sm:$0xff] }
 0xb80   :  { %v6419_v37 = vadd.f32 %v14132_v57, %v6210_v2  ;;  %v14143_v57 = vld [vmem:[#allocation212_spill] sm:$0xff] }
 0xb81   :  { %6886 = vmatmul.f32.gmra.mxu1 %v4906_v15 }
 0xb82   :  { %v6628_v41 = vadd.f32 %v12151_v42, %v6419_v37  ;;  %6259 = vmatmul.f32.gmra.mxu2 %v4904_v54  ;;  %v14141_v54 = vld [vmem:[#allocation101_spill] sm:$0xff]  ;;  %v6007_v37 = vadd.f32 %v14143_v57, %v5798_v9  ;;  %v14152_v57 = vld [vmem:[#allocation226_spill] sm:$0xff] }
 0xb84   :  { %v12444_v53 = vadd.f32 %v6836_v45, %v6628_v41  ;;  %v5592_v45 = vadd.f32 %v14141_v54, %v5383_v35  ;;  %v14151_v54 = vld [vmem:[#allocation106_spill] sm:$0xff] }
 0xb85   :  { %v6212_v44 = vpop.f32.mrf.mxu2 }
 0xb86   :  { %14135 = vst [vmem:[#allocation260_spill] sm:$0xff] %v12444_v53  ;;  %v6213_v40 = vadd.f32 %v6212_v44, %v6004_v6  ;;  %v6842_v5 = vpop.f32.mrf.mxu1  ;;  %v5386_v6 = vadd.f32 %v14145_v56, %v14144_v26  ;;  %v14146_v44 = vld [vmem:[#allocation330_spill] sm:$0xff]  ;;  %v5801_v12 = vadd.f32 %v14147_v50, %v5592_v45  ;;  %v14153_v45 = vld [vmem:[#allocation111_spill] sm:$0xff] }
 0xb88   :  { %v6422_v2 = vadd.f32 %v14139_v59, %v6213_v40  ;;  %v14150_v59 = vld [vmem:[#allocation216_spill] sm:$0xff] }
 0xb89   :  { %6889 = vmatmul.f32.gmra.mxu1 %v4907_v39 }
 0xb8a   :  { %v6631_v42 = vadd.f32 %v12168_v13, %v6422_v2  ;;  %6262 = vmatmul.f32.gmra.mxu2 %v4905_v34  ;;  %v14148_v34 = vld [vmem:[#allocation105_spill] sm:$0xff]  ;;  %v6010_v2 = vadd.f32 %v14150_v59, %v5801_v12 }
 0xb8c   :  { %v12453_v63 = vadd.f32 %v6839_v19, %v6631_v42  ;;  %v5595_v19 = vadd.f32 %v14148_v34, %v5386_v6  ;;  %v14156_v6 = vld [vmem:[#allocation220_spill] sm:$0xff]  ;;  %v14158_v34 = vld [vmem:[#allocation230_spill] sm:$0xff] }
 0xb8d   :  { %v6215_v8 = vpop.f32.mrf.mxu2 }
 0xb8e   :  { %14142 = vst [vmem:[#allocation255_spill] sm:$0xff] %v12453_v63  ;;  %v6216_v31 = vadd.f32 %v6215_v8, %v6007_v37  ;;  %v6845_v41 = vpop.f32.mrf.mxu1  ;;  %v5389_v37 = vadd.f32 %v14152_v57, %v14151_v54  ;;  %v5804_v26 = vadd.f32 %v14153_v45, %v5595_v19  ;;  %v14159_v19 = vld [vmem:[#allocation114_spill] sm:$0xff]  ;;  %v14162_v54 = vld [vmem:[#allocation224_spill] sm:$0xff] }
 0xb90   :  { %v6425_v40 = vadd.f32 %v14146_v44, %v6216_v31  ;;  %v4909_v31 = vld [vmem:[#allocation3 + $0x27a] sm:$0xff]  ;;  %v6013_v44 = vadd.f32 %v14156_v6, %v5804_v26  ;;  %v4911_v6 = vld [vmem:[#allocation3 + $0x292] sm:$0xff] }
 0xb91   :  { %6892 = vmatmul.f32.gmra.mxu1 %v4908_v22  ;;  %v14163_v26 = vld [vmem:[#allocation4_spill] sm:$0xff] }
 0xb92   :  { %v6634_v13 = vadd.f32 %v12182_v21, %v6425_v40  ;;  %6265 = vmatmul.f32.gmra.mxu2 %v4906_v15  ;;  %v14154_v15 = vld [vmem:[#allocation109_spill] sm:$0xff] }
 0xb94   :  { %v12462_v35 = vadd.f32 %v6842_v5, %v6634_v13  ;;  %v5598_v5 = vadd.f32 %v14154_v15, %v5389_v37  ;;  %v14157_v13 = vld [vmem:[#allocation110_spill] sm:$0xff] }
 0xb95   :  { %v6218_v47 = vpop.f32.mrf.mxu2  ;;  %v5392_v59 = vadd.f32 %v14158_v34, %v14157_v13 }
 0xb96   :  { %14149 = vst [vmem:[#allocation24_spill] sm:$0xff] %v12462_v35  ;;  %v6219_v9 = vadd.f32 %v6218_v47, %v6010_v2  ;;  %v6848_v42 = vpop.f32.mrf.mxu1  ;;  %v4910_v2 = vld [vmem:[#allocation3 + $0x28a] sm:$0xff]  ;;  %v5807_v47 = vadd.f32 %v14159_v19, %v5598_v5  ;;  %v14165_v5 = vld [vmem:[#allocation116_spill] sm:$0xff] }
 0xb97   :  { %v14169_v19 = vld [vmem:[#allocation5_spill] sm:$0xff] }
 0xb98   :  { %v6428_v8 = vadd.f32 %v12163_v52, %v6219_v9  ;;  %v6016_v57 = vadd.f32 %v14162_v54, %v5807_v47  ;;  %v14170_v47 = vld [vmem:[#allocation237_spill] sm:$0xff] }
 0xb99   :  { %6895 = vmatmul.f32.gmra.mxu1 %v4909_v31 }
 0xb9a   :  { %v6637_v21 = vadd.f32 %v12200_v3, %v6428_v8  ;;  %6268 = vmatmul.f32.gmra.mxu2 %v4907_v39  ;;  %v14160_v39 = vld [vmem:[#allocation113_spill] sm:$0xff] }
 0xb9c   :  { %v12471_v56 = vadd.f32 %v6845_v41, %v6637_v21  ;;  %v5601_v41 = vadd.f32 %v14160_v39, %v5392_v59  ;;  %v14164_v21 = vld [vmem:[#allocation234_spill] sm:$0xff]  ;;  %v4912_v39 = vld [vmem:[#allocation3 + $0x2a2] sm:$0xff] }
 0xb9d   :  { %v6221_v40 = vpop.f32.mrf.mxu2  ;;  %v5395_v15 = vadd.f32 %v14164_v21, %v14163_v26  ;;  %v12501_v21 = vpop.f32.mrf.mxu0 }
 0xb9e   :  { %14155 = vst [vmem:[#allocation132_spill] sm:$0xff] %v12471_v56  ;;  %v6222_v50 = vadd.f32 %v6221_v40, %v6013_v44  ;;  %v6851_v12 = vpop.f32.mrf.mxu1  ;;  %v5810_v44 = vadd.f32 %v14165_v5, %v5601_v41  ;;  %v14171_v41 = vld [vmem:[#allocation118_spill] sm:$0xff] }
 0xb9f   :  { %v14175_v5 = vld [vmem:[#allocation6_spill] sm:$0xff] }
 0xba0   :  { %v6431_v52 = vadd.f32 %v12180_v36, %v6222_v50  ;;  %v14168_v50 = vld [vmem:[#allocation228_spill] sm:$0xff] }
 0xba1   :  { %6898 = vmatmul.f32.gmra.mxu1 %v4910_v2  ;;  %v6019_v13 = vadd.f32 %v14168_v50, %v5810_v44 }
 0xba2   :  { %v6640_v3 = vadd.f32 %v12215_v14, %v6431_v52  ;;  %6271 = vmatmul.f32.gmra.mxu2 %v4908_v22  ;;  %v14166_v22 = vld [vmem:[#allocation115_spill] sm:$0xff] }
 0xba4   :  { %v12480_v9 = vadd.f32 %v6848_v42, %v6640_v3  ;;  %v5604_v42 = vadd.f32 %v14166_v22, %v5395_v15  ;;  %v5398_v3 = vadd.f32 %v14170_v47, %v14169_v19  ;;  %v4913_v22 = vld [vmem:[#allocation3 + $0x2aa] sm:$0xff] }
 0xba5   :  { %v6224_v37 = vpop.f32.mrf.mxu2 }
 0xba6   :  { %14161 = vst [vmem:[#allocation25_spill] sm:$0xff] %v12480_v9  ;;  %v6225_v8 = vadd.f32 %v6224_v37, %v6016_v57  ;;  %v6854_v45 = vpop.f32.mrf.mxu1  ;;  %v5813_v54 = vadd.f32 %v14171_v41, %v5604_v42  ;;  %v14174_v37 = vld [vmem:[#allocation232_spill] sm:$0xff]  ;;  %v14182_v41 = vld [vmem:[#allocation241_spill] sm:$0xff] }
 0xba7   :  { %v14177_v42 = vld [vmem:[#allocation120_spill] sm:$0xff] }
 0xba8   :  { %v6434_v36 = vadd.f32 %v12196_v27, %v6225_v8  ;;  %v6022_v8 = vadd.f32 %v14174_v37, %v5813_v54  ;;  %v14184_v37 = vld [vmem:[#allocation121_spill] sm:$0xff] }
 0xba9   :  { %6901 = vmatmul.f32.gmra.mxu1 %v4911_v6 }
 0xbaa   :  { %v6643_v14 = vadd.f32 %v12234_v61, %v6434_v36  ;;  %6274 = vmatmul.f32.gmra.mxu2 %v4909_v31  ;;  %v14172_v31 = vld [vmem:[#allocation117_spill] sm:$0xff] }
 0xbac   :  { %v12489_v40 = vadd.f32 %v6851_v12, %v6643_v14  ;;  %v5607_v12 = vadd.f32 %v14172_v31, %v5398_v3  ;;  %v4914_v31 = vld [vmem:[#allocation3 + $0x2ba] sm:$0xff] }
 0xbad   :  { %v6227_v34 = vpop.f32.mrf.mxu2 }
 0xbae   :  { %14167 = vst [vmem:[#allocation142_spill] sm:$0xff] %v12489_v40  ;;  %v6228_v59 = vadd.f32 %v6227_v34, %v6019_v13  ;;  %v6857_v52 = vpop.f32.mrf.mxu1  ;;  %v14180_v34 = vld [vmem:[#allocation235_spill] sm:$0xff] }
 0xbb0   :  { %v6437_v27 = vadd.f32 %v12212_v51, %v6228_v59  ;;  %v14176_v51 = vld [vmem:[#allocation239_spill] sm:$0xff] }
 0xbb1   :  { %6904 = vmatmul.f32.gmra.mxu1 %v4912_v39  ;;  %v5401_v44 = vadd.f32 %v14176_v51, %v14175_v5 }
 0xbb2   :  { %v6646_v61 = vadd.f32 %v12248_v32, %v6437_v27  ;;  %6277 = vmatmul.f32.gmra.mxu2 %v4910_v2  ;;  %v5816_v32 = vadd.f32 %v14177_v42, %v5607_v12  ;;  %v14181_v27 = vld [vmem:[#allocation7_spill] sm:$0xff]  ;;  %v14187_v42 = vld [vmem:[#allocation9_spill] sm:$0xff] }
 0xbb3   :  { %v5404_v54 = vadd.f32 %v14182_v41, %v14181_v27  ;;  %v14183_v12 = vld [vmem:[#allocation123_spill] sm:$0xff] }
 0xbb4   :  { %v12498_v57 = vadd.f32 %v6854_v45, %v6646_v61  ;;  %v14178_v45 = vld [vmem:[#allocation119_spill] sm:$0xff]  ;;  %v6025_v59 = vadd.f32 %v14180_v34, %v5816_v32 }
 0xbb5   :  { %v6230_v26 = vpop.f32.mrf.mxu2  ;;  %v5610_v50 = vadd.f32 %v14178_v45, %v5401_v44  ;;  %v4915_v45 = vld [vmem:[#allocation3 + $0x2c2] sm:$0xff] }
 0xbb6   :  { %14173 = vst [vmem:[#allocation258_spill] sm:$0xff] %v12498_v57  ;;  %v6231_v15 = vadd.f32 %v6230_v26, %v6022_v8  ;;  %v6860_v36 = vpop.f32.mrf.mxu1  ;;  %v5613_v8 = vadd.f32 %v14184_v37, %v5404_v54 }
 0xbb8   :  { %v6440_v14 = vadd.f32 %v12229_v60, %v6231_v15  ;;  %v12514_v60 = vpop.f32.mrf.mxu0  ;;  %v14186_v15 = vld [vmem:[#allocation238_spill] sm:$0xff] }
 0xbb9   :  { %6907 = vmatmul.f32.gmra.mxu1 %v4913_v22 }
 0xbba   :  { %v6649_v2 = vadd.f32 %v12265_v43, %v6440_v14  ;;  %6280 = vmatmul.f32.gmra.mxu2 %v4911_v6  ;;  %v5819_v43 = vadd.f32 %v14183_v12, %v5610_v50  ;;  %v14189_v50 = vld [vmem:[#allocation126_spill] sm:$0xff] }
 0xbbb   :  { %v14193_v12 = vld [vmem:[#allocation10_spill] sm:$0xff] }
 0xbbc   :  { %v12509_v13 = vadd.f32 %v6857_v52, %v6649_v2  ;;  %v12519_v52 = vpop.f32.mrf.mxu3  ;;  %v6028_v5 = vadd.f32 %v14186_v15, %v5819_v43  ;;  %v14194_v43 = vld [vmem:[#allocation247_spill] sm:$0xff]  ;;  %v14195_v15 = vld [vmem:[#allocation129_spill] sm:$0xff] }
 0xbbd   :  { %v6233_v19 = vpop.f32.mrf.mxu2 }
 0xbbe   :  { %14179 = vst [vmem:[#allocation27_spill] sm:$0xff] %v12509_v13  ;;  %v6234_v47 = vadd.f32 %v6233_v19, %v6025_v59  ;;  %v6863_v3 = vpop.f32.mrf.mxu1 }
 0xbc0   :  { %v6443_v61 = vadd.f32 %v12246_v29, %v6234_v47  ;;  %v14188_v29 = vld [vmem:[#allocation243_spill] sm:$0xff]  ;;  %v14192_v47 = vld [vmem:[#allocation240_spill] sm:$0xff] }
 0xbc1   :  { %6910 = vmatmul.f32.gmra.mxu1 %v4914_v31  ;;  %v5407_v32 = vadd.f32 %v14188_v29, %v14187_v42  ;;  %v14198_v42 = vld [vmem:[#allocation242_spill] sm:$0xff] }
 0xbc2   :  { %v6652_v6 = vadd.f32 %v12279_v18, %v6443_v61  ;;  %6283 = vmatmul.f32.gmra.mxu2 %v4912_v39  ;;  %v5822_v18 = vadd.f32 %v14189_v50, %v5613_v8  ;;  %v12529_v39 = vpop.f32.mrf.mxu0  ;;  %v4916_v8 = vld [vmem:[#allocation3 + $0x2d2] sm:$0xff] }
 0xbc4   :  { %v12522_v26 = vadd.f32 %v6860_v36, %v6652_v6  ;;  %v14190_v36 = vld [vmem:[#allocation124_spill] sm:$0xff]  ;;  %v6031_v27 = vadd.f32 %v14192_v47, %v5822_v18  ;;  %v12536_v41 = vpop.f32.mrf.mxu3  ;;  %v5410_v6 = vadd.f32 %v14194_v43, %v14193_v12  ;;  %v14204_v12 = vld [vmem:[#allocation245_spill] sm:$0xff] }
 0xbc5   :  { %v6236_v51 = vpop.f32.mrf.mxu2  ;;  %v5616_v59 = vadd.f32 %v14190_v36, %v5407_v32 }
 0xbc6   :  { %14185 = vst [vmem:[#allocation267_spill] sm:$0xff] %v12522_v26  ;;  %v6237_v44 = vadd.f32 %v6236_v51, %v6028_v5  ;;  %v6866_v14 = vpop.f32.mrf.mxu1 }
 0xbc8   :  { %v6446_v2 = vadd.f32 %v12261_v11, %v6237_v44 }
 0xbc9   :  { %6913 = vmatmul.f32.gmra.mxu1 %v4915_v45 }
 0xbca   :  { %v6655_v34 = vadd.f32 %v12296_v23, %v6446_v2  ;;  %6286 = vmatmul.f32.gmra.mxu2 %v4913_v22  ;;  %v5825_v23 = vadd.f32 %v14195_v15, %v5616_v59  ;;  %v12544_v51 = vpop.f32.mrf.mxu0 }
 0xbcc   :  { %v12533_v19 = vadd.f32 %v6863_v3, %v6655_v34  ;;  %v14196_v3 = vld [vmem:[#allocation127_spill] sm:$0xff]  ;;  %v6034_v29 = vadd.f32 %v14198_v42, %v5825_v23  ;;  %v12549_v18 = vpop.f32.mrf.mxu3  ;;  %v14200_v34 = vld [vmem:[#allocation252_spill] sm:$0xff]  ;;  %v4918_v42 = vld [vmem:[#allocation3 + $0x2ea] sm:$0xff] }
 0xbcd   :  { %v6239_v54 = vpop.f32.mrf.mxu2  ;;  %v5619_v5 = vadd.f32 %v14196_v3, %v5410_v6 }
 0xbce   :  { %14191 = vst [vmem:[#allocation11_spill] sm:$0xff] %v12533_v19  ;;  %v6240_v61 = vadd.f32 %v6239_v54, %v6031_v27  ;;  %v6869_v11 = vpop.f32.mrf.mxu1 }
 0xbd0   :  { %v6449_v37 = vadd.f32 %v12276_v55, %v6240_v61  ;;  %v14199_v55 = vld [vmem:[#allocation15_spill] sm:$0xff] }
 0xbd1   :  { %6916 = vmatmul.f32.gmra.mxu1 %v4916_v8  ;;  %v5413_v36 = vadd.f32 %v14200_v34, %v14199_v55  ;;  %v14210_v34 = vld [vmem:[#allocation249_spill] sm:$0xff] }
 0xbd2   :  { %v6658_v22 = vadd.f32 %v12309_v58, %v6449_v37  ;;  %6289 = vmatmul.f32.gmra.mxu2 %v4914_v31  ;;  %v4917_v58 = vld [vmem:[#allocation3 + $0x2da] sm:$0xff]  ;;  %v14201_v31 = vld [vmem:[#allocation133_spill] sm:$0xff]  ;;  %v12560_v37 = vpop.f32.mrf.mxu0 }
 0xbd3   :  { %v5828_v47 = vadd.f32 %v14201_v31, %v5619_v5 }
 0xbd4   :  { %v12546_v44 = vadd.f32 %v6866_v14, %v6658_v22  ;;  %v14202_v14 = vld [vmem:[#allocation131_spill] sm:$0xff] }
 0xbd5   :  { %v6242_v32 = vpop.f32.mrf.mxu2  ;;  %v5622_v54 = vadd.f32 %v14202_v14, %v5413_v36  ;;  %v6037_v43 = vadd.f32 %v14204_v12, %v5828_v47  ;;  %v14205_v22 = vld [vmem:[#allocation19_spill] sm:$0xff] }
 0xbd6   :  { %14197 = vst [vmem:[#allocation136_spill] sm:$0xff] %v12546_v44  ;;  %v6243_v2 = vadd.f32 %v6242_v32, %v6034_v29  ;;  %v6872_v50 = vpop.f32.mrf.mxu1  ;;  %v14207_v29 = vld [vmem:[#allocation137_spill] sm:$0xff]  ;;  %v14208_v32 = vld [vmem:[#allocation135_spill] sm:$0xff] }
 0xbd8   :  { %v6452_v59 = vadd.f32 %v12291_v28, %v6243_v2  ;;  %v14206_v28 = vld [vmem:[#allocation257_spill] sm:$0xff] }
 0xbd9   :  { %6919 = vmatmul.f32.gmra.mxu1 %v4917_v58  ;;  %v5416_v3 = vadd.f32 %v14206_v28, %v14205_v22 }
 0xbda   :  { %v6661_v27 = vadd.f32 %v12326_v49, %v6452_v59  ;;  %6292 = vmatmul.f32.gmra.mxu2 %v4915_v45  ;;  %v5831_v49 = vadd.f32 %v14207_v29, %v5622_v54  ;;  %v12566_v45 = vpop.f32.mrf.mxu3  ;;  %v12575_v12 = vpop.f32.mrf.mxu0 }
 0xbdb   :  { %v5625_v2 = vadd.f32 %v14208_v32, %v5416_v3  ;;  %v14216_v3 = vld [vmem:[#allocation254_spill] sm:$0xff]  ;;  %v14217_v32 = vld [vmem:[#allocation8_spill] sm:$0xff] }
 0xbdc   :  { %v12557_v61 = vadd.f32 %v6869_v11, %v6661_v27  ;;  %v6040_v36 = vadd.f32 %v14210_v34, %v5831_v49  ;;  %v14211_v27 = vld [vmem:[#allocation23_spill] sm:$0xff] }
 0xbdd   :  { %v6245_v6 = vpop.f32.mrf.mxu2 }
 0xbde   :  { %14203 = vst [vmem:[#allocation13_spill] sm:$0xff] %v12557_v61  ;;  %v6246_v15 = vadd.f32 %v6245_v6, %v6037_v43  ;;  %v6875_v23 = vpop.f32.mrf.mxu1  ;;  %v4919_v43 = vld [vmem:[#allocation3 + $0x2f2] sm:$0xff]  ;;  %v14213_v6 = vld [vmem:[#allocation141_spill] sm:$0xff] }
 0xbe0   :  { %v6455_v5 = vadd.f32 %v12307_v38, %v6246_v15  ;;  %v14212_v38 = vld [vmem:[#allocation261_spill] sm:$0xff]  ;;  %v14214_v15 = vld [vmem:[#allocation139_spill] sm:$0xff] }
 0xbe1   :  { %6922 = vmatmul.f32.gmra.mxu1 %v4918_v42  ;;  %v5419_v14 = vadd.f32 %v14212_v38, %v14211_v27 }
 0xbe2   :  { %v6664_v11 = vadd.f32 %v12342_v30, %v6455_v5  ;;  %6295 = vmatmul.f32.gmra.mxu2 %v4916_v8  ;;  %v5834_v30 = vadd.f32 %v14213_v6, %v5625_v2 }
 0xbe3   :  { %v5628_v22 = vadd.f32 %v14214_v15, %v5419_v14  ;;  %v14222_v14 = vld [vmem:[#allocation259_spill] sm:$0xff]  ;;  %v14223_v15 = vld [vmem:[#allocation28_spill] sm:$0xff] }
 0xbe4   :  { %v12570_v55 = vadd.f32 %v6872_v50, %v6664_v11  ;;  %v12580_v50 = vpop.f32.mrf.mxu3  ;;  %v6043_v5 = vadd.f32 %v14216_v3, %v5834_v30  ;;  %v14224_v3 = vld [vmem:[#allocation268_spill] sm:$0xff] }
 0xbe5   :  { %v6248_v59 = vpop.f32.mrf.mxu2 }
 0xbe6   :  { %14209 = vst [vmem:[#allocation146_spill] sm:$0xff] %v12570_v55  ;;  %v6249_v31 = vadd.f32 %v6248_v59, %v6040_v36  ;;  %v6878_v47 = vpop.f32.mrf.mxu1  ;;  %v4920_v36 = vld [vmem:[#allocation3 + $0x302] sm:$0xff] }
 0xbe7   :  { %v14219_v59 = vld [vmem:[#allocation145_spill] sm:$0xff] }
 0xbe8   :  { %v6458_v54 = vadd.f32 %v12322_v25, %v6249_v31  ;;  %v14218_v25 = vld [vmem:[#allocation264_spill] sm:$0xff] }
 0xbe9   :  { %6925 = vmatmul.f32.gmra.mxu1 %v4919_v43  ;;  %v5422_v34 = vadd.f32 %v14218_v25, %v14217_v32 }
 0xbea   :  { %v6667_v8 = vadd.f32 %v12501_v21, %v6458_v54  ;;  %6298 = vmatmul.f32.gmra.mxu2 %v4917_v58  ;;  %v5837_v21 = vadd.f32 %v14219_v59, %v5628_v22  ;;  %v12590_v58 = vpop.f32.mrf.mxu0  ;;  %v5425_v22 = vadd.f32 %v14224_v3, %v14223_v15 }
 0xbec   :  { %v12583_v28 = vadd.f32 %v6875_v23, %v6667_v8  ;;  %v14220_v23 = vld [vmem:[#allocation143_spill] sm:$0xff]  ;;  %v6046_v54 = vadd.f32 %v14222_v14, %v5837_v21  ;;  %v12597_v6 = vpop.f32.mrf.mxu3 }
 0xbed   :  { %v6251_v29 = vpop.f32.mrf.mxu2  ;;  %v5631_v27 = vadd.f32 %v14220_v23, %v5422_v34 }
 0xbee   :  { %14215 = vst [vmem:[#allocation262_spill] sm:$0xff] %v12583_v28  ;;  %v6252_v49 = vadd.f32 %v6251_v29, %v6043_v5  ;;  %v6881_v11 = vpop.f32.mrf.mxu1  ;;  %v4921_v29 = vld [vmem:[#allocation3 + $0x30a] sm:$0xff] }
 0xbf0   :  { %v6461_v2 = vadd.f32 %v12338_v20, %v6252_v49  ;;  %v14225_v49 = vld [vmem:[#allocation149_spill] sm:$0xff] }
 0xbf1   :  { %6928 = vmatmul.f32.gmra.mxu1 %v4920_v36 }
 0xbf2   :  { %v6670_v31 = vadd.f32 %v12514_v60, %v6461_v2  ;;  %6301 = vmatmul.f32.gmra.mxu2 %v4918_v42  ;;  %v5840_v60 = vadd.f32 %v14225_v49, %v5631_v27  ;;  %v12605_v25 = vpop.f32.mrf.mxu0  ;;  %v14228_v2 = vld [vmem:[#allocation263_spill] sm:$0xff] }
 0xbf4   :  { %v12594_v38 = vadd.f32 %v6878_v47, %v6670_v31  ;;  %v14226_v47 = vld [vmem:[#allocation147_spill] sm:$0xff]  ;;  %v6049_v59 = vadd.f32 %v14228_v2, %v5840_v60  ;;  %v12610_v14 = vpop.f32.mrf.mxu3 }
 0xbf5   :  { %v6254_v30 = vpop.f32.mrf.mxu2  ;;  %v5634_v32 = vadd.f32 %v14226_v47, %v5425_v22 }
 0xbf6   :  { %14221 = vst [vmem:[#allocation31_spill] sm:$0xff] %v12594_v38  ;;  %v6255_v8 = vadd.f32 %v6254_v30, %v6046_v54  ;;  %v6884_v20 = vpop.f32.mrf.mxu1  ;;  %v14230_v54 = vld [vmem:[#allocation272_spill] sm:$0xff] }
 0xbf8   :  { %v6464_v5 = vadd.f32 %v12519_v52, %v6255_v8  ;;  %v14229_v52 = vld [vmem:[#allocation32_spill] sm:$0xff] }
 0xbf9   :  { %6931 = vmatmul.f32.gmra.mxu1 %v4921_v29  ;;  %v5428_v27 = vadd.f32 %v14230_v54, %v14229_v52  ;;  %v14237_v52 = vld [vmem:[#allocation157_spill] sm:$0xff]  ;;  %v14238_v54 = vld [vmem:[#allocation155_spill] sm:$0xff] }
 0xbfa   :  { %v6673_v42 = vadd.f32 %v12529_v39, %v6464_v5  ;;  %6304 = vmatmul.f32.gmra.mxu2 %v4919_v43  ;;  %v4922_v39 = vld [vmem:[#allocation3 + $0x31a] sm:$0xff]  ;;  %v14231_v43 = vld [vmem:[#allocation153_spill] sm:$0xff]  ;;  %v14234_v5 = vld [vmem:[#allocation266_spill] sm:$0xff] }
 0xbfb   :  { %v5843_v8 = vadd.f32 %v14231_v43, %v5634_v32  ;;  %v14240_v43 = vld [vmem:[#allocation269_spill] sm:$0xff] }
 0xbfc   :  { %v12607_v34 = vadd.f32 %v6881_v11, %v6673_v42  ;;  %v14232_v11 = vld [vmem:[#allocation151_spill] sm:$0xff]  ;;  %v12621_v42 = vpop.f32.mrf.mxu0 }
 0xbfd   :  { %v6257_v21 = vpop.f32.mrf.mxu2  ;;  %v5637_v3 = vadd.f32 %v14232_v11, %v5428_v27  ;;  %v6052_v49 = vadd.f32 %v14234_v5, %v5843_v8 }
 0xbfe   :  { %14227 = vst [vmem:[#allocation271_spill] sm:$0xff] %v12607_v34  ;;  %v6258_v31 = vadd.f32 %v6257_v21, %v6049_v59  ;;  %v6887_v23 = vpop.f32.mrf.mxu1  ;;  %v14235_v59 = vld [vmem:[#allocation36_spill] sm:$0xff] }
 0xc00   :  { %v6467_v30 = vadd.f32 %v12536_v41, %v6258_v31  ;;  %v14236_v41 = vld [vmem:[#allocation275_spill] sm:$0xff]  ;;  %v4923_v31 = vld [vmem:[#allocation3 + $0x322] sm:$0xff] }
 0xc01   :  { %6934 = vmatmul.f32.gmra.mxu1 %v4922_v39  ;;  %v5431_v21 = vadd.f32 %v14236_v41, %v14235_v59  ;;  %v4924_v59 = vld [vmem:[#allocation3 + $0x332] sm:$0xff]  ;;  %v14243_v41 = vld [vmem:[#allocation161_spill] sm:$0xff] }
 0xc02   :  { %v6676_v15 = vadd.f32 %v12544_v51, %v6467_v30  ;;  %6307 = vmatmul.f32.gmra.mxu2 %v4920_v36  ;;  %v5846_v51 = vadd.f32 %v14237_v52, %v5637_v3  ;;  %v12627_v36 = vpop.f32.mrf.mxu3 }
 0xc03   :  { %v5640_v27 = vadd.f32 %v14238_v54, %v5431_v21 }
 0xc04   :  { %v12618_v22 = vadd.f32 %v6884_v20, %v6676_v15  ;;  %v6055_v8 = vadd.f32 %v14240_v43, %v5846_v51 }
 0xc05   :  { %v6260_v60 = vpop.f32.mrf.mxu2 }
 0xc06   :  { %14233 = vst [vmem:[#allocation29_spill] sm:$0xff] %v12618_v22  ;;  %v6261_v47 = vadd.f32 %v6260_v60, %v6052_v49  ;;  %v6890_v2 = vpop.f32.mrf.mxu1  ;;  %v14241_v49 = vld [vmem:[#allocation40_spill] sm:$0xff] }
 0xc08   :  { %v6470_v32 = vadd.f32 %v12549_v18, %v6261_v47  ;;  %v14242_v18 = vld [vmem:[#allocation278_spill] sm:$0xff]  ;;  %v12636_v47 = vpop.f32.mrf.mxu0 }
 0xc09   :  { %6937 = vmatmul.f32.gmra.mxu1 %v4923_v31  ;;  %v5434_v60 = vadd.f32 %v14242_v18, %v14241_v49  ;;  %v4925_v18 = vld [vmem:[#allocation3 + $0x33a] sm:$0xff] }
 0xc0a   :  { %v6679_v20 = vadd.f32 %v12560_v37, %v6470_v32  ;;  %6310 = vmatmul.f32.gmra.mxu2 %v4921_v29  ;;  %v5849_v37 = vadd.f32 %v14243_v41, %v5640_v27  ;;  %v4862_v29 = vld [vmem:[#allocation3 + $0x349] sm:$0xff]  ;;  %v12641_v21 = vpop.f32.mrf.mxu3  ;;  %v14244_v32 = vld [vmem:[#allocation159_spill] sm:$0xff] }
 0xc0b   :  { %6737 = vmatmul.f32.gmra.mxu0 %v4862_v29  ;;  %v5643_v52 = vadd.f32 %v14244_v32, %v5434_v60  ;;  %v14249_v41 = vld [vmem:[#allocation165_spill] sm:$0xff]  ;;  %v14252_v32 = vld [vmem:[#allocation276_spill] sm:$0xff] }
 0xc0c   :  { %v12631_v30 = vadd.f32 %v6887_v23, %v6679_v20  ;;  %v14246_v20 = vld [vmem:[#allocation273_spill] sm:$0xff] }
 0xc0d   :  { %v6263_v15 = vpop.f32.mrf.mxu2  ;;  %v6058_v54 = vadd.f32 %v14246_v20, %v5849_v37  ;;  %v14250_v37 = vld [vmem:[#allocation163_spill] sm:$0xff] }
 0xc0e   :  { %14239 = vst [vmem:[#allocation140_spill] sm:$0xff] %v12631_v30  ;;  %v6264_v11 = vadd.f32 %v6263_v15, %v6055_v8  ;;  %v6893_v5 = vpop.f32.mrf.mxu1  ;;  %v14247_v15 = vld [vmem:[#allocation44_spill] sm:$0xff] }
 0xc10   :  { %v6473_v3 = vadd.f32 %v12566_v45, %v6264_v11  ;;  %v14248_v11 = vld [vmem:[#allocation281_spill] sm:$0xff]  ;;  %v6696_v60 = vpop.f32.mrf.mxu0 }
 0xc11   :  { %6940 = vmatmul.f32.gmra.mxu1 %v4924_v59  ;;  %v5437_v27 = vadd.f32 %v14248_v11, %v14247_v15  ;;  %v14253_v15 = vld [vmem:[#allocation48_spill] sm:$0xff]  ;;  %v14254_v11 = vld [vmem:[#allocation285_spill] sm:$0xff] }
 0xc12   :  { %v6682_v23 = vadd.f32 %v12575_v12, %v6473_v3  ;;  %6313 = vmatmul.f32.gmra.mxu2 %v4922_v39  ;;  %v5852_v12 = vadd.f32 %v14249_v41, %v5643_v52  ;;  %v4927_v39 = vld [vmem:[#allocation3 + $0x352] sm:$0xff]  ;;  %v5440_v41 = vadd.f32 %v14254_v11, %v14253_v15 }
 0xc13   :  { %v4863_v3 = vld [vmem:[#allocation3 + $0x351] sm:$0xff]  ;;  %6949 = vmatmul.f32.vlgmr.msrb.gmra.mxu3 %v4927_v39  ;;  %v5646_v29 = vadd.f32 %v14250_v37, %v5437_v27 }
 0xc14   :  { %v12644_v51 = vadd.f32 %v6890_v2, %v6682_v23  ;;  %6740 = vmatmul.f32.gmra.mxu0 %v4863_v3  ;;  %v6061_v20 = vadd.f32 %v14252_v32, %v5852_v12 }
 0xc15   :  { %v6266_v43 = vpop.f32.mrf.mxu2 }
 0xc16   :  { %14245 = vst [vmem:[#allocation30_spill] sm:$0xff] %v12644_v51  ;;  %v6267_v8 = vadd.f32 %v6266_v43, %v6058_v54  ;;  %v6896_v45 = vpop.f32.mrf.mxu1  ;;  %v12656_v54 = vpop.f32.mrf.mxu3 }
 0xc18   :  { %v6476_v49 = vadd.f32 %v12580_v50, %v6267_v8  ;;  %v4926_v8 = vld [vmem:[#allocation3 + $0x34a] sm:$0xff]  ;;  %v12664_v12 = vpop.f32.mrf.mxu0 }
 0xc19   :  { %6943 = vmatmul.f32.gmra.mxu1 %v4925_v18 }
 0xc1a   :  { %v6685_v2 = vadd.f32 %v12590_v58, %v6476_v49  ;;  %6316 = vmatmul.f32.gmra.mxu2 %v4923_v31  ;;  %v14255_v58 = vld [vmem:[#allocation169_spill] sm:$0xff] }
 0xc1b   :  { %v5855_v31 = vadd.f32 %v14255_v58, %v5646_v29  ;;  %v14264_v58 = vld [vmem:[#allocation283_spill] sm:$0xff] }
 0xc1c   :  { %v12653_v23 = vadd.f32 %v6893_v5, %v6685_v2  ;;  %v14256_v5 = vld [vmem:[#allocation167_spill] sm:$0xff] }
 0xc1d   :  { %v6269_v50 = vpop.f32.mrf.mxu2  ;;  %v5649_v49 = vadd.f32 %v14256_v5, %v5440_v41  ;;  %v14258_v2 = vld [vmem:[#allocation279_spill] sm:$0xff] }
 0xc1e   :  { %14251 = vst [vmem:[#allocation150_spill] sm:$0xff] %v12653_v23  ;;  %v6270_v43 = vadd.f32 %v6269_v50, %v6061_v20  ;;  %v6899_v52 = vpop.f32.mrf.mxu1  ;;  %v6064_v37 = vadd.f32 %v14258_v2, %v5855_v31  ;;  %v12669_v15 = vpop.f32.mrf.mxu3  ;;  %v14262_v41 = vld [vmem:[#allocation171_spill] sm:$0xff] }
 0xc20   :  { %v6479_v39 = vadd.f32 %v12597_v6, %v6270_v43  ;;  %v14259_v6 = vld [vmem:[#allocation52_spill] sm:$0xff]  ;;  %v14260_v43 = vld [vmem:[#allocation289_spill] sm:$0xff]  ;;  %v12680_v5 = vpop.f32.mrf.mxu0 }
 0xc21   :  { %6946 = vmatmul.f32.gmra.mxu1 %v4926_v8  ;;  %v5443_v29 = vadd.f32 %v14260_v43, %v14259_v6  ;;  %v14266_v6 = vld [vmem:[#allocation292_spill] sm:$0xff] }
 0xc22   :  { %v6688_v27 = vadd.f32 %v12605_v25, %v6479_v39  ;;  %6319 = vmatmul.f32.gmra.mxu2 %v4924_v59  ;;  %v14261_v25 = vld [vmem:[#allocation173_spill] sm:$0xff] }
 0xc23   :  { %v5858_v59 = vadd.f32 %v14261_v25, %v5649_v49  ;;  %v14267_v49 = vld [vmem:[#allocation177_spill] sm:$0xff]  ;;  %v14270_v25 = vld [vmem:[#allocation286_spill] sm:$0xff] }
 0xc24   :  { %v12666_v3 = vadd.f32 %v6896_v45, %v6688_v27  ;;  %v5652_v45 = vadd.f32 %v14262_v41, %v5443_v29  ;;  %v7023_v41 = vmul.f32 %v12177_v0, %v12177_v0 }
 0xc25   :  { %v6272_v32 = vpop.f32.mrf.mxu2  ;;  %v6067_v31 = vadd.f32 %v14264_v58, %v5858_v59 }
 0xc26   :  { %14257 = vst [vmem:[#allocation265_spill] sm:$0xff] %v12666_v3  ;;  %v6273_v20 = vadd.f32 %v6272_v32, %v6064_v37  ;;  %v6902_v50 = vpop.f32.mrf.mxu1  ;;  %v14265_v32 = vld [vmem:[#allocation56_spill] sm:$0xff]  ;;  %v14281_v3 = vld [vmem:[#allocation297_spill] sm:$0xff] }
 0xc27   :  { %v5446_v43 = vadd.f32 %v14266_v6, %v14265_v32  ;;  %v14274_v6 = vld [vmem:[#allocation333_spill] sm:$0xff] }
 0xc28   :  { %v6482_v8 = vadd.f32 %v12610_v14, %v6273_v20  ;;  %v5861_v20 = vadd.f32 %v14267_v49, %v5652_v45  ;;  %v14273_v45 = vld [vmem:[#allocation181_spill] sm:$0xff]  ;;  %v6953_v49 = vadd.f32 %v12177_v0, %v12165_v1 }
 0xc2a   :  { %v6691_v11 = vadd.f32 %v12621_v42, %v6482_v8  ;;  %6322 = vmatmul.f32.gmra.mxu2 %v4925_v18  ;;  %v12686_v42 = vpop.f32.mrf.mxu3  ;;  %v6070_v59 = vadd.f32 %v14270_v25, %v5861_v20 }
 0xc2c   :  { %v12677_v39 = vadd.f32 %v6899_v52, %v6691_v11  ;;  %v14268_v52 = vld [vmem:[#allocation175_spill] sm:$0xff] }
 0xc2d   :  { %v6275_v27 = vpop.f32.mrf.mxu2  ;;  %v5655_v29 = vadd.f32 %v14268_v52, %v5446_v43  ;;  %v12702_v43 = vpop.f32.mrf.mxu0 }
 0xc2e   :  { %14263 = vst [vmem:[#allocation35_spill] sm:$0xff] %v12677_v39  ;;  %v6276_v2 = vadd.f32 %v6275_v27, %v6067_v31  ;;  %v6905_v37 = vpop.f32.mrf.mxu1  ;;  %v14271_v27 = vld [vmem:[#allocation60_spill] sm:$0xff]  ;;  %v14278_v39 = vld [vmem:[#allocation122_spill] sm:$0xff] }
 0xc2f   :  { %v5864_v32 = vadd.f32 %v14273_v45, %v5655_v29  ;;  %v6954_v45 = vadd.f32 %v6953_v49, %v14274_v6 }
 0xc30   :  { %v6485_v14 = vadd.f32 %v12627_v36, %v6276_v2  ;;  %v14272_v36 = vld [vmem:[#allocation295_spill] sm:$0xff] }
 0xc31   :  { %v5449_v2 = vadd.f32 %v14272_v36, %v14271_v27  ;;  %v14277_v27 = vld [vmem:[#allocation290_spill] sm:$0xff] }
 0xc32   :  { %v6694_v18 = vadd.f32 %v12636_v47, %v6485_v14  ;;  %v7022_v47 = vmul.f32 %v12165_v1, %v12165_v1  ;;  %v6073_v36 = vadd.f32 %v14277_v27, %v5864_v32  ;;  %v14279_v1 = vld [vmem:[#allocation14_spill] sm:$0xff]  ;;  %v14282_v27 = vld [vmem:[#allocation185_spill] sm:$0xff] }
 0xc34   :  { %v12690_v8 = vadd.f32 %v6902_v50, %v6694_v18  ;;  %v7024_v50 = vmul.f32 %v14274_v6, %v14274_v6  ;;  %v7086_v20 = vadd.f32 %v7023_v41, %v7022_v47  ;;  %v14275_v18 = vld [vmem:[#allocation12_spill] sm:$0xff]  ;;  %v14283_v6 = vld [vmem:[#allocation130_spill] sm:$0xff] }
 0xc35   :  { %v6278_v11 = vpop.f32.mrf.mxu2  ;;  %v7025_v52 = vmul.f32 %v14275_v18, %v14275_v18  ;;  %v6955_v41 = vadd.f32 %v6954_v45, %v14275_v18  ;;  %v14284_v45 = vld [vmem:[#allocation244_spill] sm:$0xff]  ;;  %v14289_v18 = vld [vmem:[#allocation250_spill] sm:$0xff] }
 0xc36   :  { %14269 = vst [vmem:[#allocation33_spill] sm:$0xff] %v12690_v8  ;;  %v6279_v58 = vadd.f32 %v6278_v11, %v6070_v59  ;;  %v6908_v31 = vpop.f32.mrf.mxu1  ;;  %v14276_v59 = vld [vmem:[#allocation179_spill] sm:$0xff]  ;;  %v12710_v11 = vpop.f32.mrf.mxu3  ;;  %v7087_v8 = vadd.f32 %v7086_v20, %v7024_v50 }
 0xc37   :  { %v5658_v29 = vadd.f32 %v14276_v59, %v5449_v2  ;;  %v14280_v59 = vld [vmem:[#allocation64_spill] sm:$0xff]  ;;  %v6956_v50 = vadd.f32 %v6955_v41, %v14278_v39 }
 0xc38   :  { %v6488_v14 = vadd.f32 %v12641_v21, %v6279_v58  ;;  %v7026_v21 = vmul.f32 %v14278_v39, %v14278_v39  ;;  %v7088_v47 = vadd.f32 %v7087_v8, %v7025_v52  ;;  %v5452_v32 = vadd.f32 %v14281_v3, %v14280_v59  ;;  %v14285_v59 = vld [vmem:[#allocation183_spill] sm:$0xff]  ;;  %v14287_v39 = vld [vmem:[#allocation18_spill] sm:$0xff] }
 0xc39   :  { %v5867_v49 = vadd.f32 %v14282_v27, %v5658_v29  ;;  %v6957_v8 = vadd.f32 %v6956_v50, %v14279_v1  ;;  %v14286_v27 = vld [vmem:[#allocation293_spill] sm:$0xff] }
 0xc3a   :  { %v6697_v25 = vadd.f32 %v6696_v60, %v6488_v14  ;;  %v7027_v60 = vmul.f32 %v14279_v1, %v14279_v1  ;;  %v7089_v20 = vadd.f32 %v7088_v47, %v7026_v21  ;;  %v5661_v29 = vadd.f32 %v14285_v59, %v5452_v32  ;;  %v14291_v59 = vld [vmem:[#allocation299_spill] sm:$0xff] }
 0xc3b   :  { %v6076_v41 = vadd.f32 %v14286_v27, %v5867_v49  ;;  %v6958_v21 = vadd.f32 %v6957_v8, %v14283_v6  ;;  %v14290_v49 = vld [vmem:[#allocation68_spill] sm:$0xff] }
 0xc3c   :  { %v12716_v58 = vadd.f32 %v6905_v37, %v6697_v25  ;;  %v7028_v37 = vmul.f32 %v14283_v6, %v14283_v6  ;;  %v7090_v52 = vadd.f32 %v7089_v20, %v7027_v60  ;;  %v5455_v8 = vadd.f32 %v14291_v59, %v14290_v49  ;;  %v14296_v59 = vld [vmem:[#allocation296_spill] sm:$0xff] }
 0xc3d   :  { %v6281_v0 = vpop.f32.mrf.mxu2  ;;  %v6959_v20 = vadd.f32 %v6958_v21, %v14284_v45 }
 0xc3e   :  { %v6282_v2 = vadd.f32 %v6281_v0, %v6073_v36  ;;  %v6911_v14 = vpop.f32.mrf.mxu1  ;;  %v7029_v0 = vmul.f32 %v14284_v45, %v14284_v45  ;;  %v12731_v36 = vpop.f32.mrf.mxu0  ;;  %v7091_v47 = vadd.f32 %v7090_v52, %v7028_v37  ;;  %v14292_v37 = vld [vmem:[#allocation189_spill] sm:$0xff]  ;;  %v14295_v45 = vld [vmem:[#allocation187_spill] sm:$0xff] }
 0xc3f   :  { %v12741_v60 = vpop.f32.mrf.mxu3  ;;  %v5870_v52 = vadd.f32 %v14292_v37, %v5661_v29  ;;  %v6960_v27 = vadd.f32 %v6959_v20, %v14287_v39  ;;  %v5664_v49 = vadd.f32 %v14295_v45, %v5455_v8  ;;  %v14299_v8 = vld [vmem:[#allocation72_spill] sm:$0xff] }
 0xc40   :  { %v6491_v25 = vadd.f32 %v12656_v54, %v6282_v2  ;;  %v7030_v54 = vmul.f32 %v14287_v39, %v14287_v39  ;;  %v7092_v1 = vadd.f32 %v7091_v47, %v7029_v0  ;;  %v14294_v47 = vld [vmem:[#allocation16_spill] sm:$0xff] }
 0xc41   :  { %v6961_v0 = vadd.f32 %v6960_v27, %v14289_v18  ;;  %v6079_v29 = vadd.f32 %v14296_v59, %v5870_v52  ;;  %v14300_v52 = vld [vmem:[#allocation302_spill] sm:$0xff] }
 0xc42   :  { %v6700_v3 = vadd.f32 %v12664_v12, %v6491_v25  ;;  %v7031_v12 = vmul.f32 %v14289_v18, %v14289_v18  ;;  %v14304_v18 = vld [vmem:[#allocation298_spill] sm:$0xff] }
 0xc44   :  { %v12739_v2 = vadd.f32 %v6908_v31, %v6700_v3  ;;  %v7093_v31 = vadd.f32 %v7092_v1, %v7030_v54  ;;  %v14293_v3 = vld [vmem:[#allocation246_spill] sm:$0xff]  ;;  %v14297_v54 = vld [vmem:[#allocation125_spill] sm:$0xff] }
 0xc45   :  { %v6284_v50 = vpop.f32.mrf.mxu2  ;;  %v7032_v6 = vmul.f32 %v14293_v3, %v14293_v3  ;;  %v6962_v20 = vadd.f32 %v6961_v0, %v14293_v3  ;;  %v7034_v37 = vmul.f32 %v14297_v54, %v14297_v54  ;;  %v14302_v3 = vld [vmem:[#allocation134_spill] sm:$0xff] }
 0xc46   :  { %14288 = vst [vmem:[#allocation144_spill] sm:$0xff] %v12739_v2  ;;  %v6285_v32 = vadd.f32 %v6284_v50, %v6076_v41  ;;  %v6914_v25 = vpop.f32.mrf.mxu1  ;;  %v7094_v21 = vadd.f32 %v7093_v31, %v7031_v12  ;;  %v7033_v41 = vmul.f32 %v14294_v47, %v14294_v47  ;;  %v12762_v39 = vpop.f32.mrf.mxu0  ;;  %v14298_v31 = vld [vmem:[#allocation17_spill] sm:$0xff] }
 0xc47   :  { %v12773_v0 = vpop.f32.mrf.mxu3 }
 0xc48   :  { %v6494_v2 = vadd.f32 %v12669_v15, %v6285_v32  ;;  %v7095_v1 = vadd.f32 %v7094_v21, %v7032_v6  ;;  %v6963_v32 = vadd.f32 %v6962_v20, %v14294_v47  ;;  %v5458_v6 = vadd.f32 %v14300_v52, %v14299_v8  ;;  %v14301_v21 = vld [vmem:[#allocation193_spill] sm:$0xff]  ;;  %v14303_v52 = vld [vmem:[#allocation191_spill] sm:$0xff] }
 0xc49   :  { %v5873_v59 = vadd.f32 %v14301_v21, %v5664_v49  ;;  %v7036_v20 = vmul.f32 %v14302_v3, %v14302_v3 }
 0xc4a   :  { %v6703_v50 = vadd.f32 %v12680_v5, %v6494_v2  ;;  %v7096_v27 = vadd.f32 %v7095_v1, %v7033_v41  ;;  %v7035_v5 = vmul.f32 %v14298_v31, %v14298_v31  ;;  %v5667_v47 = vadd.f32 %v14303_v52, %v5458_v6 }
 0xc4b   :  { %v6082_v49 = vadd.f32 %v14304_v18, %v5873_v59  ;;  %v14305_v18 = vld [vmem:[#allocation197_spill] sm:$0xff]  ;;  %v7041_v52 = vmul.f32 %v12390_v46, %v12390_v46 }
 0xc4c   :  { %v12764_v15 = vadd.f32 %v6911_v14, %v6703_v50  ;;  %v6964_v14 = vadd.f32 %v6963_v32, %v14297_v54  ;;  %v7097_v50 = vadd.f32 %v7096_v27, %v7034_v37  ;;  %v7038_v27 = vmul.f32 %v12363_v48, %v12363_v48 }
 0xc4d   :  { %v6287_v12 = vpop.f32.mrf.mxu2  ;;  %v5876_v59 = vadd.f32 %v14305_v18, %v5667_v47 }
 0xc4e   :  { %v6288_v45 = vadd.f32 %v6287_v12, %v6079_v29  ;;  %v12769_v2 = vpop.f32.mrf.mxu1  ;;  %v6965_v1 = vadd.f32 %v6964_v14, %v14298_v31  ;;  %v7098_v29 = vadd.f32 %v7097_v50, %v7035_v5  ;;  %v7037_v12 = vmul.f32 %v12354_v7, %v12354_v7 }
 0xc4f   :  { %v7039_v14 = vmul.f32 %v12372_v16, %v12372_v16 }
 0xc50   :  { %v6497_v41 = vadd.f32 %v12686_v42, %v6288_v45  ;;  %v6966_v32 = vadd.f32 %v6965_v1, %v14302_v3  ;;  %v7099_v37 = vadd.f32 %v7098_v29, %v7036_v20  ;;  %v12803_v29 = vpop.f32.mrf.mxu3  ;;  %v14332_v3 = vld [vmem:[#allocation323_spill] sm:$0xff] }
 0xc52   :  { %v6706_v8 = vadd.f32 %v12702_v43, %v6497_v41  ;;  %v6967_v5 = vadd.f32 %v6966_v32, %v12354_v7  ;;  %v7100_v45 = vadd.f32 %v7099_v37, %v7037_v12  ;;  %v12794_v43 = vpop.f32.mrf.mxu0  ;;  %v7042_v37 = vmul.f32 %v12399_v33, %v12399_v33  ;;  %v14331_v7 = vld [vmem:[#allocation104_spill] sm:$0xff] }
 0xc54   :  { %v12789_v21 = vadd.f32 %v6914_v25, %v6706_v8  ;;  %v6968_v20 = vadd.f32 %v6967_v5, %v12363_v48  ;;  %v7101_v41 = vadd.f32 %v7100_v45, %v7038_v27  ;;  %v7040_v25 = vmul.f32 %v12381_v10, %v12381_v10  ;;  %v14306_v27 = vld [vmem:[#allocation300_spill] sm:$0xff]  ;;  %v14329_v48 = vld [vmem:[#allocation303_spill] sm:$0xff] }
 0xc55   :  { %v6290_v42 = vpop.f32.mrf.mxu2 }
 0xc56   :  { %v6291_v6 = vadd.f32 %v6290_v42, %v6082_v49  ;;  %v12796_v50 = vpop.f32.mrf.mxu1  ;;  %v6969_v12 = vadd.f32 %v6968_v20, %v12372_v16  ;;  %v7102_v8 = vadd.f32 %v7101_v41, %v7039_v14  ;;  %v6085_v42 = vadd.f32 %v14306_v27, %v5876_v59  ;;  %v14325_v16 = vld [vmem:[#allocation265_spill] sm:$0xff] }
 0xc57   :  { %v7043_v14 = vmul.f32 %v12408_v24, %v12408_v24  ;;  %v7044_v41 = vmul.f32 %v12417_v17, %v12417_v17 }
 0xc58   :  { %v6500_v1 = vadd.f32 %v12710_v11, %v6291_v6  ;;  %v6970_v47 = vadd.f32 %v6969_v12, %v12381_v10  ;;  %v7103_v32 = vadd.f32 %v7102_v8, %v7040_v25  ;;  %v7045_v8 = vmul.f32 %v12426_v4, %v12426_v4 }
 0xc5a   :  { %v12809_v49 = vadd.f32 %v12731_v36, %v6500_v1  ;;  %v6971_v5 = vadd.f32 %v6970_v47, %v12390_v46  ;;  %v7104_v45 = vadd.f32 %v7103_v32, %v7041_v52  ;;  %v12823_v25 = vpop.f32.mrf.mxu0  ;;  %v12831_v52 = vpop.f32.mrf.mxu3  ;;  %v14319_v46 = vld [vmem:[#allocation315_spill] sm:$0xff] }
 0xc5c   :  { %v6972_v36 = vadd.f32 %v6971_v5, %v12399_v33  ;;  %v7105_v20 = vadd.f32 %v7104_v45, %v7042_v37  ;;  %v7046_v37 = vmul.f32 %v12435_v62, %v12435_v62 }
 0xc5d   :  { %v6293_v11 = vpop.f32.mrf.mxu2 }
 0xc5e   :  { %v6294_v6 = vadd.f32 %v6293_v11, %v6085_v42  ;;  %v12818_v18 = vpop.f32.mrf.mxu1  ;;  %v6973_v1 = vadd.f32 %v6972_v36, %v12408_v24  ;;  %v7106_v12 = vadd.f32 %v7105_v20, %v7043_v14  ;;  %v7047_v11 = vmul.f32 %v12444_v53, %v12444_v53 }
 0xc60   :  { %v12826_v59 = vadd.f32 %v12741_v60, %v6294_v6  ;;  %v6974_v47 = vadd.f32 %v6973_v1, %v12417_v17  ;;  %v7107_v32 = vadd.f32 %v7106_v12, %v7044_v41  ;;  %v7048_v6 = vmul.f32 %v12453_v63, %v12453_v63  ;;  %v14314_v17 = vld [vmem:[#allocation199_spill] sm:$0xff] }
 0xc61   :  { %v7049_v1 = vmul.f32 %v12462_v35, %v12462_v35 }
 0xc62   :  { %v6975_v42 = vadd.f32 %v6974_v47, %v12426_v4  ;;  %v7108_v60 = vadd.f32 %v7107_v32, %v7045_v8  ;;  %v12847_v41 = vpop.f32.mrf.mxu0  ;;  %v7050_v47 = vmul.f32 %v12471_v56, %v12471_v56  ;;  %v12854_v32 = vpop.f32.mrf.mxu3 }
 0xc64   :  { %v6976_v45 = vadd.f32 %v6975_v42, %v12435_v62  ;;  %v7109_v14 = vadd.f32 %v7108_v60, %v7046_v37 }
 0xc65   :  { %v12836_v27 = vpop.f32.mrf.mxu2 }
 0xc66   :  { %v12841_v5 = vpop.f32.mrf.mxu1  ;;  %v6977_v36 = vadd.f32 %v6976_v45, %v12444_v53  ;;  %v7110_v20 = vadd.f32 %v7109_v14, %v7047_v11  ;;  %v7051_v11 = vmul.f32 %v12480_v9, %v12480_v9  ;;  %v7053_v53 = vmul.f32 %v12498_v57, %v12498_v57 }
 0xc68   :  { %v6978_v12 = vadd.f32 %v6977_v36, %v12453_v63  ;;  %v7111_v8 = vadd.f32 %v7110_v20, %v7048_v6  ;;  %v7052_v36 = vmul.f32 %v12489_v40, %v12489_v40 }
 0xc6a   :  { %v6979_v42 = vadd.f32 %v6978_v12, %v12462_v35  ;;  %v7112_v60 = vadd.f32 %v7111_v8, %v7049_v1  ;;  %v12869_v62 = vpop.f32.mrf.mxu0  ;;  %v7054_v8 = vmul.f32 %v12509_v13, %v12509_v13 }
 0xc6c   :  { %v6980_v45 = vadd.f32 %v6979_v42, %v12471_v56  ;;  %v7113_v14 = vadd.f32 %v7112_v60, %v7050_v47 }
 0xc6d   :  { %v12856_v37 = vpop.f32.mrf.mxu2 }
 0xc6e   :  { %v12864_v6 = vpop.f32.mrf.mxu1  ;;  %v6981_v20 = vadd.f32 %v6980_v45, %v12480_v9  ;;  %v7114_v63 = vadd.f32 %v7113_v14, %v7051_v11  ;;  %v7055_v45 = vmul.f32 %v12522_v26, %v12522_v26  ;;  %v12879_v11 = vpop.f32.mrf.mxu3 }
 0xc70   :  { %v6982_v1 = vadd.f32 %v6981_v20, %v12489_v40  ;;  %v7115_v12 = vadd.f32 %v7114_v63, %v7052_v36  ;;  %v7056_v20 = vmul.f32 %v12533_v19, %v12533_v19  ;;  %v7057_v40 = vmul.f32 %v12546_v44, %v12546_v44 }
 0xc72   :  { %v6983_v42 = vadd.f32 %v6982_v1, %v12498_v57  ;;  %v7116_v60 = vadd.f32 %v7115_v12, %v7053_v53  ;;  %v7058_v12 = vmul.f32 %v12557_v61, %v12557_v61 }
 0xc74   :  { %v6984_v14 = vadd.f32 %v6983_v42, %v12509_v13  ;;  %v7117_v9 = vadd.f32 %v7116_v60, %v7054_v8  ;;  %v12894_v8 = vpop.f32.mrf.mxu0  ;;  %v14307_v13 = vld [vmem:[#allocation76_spill] sm:$0xff] }
 0xc75   :  { %v12874_v47 = vpop.f32.mrf.mxu2 }
 0xc76   :  { %v6985_v63 = vadd.f32 %v6984_v14, %v12522_v26  ;;  %v7118_v36 = vadd.f32 %v7117_v9, %v7055_v45  ;;  %v12887_v56 = vpop.f32.mrf.mxu1  ;;  %v7059_v9 = vmul.f32 %v12570_v55, %v12570_v55  ;;  %v7061_v26 = vmul.f32 %v12594_v38, %v12594_v38 }
 0xc78   :  { %v6986_v53 = vadd.f32 %v6985_v63, %v12533_v19  ;;  %v7119_v1 = vadd.f32 %v7118_v36, %v7056_v20  ;;  %v7060_v63 = vmul.f32 %v12583_v28, %v12583_v28  ;;  %v12902_v20 = vpop.f32.mrf.mxu3 }
 0xc7a   :  { %v6987_v42 = vadd.f32 %v6986_v53, %v12546_v44  ;;  %v7120_v60 = vadd.f32 %v7119_v1, %v7057_v40  ;;  %v14308_v53 = vld [vmem:[#allocation305_spill] sm:$0xff] }
 0xc7b   :  { %v5461_v40 = vadd.f32 %v14308_v53, %v14307_v13  ;;  %v14311_v13 = vld [vmem:[#allocation195_spill] sm:$0xff] }
 0xc7c   :  { %v6988_v45 = vadd.f32 %v6987_v42, %v12557_v61  ;;  %v7121_v14 = vadd.f32 %v7120_v60, %v7058_v12  ;;  %v7062_v12 = vmul.f32 %v12607_v34, %v12607_v34  ;;  %v14309_v42 = vld [vmem:[#allocation80_spill] sm:$0xff] }
 0xc7d   :  { %v12892_v57 = vpop.f32.mrf.mxu2  ;;  %v14310_v60 = vld [vmem:[#allocation308_spill] sm:$0xff]  ;;  %v5670_v53 = vadd.f32 %v14311_v13, %v5461_v40  ;;  %v7065_v40 = vmul.f32 %v12644_v51, %v12644_v51  ;;  %v14317_v13 = vld [vmem:[#allocation203_spill] sm:$0xff] }
 0xc7e   :  { %v6989_v36 = vadd.f32 %v6988_v45, %v12570_v55  ;;  %v7122_v19 = vadd.f32 %v7121_v14, %v7059_v9  ;;  %v5464_v61 = vadd.f32 %v14310_v60, %v14309_v42  ;;  %v12914_v35 = vpop.f32.mrf.mxu1  ;;  %v7063_v14 = vmul.f32 %v12618_v22, %v12618_v22 }
 0xc7f   :  { %v7064_v60 = vmul.f32 %v12631_v30, %v12631_v30 }
 0xc80   :  { %v6990_v1 = vadd.f32 %v6989_v36, %v12583_v28  ;;  %v7123_v44 = vadd.f32 %v7122_v19, %v7060_v63  ;;  %v14312_v36 = vld [vmem:[#allocation84_spill] sm:$0xff]  ;;  %v14313_v19 = vld [vmem:[#allocation310_spill] sm:$0xff]  ;;  %v12924_v28 = vpop.f32.mrf.mxu0  ;;  %v5673_v24 = vadd.f32 %v14314_v17, %v5464_v61 }
 0xc81   :  { %v5467_v63 = vadd.f32 %v14313_v19, %v14312_v36  ;;  %v14318_v19 = vld [vmem:[#allocation92_spill] sm:$0xff] }
 0xc82   :  { %v6991_v9 = vadd.f32 %v6990_v1, %v12594_v38  ;;  %v7124_v45 = vadd.f32 %v7123_v44, %v7061_v26  ;;  %v14315_v1 = vld [vmem:[#allocation88_spill] sm:$0xff] }
 0xc83   :  { %v14316_v26 = vld [vmem:[#allocation312_spill] sm:$0xff]  ;;  %v5676_v36 = vadd.f32 %v14317_v13, %v5467_v63  ;;  %v14324_v13 = vld [vmem:[#allocation318_spill] sm:$0xff] }
 0xc84   :  { %v6992_v55 = vadd.f32 %v6991_v9, %v12607_v34  ;;  %v7125_v42 = vadd.f32 %v7124_v45, %v7062_v12  ;;  %v5470_v44 = vadd.f32 %v14316_v26, %v14315_v1  ;;  %v5473_v9 = vadd.f32 %v14319_v46, %v14318_v19  ;;  %v12938_v12 = vpop.f32.mrf.mxu3  ;;  %v14320_v45 = vld [vmem:[#allocation201_spill] sm:$0xff]  ;;  %v14323_v63 = vld [vmem:[#allocation96_spill] sm:$0xff] }
 0xc85   :  { %v12916_v4 = vpop.f32.mrf.mxu2  ;;  %v5879_v34 = vadd.f32 %v14320_v45, %v5670_v53  ;;  %v7066_v1 = vmul.f32 %v12653_v23, %v12653_v23  ;;  %v5476_v10 = vadd.f32 %v14324_v13, %v14323_v63  ;;  %v7067_v53 = vmul.f32 %v14325_v16, %v14325_v16  ;;  %v14328_v45 = vld [vmem:[#allocation321_spill] sm:$0xff] }
 0xc86   :  { %v6993_v38 = vadd.f32 %v6992_v55, %v12618_v22  ;;  %v7126_v33 = vadd.f32 %v7125_v42, %v7063_v14  ;;  %v14321_v55 = vld [vmem:[#allocation207_spill] sm:$0xff]  ;;  %v14322_v42 = vld [vmem:[#allocation205_spill] sm:$0xff]  ;;  %v5482_v63 = vadd.f32 %v14332_v3, %v14331_v7 }
 0xc87   :  { %v5679_v14 = vadd.f32 %v14321_v55, %v5470_v44  ;;  %v5882_v26 = vadd.f32 %v14322_v42, %v5673_v24  ;;  %v6088_v44 = vadd.f32 %v14329_v48, %v5879_v34  ;;  %v14330_v55 = vld [vmem:[#allocation209_spill] sm:$0xff]  ;;  %v12958_v42 = vpop.f32.mrf.mxu1 }
 0xc88   :  { %v6994_v17 = vadd.f32 %v6993_v38, %v12631_v30  ;;  %v7127_v61 = vadd.f32 %v7126_v33, %v7064_v60  ;;  %v14326_v38 = vld [vmem:[#allocation211_spill] sm:$0xff]  ;;  %v14327_v60 = vld [vmem:[#allocation100_spill] sm:$0xff]  ;;  %v5885_v24 = vadd.f32 %v14330_v55, %v5676_v36  ;;  %v14337_v34 = vld [vmem:[#allocation213_spill] sm:$0xff]  ;;  %v12971_v54 = vpop.f32.mrf.mxu0 }
 0xc89   :  { %v5682_v33 = vadd.f32 %v14326_v38, %v5473_v9  ;;  %v5479_v30 = vadd.f32 %v14328_v45, %v14327_v60  ;;  %v14335_v9 = vld [vmem:[#allocation326_spill] sm:$0xff]  ;;  %v6297_v60 = vadd.f32 %v12836_v27, %v6088_v44  ;;  %v5888_v36 = vadd.f32 %v14337_v34, %v5679_v14  ;;  %v14338_v55 = vld [vmem:[#allocation215_spill] sm:$0xff]  ;;  %v14342_v44 = vld [vmem:[#allocation217_spill] sm:$0xff] }
 0xc8a   :  { %v6995_v46 = vadd.f32 %v6994_v17, %v12644_v51  ;;  %v7128_v19 = vadd.f32 %v7127_v61, %v7065_v40  ;;  %v14333_v61 = vld [vmem:[#allocation35_spill] sm:$0xff]  ;;  %v14334_v51 = vld [vmem:[#allocation108_spill] sm:$0xff]  ;;  %v14336_v45 = vld [vmem:[#allocation306_spill] sm:$0xff]  ;;  %v5685_v31 = vadd.f32 %v14338_v55, %v5476_v10 }
 0xc8b   :  { %v7068_v13 = vmul.f32 %v14333_v61, %v14333_v61  ;;  %v5485_v38 = vadd.f32 %v14335_v9, %v14334_v51  ;;  %v6091_v48 = vadd.f32 %v14336_v45, %v5882_v26  ;;  %v14341_v9 = vld [vmem:[#allocation309_spill] sm:$0xff]  ;;  %v5891_v26 = vadd.f32 %v14342_v44, %v5682_v33  ;;  %v14343_v45 = vld [vmem:[#allocation223_spill] sm:$0xff] }
 0xc8c   :  { %v6996_v17 = vadd.f32 %v6995_v46, %v12653_v23  ;;  %v7129_v40 = vadd.f32 %v7128_v19, %v7066_v1  ;;  %v14339_v1 = vld [vmem:[#allocation33_spill] sm:$0xff]  ;;  %v14340_v19 = vld [vmem:[#allocation219_spill] sm:$0xff]  ;;  %v6094_v27 = vadd.f32 %v14341_v9, %v5885_v24  ;;  %v5691_v14 = vadd.f32 %v14343_v45, %v5482_v63  ;;  %v12985_v55 = vpop.f32.mrf.mxu3  ;;  %v14346_v9 = vld [vmem:[#allocation144_spill] sm:$0xff] }
 0xc8d   :  { %v12946_v22 = vpop.f32.mrf.mxu2  ;;  %v7069_v46 = vmul.f32 %v14339_v1, %v14339_v1  ;;  %v5688_v23 = vadd.f32 %v14340_v19, %v5479_v30  ;;  %v6300_v51 = vadd.f32 %v12856_v37, %v6091_v48  ;;  %v6506_v30 = vadd.f32 %v12773_v0, %v6297_v60  ;;  %v14345_v48 = vld [vmem:[#allocation311_spill] sm:$0xff]  ;;  %v14348_v60 = vld [vmem:[#allocation313_spill] sm:$0xff] }
 0xc8e   :  { %v6997_v7 = vadd.f32 %v6996_v17, %v14325_v16  ;;  %v7130_v3 = vadd.f32 %v7129_v40, %v7067_v53  ;;  %v7070_v17 = vmul.f32 %v12716_v58, %v12716_v58  ;;  %v14344_v53 = vld [vmem:[#allocation227_spill] sm:$0xff]  ;;  %v6303_v37 = vadd.f32 %v12874_v47, %v6094_v27  ;;  %v14349_v45 = vld [vmem:[#allocation225_spill] sm:$0xff] }
 0xc8f   :  { %v5694_v40 = vadd.f32 %v14344_v53, %v5485_v38  ;;  %v6097_v24 = vadd.f32 %v14345_v48, %v5888_v36  ;;  %v6712_v38 = vadd.f32 %v12762_v39, %v12826_v59  ;;  %v6509_v44 = vadd.f32 %v12803_v29, %v6300_v51  ;;  %v13010_v59 = vpop.f32.mrf.mxu1  ;;  %v14351_v53 = vld [vmem:[#allocation229_spill] sm:$0xff] }
 0xc90   :  { %v6998_v10 = vadd.f32 %v6997_v7, %v14333_v61  ;;  %v7131_v34 = vadd.f32 %v7130_v3, %v7068_v13  ;;  %v7071_v13 = vmul.f32 %v14346_v9, %v14346_v9  ;;  %v14347_v7 = vld [vmem:[#allocation221_spill] sm:$0xff]  ;;  %v6100_v47 = vadd.f32 %v14348_v60, %v5891_v26 }
 0xc91   :  { %v5894_v3 = vadd.f32 %v14347_v7, %v5685_v31  ;;  %v6306_v0 = vadd.f32 %v12892_v57, %v6097_v24  ;;  %v13005_v31 = vadd.f32 %v12769_v2, %v12809_v49  ;;  %v6715_v39 = vadd.f32 %v12794_v43, %v6506_v30  ;;  %v14352_v24 = vld [vmem:[#allocation319_spill] sm:$0xff]  ;;  %v14353_v7 = vld [vmem:[#allocation112_spill] sm:$0xff] }
 0xc92   :  { %v6999_v33 = vadd.f32 %v6998_v10, %v14339_v1  ;;  %v7132_v63 = vadd.f32 %v7131_v34, %v7069_v46  ;;  %v7072_v46 = vmul.f32 %v12764_v15, %v12764_v15  ;;  %v5897_v10 = vadd.f32 %v14349_v45, %v5688_v23  ;;  %v14350_v34 = vld [vmem:[#allocation316_spill] sm:$0xff]  ;;  %v14356_v45 = vld [vmem:[#allocation233_spill] sm:$0xff] }
 0xc93   :  { %v6512_v29 = vadd.f32 %v12831_v52, %v6303_v37  ;;  %v6309_v57 = vadd.f32 %v12916_v4, %v6100_v47  ;;  %v5900_v48 = vadd.f32 %v14351_v53, %v5691_v14  ;;  %v7073_v23 = vmul.f32 %v12789_v21, %v12789_v21  ;;  %v6735_v4 = vpop.f32.mrf.mxu0 }
 0xc94   :  { %v7000_v36 = vadd.f32 %v6999_v33, %v12716_v58  ;;  %v7133_v27 = vadd.f32 %v7132_v63, %v7070_v17  ;;  %v6103_v17 = vadd.f32 %v14350_v34, %v5894_v3  ;;  %v13018_v2 = vadd.f32 %v12796_v50, %v6712_v38  ;;  %v14354_v3 = vld [vmem:[#allocation329_spill] sm:$0xff] }
 0xc95   :  { %v6314_v19 = vpop.f32.mrf.mxu2  ;;  %v6718_v43 = vadd.f32 %v12823_v25, %v6509_v44  ;;  %v6515_v49 = vadd.f32 %v12854_v32, %v6306_v0  ;;  %v6106_v33 = vadd.f32 %v14352_v24, %v5897_v10  ;;  %v7074_v14 = vmul.f32 %v13005_v31, %v13005_v31  ;;  %v6529_v32 = vpop.f32.mrf.mxu3  ;;  %v14355_v0 = vld [vmem:[#allocation322_spill] sm:$0xff] }
 0xc96   :  { %v7001_v51 = vadd.f32 %v7000_v36, %v14346_v9  ;;  %v7134_v26 = vadd.f32 %v7133_v27, %v7071_v13  ;;  %v6312_v37 = vadd.f32 %v12946_v22, %v6103_v17  ;;  %v13028_v63 = vadd.f32 %v12818_v18, %v6715_v39 }
 0xc97   :  { %v6721_v50 = vadd.f32 %v12847_v41, %v6512_v29  ;;  %v6518_v25 = vadd.f32 %v12879_v11, %v6309_v57  ;;  %v5488_v38 = vadd.f32 %v14354_v3, %v14353_v7  ;;  %v6315_v22 = vadd.f32 %v6314_v19, %v6106_v33  ;;  %v6944_v17 = vpop.f32.mrf.mxu1 }
 0xc98   :  { %v7002_v52 = vadd.f32 %v7001_v51, %v12764_v15  ;;  %v7135_v30 = vadd.f32 %v7134_v26, %v7072_v46  ;;  %v6109_v60 = vadd.f32 %v14355_v0, %v5900_v48  ;;  %v7075_v36 = vmul.f32 %v13018_v2, %v13018_v2  ;;  %v14357_v51 = vld [vmem:[#allocation231_spill] sm:$0xff]  ;;  %v14358_v48 = vld [vmem:[#allocation325_spill] sm:$0xff] }
 0xc99   :  { %v13039_v18 = vadd.f32 %v12841_v5, %v6718_v43  ;;  %v6724_v41 = vadd.f32 %v12869_v62, %v6515_v49  ;;  %v6521_v27 = vadd.f32 %v12902_v20, %v6312_v37  ;;  %v5903_v10 = vadd.f32 %v14356_v45, %v5694_v40 }
 0xc9a   :  { %v7003_v44 = vadd.f32 %v7002_v52, %v12789_v21  ;;  %v7136_v47 = vadd.f32 %v7135_v30, %v7073_v23  ;;  %v7076_v19 = vmul.f32 %v13028_v63, %v13028_v63  ;;  %v13048_v29 = vadd.f32 %v12864_v6, %v6721_v50 }
 0xc9b   :  { %v6727_v57 = vadd.f32 %v12894_v8, %v6518_v25  ;;  %v6524_v62 = vadd.f32 %v12938_v12, %v6315_v22  ;;  %v5697_v26 = vadd.f32 %v14357_v51, %v5488_v38  ;;  %v7077_v20 = vmul.f32 %v13039_v18, %v13039_v18  ;;  %v6738_v30 = vpop.f32.mrf.mxu0 }
 0xc9c   :  { %v7004_v11 = vadd.f32 %v7003_v44, %v13005_v31  ;;  %v7137_v39 = vadd.f32 %v7136_v47, %v7074_v14  ;;  %v13057_v40 = vadd.f32 %v12887_v56, %v6724_v41  ;;  %v6730_v6 = vadd.f32 %v12924_v28, %v6521_v27  ;;  %v14359_v14 = vld [vmem:[#allocation236_spill] sm:$0xff] }
 0xc9d   :  { %v6317_v13 = vpop.f32.mrf.mxu2  ;;  %v6112_v23 = vadd.f32 %v14358_v48, %v5903_v10  ;;  %v7078_v12 = vmul.f32 %v13048_v29, %v13048_v29  ;;  %v13066_v49 = vadd.f32 %v12914_v35, %v6727_v57  ;;  %v6733_v37 = vadd.f32 %v12971_v54, %v6524_v62 }
 0xc9e   :  { %v6318_v46 = vadd.f32 %v6317_v13, %v6109_v60  ;;  %v7005_v5 = vadd.f32 %v7004_v11, %v13018_v2  ;;  %v7138_v34 = vadd.f32 %v7137_v39, %v7075_v36  ;;  %v7079_v28 = vmul.f32 %v13057_v40, %v13057_v40 }
 0xc9f   :  { %v5906_v50 = vadd.f32 %v14359_v14, %v5697_v26  ;;  %v13075_v13 = vadd.f32 %v12958_v42, %v6730_v6  ;;  %v7080_v38 = vmul.f32 %v13066_v49, %v13066_v49  ;;  %v13081_v44 = vadd.f32 %v13010_v59, %v6733_v37  ;;  %v6947_v60 = vpop.f32.mrf.mxu1 }
 0xca0   :  { %v7006_v53 = vadd.f32 %v7005_v5, %v13028_v63  ;;  %v6527_v8 = vadd.f32 %v12985_v55, %v6318_v46  ;;  %v7139_v43 = vadd.f32 %v7138_v34, %v7076_v19  ;;  %v6532_v55 = vpop.f32.mrf.mxu3 }
 0xca1   :  { %v7081_v42 = vmul.f32 %v13075_v13, %v13075_v13  ;;  %v7082_v27 = vmul.f32 %v13081_v44, %v13081_v44 }
 0xca2   :  { %v7007_v56 = vadd.f32 %v7006_v53, %v13039_v18  ;;  %v7140_v33 = vadd.f32 %v7139_v43, %v7077_v20  ;;  %v6736_v35 = vadd.f32 %v6735_v4, %v6527_v8  ;;  %v14360_v4 = vld [vmem:[#allocation327_spill] sm:$0xff] }
 0xca3   :  { %v6741_v10 = vpop.f32.mrf.mxu0 }
 0xca4   :  { %v7008_v25 = vadd.f32 %v7007_v56, %v13048_v29  ;;  %v7141_v3 = vadd.f32 %v7140_v33, %v7078_v12  ;;  %v13086_v36 = vadd.f32 %v6944_v17, %v6736_v35 }
 0xca5   :  { %v6320_v52 = vpop.f32.mrf.mxu2 }
 0xca6   :  { %v6321_v24 = vadd.f32 %v6320_v52, %v6112_v23  ;;  %v7009_v54 = vadd.f32 %v7008_v25, %v13057_v40  ;;  %v7142_v0 = vadd.f32 %v7141_v3, %v7079_v28  ;;  %v7083_v19 = vmul.f32 %v13086_v36, %v13086_v36 }
 0xca8   :  { %v6530_v7 = vadd.f32 %v6529_v32, %v6321_v24  ;;  %v7010_v47 = vadd.f32 %v7009_v54, %v13066_v49  ;;  %v6115_v32 = vadd.f32 %v14360_v4, %v5906_v50  ;;  %v7143_v41 = vadd.f32 %v7142_v0, %v7080_v38  ;;  %v6950_v62 = vpop.f32.mrf.mxu3 }
 0xcaa   :  { %v6739_v22 = vadd.f32 %v6738_v30, %v6530_v7  ;;  %v7011_v59 = vadd.f32 %v7010_v47, %v13075_v13  ;;  %v7144_v57 = vadd.f32 %v7143_v41, %v7081_v42 }
 0xcac   :  { %v13091_v46 = vadd.f32 %v6947_v60, %v6739_v22  ;;  %v7012_v39 = vadd.f32 %v7011_v59, %v13081_v44  ;;  %v7145_v34 = vadd.f32 %v7144_v57, %v7082_v27 }
 0xcad   :  { %v6323_v11 = vpop.f32.mrf.mxu2 }
 0xcae   :  { %v6324_v45 = vadd.f32 %v6323_v11, %v6115_v32  ;;  %v7013_v51 = vadd.f32 %v7012_v39, %v13086_v36  ;;  %v7084_v26 = vmul.f32 %v13091_v46, %v13091_v46  ;;  %v7146_v53 = vadd.f32 %v7145_v34, %v7083_v19  ;;  %v7171_v11 = vld [vmem:[%s13502_s5] sm:$0x1]  ;;  %v14363_v34 = vld [vmem:[#allocation333_spill] sm:$0xff] }
 0xcaf   :  { %v7173_v39 = vld [vmem:[%s13503_s6] sm:$0x1] }
 0xcb0   :  { %v6533_v5 = vadd.f32 %v6532_v55, %v6324_v45  ;;  %v7014_v17 = vadd.f32 %v7013_v51, %v13091_v46  ;;  %v7147_v8 = vadd.f32 %v7146_v53, %v7084_v26  ;;  %v14362_v51 = vld [vmem:[#allocation332_spill] sm:$0xff] }
 0xcb2   :  { %v6742_v20 = vadd.f32 %v6741_v10, %v6533_v5  ;;  %v14361_v5 = vld [vmem:[#allocation331_spill] sm:$0xff] }
 0xcb4   :  { %v6951_v6 = vadd.f32 %v6950_v62, %v6742_v20 }
 0xcb6   :  { %v7015_v48 = vadd.f32 %v7014_v17, %v6951_v6  ;;  %v7085_v23 = vmul.f32 %v6951_v6, %v6951_v6  ;;  %v14364_v17 = vld [vmem:[#allocation12_spill] sm:$0xff] }
 0xcb8   :  { %v7016_v43 = vrot.slane %v7015_v48, 4  ;;  %v7148_v12 = vadd.f32 %v7147_v8, %v7085_v23 }
 0xcba   :  { %v7017_v52 = vadd.f32 %v7016_v43, %v7015_v48  ;;  %v7149_v30 = vrot.slane %v7148_v12, 4 }
 0xcbc   :  { %v7018_v56 = vrot.slane %v7017_v52, 2  ;;  %v7150_v37 = vadd.f32 %v7149_v30, %v7148_v12  ;;  %v14366_v12 = vld [vmem:[#allocation14_spill] sm:$0xff] }
 0xcbe   :  { %v7019_v24 = vadd.f32 %v7018_v56, %v7017_v52  ;;  %v7151_v33 = vrot.slane %v7150_v37, 2  ;;  %v14367_v56 = vld [vmem:[#allocation130_spill] sm:$0xff] }
 0xcc0   :  { %v7020_v28 = vrot.slane %v7019_v24, 1  ;;  %v7152_v55 = vadd.f32 %v7151_v33, %v7150_v37  ;;  %v14368_v33 = vld [vmem:[#allocation244_spill] sm:$0xff] }
 0xcc2   :  { %v7021_v14 = vadd.f32 %v7020_v28, %v7019_v24  ;;  %v7153_v50 = vrot.slane %v7152_v55, 1 }
 0xcc4   :  { %v7154_v25 = vadd.f32 %v7153_v50, %v7152_v55  ;;  %v7155_v35 = vmul.f32 0.001953125, %v7021_v14  ;;  %v14369_v55 = vld [vmem:[#allocation18_spill] sm:$0xff] }
 0xcc6   :  { %v7156_v7 = vmul.f32 0.001953125, %v7154_v25  ;;  %v7157_v3 = vmul.f32 %v7155_v35, %v7155_v35 }
 0xcc8   :  { %v7158_v38 = vsub.f32 %v7156_v7, %v7157_v3 }
 0xcca   :  { %v7159_v54 = vmax.f32 %v7158_v38, 0.0 }
 0xccc   :  { %v7160_v22 = vadd.f32 1e-05, %v7159_v54  ;;  %v14370_v54 = vld [vmem:[#allocation250_spill] sm:$0xff] }
 0xcce   :  { %7553 = vrsqrt.f32 %v7160_v22  ;;  %vm7167_vm0 = vweird.f32 %v7160_v22 }
 0xcd4   :  { %v7554_v0 = vpop.eup %7553 }
 0xcd5   :  { %v7162_v60 = vmul.f32 %v7554_v0, %v7160_v22  ;;  %vm7168_vm15 = vweird.f32 %v7554_v0 }
 0xcd6   :  { %vm7169_vm1 = vmor %vm7167_vm0, %vm7168_vm15 }
 0xcd7   :  { %v7163_v47 = vmul.f32 %v7554_v0, %v7162_v60 }
 0xcd9   :  { %v7164_v42 = vmul.f32 0.5, %v7163_v47  ;;  %v14371_v47 = vld [vmem:[#allocation246_spill] sm:$0xff] }
 0xcdb   :  { %v7165_v4 = vsub.f32 1.5, %v7164_v42 }
 0xcdd   :  { %v7166_v32 = vmul.f32 %v7554_v0, %v7165_v4 }
 0xcdf   :  { %v7170_v41 = vsel %vm7169_vm1, %v7554_v0, %v7166_v32 }
 0xce0   :  { %v7172_v27 = vmul.f32 %v7171_v11, %v7170_v41  ;;  %v14372_v41 = vld [vmem:[#allocation16_spill] sm:$0xff] }
 0xce2   :  { %v13104_v59 = vperm.slane %v7172_v27, 0  ;;  %v7174_v10 = vmul.f32 %v7172_v27, %v7155_v35 }
 0xce4   :  { %v7240_v45 = vmul.f32 %v13104_v59, %v6951_v6  ;;  %v7175_v19 = vsub.f32 %v7173_v39, %v7174_v10  ;;  %v7177_v62 = vmul.f32 %v13104_v59, %v14361_v5  ;;  %v7178_v26 = vmul.f32 %v13104_v59, %v14362_v51  ;;  %v14365_v6 = vld [vmem:[#allocation122_spill] sm:$0xff]  ;;  %v14373_v10 = vld [vmem:[#allocation125_spill] sm:$0xff] }
 0xce5   :  { %v7179_v20 = vmul.f32 %v13104_v59, %v14363_v34  ;;  %v7180_v53 = vmul.f32 %v13104_v59, %v14364_v17  ;;  %v7181_v8 = vmul.f32 %v13104_v59, %v14365_v6  ;;  %v7182_v52 = vmul.f32 %v13104_v59, %v14366_v12  ;;  %v14377_v12 = vld [vmem:[#allocation22_spill] sm:$0xff] }
 0xce6   :  { %v13110_v57 = vperm.slane %v7175_v19, 0  ;;  %v7183_v37 = vmul.f32 %v13104_v59, %v14367_v56  ;;  %v7184_v28 = vmul.f32 %v13104_v59, %v14368_v33  ;;  %v7185_v14 = vmul.f32 %v13104_v59, %v14369_v55  ;;  %v14379_v55 = vld [vmem:[#allocation251_spill] sm:$0xff] }
 0xce7   :  { %v7186_v22 = vmul.f32 %v13104_v59, %v14370_v54  ;;  %v7187_v42 = vmul.f32 %v13104_v59, %v14371_v47  ;;  %v7188_v11 = vmul.f32 %v13104_v59, %v14372_v41  ;;  %v7189_v39 = vmul.f32 %v13104_v59, %v14373_v10 }
 0xce8   :  { %v7244_v48 = vadd.f32 %v13110_v57, %v7177_v62  ;;  %v7245_v23 = vadd.f32 %v13110_v57, %v7178_v26  ;;  %v7246_v43 = vadd.f32 %v13110_v57, %v7179_v20  ;;  %v7247_v30 = vadd.f32 %v13110_v57, %v7180_v53  ;;  %v14374_v62 = vld [vmem:[#allocation17_spill] sm:$0xff]  ;;  %v14375_v20 = vld [vmem:[#allocation134_spill] sm:$0xff] }
 0xce9   :  { %v7248_v24 = vadd.f32 %v13110_v57, %v7181_v8  ;;  %v7249_v50 = vadd.f32 %v13110_v57, %v7182_v52  ;;  %v13137_v25 = vadd.f32 %v13110_v57, %v7240_v45  ;;  %v7250_v35 = vadd.f32 %v13110_v57, %v7183_v37  ;;  %v14376_v8 = vld [vmem:[#allocation248_spill] sm:$0xff] }
 0xcea   :  { %v7308_v7 = vmax.f32 %v7244_v48, 0.0  ;;  %v7309_v3 = vmax.f32 %v7245_v23, 0.0  ;;  %v7310_v38 = vmax.f32 %v7246_v43, 0.0  ;;  %v7251_v0 = vadd.f32 %v13110_v57, %v7184_v28  ;;  %v14378_v37 = vld [vmem:[#allocation256_spill] sm:$0xff] }
 0xceb   :  { %v7311_v60 = vmax.f32 %v7247_v30, 0.0  ;;  %v7252_v4 = vadd.f32 %v13110_v57, %v7185_v14  ;;  %v7312_v32 = vmax.f32 %v7248_v24, 0.0  ;;  %v7253_v27 = vadd.f32 %v13110_v57, %v7186_v22  ;;  %v14381_v22 = vld [vmem:[#allocation128_spill] sm:$0xff] }
 0xcec   :  { %7372 = vst [vmem:[%s13504_s7] sm:$0xff] %v7308_v7  ;;  %v7313_v45 = vmax.f32 %v7249_v50, 0.0  ;;  %v7254_v19 = vadd.f32 %v13110_v57, %v7187_v42  ;;  %v7314_v5 = vmax.f32 %v7250_v35, 0.0  ;;  %v7190_v51 = vmul.f32 %v13104_v59, %v14374_v62  ;;  %v14380_v7 = vld [vmem:[#allocation20_spill] sm:$0xff]  ;;  %v14382_v42 = vld [vmem:[#allocation21_spill] sm:$0xff] }
 0xced   :  { %7373 = vst [vmem:[%s13504_s7 + $0x8] sm:$0xff] %v7309_v3  ;;  %v7255_v26 = vadd.f32 %v13110_v57, %v7188_v11  ;;  %v7315_v34 = vmax.f32 %v7251_v0, 0.0  ;;  %v7191_v17 = vmul.f32 %v13104_v59, %v14375_v20  ;;  %v7256_v53 = vadd.f32 %v13110_v57, %v7189_v39  ;;  %v14383_v11 = vld [vmem:[#allocation138_spill] sm:$0xff]  ;;  %v14384_v39 = vld [vmem:[#allocation253_spill] sm:$0xff] }
 0xcee   :  { %7374 = vst [vmem:[%s13504_s7 + $0x10] sm:$0xff] %v7310_v38  ;;  %v7316_v6 = vmax.f32 %v7252_v4, 0.0  ;;  %v7192_v48 = vmul.f32 %v13104_v59, %v14376_v8  ;;  %v7257_v23 = vadd.f32 %v13110_v57, %v7190_v51  ;;  %v7317_v43 = vmax.f32 %v7253_v27, 0.0  ;;  %v14385_v51 = vld [vmem:[#allocation26_spill] sm:$0xff] }
 0xcef   :  { %7375 = vst [vmem:[%s13504_s7 + $0x18] sm:$0xff] %v7311_v60  ;;  %v7193_v52 = vmul.f32 %v13104_v59, %v14377_v12  ;;  %v7258_v30 = vadd.f32 %v13110_v57, %v7191_v17  ;;  %v7318_v56 = vmax.f32 %v7254_v19, 0.0  ;;  %v7194_v24 = vmul.f32 %v13104_v59, %v14378_v37  ;;  %v14386_v17 = vld [vmem:[#allocation260_spill] sm:$0xff] }
 0xcf0   :  { %7376 = vst [vmem:[%s13504_s7 + $0x20] sm:$0xff] %v7312_v32  ;;  %v7259_v33 = vadd.f32 %v13110_v57, %v7192_v48  ;;  %v7319_v28 = vmax.f32 %v7255_v26, 0.0  ;;  %v7195_v14 = vmul.f32 %v13104_v59, %v14379_v55  ;;  %v7320_v35 = vmax.f32 %v7256_v53, 0.0  ;;  %v14387_v48 = vld [vmem:[#allocation255_spill] sm:$0xff] }
 0xcf1   :  { %7377 = vst [vmem:[%s13504_s7 + $0x28] sm:$0xff] %v7313_v45  ;;  %v7260_v50 = vadd.f32 %v13110_v57, %v7193_v52  ;;  %v7196_v3 = vmul.f32 %v13104_v59, %v14380_v7  ;;  %v7261_v38 = vadd.f32 %v13110_v57, %v7194_v24  ;;  %v7321_v54 = vmax.f32 %v7257_v23, 0.0  ;;  %v14388_v52 = vld [vmem:[#allocation24_spill] sm:$0xff] }
 0xcf2   :  { %7378 = vst [vmem:[%s13504_s7 + $0x30] sm:$0xff] %v7314_v5  ;;  %v7197_v0 = vmul.f32 %v13104_v59, %v14381_v22  ;;  %v7262_v60 = vadd.f32 %v13110_v57, %v7195_v14  ;;  %v7322_v47 = vmax.f32 %v7258_v30, 0.0  ;;  %v7198_v4 = vmul.f32 %v13104_v59, %v14382_v42  ;;  %v14389_v24 = vld [vmem:[#allocation132_spill] sm:$0xff]  ;;  %v14390_v14 = vld [vmem:[#allocation25_spill] sm:$0xff] }
 0xcf3   :  { %7379 = vst [vmem:[%s13504_s7 + $0x38] sm:$0xff] %v7315_v34  ;;  %v7263_v32 = vadd.f32 %v13110_v57, %v7196_v3  ;;  %v7323_v41 = vmax.f32 %v7259_v33, 0.0  ;;  %v7199_v27 = vmul.f32 %v13104_v59, %v14383_v11  ;;  %v7324_v10 = vmax.f32 %v7260_v50, 0.0  ;;  %v14391_v3 = vld [vmem:[#allocation142_spill] sm:$0xff] }
 0xcf4   :  { %7380 = vst [vmem:[%s13504_s7 + $0x40] sm:$0xff] %v7316_v6  ;;  %v7264_v45 = vadd.f32 %v13110_v57, %v7197_v0  ;;  %v7200_v19 = vmul.f32 %v13104_v59, %v14384_v39  ;;  %v7265_v5 = vadd.f32 %v13110_v57, %v7198_v4  ;;  %v7325_v62 = vmax.f32 %v7261_v38, 0.0  ;;  %v14392_v0 = vld [vmem:[#allocation258_spill] sm:$0xff]  ;;  %v14393_v4 = vld [vmem:[#allocation27_spill] sm:$0xff] }
 0xcf5   :  { %7381 = vst [vmem:[%s13504_s7 + $0x48] sm:$0xff] %v7317_v43  ;;  %v7201_v26 = vmul.f32 %v13104_v59, %v14385_v51  ;;  %v7266_v34 = vadd.f32 %v13110_v57, %v7199_v27  ;;  %v7326_v20 = vmax.f32 %v7262_v60, 0.0  ;;  %v7202_v53 = vmul.f32 %v13104_v59, %v14386_v17  ;;  %v14394_v27 = vld [vmem:[#allocation267_spill] sm:$0xff] }
 0xcf6   :  { %7382 = vst [vmem:[%s13504_s7 + $0x50] sm:$0xff] %v7318_v56  ;;  %v7267_v6 = vadd.f32 %v13110_v57, %v7200_v19  ;;  %v7327_v8 = vmax.f32 %v7263_v32, 0.0  ;;  %v7203_v23 = vmul.f32 %v13104_v59, %v14387_v48  ;;  %v7328_v12 = vmax.f32 %v7264_v45, 0.0  ;;  %v14395_v19 = vld [vmem:[#allocation11_spill] sm:$0xff] }
 0xcf7   :  { %7383 = vst [vmem:[%s13504_s7 + $0x58] sm:$0xff] %v7319_v28  ;;  %v7268_v43 = vadd.f32 %v13110_v57, %v7201_v26  ;;  %v7204_v30 = vmul.f32 %v13104_v59, %v14388_v52  ;;  %v7269_v56 = vadd.f32 %v13110_v57, %v7202_v53  ;;  %v7329_v37 = vmax.f32 %v7265_v5, 0.0  ;;  %v14396_v26 = vld [vmem:[#allocation136_spill] sm:$0xff]  ;;  %v14397_v53 = vld [vmem:[#allocation13_spill] sm:$0xff] }
 0xcf8   :  { %7384 = vst [vmem:[%s13504_s7 + $0x60] sm:$0xff] %v7320_v35  ;;  %v7205_v33 = vmul.f32 %v13104_v59, %v14389_v24  ;;  %v7270_v28 = vadd.f32 %v13110_v57, %v7203_v23  ;;  %v7330_v55 = vmax.f32 %v7266_v34, 0.0  ;;  %v7206_v50 = vmul.f32 %v13104_v59, %v14390_v14  ;;  %v14398_v23 = vld [vmem:[#allocation146_spill] sm:$0xff] }
 0xcf9   :  { %7385 = vst [vmem:[%s13504_s7 + $0x68] sm:$0xff] %v7321_v54  ;;  %v7271_v35 = vadd.f32 %v13110_v57, %v7204_v30  ;;  %v7331_v7 = vmax.f32 %v7267_v6, 0.0  ;;  %v7207_v38 = vmul.f32 %v13104_v59, %v14391_v3  ;;  %v7332_v22 = vmax.f32 %v7268_v43, 0.0  ;;  %v14399_v30 = vld [vmem:[#allocation262_spill] sm:$0xff] }
 0xcfa   :  { %7386 = vst [vmem:[%s13504_s7 + $0x70] sm:$0xff] %v7322_v47  ;;  %v7272_v54 = vadd.f32 %v13110_v57, %v7205_v33  ;;  %v7208_v60 = vmul.f32 %v13104_v59, %v14392_v0  ;;  %v7273_v47 = vadd.f32 %v13110_v57, %v7206_v50  ;;  %v7333_v42 = vmax.f32 %v7269_v56, 0.0  ;;  %v14400_v33 = vld [vmem:[#allocation31_spill] sm:$0xff] }
 0xcfb   :  { %7387 = vst [vmem:[%s13504_s7 + $0x78] sm:$0xff] %v7323_v41  ;;  %v7209_v32 = vmul.f32 %v13104_v59, %v14393_v4  ;;  %v7274_v41 = vadd.f32 %v13110_v57, %v7207_v38  ;;  %v7334_v11 = vmax.f32 %v7270_v28, 0.0  ;;  %v7210_v45 = vmul.f32 %v13104_v59, %v14394_v27  ;;  %v14401_v50 = vld [vmem:[#allocation271_spill] sm:$0xff]  ;;  %v14402_v38 = vld [vmem:[#allocation29_spill] sm:$0xff] }
 0xcfc   :  { %7388 = vst [vmem:[%s13504_s7 + $0x80] sm:$0xff] %v7324_v10  ;;  %v7275_v10 = vadd.f32 %v13110_v57, %v7208_v60  ;;  %v7335_v39 = vmax.f32 %v7271_v35, 0.0  ;;  %v7211_v5 = vmul.f32 %v13104_v59, %v14395_v19  ;;  %v7336_v51 = vmax.f32 %v7272_v54, 0.0  ;;  %v14403_v60 = vld [vmem:[#allocation140_spill] sm:$0xff] }
 0xcfd   :  { %7389 = vst [vmem:[%s13504_s7 + $0x88] sm:$0xff] %v7325_v62  ;;  %v7276_v62 = vadd.f32 %v13110_v57, %v7209_v32  ;;  %v7212_v34 = vmul.f32 %v13104_v59, %v14396_v26  ;;  %v7337_v17 = vmax.f32 %v7273_v47, 0.0  ;;  %v7213_v6 = vmul.f32 %v13104_v59, %v14397_v53  ;;  %v14404_v32 = vld [vmem:[#allocation30_spill] sm:$0xff] }
 0xcfe   :  { %7390 = vst [vmem:[%s13504_s7 + $0x90] sm:$0xff] %v7326_v20  ;;  %v7277_v20 = vadd.f32 %v13110_v57, %v7210_v45  ;;  %v7338_v48 = vmax.f32 %v7274_v41, 0.0  ;;  %v7214_v43 = vmul.f32 %v13104_v59, %v14398_v23  ;;  %v7339_v52 = vmax.f32 %v7275_v10, 0.0  ;;  %v14405_v45 = vld [vmem:[#allocation150_spill] sm:$0xff] }
 0xcff   :  { %7391 = vst [vmem:[%s13504_s7 + $0x98] sm:$0xff] %v7327_v8  ;;  %v7278_v8 = vadd.f32 %v13110_v57, %v7211_v5  ;;  %v7215_v56 = vmul.f32 %v13104_v59, %v14399_v30  ;;  %v7340_v24 = vmax.f32 %v7276_v62, 0.0  ;;  %v7216_v28 = vmul.f32 %v13104_v59, %v14400_v33 }
 0xd00   :  { %7392 = vst [vmem:[%s13504_s7 + $0xa0] sm:$0xff] %v7328_v12  ;;  %v7279_v12 = vadd.f32 %v13110_v57, %v7212_v34  ;;  %v7341_v14 = vmax.f32 %v7277_v20, 0.0  ;;  %v7217_v35 = vmul.f32 %v13104_v59, %v14401_v50  ;;  %v7218_v54 = vmul.f32 %v13104_v59, %v14402_v38 }
 0xd01   :  { %7393 = vst [vmem:[%s13504_s7 + $0xa8] sm:$0xff] %v7329_v37  ;;  %v7280_v37 = vadd.f32 %v13110_v57, %v7213_v6  ;;  %v7342_v3 = vmax.f32 %v7278_v8, 0.0  ;;  %v7219_v47 = vmul.f32 %v13104_v59, %v14403_v60  ;;  %v7220_v41 = vmul.f32 %v13104_v59, %v14404_v32 }
 0xd02   :  { %7394 = vst [vmem:[%s13504_s7 + $0xb0] sm:$0xff] %v7330_v55  ;;  %v7281_v55 = vadd.f32 %v13110_v57, %v7214_v43  ;;  %v7343_v0 = vmax.f32 %v7279_v12, 0.0  ;;  %v7221_v10 = vmul.f32 %v13104_v59, %v14405_v45  ;;  %v7222_v5 = vmul.f32 %v13104_v59, %v14325_v16 }
 0xd03   :  { %7395 = vst [vmem:[%s13504_s7 + $0xb8] sm:$0xff] %v7331_v7  ;;  %v7282_v7 = vadd.f32 %v13110_v57, %v7215_v56  ;;  %v7344_v4 = vmax.f32 %v7280_v37, 0.0  ;;  %v7287_v62 = vadd.f32 %v13110_v57, %v7220_v41  ;;  %v7223_v26 = vmul.f32 %v13104_v59, %v14333_v61 }
 0xd04   :  { %7396 = vst [vmem:[%s13504_s7 + $0xc0] sm:$0xff] %v7332_v22  ;;  %v7283_v22 = vadd.f32 %v13110_v57, %v7216_v28  ;;  %v7345_v27 = vmax.f32 %v7281_v55, 0.0  ;;  %v7288_v34 = vadd.f32 %v13110_v57, %v7221_v10  ;;  %v7224_v16 = vmul.f32 %v13104_v59, %v14339_v1 }
 0xd05   :  { %7397 = vst [vmem:[%s13504_s7 + $0xc8] sm:$0xff] %v7333_v42  ;;  %v7284_v42 = vadd.f32 %v13110_v57, %v7217_v35  ;;  %v7346_v19 = vmax.f32 %v7282_v7, 0.0  ;;  %v7225_v61 = vmul.f32 %v13104_v59, %v12716_v58  ;;  %v7290_v6 = vadd.f32 %v13110_v57, %v7223_v26 }
 0xd06   :  { %7398 = vst [vmem:[%s13504_s7 + $0xd0] sm:$0xff] %v7334_v11  ;;  %v7285_v11 = vadd.f32 %v13110_v57, %v7218_v54  ;;  %v7226_v1 = vmul.f32 %v13104_v59, %v14346_v9  ;;  %v7351_v23 = vmax.f32 %v7287_v62, 0.0  ;;  %v7227_v58 = vmul.f32 %v13104_v59, %v12764_v15 }
 0xd07   :  { %7399 = vst [vmem:[%s13504_s7 + $0xd8] sm:$0xff] %v7335_v39  ;;  %v7286_v39 = vadd.f32 %v13110_v57, %v7219_v47  ;;  %v7348_v20 = vmax.f32 %v7284_v42, 0.0  ;;  %v7292_v43 = vadd.f32 %v13110_v57, %v7225_v61  ;;  %v7352_v12 = vmax.f32 %v7288_v34, 0.0 }
 0xd08   :  { %7400 = vst [vmem:[%s13504_s7 + $0xe0] sm:$0xff] %v7336_v51  ;;  %v7347_v51 = vmax.f32 %v7283_v22, 0.0  ;;  %v7349_v53 = vmax.f32 %v7285_v11, 0.0  ;;  %v7228_v9 = vmul.f32 %v13104_v59, %v12789_v21  ;;  %v7229_v15 = vmul.f32 %v13104_v59, %v13005_v31 }
 0xd09   :  { %7401 = vst [vmem:[%s13504_s7 + $0xe8] sm:$0xff] %v7337_v17  ;;  %v7289_v17 = vadd.f32 %v13110_v57, %v7222_v5  ;;  %v7350_v8 = vmax.f32 %v7286_v39, 0.0  ;;  %v7294_v56 = vadd.f32 %v13110_v57, %v7227_v58  ;;  %v7354_v37 = vmax.f32 %v7290_v6, 0.0 }
 0xd0a   :  { %7402 = vst [vmem:[%s13504_s7 + $0xf0] sm:$0xff] %v7338_v48  ;;  %v7291_v48 = vadd.f32 %v13110_v57, %v7224_v16  ;;  %v7230_v21 = vmul.f32 %v13104_v59, %v13018_v2  ;;  %v7231_v31 = vmul.f32 %v13104_v59, %v13028_v63  ;;  %v7296_v28 = vadd.f32 %v13110_v57, %v7229_v15 }
 0xd0b   :  { %7403 = vst [vmem:[%s13504_s7 + $0xf8] sm:$0xff] %v7339_v52  ;;  %v7293_v52 = vadd.f32 %v13110_v57, %v7226_v1  ;;  %v7353_v30 = vmax.f32 %v7289_v17, 0.0  ;;  %v7356_v55 = vmax.f32 %v7292_v43, 0.0  ;;  %v7232_v2 = vmul.f32 %v13104_v59, %v13039_v18 }
 0xd0c   :  { %7404 = vst [vmem:[%s13504_s7 + $0x100] sm:$0xff] %v7340_v24  ;;  %v7295_v24 = vadd.f32 %v13110_v57, %v7228_v9  ;;  %v7355_v33 = vmax.f32 %v7291_v48, 0.0  ;;  %v7233_v63 = vmul.f32 %v13104_v59, %v13048_v29  ;;  %v7298_v35 = vadd.f32 %v13110_v57, %v7231_v31 }
 0xd0d   :  { %7405 = vst [vmem:[%s13504_s7 + $0x108] sm:$0xff] %v7341_v14  ;;  %v7297_v14 = vadd.f32 %v13110_v57, %v7230_v21  ;;  %v7357_v50 = vmax.f32 %v7293_v52, 0.0  ;;  %v7358_v7 = vmax.f32 %v7294_v56, 0.0  ;;  %v7234_v18 = vmul.f32 %v13104_v59, %v13057_v40 }
 0xd0e   :  { %7406 = vst [vmem:[%s13504_s7 + $0x110] sm:$0xff] %v7342_v3  ;;  %v7299_v3 = vadd.f32 %v13110_v57, %v7232_v2  ;;  %v7359_v38 = vmax.f32 %v7295_v24, 0.0  ;;  %v7235_v29 = vmul.f32 %v13104_v59, %v13066_v49  ;;  %v7300_v54 = vadd.f32 %v13110_v57, %v7233_v63 }
 0xd0f   :  { %7407 = vst [vmem:[%s13504_s7 + $0x118] sm:$0xff] %v7343_v0  ;;  %v7360_v22 = vmax.f32 %v7296_v28, 0.0  ;;  %v7236_v40 = vmul.f32 %v13104_v59, %v13075_v13  ;;  %v7301_v0 = vadd.f32 %v13110_v57, %v7234_v18  ;;  %v7361_v60 = vmax.f32 %v7297_v14, 0.0 }
 0xd10   :  { %7408 = vst [vmem:[%s13504_s7 + $0x120] sm:$0xff] %v7344_v4  ;;  %v7237_v49 = vmul.f32 %v13104_v59, %v13081_v44  ;;  %v7302_v47 = vadd.f32 %v13110_v57, %v7235_v29  ;;  %v7362_v42 = vmax.f32 %v7298_v35, 0.0  ;;  %v7238_v13 = vmul.f32 %v13104_v59, %v13086_v36 }
 0xd11   :  { %7409 = vst [vmem:[%s13504_s7 + $0x128] sm:$0xff] %v7345_v27  ;;  %v7303_v4 = vadd.f32 %v13110_v57, %v7236_v40  ;;  %v7363_v32 = vmax.f32 %v7299_v3, 0.0  ;;  %v7239_v44 = vmul.f32 %v13104_v59, %v13091_v46  ;;  %v7364_v11 = vmax.f32 %v7300_v54, 0.0 }
 0xd12   :  { %7410 = vst [vmem:[%s13504_s7 + $0x130] sm:$0xff] %v7346_v19  ;;  %v7304_v41 = vadd.f32 %v13110_v57, %v7237_v49  ;;  %v7305_v27 = vadd.f32 %v13110_v57, %v7238_v13  ;;  %v7365_v36 = vmax.f32 %v7301_v0, 0.0  ;;  %v7366_v10 = vmax.f32 %v7302_v47, 0.0 }
 0xd13   :  { %7411 = vst [vmem:[%s13504_s7 + $0x138] sm:$0xff] %v7347_v51  ;;  %v7306_v45 = vadd.f32 %v13110_v57, %v7239_v44  ;;  %v7367_v46 = vmax.f32 %v7303_v4, 0.0  ;;  %v7371_v19 = vmax.f32 %v13137_v25, 0.0 }
 0xd14   :  { %7412 = vst [vmem:[%s13504_s7 + $0x140] sm:$0xff] %v7348_v20  ;;  %v7368_v59 = vmax.f32 %v7304_v41, 0.0  ;;  %v7369_v39 = vmax.f32 %v7305_v27, 0.0 }
 0xd15   :  { %7413 = vst [vmem:[%s13504_s7 + $0x148] sm:$0xff] %v7349_v53  ;;  %v7370_v57 = vmax.f32 %v7306_v45, 0.0 }
 0xd16   :  { %7414 = vst [vmem:[%s13504_s7 + $0x150] sm:$0xff] %v7350_v8 }
 0xd17   :  { %7415 = vst [vmem:[%s13504_s7 + $0x158] sm:$0xff] %v7351_v23 }
 0xd18   :  { %7416 = vst [vmem:[%s13504_s7 + $0x160] sm:$0xff] %v7352_v12 }
 0xd19   :  { %7417 = vst [vmem:[%s13504_s7 + $0x168] sm:$0xff] %v7353_v30 }
 0xd1a   :  { %7418 = vst [vmem:[%s13504_s7 + $0x170] sm:$0xff] %v7354_v37 }
 0xd1b   :  { %7419 = vst [vmem:[%s13504_s7 + $0x178] sm:$0xff] %v7355_v33 }
 0xd1c   :  { %7420 = vst [vmem:[%s13504_s7 + $0x180] sm:$0xff] %v7356_v55 }
 0xd1d   :  { %7421 = vst [vmem:[%s13504_s7 + $0x188] sm:$0xff] %v7357_v50 }
 0xd1e   :  { %7422 = vst [vmem:[%s13504_s7 + $0x190] sm:$0xff] %v7358_v7 }
 0xd1f   :  { %7423 = vst [vmem:[%s13504_s7 + $0x198] sm:$0xff] %v7359_v38 }
 0xd20   :  { %7424 = vst [vmem:[%s13504_s7 + $0x1a0] sm:$0xff] %v7360_v22 }
 0xd21   :  { %7425 = vst [vmem:[%s13504_s7 + $0x1a8] sm:$0xff] %v7361_v60 }
 0xd22   :  { %7426 = vst [vmem:[%s13504_s7 + $0x1b0] sm:$0xff] %v7362_v42 }
 0xd23   :  { %7427 = vst [vmem:[%s13504_s7 + $0x1b8] sm:$0xff] %v7363_v32 }
 0xd24   :  { %7428 = vst [vmem:[%s13504_s7 + $0x1c0] sm:$0xff] %v7364_v11 }
 0xd25   :  { %7429 = vst [vmem:[%s13504_s7 + $0x1c8] sm:$0xff] %v7365_v36 }
 0xd26   :  { %7430 = vst [vmem:[%s13504_s7 + $0x1d0] sm:$0xff] %v7366_v10 }
 0xd27   :  { %7431 = vst [vmem:[%s13504_s7 + $0x1d8] sm:$0xff] %v7367_v46 }
 0xd28   :  { %7432 = vst [vmem:[%s13504_s7 + $0x1e0] sm:$0xff] %v7368_v59 }
 0xd29   :  { %7433 = vst [vmem:[%s13504_s7 + $0x1e8] sm:$0xff] %v7369_v39 }
 0xd2a   :  { %7434 = vst [vmem:[%s13504_s7 + $0x1f0] sm:$0xff] %v7370_v57 }
 0xd2b   :  { %7435 = vst [vmem:[%s13504_s7 + $0x1f8] sm:$0xff] %v7371_v19 }

</bundles_post_ra>
